<compile_context>
chip_gen: v5e
topology: v5e:2x2
jax: 0.10.0
libtpu: 0.0.40
codegen_flags: <defaults>
</compile_context>

<pallas_src>
import jax
import jax.numpy as jnp
from jax.experimental import pallas as pl
from jax.experimental.pallas import tpu as pltpu

HIDDEN = 50           # hidden_size (PyTorch)
HIDDEN_PAD = 128      # lane-padded hidden (dense MXU RHS / output store); sliced back to 50
B = 2                 # batch
H = 8                 # rows (conv kernel height is 1 -> rows independent)
L = 1945              # max_length, chosen so the flattened feature size is exactly 3712

# Widths after each stage (all "valid", stride 2 along W).
W1 = (L - 5) // 2 + 1     # conv1 -> 971
P1 = (W1 - 3) // 2 + 1    # pool1 -> 485
W2 = (P1 - 5) // 2 + 1    # conv2 -> 241
P2 = (W2 - 3) // 2 + 1    # pool2 -> 120
W3 = (P2 - 4) // 2 + 1    # conv3 -> 59
P3 = (W3 - 3) // 2 + 1    # pool3 -> 29
FLAT = 16 * H * P3        # 3712, must match nn.Linear(3712, hidden_size)
assert FLAT == 3712

HC1 = 4 * H               # 32  lanes after conv1
HC2 = 8 * H               # 64  lanes after conv2
HC3 = 16 * H              # 128 lanes after conv3


# --------------------------- Pallas kernel -----------------------------------

def _conv_relu_s2(in_ref, w_ref, b_ref, out_ref):
  """Valid 1-D conv (stride 2 along W, rows packed on lanes) + bias + ReLU.

  in_ref : (W_in, H*C_in)                 lane = h*C_in + ci
  w_ref  : (K*H*C_in, H*C_out)            rows k*H*C_in + h*C_in + ci, block-diagonal over h
  b_ref  : (1, H*C_out)                   bias tiled over rows
  out_ref: (W_out, H*C_out)               lane = h*C_out + co

  im2col along lanes + ONE MXU dot per stage (K-tap accumulation inside the MXU).
  """
  W_out = out_ref.shape[0]
  hc_in = in_ref.shape[1]
  K = w_ref.shape[0] // hc_in
  # K strided sublane views, placed side-by-side on the lane axis: (W_out, K*H*C_in).
  cols = [in_ref[pl.ds(k, W_out, stride=2), :] for k in range(K)]
  x_im = jnp.concatenate(cols, axis=1)
  acc = jnp.dot(x_im, w_ref[...], preferred_element_type=jnp.float32)   # single MXU dot
  out_ref[...] = jnp.maximum(acc + b_ref[...], 0.0)


def _maxpool3_s2(in_ref, out_ref):
  """Max-pool window 3, stride 2 along W.  in_ref: (W_in, C)  out_ref: (W_out, C)."""
  W_out = out_ref.shape[0]
  a = in_ref[pl.ds(0, W_out, stride=2), :]
  b = in_ref[pl.ds(1, W_out, stride=2), :]
  c = in_ref[pl.ds(2, W_out, stride=2), :]
  out_ref[...] = jnp.maximum(jnp.maximum(a, b), c)


def cnn_kernel(x_ref, w1, b1, w2, b2, w3, b3, fw_ref, fb_ref, o_ref,
               s1, p1, s2, p2, s3, p3):
  # One sample per grid step.  x_ref: (L, H) with lane = h (C_in = 1).
  _conv_relu_s2(x_ref, w1, b1, s1)    # (1945, 8)   -> (971, 32)   K=40
  _maxpool3_s2(s1, p1)                # (971, 32)   -> (485, 32)
  _conv_relu_s2(p1, w2, b2, s2)       # (485, 32)   -> (241, 64)   K=160
  _maxpool3_s2(s2, p2)                # (241, 64)   -> (120, 64)
  _conv_relu_s2(p2, w3, b3, s3)       # (120, 64)   -> (59, 128)   K=256
  _maxpool3_s2(s3, p3)                # (59, 128)   -> (29, 128)

  # Fused fc1 + ReLU epilogue as ONE dot:
  #   flatten p3 (29, 128) along lanes -> (1, 3712); offsets are multiples of 128 so the
  #   concat is lane-aligned.  fw was pre-permuted offline so its rows follow this
  #   (w, h, c) order; HIDDEN is lane-padded to 128.
  flat = jnp.concatenate([p3[pl.ds(w, 1), :] for w in range(P3)], axis=1)   # (1, FLAT)
  acc = jnp.dot(flat, fw_ref[...], preferred_element_type=jnp.float32)      # (1, 128)
  o_ref[...] = jnp.maximum(acc + fb_ref[...], 0.0)


# --------------------------- wrapper ------------------------------------------

def _full_spec(a):
  shape = a.shape
  return pl.BlockSpec(shape, lambda *_: (0,) * len(shape))


def cnn_forward(x, params):
  """x: (B, 1, H, L) float32 NCHW, exactly like the PyTorch module."""
  (wc1, bc1, wc2, bc2, wc3, bc3, fwk, fbk) = params
  Bn = x.shape[0]
  # (B, 1, H, L) -> (B, L, H): W on sublanes, rows on lanes (cheap one-off XLA transpose).
  x_t = jnp.transpose(x[:, 0, :, :], (0, 2, 1))

  out = pl.pallas_call(
      cnn_kernel,
      out_shape=jax.ShapeDtypeStruct((Bn, 1, HIDDEN_PAD), jnp.float32),
      grid=(Bn,),
      in_specs=[
          pl.BlockSpec((None, L, H), lambda b: (b, 0, 0)),
          # Constant index maps -> weights are DMA'd once and stay VMEM-resident.
          _full_spec(wc1), _full_spec(bc1),
          _full_spec(wc2), _full_spec(bc2),
          _full_spec(wc3), _full_spec(bc3),
          _full_spec(fwk), _full_spec(fbk),
      ],
      out_specs=pl.BlockSpec((None, 1, HIDDEN_PAD), lambda b: (b, 0, 0)),
      scratch_shapes=[
          pltpu.VMEM((W1, HC1), jnp.float32),
          pltpu.VMEM((P1, HC1), jnp.float32),
          pltpu.VMEM((W2, HC2), jnp.float32),
          pltpu.VMEM((P2, HC2), jnp.float32),
          pltpu.VMEM((W3, HC3), jnp.float32),
          pltpu.VMEM((P3, HC3), jnp.float32),
      ],
      compiler_params=pltpu.CompilerParams(dimension_semantics=("parallel",)),
  )(x_t, wc1, bc1, wc2, bc2, wc3, bc3, fwk, fbk)
  return out[:, 0, :HIDDEN]                       # slice the lane padding back to 50


# --------------------------- params & reference -------------------------------

def init_params_torch_layout(key):
  """Deterministic params, PyTorch-default-like U(-1/sqrt(fan_in), +1/sqrt(fan_in))."""
  ks = jax.random.split(key, 8)
  def u(k, shape, fan_in):
    bound = 1.0 / float(fan_in) ** 0.5
    return jax.random.uniform(k, shape, jnp.float32, -bound, bound)
  w1 = u(ks[0], (4, 1, 1, 5), 1 * 1 * 5);   b1 = u(ks[1], (4,),  1 * 1 * 5)
  w2 = u(ks[2], (8, 4, 1, 5), 4 * 1 * 5);   b2 = u(ks[3], (8,),  4 * 1 * 5)
  w3 = u(ks[4], (16, 8, 1, 4), 8 * 1 * 4);  b3 = u(ks[5], (16,), 8 * 1 * 4)
  fw = u(ks[6], (HIDDEN, FLAT), FLAT);      fb = u(ks[7], (HIDDEN,), FLAT)
  return (w1, b1, w2, b2, w3, b3, fw, fb)


def to_kernel_params(pt):
  """Convert PyTorch-layout params to the kernel's block-diagonal / permuted layout."""
  (w1, b1, w2, b2, w3, b3, fw, fb) = pt

  def conv_block_diag(w):
    # (C_out, C_in, 1, K) -> (K*H*C_in, H*C_out), block-diagonal over the H rows.
    co, ci, _, k = w.shape
    wk = jnp.transpose(w[:, :, 0, :], (2, 1, 0))            # (K, C_in, C_out)
    eye = jnp.eye(H, dtype=w.dtype)                          # (H, H)
    blk = jnp.einsum('hg,kio->khigo', eye, wk)               # (K, H, C_in, H, C_out)
    return blk.reshape(k * H * ci, H * co)

  def bias_tile(b):
    return jnp.tile(b, H)[None, :]                           # (1, H*C_out), lane = h*C_out + co

  # fc1 weight: kernel lane layout at the epilogue is flat index w*128 + h*16 + c,
  # PyTorch's .view(-1, 3712) flattens (c, h, w).  Fold the permutation into fw offline,
  # then pad HIDDEN 50 -> 128 lanes (zero columns) for a lane-dense RHS / output.
  fwt = fw.reshape(HIDDEN, 16, H, P3)                        # [n, c, h, w]
  fwk = jnp.transpose(fwt, (3, 2, 1, 0)).reshape(FLAT, HIDDEN)   # rows = w*128 + h*16 + c
  fwk = jnp.pad(fwk, ((0, 0), (0, HIDDEN_PAD - HIDDEN)))         # (FLAT, 128)
  fbk = jnp.pad(fb, (0, HIDDEN_PAD - HIDDEN))[None, :]           # (1, 128)
  return (conv_block_diag(w1), bias_tile(b1),
          conv_block_diag(w2), bias_tile(b2),
          conv_block_diag(w3), bias_tile(b3),
          fwk, fbk)


def reference_forward(x, pt):
  (w1, b1, w2, b2, w3, b3, fw, fb) = pt
  def conv(y, w, b):
    out = jax.lax.conv_general_dilated(
        y, w, window_strides=(1, 2), padding="VALID",
        dimension_numbers=("NCHW", "OIHW", "NCHW"),
        precision=jax.lax.Precision.HIGHEST)
    return out + b[None, :, None, None]
  def pool(y):
    return jax.lax.reduce_window(y, -jnp.inf, jax.lax.max,
                                 (1, 1, 1, 3), (1, 1, 1, 2), "VALID")
  y = pool(jax.nn.relu(conv(x, w1, b1)))
  y = pool(jax.nn.relu(conv(y, w2, b2)))
  y = pool(jax.nn.relu(conv(y, w3, b3)))
  flat = y.reshape(-1, FLAT)
  return jax.nn.relu(
      jnp.dot(flat, fw.T, precision=jax.lax.Precision.HIGHEST) + fb[None, :])


if __name__ == "__main__":
  key = jax.random.PRNGKey(0)
  kx, kp = jax.random.split(key)
  x = jax.random.normal(kx, (B, 1, H, L), jnp.float32)   # NCHW, like the PyTorch module
  pt_params = init_params_torch_layout(kp)
  k_params = to_kernel_params(pt_params)

  out = jax.block_until_ready(jax.jit(cnn_forward)(x, k_params))
  assert out.shape == (B, HIDDEN) and out.dtype == jnp.float32

  ref = jax.block_until_ready(reference_forward(x, pt_params))
  max_err = float(jnp.max(jnp.abs(out - ref)))
  assert max_err < 2e-3, f"kernel/reference mismatch: max |diff| = {max_err}"

  print("KERNEL_OK")
</pallas_src>

<mosaic_0001>
module attributes {stable_mosaic.version = 11 : i64} {
  func.func @cnn_kernel(%arg0: i32, %arg1: memref<1x1945x8xf32, #tpu.memory_space<vmem>>, %arg2: memref<40x32xf32, #tpu.memory_space<vmem>>, %arg3: memref<1x32xf32, #tpu.memory_space<vmem>>, %arg4: memref<160x64xf32, #tpu.memory_space<vmem>>, %arg5: memref<1x64xf32, #tpu.memory_space<vmem>>, %arg6: memref<256x128xf32, #tpu.memory_space<vmem>>, %arg7: memref<1x128xf32, #tpu.memory_space<vmem>>, %arg8: memref<3712x128xf32, #tpu.memory_space<vmem>>, %arg9: memref<1x128xf32, #tpu.memory_space<vmem>>, %arg10: memref<1x1x128xf32, #tpu.memory_space<vmem>>, %arg11: memref<971x32xf32, #tpu.memory_space<vmem>>, %arg12: memref<485x32xf32, #tpu.memory_space<vmem>>, %arg13: memref<241x64xf32, #tpu.memory_space<vmem>>, %arg14: memref<120x64xf32, #tpu.memory_space<vmem>>, %arg15: memref<59x128xf32, #tpu.memory_space<vmem>>, %arg16: memref<29x128xf32, #tpu.memory_space<vmem>>) attributes {dimension_semantics = [#tpu.dimension_semantics<parallel>], iteration_bounds = array<i64: 2>, scalar_prefetch = 0 : i64, scratch_operands = 6 : i64, tpu.core_type = #tpu.core_type<tc>, window_params = [{transform_indices = @transform_0, window_bounds = array<i64: 1, 1945, 8>}, {pipeline_mode = #tpu.pipeline_mode<synchronous>, transform_indices = @transform_1, window_bounds = array<i64: 40, 32>}, {pipeline_mode = #tpu.pipeline_mode<synchronous>, transform_indices = @transform_2, window_bounds = array<i64: 1, 32>}, {pipeline_mode = #tpu.pipeline_mode<synchronous>, transform_indices = @transform_3, window_bounds = array<i64: 160, 64>}, {pipeline_mode = #tpu.pipeline_mode<synchronous>, transform_indices = @transform_4, window_bounds = array<i64: 1, 64>}, {pipeline_mode = #tpu.pipeline_mode<synchronous>, transform_indices = @transform_5, window_bounds = array<i64: 256, 128>}, {pipeline_mode = #tpu.pipeline_mode<synchronous>, transform_indices = @transform_6, window_bounds = array<i64: 1, 128>}, {pipeline_mode = #tpu.pipeline_mode<synchronous>, transform_indices = @transform_7, window_bounds = array<i64: 3712, 128>}, {pipeline_mode = #tpu.pipeline_mode<synchronous>, transform_indices = @transform_8, window_bounds = array<i64: 1, 128>}, {transform_indices = @transform_9, window_bounds = array<i64: 1, 1, 128>}]} {
    %c0 = arith.constant 0 : index
    %c0_0 = arith.constant 0 : index
    %c0_1 = arith.constant 0 : index
    %0 = tpu.strided_load %arg1[%c0, %c0_0, %c0_1] {strides = array<i32: 1, 2, 1>} : memref<1x1945x8xf32, #tpu.memory_space<vmem>>, vector<1x971x8xf32>
    %1 = vector.shape_cast %0 : vector<1x971x8xf32> to vector<971x8xf32>
    %c0_2 = arith.constant 0 : index
    %c1 = arith.constant 1 : index
    %c0_3 = arith.constant 0 : index
    %2 = tpu.strided_load %arg1[%c0_2, %c1, %c0_3] {strides = array<i32: 1, 2, 1>} : memref<1x1945x8xf32, #tpu.memory_space<vmem>>, vector<1x971x8xf32>
    %3 = vector.shape_cast %2 : vector<1x971x8xf32> to vector<971x8xf32>
    %c0_4 = arith.constant 0 : index
    %c2 = arith.constant 2 : index
    %c0_5 = arith.constant 0 : index
    %4 = tpu.strided_load %arg1[%c0_4, %c2, %c0_5] {strides = array<i32: 1, 2, 1>} : memref<1x1945x8xf32, #tpu.memory_space<vmem>>, vector<1x971x8xf32>
    %5 = vector.shape_cast %4 : vector<1x971x8xf32> to vector<971x8xf32>
    %c0_6 = arith.constant 0 : index
    %c3 = arith.constant 3 : index
    %c0_7 = arith.constant 0 : index
    %6 = tpu.strided_load %arg1[%c0_6, %c3, %c0_7] {strides = array<i32: 1, 2, 1>} : memref<1x1945x8xf32, #tpu.memory_space<vmem>>, vector<1x971x8xf32>
    %7 = vector.shape_cast %6 : vector<1x971x8xf32> to vector<971x8xf32>
    %c0_8 = arith.constant 0 : index
    %c4 = arith.constant 4 : index
    %c0_9 = arith.constant 0 : index
    %8 = tpu.strided_load %arg1[%c0_8, %c4, %c0_9] {strides = array<i32: 1, 2, 1>} : memref<1x1945x8xf32, #tpu.memory_space<vmem>>, vector<1x971x8xf32>
    %9 = vector.shape_cast %8 : vector<1x971x8xf32> to vector<971x8xf32>
    %10 = tpu.concatenate %1, %3, %5, %7, %9 in 1 : vector<971x8xf32>, vector<971x8xf32>, vector<971x8xf32>, vector<971x8xf32>, vector<971x8xf32> -> vector<971x40xf32>
    %c0_10 = arith.constant 0 : index
    %c0_11 = arith.constant 0 : index
    %11 = vector.load %arg2[%c0_10, %c0_11] : memref<40x32xf32, #tpu.memory_space<vmem>>, vector<40x32xf32>
    %cst = arith.constant dense<0.000000e+00> : vector<971x32xf32>
    %12 = tpu.matmul %10, %11, %cst {dimension_numbers = #tpu.dot_dimension_numbers<[1], [0], [0], [1], [0, 0, 1, 1], [], []>} : vector<971x40xf32>, vector<40x32xf32>, vector<971x32xf32> -> vector<971x32xf32>
    %c0_12 = arith.constant 0 : index
    %c0_13 = arith.constant 0 : index
    %13 = vector.load %arg3[%c0_12, %c0_13] : memref<1x32xf32, #tpu.memory_space<vmem>>, vector<1x32xf32>
    %14 = vector.broadcast %13 : vector<1x32xf32> to vector<971x32xf32>
    %15 = arith.addf %12, %14 : vector<971x32xf32>
    %cst_14 = arith.constant 0.000000e+00 : f32
    %16 = vector.broadcast %cst_14 : f32 to vector<971x32xf32>
    %17 = arith.maximumf %15, %16 : vector<971x32xf32>
    %c0_15 = arith.constant 0 : index
    %c0_16 = arith.constant 0 : index
    %18 = vector.load %arg11[%c0_15, %c0_16] : memref<971x32xf32, #tpu.memory_space<vmem>>, vector<971x32xf32>
    tpu.vector_store %arg11[%c0_15, %c0_16], %17 {strides = array<i32>} : memref<971x32xf32, #tpu.memory_space<vmem>>, vector<971x32xf32>,
    %c0_17 = arith.constant 0 : index
    %c0_18 = arith.constant 0 : index
    %19 = tpu.strided_load %arg11[%c0_17, %c0_18] {strides = array<i32: 2, 1>} : memref<971x32xf32, #tpu.memory_space<vmem>>, vector<485x32xf32>
    %c1_19 = arith.constant 1 : index
    %c0_20 = arith.constant 0 : index
    %20 = tpu.strided_load %arg11[%c1_19, %c0_20] {strides = array<i32: 2, 1>} : memref<971x32xf32, #tpu.memory_space<vmem>>, vector<485x32xf32>
    %c2_21 = arith.constant 2 : index
    %c0_22 = arith.constant 0 : index
    %21 = tpu.strided_load %arg11[%c2_21, %c0_22] {strides = array<i32: 2, 1>} : memref<971x32xf32, #tpu.memory_space<vmem>>, vector<485x32xf32>
    %22 = arith.maximumf %19, %20 : vector<485x32xf32>
    %23 = arith.maximumf %22, %21 : vector<485x32xf32>
    %c0_23 = arith.constant 0 : index
    %c0_24 = arith.constant 0 : index
    %24 = vector.load %arg12[%c0_23, %c0_24] : memref<485x32xf32, #tpu.memory_space<vmem>>, vector<485x32xf32>
    tpu.vector_store %arg12[%c0_23, %c0_24], %23 {strides = array<i32>} : memref<485x32xf32, #tpu.memory_space<vmem>>, vector<485x32xf32>,
    %c0_25 = arith.constant 0 : index
    %c0_26 = arith.constant 0 : index
    %25 = tpu.strided_load %arg12[%c0_25, %c0_26] {strides = array<i32: 2, 1>} : memref<485x32xf32, #tpu.memory_space<vmem>>, vector<241x32xf32>
    %c1_27 = arith.constant 1 : index
    %c0_28 = arith.constant 0 : index
    %26 = tpu.strided_load %arg12[%c1_27, %c0_28] {strides = array<i32: 2, 1>} : memref<485x32xf32, #tpu.memory_space<vmem>>, vector<241x32xf32>
    %c2_29 = arith.constant 2 : index
    %c0_30 = arith.constant 0 : index
    %27 = tpu.strided_load %arg12[%c2_29, %c0_30] {strides = array<i32: 2, 1>} : memref<485x32xf32, #tpu.memory_space<vmem>>, vector<241x32xf32>
    %c3_31 = arith.constant 3 : index
    %c0_32 = arith.constant 0 : index
    %28 = tpu.strided_load %arg12[%c3_31, %c0_32] {strides = array<i32: 2, 1>} : memref<485x32xf32, #tpu.memory_space<vmem>>, vector<241x32xf32>
    %c4_33 = arith.constant 4 : index
    %c0_34 = arith.constant 0 : index
    %29 = tpu.strided_load %arg12[%c4_33, %c0_34] {strides = array<i32: 2, 1>} : memref<485x32xf32, #tpu.memory_space<vmem>>, vector<241x32xf32>
    %30 = tpu.concatenate %25, %26, %27, %28, %29 in 1 : vector<241x32xf32>, vector<241x32xf32>, vector<241x32xf32>, vector<241x32xf32>, vector<241x32xf32> -> vector<241x160xf32>
    %c0_35 = arith.constant 0 : index
    %c0_36 = arith.constant 0 : index
    %31 = vector.load %arg4[%c0_35, %c0_36] : memref<160x64xf32, #tpu.memory_space<vmem>>, vector<160x64xf32>
    %cst_37 = arith.constant dense<0.000000e+00> : vector<241x64xf32>
    %32 = tpu.matmul %30, %31, %cst_37 {dimension_numbers = #tpu.dot_dimension_numbers<[1], [0], [0], [1], [0, 0, 1, 1], [], []>} : vector<241x160xf32>, vector<160x64xf32>, vector<241x64xf32> -> vector<241x64xf32>
    %c0_38 = arith.constant 0 : index
    %c0_39 = arith.constant 0 : index
    %33 = vector.load %arg5[%c0_38, %c0_39] : memref<1x64xf32, #tpu.memory_space<vmem>>, vector<1x64xf32>
    %34 = vector.broadcast %33 : vector<1x64xf32> to vector<241x64xf32>
    %35 = arith.addf %32, %34 : vector<241x64xf32>
    %cst_40 = arith.constant 0.000000e+00 : f32
    %36 = vector.broadcast %cst_40 : f32 to vector<241x64xf32>
    %37 = arith.maximumf %35, %36 : vector<241x64xf32>
    %c0_41 = arith.constant 0 : index
    %c0_42 = arith.constant 0 : index
    %38 = vector.load %arg13[%c0_41, %c0_42] : memref<241x64xf32, #tpu.memory_space<vmem>>, vector<241x64xf32>
    tpu.vector_store %arg13[%c0_41, %c0_42], %37 {strides = array<i32>} : memref<241x64xf32, #tpu.memory_space<vmem>>, vector<241x64xf32>,
    %c0_43 = arith.constant 0 : index
    %c0_44 = arith.constant 0 : index
    %39 = tpu.strided_load %arg13[%c0_43, %c0_44] {strides = array<i32: 2, 1>} : memref<241x64xf32, #tpu.memory_space<vmem>>, vector<120x64xf32>
    %c1_45 = arith.constant 1 : index
    %c0_46 = arith.constant 0 : index
    %40 = tpu.strided_load %arg13[%c1_45, %c0_46] {strides = array<i32: 2, 1>} : memref<241x64xf32, #tpu.memory_space<vmem>>, vector<120x64xf32>
    %c2_47 = arith.constant 2 : index
    %c0_48 = arith.constant 0 : index
    %41 = tpu.strided_load %arg13[%c2_47, %c0_48] {strides = array<i32: 2, 1>} : memref<241x64xf32, #tpu.memory_space<vmem>>, vector<120x64xf32>
    %42 = arith.maximumf %39, %40 : vector<120x64xf32>
    %43 = arith.maximumf %42, %41 : vector<120x64xf32>
    %c0_49 = arith.constant 0 : index
    %c0_50 = arith.constant 0 : index
    %44 = vector.load %arg14[%c0_49, %c0_50] : memref<120x64xf32, #tpu.memory_space<vmem>>, vector<120x64xf32>
    tpu.vector_store %arg14[%c0_49, %c0_50], %43 {strides = array<i32>} : memref<120x64xf32, #tpu.memory_space<vmem>>, vector<120x64xf32>,
    %c0_51 = arith.constant 0 : index
    %c0_52 = arith.constant 0 : index
    %45 = tpu.strided_load %arg14[%c0_51, %c0_52] {strides = array<i32: 2, 1>} : memref<120x64xf32, #tpu.memory_space<vmem>>, vector<59x64xf32>
    %c1_53 = arith.constant 1 : index
    %c0_54 = arith.constant 0 : index
    %46 = tpu.strided_load %arg14[%c1_53, %c0_54] {strides = array<i32: 2, 1>} : memref<120x64xf32, #tpu.memory_space<vmem>>, vector<59x64xf32>
    %c2_55 = arith.constant 2 : index
    %c0_56 = arith.constant 0 : index
    %47 = tpu.strided_load %arg14[%c2_55, %c0_56] {strides = array<i32: 2, 1>} : memref<120x64xf32, #tpu.memory_space<vmem>>, vector<59x64xf32>
    %c3_57 = arith.constant 3 : index
    %c0_58 = arith.constant 0 : index
    %48 = tpu.strided_load %arg14[%c3_57, %c0_58] {strides = array<i32: 2, 1>} : memref<120x64xf32, #tpu.memory_space<vmem>>, vector<59x64xf32>
    %49 = tpu.concatenate %45, %46, %47, %48 in 1 : vector<59x64xf32>, vector<59x64xf32>, vector<59x64xf32>, vector<59x64xf32> -> vector<59x256xf32>
    %c0_59 = arith.constant 0 : index
    %c0_60 = arith.constant 0 : index
    %50 = vector.load %arg6[%c0_59, %c0_60] : memref<256x128xf32, #tpu.memory_space<vmem>>, vector<256x128xf32>
    %cst_61 = arith.constant dense<0.000000e+00> : vector<59x128xf32>
    %51 = tpu.matmul %49, %50, %cst_61 {dimension_numbers = #tpu.dot_dimension_numbers<[1], [0], [0], [1], [0, 0, 1, 1], [], []>} : vector<59x256xf32>, vector<256x128xf32>, vector<59x128xf32> -> vector<59x128xf32>
    %c0_62 = arith.constant 0 : index
    %c0_63 = arith.constant 0 : index
    %52 = vector.load %arg7[%c0_62, %c0_63] : memref<1x128xf32, #tpu.memory_space<vmem>>, vector<1x128xf32>
    %53 = vector.broadcast %52 : vector<1x128xf32> to vector<59x128xf32>
    %54 = arith.addf %51, %53 : vector<59x128xf32>
    %cst_64 = arith.constant 0.000000e+00 : f32
    %55 = vector.broadcast %cst_64 : f32 to vector<59x128xf32>
    %56 = arith.maximumf %54, %55 : vector<59x128xf32>
    %c0_65 = arith.constant 0 : index
    %c0_66 = arith.constant 0 : index
    %57 = vector.load %arg15[%c0_65, %c0_66] : memref<59x128xf32, #tpu.memory_space<vmem>>, vector<59x128xf32>
    tpu.vector_store %arg15[%c0_65, %c0_66], %56 {strides = array<i32>} : memref<59x128xf32, #tpu.memory_space<vmem>>, vector<59x128xf32>,
    %c0_67 = arith.constant 0 : index
    %c0_68 = arith.constant 0 : index
    %58 = tpu.strided_load %arg15[%c0_67, %c0_68] {strides = array<i32: 2, 1>} : memref<59x128xf32, #tpu.memory_space<vmem>>, vector<29x128xf32>
    %c1_69 = arith.constant 1 : index
    %c0_70 = arith.constant 0 : index
    %59 = tpu.strided_load %arg15[%c1_69, %c0_70] {strides = array<i32: 2, 1>} : memref<59x128xf32, #tpu.memory_space<vmem>>, vector<29x128xf32>
    %c2_71 = arith.constant 2 : index
    %c0_72 = arith.constant 0 : index
    %60 = tpu.strided_load %arg15[%c2_71, %c0_72] {strides = array<i32: 2, 1>} : memref<59x128xf32, #tpu.memory_space<vmem>>, vector<29x128xf32>
    %61 = arith.maximumf %58, %59 : vector<29x128xf32>
    %62 = arith.maximumf %61, %60 : vector<29x128xf32>
    %c0_73 = arith.constant 0 : index
    %c0_74 = arith.constant 0 : index
    %63 = vector.load %arg16[%c0_73, %c0_74] : memref<29x128xf32, #tpu.memory_space<vmem>>, vector<29x128xf32>
    tpu.vector_store %arg16[%c0_73, %c0_74], %62 {strides = array<i32>} : memref<29x128xf32, #tpu.memory_space<vmem>>, vector<29x128xf32>,
    %c0_75 = arith.constant 0 : index
    %c0_76 = arith.constant 0 : index
    %64 = vector.load %arg16[%c0_75, %c0_76] : memref<29x128xf32, #tpu.memory_space<vmem>>, vector<1x128xf32>
    %c1_77 = arith.constant 1 : index
    %c0_78 = arith.constant 0 : index
    %65 = vector.load %arg16[%c1_77, %c0_78] : memref<29x128xf32, #tpu.memory_space<vmem>>, vector<1x128xf32>
    %c2_79 = arith.constant 2 : index
    %c0_80 = arith.constant 0 : index
    %66 = vector.load %arg16[%c2_79, %c0_80] : memref<29x128xf32, #tpu.memory_space<vmem>>, vector<1x128xf32>
    %c3_81 = arith.constant 3 : index
    %c0_82 = arith.constant 0 : index
    %67 = vector.load %arg16[%c3_81, %c0_82] : memref<29x128xf32, #tpu.memory_space<vmem>>, vector<1x128xf32>
    %c4_83 = arith.constant 4 : index
    %c0_84 = arith.constant 0 : index
    %68 = vector.load %arg16[%c4_83, %c0_84] : memref<29x128xf32, #tpu.memory_space<vmem>>, vector<1x128xf32>
    %c5 = arith.constant 5 : index
    %c0_85 = arith.constant 0 : index
    %69 = vector.load %arg16[%c5, %c0_85] : memref<29x128xf32, #tpu.memory_space<vmem>>, vector<1x128xf32>
    %c6 = arith.constant 6 : index
    %c0_86 = arith.constant 0 : index
    %70 = vector.load %arg16[%c6, %c0_86] : memref<29x128xf32, #tpu.memory_space<vmem>>, vector<1x128xf32>
    %c7 = arith.constant 7 : index
    %c0_87 = arith.constant 0 : index
    %71 = vector.load %arg16[%c7, %c0_87] : memref<29x128xf32, #tpu.memory_space<vmem>>, vector<1x128xf32>
    %c8 = arith.constant 8 : index
    %c0_88 = arith.constant 0 : index
    %72 = vector.load %arg16[%c8, %c0_88] : memref<29x128xf32, #tpu.memory_space<vmem>>, vector<1x128xf32>
    %c9 = arith.constant 9 : index
    %c0_89 = arith.constant 0 : index
    %73 = vector.load %arg16[%c9, %c0_89] : memref<29x128xf32, #tpu.memory_space<vmem>>, vector<1x128xf32>
    %c10 = arith.constant 10 : index
    %c0_90 = arith.constant 0 : index
    %74 = vector.load %arg16[%c10, %c0_90] : memref<29x128xf32, #tpu.memory_space<vmem>>, vector<1x128xf32>
    %c11 = arith.constant 11 : index
    %c0_91 = arith.constant 0 : index
    %75 = vector.load %arg16[%c11, %c0_91] : memref<29x128xf32, #tpu.memory_space<vmem>>, vector<1x128xf32>
    %c12 = arith.constant 12 : index
    %c0_92 = arith.constant 0 : index
    %76 = vector.load %arg16[%c12, %c0_92] : memref<29x128xf32, #tpu.memory_space<vmem>>, vector<1x128xf32>
    %c13 = arith.constant 13 : index
    %c0_93 = arith.constant 0 : index
    %77 = vector.load %arg16[%c13, %c0_93] : memref<29x128xf32, #tpu.memory_space<vmem>>, vector<1x128xf32>
    %c14 = arith.constant 14 : index
    %c0_94 = arith.constant 0 : index
    %78 = vector.load %arg16[%c14, %c0_94] : memref<29x128xf32, #tpu.memory_space<vmem>>, vector<1x128xf32>
    %c15 = arith.constant 15 : index
    %c0_95 = arith.constant 0 : index
    %79 = vector.load %arg16[%c15, %c0_95] : memref<29x128xf32, #tpu.memory_space<vmem>>, vector<1x128xf32>
    %c16 = arith.constant 16 : index
    %c0_96 = arith.constant 0 : index
    %80 = vector.load %arg16[%c16, %c0_96] : memref<29x128xf32, #tpu.memory_space<vmem>>, vector<1x128xf32>
    %c17 = arith.constant 17 : index
    %c0_97 = arith.constant 0 : index
    %81 = vector.load %arg16[%c17, %c0_97] : memref<29x128xf32, #tpu.memory_space<vmem>>, vector<1x128xf32>
    %c18 = arith.constant 18 : index
    %c0_98 = arith.constant 0 : index
    %82 = vector.load %arg16[%c18, %c0_98] : memref<29x128xf32, #tpu.memory_space<vmem>>, vector<1x128xf32>
    %c19 = arith.constant 19 : index
    %c0_99 = arith.constant 0 : index
    %83 = vector.load %arg16[%c19, %c0_99] : memref<29x128xf32, #tpu.memory_space<vmem>>, vector<1x128xf32>
    %c20 = arith.constant 20 : index
    %c0_100 = arith.constant 0 : index
    %84 = vector.load %arg16[%c20, %c0_100] : memref<29x128xf32, #tpu.memory_space<vmem>>, vector<1x128xf32>
    %c21 = arith.constant 21 : index
    %c0_101 = arith.constant 0 : index
    %85 = vector.load %arg16[%c21, %c0_101] : memref<29x128xf32, #tpu.memory_space<vmem>>, vector<1x128xf32>
    %c22 = arith.constant 22 : index
    %c0_102 = arith.constant 0 : index
    %86 = vector.load %arg16[%c22, %c0_102] : memref<29x128xf32, #tpu.memory_space<vmem>>, vector<1x128xf32>
    %c23 = arith.constant 23 : index
    %c0_103 = arith.constant 0 : index
    %87 = vector.load %arg16[%c23, %c0_103] : memref<29x128xf32, #tpu.memory_space<vmem>>, vector<1x128xf32>
    %c24 = arith.constant 24 : index
    %c0_104 = arith.constant 0 : index
    %88 = vector.load %arg16[%c24, %c0_104] : memref<29x128xf32, #tpu.memory_space<vmem>>, vector<1x128xf32>
    %c25 = arith.constant 25 : index
    %c0_105 = arith.constant 0 : index
    %89 = vector.load %arg16[%c25, %c0_105] : memref<29x128xf32, #tpu.memory_space<vmem>>, vector<1x128xf32>
    %c26 = arith.constant 26 : index
    %c0_106 = arith.constant 0 : index
    %90 = vector.load %arg16[%c26, %c0_106] : memref<29x128xf32, #tpu.memory_space<vmem>>, vector<1x128xf32>
    %c27 = arith.constant 27 : index
    %c0_107 = arith.constant 0 : index
    %91 = vector.load %arg16[%c27, %c0_107] : memref<29x128xf32, #tpu.memory_space<vmem>>, vector<1x128xf32>
    %c28 = arith.constant 28 : index
    %c0_108 = arith.constant 0 : index
    %92 = vector.load %arg16[%c28, %c0_108] : memref<29x128xf32, #tpu.memory_space<vmem>>, vector<1x128xf32>
    %93 = tpu.concatenate %64, %65, %66, %67, %68, %69, %70, %71, %72, %73, %74, %75, %76, %77, %78, %79 in 1 : vector<1x128xf32>, vector<1x128xf32>, vector<1x128xf32>, vector<1x128xf32>, vector<1x128xf32>, vector<1x128xf32>, vector<1x128xf32>, vector<1x128xf32>, vector<1x128xf32>, vector<1x128xf32>, vector<1x128xf32>, vector<1x128xf32>, vector<1x128xf32>, vector<1x128xf32>, vector<1x128xf32>, vector<1x128xf32> -> vector<1x2048xf32>
    %94 = tpu.concatenate %80, %81, %82, %83, %84, %85, %86, %87, %88, %89, %90, %91, %92 in 1 : vector<1x128xf32>, vector<1x128xf32>, vector<1x128xf32>, vector<1x128xf32>, vector<1x128xf32>, vector<1x128xf32>, vector<1x128xf32>, vector<1x128xf32>, vector<1x128xf32>, vector<1x128xf32>, vector<1x128xf32>, vector<1x128xf32>, vector<1x128xf32> -> vector<1x1664xf32>
    %95 = tpu.concatenate %93, %94 in 1 : vector<1x2048xf32>, vector<1x1664xf32> -> vector<1x3712xf32>
    %c0_109 = arith.constant 0 : index
    %c0_110 = arith.constant 0 : index
    %96 = vector.load %arg8[%c0_109, %c0_110] : memref<3712x128xf32, #tpu.memory_space<vmem>>, vector<3712x128xf32>
    %cst_111 = arith.constant dense<0.000000e+00> : vector<1x128xf32>
    %97 = tpu.matmul %95, %96, %cst_111 {dimension_numbers = #tpu.dot_dimension_numbers<[1], [0], [0], [1], [0, 0, 1, 1], [], []>} : vector<1x3712xf32>, vector<3712x128xf32>, vector<1x128xf32> -> vector<1x128xf32>
    %c0_112 = arith.constant 0 : index
    %c0_113 = arith.constant 0 : index
    %98 = vector.load %arg9[%c0_112, %c0_113] : memref<1x128xf32, #tpu.memory_space<vmem>>, vector<1x128xf32>
    %99 = arith.addf %97, %98 : vector<1x128xf32>
    %cst_114 = arith.constant 0.000000e+00 : f32
    %100 = vector.broadcast %cst_114 : f32 to vector<1x128xf32>
    %101 = arith.maximumf %99, %100 : vector<1x128xf32>
    %c0_115 = arith.constant 0 : index
    %c0_116 = arith.constant 0 : index
    %c0_117 = arith.constant 0 : index
    %102 = vector.load %arg10[%c0_115, %c0_116, %c0_117] : memref<1x1x128xf32, #tpu.memory_space<vmem>>, vector<1x1x128xf32>
    %103 = vector.shape_cast %102 : vector<1x1x128xf32> to vector<1x128xf32>
    %104 = vector.shape_cast %101 : vector<1x128xf32> to vector<1x1x128xf32>
    tpu.vector_store %arg10[%c0_115, %c0_116, %c0_117], %104 {strides = array<i32>} : memref<1x1x128xf32, #tpu.memory_space<vmem>>, vector<1x1x128xf32>,
    return
  }
  func.func @transform_0(%arg0: i32) -> (i32, i32, i32) {
    %c0_i32 = arith.constant 0 : i32
    %c0_i32_0 = arith.constant 0 : i32
    %c0_i32_1 = arith.constant 0 : i32
    return %arg0, %c0_i32, %c0_i32_0 : i32, i32, i32
  }
  func.func @transform_1(%arg0: i32) -> (i32, i32) {
    %c0_i32 = arith.constant 0 : i32
    %c0_i32_0 = arith.constant 0 : i32
    %c0_i32_1 = arith.constant 0 : i32
    return %c0_i32, %c0_i32_0 : i32, i32
  }
  func.func @transform_2(%arg0: i32) -> (i32, i32) {
    %c0_i32 = arith.constant 0 : i32
    %c0_i32_0 = arith.constant 0 : i32
    %c0_i32_1 = arith.constant 0 : i32
    return %c0_i32, %c0_i32_0 : i32, i32
  }
  func.func @transform_3(%arg0: i32) -> (i32, i32) {
    %c0_i32 = arith.constant 0 : i32
    %c0_i32_0 = arith.constant 0 : i32
    %c0_i32_1 = arith.constant 0 : i32
    return %c0_i32, %c0_i32_0 : i32, i32
  }
  func.func @transform_4(%arg0: i32) -> (i32, i32) {
    %c0_i32 = arith.constant 0 : i32
    %c0_i32_0 = arith.constant 0 : i32
    %c0_i32_1 = arith.constant 0 : i32
    return %c0_i32, %c0_i32_0 : i32, i32
  }
  func.func @transform_5(%arg0: i32) -> (i32, i32) {
    %c0_i32 = arith.constant 0 : i32
    %c0_i32_0 = arith.constant 0 : i32
    %c0_i32_1 = arith.constant 0 : i32
    return %c0_i32, %c0_i32_0 : i32, i32
  }
  func.func @transform_6(%arg0: i32) -> (i32, i32) {
    %c0_i32 = arith.constant 0 : i32
    %c0_i32_0 = arith.constant 0 : i32
    %c0_i32_1 = arith.constant 0 : i32
    return %c0_i32, %c0_i32_0 : i32, i32
  }
  func.func @transform_7(%arg0: i32) -> (i32, i32) {
    %c0_i32 = arith.constant 0 : i32
    %c0_i32_0 = arith.constant 0 : i32
    %c0_i32_1 = arith.constant 0 : i32
    return %c0_i32, %c0_i32_0 : i32, i32
  }
  func.func @transform_8(%arg0: i32) -> (i32, i32) {
    %c0_i32 = arith.constant 0 : i32
    %c0_i32_0 = arith.constant 0 : i32
    %c0_i32_1 = arith.constant 0 : i32
    return %c0_i32, %c0_i32_0 : i32, i32
  }
  func.func @transform_9(%arg0: i32) -> (i32, i32, i32) {
    %c0_i32 = arith.constant 0 : i32
    %c0_i32_0 = arith.constant 0 : i32
    %c0_i32_1 = arith.constant 0 : i32
    return %arg0, %c0_i32, %c0_i32_0 : i32, i32, i32
  }
}

</mosaic_0001>

<bundles_post_ra>
// kernel: cnn_forward.1
= control target key start
LH: loop header
LB: loop body
LE: loop exit
PB: predicated region body
PF: predicated region fallthrough
CT: control target
= control target key end

     0   :  { %14 = vsyncpa [#allocation9], 0  ;;  %s14098_s0 = inlined_call_operand.vmem [shape: f32[2,1945,8], index: 0, kind: input, shape index: {}]   ;;  %s14099_s1 = inlined_call_operand.vmem [shape: f32[40,32], index: 1, kind: input, shape index: {}]   ;;  %s14100_s2 = inlined_call_operand.vmem [shape: f32[1,32], index: 2, kind: input, shape index: {}]   ;;  %s14101_s3 = inlined_call_operand.vmem [shape: f32[160,64], index: 3, kind: input, shape index: {}]   ;;  %s14102_s4 = inlined_call_operand.vmem [shape: f32[1,64], index: 4, kind: input, shape index: {}]   ;;  %s14103_s5 = inlined_call_operand.vmem [shape: f32[256,128], index: 5, kind: input, shape index: {}]   ;;  %s14104_s6 = inlined_call_operand.vmem [shape: f32[1,128], index: 6, kind: input, shape index: {}]   ;;  %s14105_s7 = inlined_call_operand.vmem [shape: f32[3712,128], index: 7, kind: input, shape index: {}]   ;;  %s14106_s8 = inlined_call_operand.vmem [shape: f32[1,128], index: 8, kind: input, shape index: {}]   ;;  %s14107_s9 = inlined_call_operand.hbm [shape: f32[2,1,128], index: 9, kind: output, shape index: {}]  }
   0x1   :  { %16 = vsyncpa [#allocation9 + $0x1], 0  ;;  %s9466_s30 = smov 0   ;;  %s9468_s10 = smov 0  }
   0x2   :  { %s9470_s11 = smov 0   ;;  %s9472_s12 = smov 0  }
   0x3 LB: > { %s9487_s13 = sadd.s32 4294967295, %s9408_s12   ;;  %s8312_s14 = sadd.s32 4294967294, %s9408_s12   ;;  %s9408_s12 = sphi %s9472_s12, %s14139_s12   ;;  %s9404_s11 = sphi %s9470_s11, %s14138_s11   ;;  %s9400_s10 = sphi %s9468_s10, %s14137_s10   ;;  %s9396_s30 = sphi %s9466_s30, %s14136_s30  }
   0x4   : > { %s9491_s15 = sadd.s32 1, %s9408_s12   ;;  %s223_s16 = sadd.s32 1, %s9404_s11 }
   0x5   : > { %s220_s17 = ssub.s32 %s9408_s12, %s9491_s15  ;;  %p233_p0 = scmp.ne.s32.totalorder %s9404_s11, %s9400_s10 }
   0x6   : > { %p221_p1 = scmp.eq.s32.totalorder %s220_s17, 0  ;;  %p234_p2 = scmp.eq.s32.totalorder %s9487_s13, 1 }
   0x7   : > { %p239_p3 = scmp.ne.s32.totalorder %s9400_s10, %s9396_s30  ;;  %p240_p4 = scmp.eq.s32.totalorder %s8312_s14, 1 }
   0x8   : > { %s9502_s18 = scalar_select %p221_p1, %s9404_s11, %s223_s16  }
   0x9   : > { %p9504_p5 = por %p234_p2, %p233_p0  ;;  %p9508_p6 = por %p240_p4, %p239_p3 }
   0xa   : > { %p8315_p7 = scmp.ge.s32.totalorder %s9408_s12, 1  ;;  %p290_p8 = scmp.lt.s32.totalorder %s9408_s12, 3 }
   0xc   : > { %p291_p9 = pnand %p8315_p7, %p290_p8 }
   0xe   : > { %294 = sbr.rel (%p291_p9) target bundleno = 2658 (0xa62), region = 56 }
  0x13   : > { %p325_p10 = scmp.lt.s32.totalorder %s9487_s13, 1  ;;  %s9410_s26 = smov 8   ;;  %vm3501_vm0 = vcmask 64512   ;;  %vm3624_vm1 = vcmask 130048   ;;  %vm3747_vm2 = vcmask 195584   ;;  %vm3870_vm3 = vcmask 261120  }
  0x14   : > { %s9411_s27 = smov 24   ;;  %s9412_s28 = smov 16   ;;  %vm4002_vm4 = vcmask 326656   ;;  %vm6258_vm5 = vcmask 523264   ;;  %vm6290_vm6 = vcmask 785408   ;;  %vm4995_vm7 = vcmask 256000  }
  0x15   : > { %s326_s21 = scalar_select %p325_p10, %s9487_s13, 1  ;;  %vm5544_vm8 = vcmask 258048   ;;  %vm6720_vm9 = vcmask 516096  }
  0x16   : > { %s9413_s29 = smov 32   ;;  %s14110_s14 = smov 96  }
  0x17   : > { %s9096_s22 = smul.u32 1952, %s326_s21  ;;  %s14134_s23 = smov 96  }
  0x18   : > { %s14135_s24 = smov 64  }
  0x19   : > { %s9519_s25 = scalar_lea.vmem %s14098_s0, %s9096_s22  ;;  %s14108_s22 = smov 64  }
  0x1a   : > { %v8442_v0 = vld [vmem:[%s9519_s25 + $0x41] ss:$2 sm:$0xff]  ;;  %v8443_v3 = vld [vmem:[%s9519_s25 + $0x51] ss:$2 sm:$0xff] }
  0x1b   : > { %v8440_v1 = vld [vmem:[%s9519_s25 + $0x21] ss:$2 sm:$0xff]  ;;  %1679 = vrot.lane.b32.xlu2 %v8442_v0, %s9410_s26  ;;  %v8441_v4 = vld [vmem:[%s9519_s25 + $0x31] ss:$2 sm:$0xff] }
  0x1c   : > { %v8438_v2 = vld [vmem:[%s9519_s25 + $0x1] ss:$2 sm:$0xff]  ;;  %1675 = vrot.lane.b32.xlu1 %v8440_v1, %s9410_s26  ;;  %v8439_v5 = vld [vmem:[%s9519_s25 + $0x11] ss:$2 sm:$0xff] }
  0x1d   : > { %1671 = vrot.lane.b32.xlu0 %v8438_v2, %s9410_s26  ;;  %v8446_v6 = vld [vmem:[%s9519_s25 + $0x81] ss:$2 sm:$0xff]  ;;  %v8445_v7 = vld [vmem:[%s9519_s25 + $0x71] ss:$2 sm:$0xff] }
  0x1e   : > { %v8444_v8 = vld [vmem:[%s9519_s25 + $0x61] ss:$2 sm:$0xff]  ;;  %v8449_v9 = vld [vmem:[%s9519_s25 + $0xb1] ss:$2 sm:$0xff] }
  0x1f   : > { %v8448_v10 = vld [vmem:[%s9519_s25 + $0xa1] ss:$2 sm:$0xff]  ;;  %v8447_v11 = vld [vmem:[%s9519_s25 + $0x91] ss:$2 sm:$0xff] }
  0x20   : > { %v8452_v12 = vld [vmem:[%s9519_s25 + $0xe1] ss:$2 sm:$0xff]  ;;  %v8451_v13 = vld [vmem:[%s9519_s25 + $0xd1] ss:$2 sm:$0xff] }
  0x21   : > { %v8450_v14 = vld [vmem:[%s9519_s25 + $0xc1] ss:$2 sm:$0xff]  ;;  %v8455_v15 = vld [vmem:[%s9519_s25 + $0x111] ss:$2 sm:$0xff] }
  0x22   : > { %v8454_v16 = vld [vmem:[%s9519_s25 + $0x101] ss:$2 sm:$0xff]  ;;  %v8453_v17 = vld [vmem:[%s9519_s25 + $0xf1] ss:$2 sm:$0xff] }
  0x23   : > { %1681 = vrot.lane.b32.xlu2 %v8443_v3, %s9410_s26  ;;  %v8458_v18 = vld [vmem:[%s9519_s25 + $0x141] ss:$2 sm:$0xff]  ;;  %v8457_v19 = vld [vmem:[%s9519_s25 + $0x131] ss:$2 sm:$0xff] }
  0x24   : > { %1677 = vrot.lane.b32.xlu1 %v8441_v4, %s9410_s26  ;;  %v8456_v20 = vld [vmem:[%s9519_s25 + $0x121] ss:$2 sm:$0xff]  ;;  %v8461_v21 = vld [vmem:[%s9519_s25 + $0x171] ss:$2 sm:$0xff] }
  0x25   : > { %1673 = vrot.lane.b32.xlu0 %v8439_v5, %s9410_s26  ;;  %v8460_v22 = vld [vmem:[%s9519_s25 + $0x161] ss:$2 sm:$0xff]  ;;  %v8459_v23 = vld [vmem:[%s9519_s25 + $0x151] ss:$2 sm:$0xff] }
  0x26   : > { %v8464_v24 = vld [vmem:[%s9519_s25 + $0x1a1] ss:$2 sm:$0xff]  ;;  %v8463_v25 = vld [vmem:[%s9519_s25 + $0x191] ss:$2 sm:$0xff] }
  0x27   : > { %v8462_v26 = vld [vmem:[%s9519_s25 + $0x181] ss:$2 sm:$0xff]  ;;  %v8467_v27 = vld [vmem:[%s9519_s25 + $0x1d1] ss:$2 sm:$0xff] }
  0x28   : > { %v8466_v28 = vld [vmem:[%s9519_s25 + $0x1c1] ss:$2 sm:$0xff]  ;;  %v8465_v29 = vld [vmem:[%s9519_s25 + $0x1b1] ss:$2 sm:$0xff] }
  0x29   : > { %v8470_v30 = vld [vmem:[%s9519_s25 + $0x201] ss:$2 sm:$0xff]  ;;  %v8469_v31 = vld [vmem:[%s9519_s25 + $0x1f1] ss:$2 sm:$0xff] }
  0x2a   : > { %v8468_v32 = vld [vmem:[%s9519_s25 + $0x1e1] ss:$2 sm:$0xff]  ;;  %v8473_v33 = vld [vmem:[%s9519_s25 + $0x231] ss:$2 sm:$0xff] }
  0x2b   : > { %1687 = vrot.lane.b32.xlu2 %v8446_v6, %s9410_s26  ;;  %v8472_v34 = vld [vmem:[%s9519_s25 + $0x221] ss:$2 sm:$0xff]  ;;  %v8471_v35 = vld [vmem:[%s9519_s25 + $0x211] ss:$2 sm:$0xff] }
  0x2c   : > { %1685 = vrot.lane.b32.xlu1 %v8445_v7, %s9410_s26  ;;  %v8476_v37 = vld [vmem:[%s9519_s25 + $0x261] ss:$2 sm:$0xff]  ;;  %v8475_v38 = vld [vmem:[%s9519_s25 + $0x251] ss:$2 sm:$0xff] }
  0x2d   : > { %1683 = vrot.lane.b32.xlu0 %v8444_v8, %s9410_s26  ;;  %v8474_v39 = vld [vmem:[%s9519_s25 + $0x241] ss:$2 sm:$0xff]  ;;  %v8479_v41 = vld [vmem:[%s9519_s25 + $0x291] ss:$2 sm:$0xff] }
  0x2e   : > { %v8478_v42 = vld [vmem:[%s9519_s25 + $0x281] ss:$2 sm:$0xff]  ;;  %v8477_v43 = vld [vmem:[%s9519_s25 + $0x271] ss:$2 sm:$0xff] }
  0x2f   : > { %v8482_v45 = vld [vmem:[%s9519_s25 + $0x2c1] ss:$2 sm:$0xff]  ;;  %v8481_v46 = vld [vmem:[%s9519_s25 + $0x2b1] ss:$2 sm:$0xff] }
  0x30   : > { %v8480_v47 = vld [vmem:[%s9519_s25 + $0x2a1] ss:$2 sm:$0xff]  ;;  %v8485_v51 = vld [vmem:[%s9519_s25 + $0x2f1] ss:$2 sm:$0xff] }
  0x31   : > { %v8484_v52 = vld [vmem:[%s9519_s25 + $0x2e1] ss:$2 sm:$0xff]  ;;  %v8483_v53 = vld [vmem:[%s9519_s25 + $0x2d1] ss:$2 sm:$0xff] }
  0x32   : > { %v8488_v57 = vld [vmem:[%s9519_s25 + $0x321] ss:$2 sm:$0xff]  ;;  %v8487_v58 = vld [vmem:[%s9519_s25 + $0x311] ss:$2 sm:$0xff] }
  0x33   : > { %1693 = vrot.lane.b32.xlu2 %v8449_v9, %s9410_s26  ;;  %v8486_v59 = vld [vmem:[%s9519_s25 + $0x301] ss:$2 sm:$0xff]  ;;  %v8491_v63 = vld [vmem:[%s9519_s25 + $0x351] ss:$2 sm:$0xff] }
  0x34   : > { %1691 = vrot.lane.b32.xlu1 %v8448_v10, %s9410_s26  ;;  %v8490_v0 = vld [vmem:[%s9519_s25 + $0x341] ss:$2 sm:$0xff]  ;;  %v8489_v1 = vld [vmem:[%s9519_s25 + $0x331] ss:$2 sm:$0xff] }
  0x35   : > { %1689 = vrot.lane.b32.xlu0 %v8447_v11, %s9410_s26  ;;  %v8494_v5 = vld [vmem:[%s9519_s25 + $0x381] ss:$2 sm:$0xff]  ;;  %v8493_v6 = vld [vmem:[%s9519_s25 + $0x371] ss:$2 sm:$0xff] }
  0x36   : > { %v8492_v7 = vld [vmem:[%s9519_s25 + $0x361] ss:$2 sm:$0xff] }
  0x37   : > { %v8682_v11 = vld [vmem:[%s9519_s25 + $0x3] ss:$2 sm:$0xff] }
  0x3b   : > { %1699 = vrot.lane.b32.xlu2 %v8452_v12, %s9410_s26  ;;  %v8560_v12 = vld [vmem:[%s9519_s25 + $0x2] ss:$2 sm:$0xff] }
  0x3c   : > { %1697 = vrot.lane.b32.xlu1 %v8451_v13, %s9410_s26  ;;  %v8495_v13 = vld [vmem:[%s9519_s25 + $0x391] ss:$2 sm:$0xff] }
  0x3d   : > { %1695 = vrot.lane.b32.xlu0 %v8450_v14, %s9410_s26 }
  0x43   : > { %1705 = vrot.lane.b32.xlu2 %v8455_v15, %s9410_s26 }
  0x44   : > { %1703 = vrot.lane.b32.xlu1 %v8454_v16, %s9410_s26 }
  0x45   : > { %1701 = vrot.lane.b32.xlu0 %v8453_v17, %s9410_s26  ;;  %v8683_v17 = vld [vmem:[%s9519_s25 + $0x13] ss:$2 sm:$0xff] }
  0x4b   : > { %1711 = vrot.lane.b32.xlu2 %v8458_v18, %s9410_s26  ;;  %v8561_v18 = vld [vmem:[%s9519_s25 + $0x12] ss:$2 sm:$0xff] }
  0x4c   : > { %1709 = vrot.lane.b32.xlu1 %v8457_v19, %s9410_s26  ;;  %v8804_v19 = vld [vmem:[%s9519_s25 + $0x4] ss:$2 sm:$0xff] }
  0x4d   : > { %1707 = vrot.lane.b32.xlu0 %v8456_v20, %s9410_s26 }
  0x53   : > { %1717 = vrot.lane.b32.xlu2 %v8461_v21, %s9410_s26 }
  0x54   : > { %1715 = vrot.lane.b32.xlu1 %v8460_v22, %s9410_s26 }
  0x55   : > { %1713 = vrot.lane.b32.xlu0 %v8459_v23, %s9410_s26  ;;  %v8684_v23 = vld [vmem:[%s9519_s25 + $0x23] ss:$2 sm:$0xff] }
  0x5b   : > { %1723 = vrot.lane.b32.xlu2 %v8464_v24, %s9410_s26  ;;  %v8562_v24 = vld [vmem:[%s9519_s25 + $0x22] ss:$2 sm:$0xff] }
  0x5c   : > { %1721 = vrot.lane.b32.xlu1 %v8463_v25, %s9410_s26  ;;  %v8805_v25 = vld [vmem:[%s9519_s25 + $0x14] ss:$2 sm:$0xff] }
  0x5d   : > { %1719 = vrot.lane.b32.xlu0 %v8462_v26, %s9410_s26 }
  0x63   : > { %1729 = vrot.lane.b32.xlu2 %v8467_v27, %s9410_s26 }
  0x64   : > { %1727 = vrot.lane.b32.xlu1 %v8466_v28, %s9410_s26 }
  0x65   : > { %1725 = vrot.lane.b32.xlu0 %v8465_v29, %s9410_s26  ;;  %v8685_v29 = vld [vmem:[%s9519_s25 + $0x33] ss:$2 sm:$0xff] }
  0x6b   : > { %1735 = vrot.lane.b32.xlu2 %v8470_v30, %s9410_s26  ;;  %v8563_v30 = vld [vmem:[%s9519_s25 + $0x32] ss:$2 sm:$0xff] }
  0x6c   : > { %1733 = vrot.lane.b32.xlu1 %v8469_v31, %s9410_s26  ;;  %v8806_v31 = vld [vmem:[%s9519_s25 + $0x24] ss:$2 sm:$0xff] }
  0x6d   : > { %1731 = vrot.lane.b32.xlu0 %v8468_v32, %s9410_s26 }
  0x73   : > { %1741 = vrot.lane.b32.xlu2 %v8473_v33, %s9410_s26 }
  0x74   : > { %1739 = vrot.lane.b32.xlu1 %v8472_v34, %s9410_s26 }
  0x75   : > { %1737 = vrot.lane.b32.xlu0 %v8471_v35, %s9410_s26  ;;  %v9593_v36 = vpop.permute.xlu2 %1679  ;;  %v8686_v35 = vld [vmem:[%s9519_s25 + $0x43] ss:$2 sm:$0xff] }
  0x7b   : > { %1747 = vrot.lane.b32.xlu2 %v8476_v37, %s9410_s26  ;;  %v8564_v37 = vld [vmem:[%s9519_s25 + $0x42] ss:$2 sm:$0xff] }
  0x7c   : > { %1745 = vrot.lane.b32.xlu1 %v8475_v38, %s9410_s26  ;;  %v8807_v38 = vld [vmem:[%s9519_s25 + $0x34] ss:$2 sm:$0xff] }
  0x7d   : > { %1743 = vrot.lane.b32.xlu0 %v8474_v39, %s9410_s26  ;;  %v9601_v40 = vpop.permute.xlu2 %1681 }
  0x83   : > { %1753 = vrot.lane.b32.xlu2 %v8479_v41, %s9410_s26 }
  0x84   : > { %1751 = vrot.lane.b32.xlu1 %v8478_v42, %s9410_s26 }
  0x85   : > { %1749 = vrot.lane.b32.xlu0 %v8477_v43, %s9410_s26  ;;  %v9609_v44 = vpop.permute.xlu2 %1687  ;;  %v8687_v43 = vld [vmem:[%s9519_s25 + $0x53] ss:$2 sm:$0xff] }
  0x8b   : > { %1759 = vrot.lane.b32.xlu2 %v8482_v45, %s9410_s26  ;;  %v8565_v45 = vld [vmem:[%s9519_s25 + $0x52] ss:$2 sm:$0xff] }
  0x8c   : > { %1757 = vrot.lane.b32.xlu1 %v8481_v46, %s9410_s26  ;;  %v8808_v46 = vld [vmem:[%s9519_s25 + $0x44] ss:$2 sm:$0xff] }
  0x8d   : > { %1755 = vrot.lane.b32.xlu0 %v8480_v47, %s9410_s26  ;;  %v9617_v48 = vpop.permute.xlu2 %1693 }
  0x8e   : > { %v9619_v49 = vpop.permute.xlu1 %1675 }
  0x8f   : > { %v9621_v50 = vpop.permute.xlu0 %1671 }
  0x93   : > { %1765 = vrot.lane.b32.xlu2 %v8485_v51, %s9410_s26 }
  0x94   : > { %1763 = vrot.lane.b32.xlu1 %v8484_v52, %s9410_s26 }
  0x95   : > { %1761 = vrot.lane.b32.xlu0 %v8483_v53, %s9410_s26  ;;  %v9629_v54 = vpop.permute.xlu2 %1699  ;;  %v8688_v53 = vld [vmem:[%s9519_s25 + $0x63] ss:$2 sm:$0xff] }
  0x96   : > { %v9631_v55 = vpop.permute.xlu1 %1677 }
  0x97   : > { %v9633_v56 = vpop.permute.xlu0 %1673 }
  0x9b   : > { %1771 = vrot.lane.b32.xlu2 %v8488_v57, %s9410_s26  ;;  %v8566_v57 = vld [vmem:[%s9519_s25 + $0x62] ss:$2 sm:$0xff] }
  0x9c   : > { %1769 = vrot.lane.b32.xlu1 %v8487_v58, %s9410_s26  ;;  %v8809_v58 = vld [vmem:[%s9519_s25 + $0x54] ss:$2 sm:$0xff] }
  0x9d   : > { %1767 = vrot.lane.b32.xlu0 %v8486_v59, %s9410_s26  ;;  %v9641_v60 = vpop.permute.xlu2 %1705 }
  0x9e   : > { %v9643_v61 = vpop.permute.xlu1 %1685 }
  0x9f   : > { %v9645_v62 = vpop.permute.xlu0 %1683 }
  0xa3   : > { %1777 = vrot.lane.b32.xlu2 %v8491_v63, %s9410_s26 }
  0xa4   : > { %1775 = vrot.lane.b32.xlu1 %v8490_v0, %s9410_s26 }
  0xa5   : > { %1773 = vrot.lane.b32.xlu0 %v8489_v1, %s9410_s26  ;;  %v9653_v2 = vpop.permute.xlu2 %1711  ;;  %v8689_v1 = vld [vmem:[%s9519_s25 + $0x73] ss:$2 sm:$0xff] }
  0xa6   : > { %v9655_v3 = vpop.permute.xlu1 %1691 }
  0xa7   : > { %v9657_v4 = vpop.permute.xlu0 %1689 }
  0xab   : > { %1783 = vrot.lane.b32.xlu2 %v8494_v5, %s9410_s26  ;;  %v8567_v5 = vld [vmem:[%s9519_s25 + $0x72] ss:$2 sm:$0xff] }
  0xac   : > { %1781 = vrot.lane.b32.xlu1 %v8493_v6, %s9410_s26  ;;  %v8810_v6 = vld [vmem:[%s9519_s25 + $0x64] ss:$2 sm:$0xff] }
  0xad   : > { %1779 = vrot.lane.b32.xlu0 %v8492_v7, %s9410_s26  ;;  %v9665_v8 = vpop.permute.xlu2 %1717 }
  0xae   : > { %v9667_v9 = vpop.permute.xlu1 %1697 }
  0xaf   : > { %v9669_v10 = vpop.permute.xlu0 %1695 }
  0xb3   : > { %2647 = vrot.lane.b32.xlu2 %v8682_v11, %s9411_s27 }
  0xb4   : > { %2159 = vrot.lane.b32.xlu1 %v8560_v12, %s9412_s28 }
  0xb5   : > { %1785 = vrot.lane.b32.xlu0 %v8495_v13, %s9410_s26  ;;  %v9677_v14 = vpop.permute.xlu2 %1723  ;;  %v8690_v13 = vld [vmem:[%s9519_s25 + $0x83] ss:$2 sm:$0xff] }
  0xb6   : > { %v9679_v15 = vpop.permute.xlu1 %1703 }
  0xb7   : > { %v9681_v16 = vpop.permute.xlu0 %1701 }
  0xbb   : > { %2649 = vrot.lane.b32.xlu2 %v8683_v17, %s9411_s27  ;;  %v8568_v17 = vld [vmem:[%s9519_s25 + $0x82] ss:$2 sm:$0xff] }
  0xbc   : > { %2161 = vrot.lane.b32.xlu1 %v8561_v18, %s9412_s28  ;;  %v8811_v18 = vld [vmem:[%s9519_s25 + $0x74] ss:$2 sm:$0xff] }
  0xbd   : > { %3135 = vrot.lane.b32.xlu0 %v8804_v19, %s9413_s29  ;;  %v9689_v20 = vpop.permute.xlu2 %1729 }
  0xbe   : > { %v9691_v21 = vpop.permute.xlu1 %1709 }
  0xbf   : > { %v9693_v22 = vpop.permute.xlu0 %1707 }
  0xc3   : > { %2651 = vrot.lane.b32.xlu2 %v8684_v23, %s9411_s27 }
  0xc4   : > { %2163 = vrot.lane.b32.xlu1 %v8562_v24, %s9412_s28 }
  0xc5   : > { %3137 = vrot.lane.b32.xlu0 %v8805_v25, %s9413_s29  ;;  %v9701_v26 = vpop.permute.xlu2 %1735  ;;  %v8691_v25 = vld [vmem:[%s9519_s25 + $0x93] ss:$2 sm:$0xff] }
  0xc6   : > { %v9703_v27 = vpop.permute.xlu1 %1715 }
  0xc7   : > { %v9705_v28 = vpop.permute.xlu0 %1713 }
  0xcb   : > { %2653 = vrot.lane.b32.xlu2 %v8685_v29, %s9411_s27  ;;  %v8569_v29 = vld [vmem:[%s9519_s25 + $0x92] ss:$2 sm:$0xff] }
  0xcc   : > { %2165 = vrot.lane.b32.xlu1 %v8563_v30, %s9412_s28  ;;  %v8812_v30 = vld [vmem:[%s9519_s25 + $0x84] ss:$2 sm:$0xff] }
  0xcd   : > { %3139 = vrot.lane.b32.xlu0 %v8806_v31, %s9413_s29  ;;  %v9713_v32 = vpop.permute.xlu2 %1741 }
  0xce   : > { %v9715_v33 = vpop.permute.xlu1 %1721 }
  0xcf   : > { %v9717_v34 = vpop.permute.xlu0 %1719 }
  0xd3   : > { %2655 = vrot.lane.b32.xlu2 %v8686_v35, %s9411_s27 }
  0xd4   : > { %2167 = vrot.lane.b32.xlu1 %v8564_v37, %s9412_s28 }
  0xd5   : > { %3141 = vrot.lane.b32.xlu0 %v8807_v38, %s9413_s29  ;;  %v9725_v39 = vpop.permute.xlu2 %1747  ;;  %v8692_v38 = vld [vmem:[%s9519_s25 + $0xa3] ss:$2 sm:$0xff] }
  0xd6   : > { %v9727_v41 = vpop.permute.xlu1 %1727 }
  0xd7   : > { %v9729_v42 = vpop.permute.xlu0 %1725 }
  0xdb   : > { %2657 = vrot.lane.b32.xlu2 %v8687_v43, %s9411_s27  ;;  %v8570_v43 = vld [vmem:[%s9519_s25 + $0xa2] ss:$2 sm:$0xff] }
  0xdc   : > { %2169 = vrot.lane.b32.xlu1 %v8565_v45, %s9412_s28  ;;  %v8813_v45 = vld [vmem:[%s9519_s25 + $0x94] ss:$2 sm:$0xff] }
  0xdd   : > { %3143 = vrot.lane.b32.xlu0 %v8808_v46, %s9413_s29  ;;  %v9737_v47 = vpop.permute.xlu2 %1753 }
  0xde   : > { %v9739_v51 = vpop.permute.xlu1 %1733 }
  0xdf   : > { %v9741_v52 = vpop.permute.xlu0 %1731 }
  0xe3   : > { %2659 = vrot.lane.b32.xlu2 %v8688_v53, %s9411_s27 }
  0xe4   : > { %2171 = vrot.lane.b32.xlu1 %v8566_v57, %s9412_s28 }
  0xe5   : > { %3145 = vrot.lane.b32.xlu0 %v8809_v58, %s9413_s29  ;;  %v9749_v59 = vpop.permute.xlu2 %1759  ;;  %v3997_v58 = vld [vmem:[%s14099_s1 + $0x20] sm:$0xff] }
  0xe6   : > { %v9751_v63 = vpop.permute.xlu1 %1739  ;;  %4380 = vmatpush.msra.mxu0 %v3997_v58  ;;  %9081 = vmatpush.msra.mxu1 %v3997_v58 }
  0xe7   : > { %v9753_v0 = vpop.permute.xlu0 %1737  ;;  %9082 = vmatpush.msra.mxu2 %v3997_v58  ;;  %9083 = vmatpush.msra.mxu3 %v3997_v58  ;;  %v8815_v58 = vld [vmem:[%s9519_s25 + $0xb4] ss:$2 sm:$0xff] }
  0xeb   : > { %2661 = vrot.lane.b32.xlu2 %v8689_v1, %s9411_s27  ;;  %v3996_v1 = vld [vmem:[%s14099_s1 + $0x18] sm:$0xff] }
  0xec   : > { %2173 = vrot.lane.b32.xlu1 %v8567_v5, %s9412_s28  ;;  %v8693_v5 = vld [vmem:[%s9519_s25 + $0xb3] ss:$2 sm:$0xff]  ;;  %4381 = vmatpush.msra.mxu0 %v3996_v1 }
  0xed   : > { %3147 = vrot.lane.b32.xlu0 %v8810_v6, %s9413_s29  ;;  %v9761_v7 = vpop.permute.xlu2 %1765  ;;  %v8571_v6 = vld [vmem:[%s9519_s25 + $0xb2] ss:$2 sm:$0xff]  ;;  %9084 = vmatpush.msra.mxu1 %v3996_v1 }
  0xee   : > { %v9763_v11 = vpop.permute.xlu1 %1745  ;;  %9085 = vmatpush.msra.mxu2 %v3996_v1  ;;  %9086 = vmatpush.msra.mxu3 %v3996_v1 }
  0xef   : > { %v9765_v12 = vpop.permute.xlu0 %1743 }
  0xf3   : > { %2663 = vrot.lane.b32.xlu2 %v8690_v13, %s9411_s27  ;;  %v8814_v13 = vld [vmem:[%s9519_s25 + $0xa4] ss:$2 sm:$0xff] }
  0xf4   : > { %2175 = vrot.lane.b32.xlu1 %v8568_v17, %s9412_s28  ;;  %v3995_v17 = vld [vmem:[%s14099_s1 + $0x10] sm:$0xff] }
  0xf5   : > { %3149 = vrot.lane.b32.xlu0 %v8811_v18, %s9413_s29  ;;  %v9773_v19 = vpop.permute.xlu2 %1771  ;;  %4382 = vmatpush.msra.mxu0 %v3995_v17  ;;  %v3994_v18 = vld [vmem:[%s14099_s1 + $0x8] sm:$0xff] }
  0xf6   : > { %14114 = vst [vmem:[#allocation11_spill] sm:$0xff] %v9773_v19  ;;  %v9775_v23 = vpop.permute.xlu1 %1751  ;;  %9087 = vmatpush.msra.mxu1 %v3995_v17  ;;  %9088 = vmatpush.msra.mxu2 %v3995_v17 }
  0xf7   : > { %v9777_v24 = vpop.permute.xlu0 %1749  ;;  %4383 = vmatpush.msra.mxu0 %v3994_v18  ;;  %9089 = vmatpush.msra.mxu3 %v3995_v17  ;;  %v8573_v17 = vld [vmem:[%s9519_s25 + $0xd2] ss:$2 sm:$0xff] }
  0xf8   : > { %9090 = vmatpush.msra.mxu1 %v3994_v18  ;;  %9091 = vmatpush.msra.mxu2 %v3994_v18 }
  0xf9   : > { %9092 = vmatpush.msra.mxu3 %v3994_v18  ;;  %v8816_v18 = vld [vmem:[%s9519_s25 + $0xc4] ss:$2 sm:$0xff] }
  0xfb   : > { %2665 = vrot.lane.b32.xlu2 %v8691_v25, %s9411_s27 }
  0xfc   : > { %2177 = vrot.lane.b32.xlu1 %v8569_v29, %s9412_s28 }
  0xfd   : > { %3151 = vrot.lane.b32.xlu0 %v8812_v30, %s9413_s29  ;;  %v9785_v31 = vpop.permute.xlu2 %1777 }
  0xfe   : > { %14115 = vst [vmem:[#allocation12_spill] sm:$0xff] %v9785_v31  ;;  %v9787_v35 = vpop.permute.xlu1 %1757  ;;  %v8817_v31 = vld [vmem:[%s9519_s25 + $0xd4] ss:$2 sm:$0xff] }
  0xff   : > { %v9789_v37 = vpop.permute.xlu0 %1755 }
 0x103   : > { %2667 = vrot.lane.b32.xlu2 %v8692_v38, %s9411_s27  ;;  %v3993_v38 = vld [vmem:[%s14099_s1] sm:$0xff] }
 0x104   : > { %2179 = vrot.lane.b32.xlu1 %v8570_v43, %s9412_s28  ;;  %v8694_v43 = vld [vmem:[%s9519_s25 + $0xc3] ss:$2 sm:$0xff]  ;;  %4384 = vmatpush.msra.mxu0 %v3993_v38 }
 0x105   : > { %3153 = vrot.lane.b32.xlu0 %v8813_v45, %s9413_s29  ;;  %v9797_v46 = vpop.permute.xlu2 %1783  ;;  %v8572_v45 = vld [vmem:[%s9519_s25 + $0xc2] ss:$2 sm:$0xff]  ;;  %9093 = vmatpush.msra.mxu1 %v3993_v38 }
 0x106   : > { %14116 = vst [vmem:[#allocation13_spill] sm:$0xff] %v9797_v46  ;;  %v9799_v53 = vpop.permute.xlu1 %1763  ;;  %9094 = vmatpush.msra.mxu2 %v3993_v38  ;;  %9095 = vmatpush.msra.mxu3 %v3993_v38  ;;  %v8574_v46 = vld [vmem:[%s9519_s25 + $0xe2] ss:$2 sm:$0xff] }
 0x107   : > { %v9801_v57 = vpop.permute.xlu0 %1761 }
 0x10b   : > { %2669 = vrot.lane.b32.xlu2 %v8693_v5, %s9411_s27 }
 0x10c   : > { %2181 = vrot.lane.b32.xlu1 %v8571_v6, %s9412_s28 }
 0x10d   : > { %3155 = vrot.lane.b32.xlu0 %v8814_v13, %s9413_s29  ;;  %v2648_v25 = vpop.permute.xlu2 %2647  ;;  %v8695_v13 = vld [vmem:[%s9519_s25 + $0xd3] ss:$2 sm:$0xff] }
 0x10e   : > { %v9821_v29 = vpop.permute.xlu1 %1769 }
 0x10f   : > { %14117 = vst [vmem:[#allocation14_spill] sm:$0xff] %v9821_v29  ;;  %v9823_v30 = vpop.permute.xlu0 %1767 }
 0x110   : > { %14118 = vst [vmem:[#allocation15_spill] sm:$0xff] %v9823_v30 }
 0x113   : > { %2671 = vrot.lane.b32.xlu2 %v8694_v43, %s9411_s27 }
 0x114   : > { %2183 = vrot.lane.b32.xlu1 %v8572_v45, %s9412_s28 }
 0x115   : > { %3157 = vrot.lane.b32.xlu0 %v8815_v58, %s9413_s29  ;;  %v2650_v1 = vpop.permute.xlu2 %2649  ;;  %v8696_v58 = vld [vmem:[%s9519_s25 + $0xe3] ss:$2 sm:$0xff] }
 0x116   : > { %v9834_v5 = vpop.permute.xlu1 %1775 }
 0x117   : > { %14119 = vst [vmem:[#allocation16_spill] sm:$0xff] %v9834_v5  ;;  %v9836_v6 = vpop.permute.xlu0 %1773  ;;  %v330_v5 = vld [vmem:[%s9519_s25] ss:$2 sm:$0xff] }
 0x118   : > { %14120 = vst [vmem:[#allocation17_spill] sm:$0xff] %v9836_v6  ;;  %v8818_v6 = vld [vmem:[%s9519_s25 + $0xe4] ss:$2 sm:$0xff] }
 0x11b   : > { %2673 = vrot.lane.b32.xlu2 %v8695_v13, %s9411_s27 }
 0x11c   : > { %2185 = vrot.lane.b32.xlu1 %v8573_v17, %s9412_s28 }
 0x11d   : > { %3159 = vrot.lane.b32.xlu0 %v8816_v18, %s9413_s29  ;;  %v2652_v38 = vpop.permute.xlu2 %2651 }
 0x11e   : > { %v9844_v43 = vpop.permute.xlu1 %1781 }
 0x11f   : > { %14121 = vst [vmem:[#allocation18_spill] sm:$0xff] %v9844_v43  ;;  %v9846_v45 = vpop.permute.xlu0 %1779  ;;  %v8697_v43 = vld [vmem:[%s9519_s25 + $0xf3] ss:$2 sm:$0xff] }
 0x120   : > { %14122 = vst [vmem:[#allocation19_spill] sm:$0xff] %v9846_v45  ;;  %v8575_v45 = vld [vmem:[%s9519_s25 + $0xf2] ss:$2 sm:$0xff] }
 0x123   : > { %2675 = vrot.lane.b32.xlu2 %v8696_v58, %s9411_s27  ;;  %v3502_v58 = vsel %vm3501_vm0, %v330_v5, %v9621_v50  ;;  %v8317_v50 = vld [vmem:[%s9519_s25 + $0x10] ss:$2 sm:$0xff] }
 0x124   : > { %2187 = vrot.lane.b32.xlu1 %v8574_v46, %s9412_s28 }
 0x125   : > { %3161 = vrot.lane.b32.xlu0 %v8817_v31, %s9413_s29  ;;  %v9854_v13 = vpop.permute.xlu2 %2653 }
 0x126   : > { %v2160_v17 = vpop.permute.xlu1 %2159 }
 0x127   : > { %v9856_v18 = vpop.permute.xlu0 %1785  ;;  %v3625_v46 = vsel %vm3624_vm1, %v3502_v58, %v2160_v17  ;;  %v3503_v17 = vsel %vm3501_vm0, %v8317_v50, %v9633_v56  ;;  %v8699_v56 = vld [vmem:[%s9519_s25 + $0x113] ss:$2 sm:$0xff]  ;;  %v8820_v50 = vld [vmem:[%s9519_s25 + $0x104] ss:$2 sm:$0xff] }
 0x128   : > { %14123 = vst [vmem:[#allocation20_spill] sm:$0xff] %v9856_v18  ;;  %v3748_v29 = vsel %vm3747_vm2, %v3625_v46, %v2648_v25 }
 0x12b   : > { %2677 = vrot.lane.b32.xlu2 %v8697_v43, %s9411_s27  ;;  %v8698_v43 = vld [vmem:[%s9519_s25 + $0x103] ss:$2 sm:$0xff] }
 0x12c   : > { %2189 = vrot.lane.b32.xlu1 %v8575_v45, %s9412_s28  ;;  %v8576_v45 = vld [vmem:[%s9519_s25 + $0x102] ss:$2 sm:$0xff] }
 0x12d   : > { %3163 = vrot.lane.b32.xlu0 %v8818_v6, %s9413_s29  ;;  %v9868_v31 = vpop.permute.xlu2 %2655  ;;  %v8819_v6 = vld [vmem:[%s9519_s25 + $0xf4] ss:$2 sm:$0xff] }
 0x12e   : > { %v2162_v18 = vpop.permute.xlu1 %2161 }
 0x12f   : > { %v3136_v19 = vpop.permute.xlu0 %3135  ;;  %v3626_v58 = vsel %vm3624_vm1, %v3503_v17, %v2162_v18  ;;  %v8577_v18 = vld [vmem:[%s9519_s25 + $0x112] ss:$2 sm:$0xff] }
 0x130   : > { %v3871_v5 = vsel %vm3870_vm3, %v3748_v29, %v3136_v19  ;;  %v3749_v46 = vsel %vm3747_vm2, %v3626_v58, %v2650_v1  ;;  %v8319_v58 = vld [vmem:[%s9519_s25 + $0x30] ss:$2 sm:$0xff] }
 0x131   : > { %8926 = vmatmul.msk.f32.vlgmr.msra.gmra.mxu0 %vm4002_vm4, %v3871_v5  ;;  %v8318_v5 = vld [vmem:[%s9519_s25 + $0x20] ss:$2 sm:$0xff] }
 0x133   : > { %2679 = vrot.lane.b32.xlu2 %v8698_v43, %s9411_s27  ;;  %v3504_v43 = vsel %vm3501_vm0, %v8318_v5, %v9619_v49  ;;  %v8700_v49 = vld [vmem:[%s9519_s25 + $0x123] ss:$2 sm:$0xff]  ;;  %v3505_v5 = vsel %vm3501_vm0, %v8319_v58, %v9631_v55  ;;  %v8701_v55 = vld [vmem:[%s9519_s25 + $0x133] ss:$2 sm:$0xff] }
 0x134   : > { %2191 = vrot.lane.b32.xlu1 %v8576_v45, %s9412_s28 }
 0x135   : > { %3165 = vrot.lane.b32.xlu0 %v8819_v6, %s9413_s29  ;;  %v9883_v19 = vpop.permute.xlu2 %2657 }
 0x136   : > { %v2164_v25 = vpop.permute.xlu1 %2163 }
 0x137   : > { %v3138_v29 = vpop.permute.xlu0 %3137  ;;  %v3627_v45 = vsel %vm3624_vm1, %v3504_v43, %v2164_v25  ;;  %v8578_v25 = vld [vmem:[%s9519_s25 + $0x122] ss:$2 sm:$0xff] }
 0x138   : > { %v3872_v30 = vsel %vm3870_vm3, %v3749_v46, %v3138_v29  ;;  %v3750_v17 = vsel %vm3747_vm2, %v3627_v45, %v2652_v38  ;;  %v8821_v46 = vld [vmem:[%s9519_s25 + $0x114] ss:$2 sm:$0xff] }
 0x139   : > { %8927 = vmatmul.msk.f32.gmra.mxu0 %vm4002_vm4, %v3872_v30  ;;  %v8320_v45 = vld [vmem:[%s9519_s25 + $0x40] ss:$2 sm:$0xff] }
 0x13a   : > { %v3506_v58 = vsel %vm3501_vm0, %v8320_v45, %v9593_v36  ;;  %v8702_v36 = vld [vmem:[%s9519_s25 + $0x143] ss:$2 sm:$0xff] }
 0x13b   : > { %2681 = vrot.lane.b32.xlu2 %v8699_v56, %s9411_s27 }
 0x13c   : > { %2193 = vrot.lane.b32.xlu1 %v8577_v18, %s9412_s28 }
 0x13d   : > { %3167 = vrot.lane.b32.xlu0 %v8820_v50, %s9413_s29  ;;  %v9898_v1 = vpop.permute.xlu2 %2659 }
 0x13e   : > { %v2166_v30 = vpop.permute.xlu1 %2165 }
 0x13f   : > { %v3140_v6 = vpop.permute.xlu0 %3139  ;;  %v3628_v56 = vsel %vm3624_vm1, %v3505_v5, %v2166_v30  ;;  %v8579_v30 = vld [vmem:[%s9519_s25 + $0x132] ss:$2 sm:$0xff] }
 0x140   : > { %v3873_v29 = vsel %vm3870_vm3, %v3750_v17, %v3140_v6  ;;  %v3751_v43 = vsel %vm3747_vm2, %v3628_v56, %v9854_v13  ;;  %v8822_v17 = vld [vmem:[%s9519_s25 + $0x124] ss:$2 sm:$0xff] }
 0x141   : > { %8928 = vmatmul.msk.f32.gmra.mxu0 %vm4002_vm4, %v3873_v29  ;;  %v8321_v5 = vld [vmem:[%s9519_s25 + $0x50] ss:$2 sm:$0xff] }
 0x143   : > { %2683 = vrot.lane.b32.xlu2 %v8700_v49, %s9411_s27 }
 0x144   : > { %2195 = vrot.lane.b32.xlu1 %v8578_v25, %s9412_s28 }
 0x145   : > { %3169 = vrot.lane.b32.xlu0 %v8821_v46, %s9413_s29  ;;  %v9913_v38 = vpop.permute.xlu2 %2661 }
 0x146   : > { %v2168_v18 = vpop.permute.xlu1 %2167 }
 0x147   : > { %v3142_v50 = vpop.permute.xlu0 %3141  ;;  %v3629_v29 = vsel %vm3624_vm1, %v3506_v58, %v2168_v18  ;;  %v8580_v18 = vld [vmem:[%s9519_s25 + $0x142] ss:$2 sm:$0xff] }
 0x148   : > { %v3874_v6 = vsel %vm3870_vm3, %v3751_v43, %v3142_v50  ;;  %v3752_v46 = vsel %vm3747_vm2, %v3629_v29, %v9868_v31  ;;  %v8823_v50 = vld [vmem:[%s9519_s25 + $0x134] ss:$2 sm:$0xff]  ;;  %v3507_v43 = vsel %vm3501_vm0, %v8321_v5, %v9601_v40  ;;  %v8703_v40 = vld [vmem:[%s9519_s25 + $0x153] ss:$2 sm:$0xff] }
 0x149   : > { %8929 = vmatmul.msk.f32.gmra.mxu0 %vm4002_vm4, %v3874_v6  ;;  %v8581_v29 = vld [vmem:[%s9519_s25 + $0x152] ss:$2 sm:$0xff] }
 0x14b   : > { %2685 = vrot.lane.b32.xlu2 %v8701_v55, %s9411_s27 }
 0x14c   : > { %2197 = vrot.lane.b32.xlu1 %v8579_v30, %s9412_s28 }
 0x14d   : > { %3171 = vrot.lane.b32.xlu0 %v8822_v17, %s9413_s29  ;;  %v9929_v13 = vpop.permute.xlu2 %2663  ;;  %v8322_v17 = vld [vmem:[%s9519_s25 + $0x60] ss:$2 sm:$0xff] }
 0x14e   : > { %v2170_v49 = vpop.permute.xlu1 %2169 }
 0x14f   : > { %v3144_v25 = vpop.permute.xlu0 %3143  ;;  %v3630_v45 = vsel %vm3624_vm1, %v3507_v43, %v2170_v49  ;;  %v8824_v49 = vld [vmem:[%s9519_s25 + $0x144] ss:$2 sm:$0xff] }
 0x150   : > { %v3875_v56 = vsel %vm3870_vm3, %v3752_v46, %v3144_v25  ;;  %v3753_v30 = vsel %vm3747_vm2, %v3630_v45, %v9883_v19  ;;  %v3508_v25 = vsel %vm3501_vm0, %v8322_v17, %v9645_v62  ;;  %v8704_v62 = vld [vmem:[%s9519_s25 + $0x163] ss:$2 sm:$0xff]  ;;  %v8582_v43 = vld [vmem:[%s9519_s25 + $0x162] ss:$2 sm:$0xff] }
 0x151   : > { %8930 = vmatmul.msk.f32.gmra.mxu0 %vm4002_vm4, %v3875_v56  ;;  %v8825_v45 = vld [vmem:[%s9519_s25 + $0x154] ss:$2 sm:$0xff] }
 0x153   : > { %2687 = vrot.lane.b32.xlu2 %v8702_v36, %s9411_s27 }
 0x154   : > { %2199 = vrot.lane.b32.xlu1 %v8580_v18, %s9412_s28  ;;  %v8323_v18 = vld [vmem:[%s9519_s25 + $0x70] ss:$2 sm:$0xff] }
 0x155   : > { %3173 = vrot.lane.b32.xlu0 %v8823_v50, %s9413_s29  ;;  %v9945_v31 = vpop.permute.xlu2 %2665 }
 0x156   : > { %v2172_v6 = vpop.permute.xlu1 %2171 }
 0x157   : > { %v3146_v55 = vpop.permute.xlu0 %3145  ;;  %v3631_v46 = vsel %vm3624_vm1, %v3508_v25, %v2172_v6  ;;  %v3509_v6 = vsel %vm3501_vm0, %v8323_v18, %v9643_v61  ;;  %v8705_v61 = vld [vmem:[%s9519_s25 + $0x173] ss:$2 sm:$0xff]  ;;  %v8826_v25 = vld [vmem:[%s9519_s25 + $0x164] ss:$2 sm:$0xff] }
 0x158   : > { %v3876_v58 = vsel %vm3870_vm3, %v3753_v30, %v3146_v55  ;;  %v3754_v36 = vsel %vm3747_vm2, %v3631_v46, %v9898_v1 }
 0x159   : > { %8931 = vmatmul.msk.f32.gmra.mxu0 %vm4002_vm4, %v3876_v58 }
 0x15b   : > { %2689 = vrot.lane.b32.xlu2 %v8703_v40, %s9411_s27  ;;  %v8324_v40 = vld [vmem:[%s9519_s25 + $0x80] ss:$2 sm:$0xff] }
 0x15c   : > { %2201 = vrot.lane.b32.xlu1 %v8581_v29, %s9412_s28  ;;  %v3510_v46 = vsel %vm3501_vm0, %v8324_v40, %v9609_v44  ;;  %v8706_v44 = vld [vmem:[%s9519_s25 + $0x183] ss:$2 sm:$0xff]  ;;  %v8326_v40 = vld [vmem:[%s9519_s25 + $0xa0] ss:$2 sm:$0xff] }
 0x15d   : > { %3175 = vrot.lane.b32.xlu0 %v8824_v49, %s9413_s29  ;;  %v9961_v19 = vpop.permute.xlu2 %2667  ;;  %v8583_v49 = vld [vmem:[%s9519_s25 + $0x172] ss:$2 sm:$0xff] }
 0x15e   : > { %v2174_v5 = vpop.permute.xlu1 %2173 }
 0x15f   : > { %v3148_v56 = vpop.permute.xlu0 %3147  ;;  %v3632_v55 = vsel %vm3624_vm1, %v3509_v6, %v2174_v5 }
 0x160   : > { %v3877_v50 = vsel %vm3870_vm3, %v3754_v36, %v3148_v56  ;;  %v3755_v58 = vsel %vm3747_vm2, %v3632_v55, %v9913_v38 }
 0x161   : > { %8932 = vmatmul.msk.f32.gmra.mxu0 %vm4002_vm4, %v3877_v50  ;;  %v8325_v50 = vld [vmem:[%s9519_s25 + $0x90] ss:$2 sm:$0xff] }
 0x162   : > { %v3511_v6 = vsel %vm3501_vm0, %v8325_v50, %v9657_v4  ;;  %v8707_v4 = vld [vmem:[%s9519_s25 + $0x193] ss:$2 sm:$0xff] }
 0x163   : > { %2691 = vrot.lane.b32.xlu2 %v8704_v62, %s9411_s27 }
 0x164   : > { %2203 = vrot.lane.b32.xlu1 %v8582_v43, %s9412_s28  ;;  %v8584_v43 = vld [vmem:[%s9519_s25 + $0x182] ss:$2 sm:$0xff] }
 0x165   : > { %3177 = vrot.lane.b32.xlu0 %v8825_v45, %s9413_s29  ;;  %v9977_v1 = vpop.permute.xlu2 %2669  ;;  %v8827_v45 = vld [vmem:[%s9519_s25 + $0x174] ss:$2 sm:$0xff] }
 0x166   : > { %v2176_v30 = vpop.permute.xlu1 %2175 }
 0x167   : > { %v3150_v17 = vpop.permute.xlu0 %3149  ;;  %v3633_v5 = vsel %vm3624_vm1, %v3510_v46, %v2176_v30 }
 0x168   : > { %v3878_v29 = vsel %vm3870_vm3, %v3755_v58, %v3150_v17  ;;  %v3756_v18 = vsel %vm3747_vm2, %v3633_v5, %v9929_v13 }
 0x169   : > { %8933 = vmatmul.msk.f32.gmra.mxu0 %vm4002_vm4, %v3878_v29 }
 0x16b   : > { %2693 = vrot.lane.b32.xlu2 %v8705_v61, %s9411_s27  ;;  %v8585_v61 = vld [vmem:[%s9519_s25 + $0x192] ss:$2 sm:$0xff] }
 0x16c   : > { %2205 = vrot.lane.b32.xlu1 %v8583_v49, %s9412_s28  ;;  %v8828_v49 = vld [vmem:[%s9519_s25 + $0x184] ss:$2 sm:$0xff] }
 0x16d   : > { %3179 = vrot.lane.b32.xlu0 %v8826_v25, %s9413_s29  ;;  %v9993_v38 = vpop.permute.xlu2 %2671  ;;  %v3512_v25 = vsel %vm3501_vm0, %v8326_v40, %v9655_v3  ;;  %v8708_v3 = vld [vmem:[%s9519_s25 + $0x1a3] ss:$2 sm:$0xff]  ;;  %v8587_v40 = vld [vmem:[%s9519_s25 + $0x1b2] ss:$2 sm:$0xff] }
 0x16e   : > { %v2178_v56 = vpop.permute.xlu1 %2177 }
 0x16f   : > { %v3152_v36 = vpop.permute.xlu0 %3151  ;;  %v3634_v55 = vsel %vm3624_vm1, %v3511_v6, %v2178_v56 }
 0x170   : > { %v3879_v62 = vsel %vm3870_vm3, %v3756_v18, %v3152_v36  ;;  %v3757_v58 = vsel %vm3747_vm2, %v3634_v55, %v9945_v31  ;;  %v8327_v18 = vld [vmem:[%s9519_s25 + $0xb0] ss:$2 sm:$0xff] }
 0x171   : > { %8934 = vmatmul.msk.f32.gmra.mxu0 %vm4002_vm4, %v3879_v62  ;;  %v8586_v62 = vld [vmem:[%s9519_s25 + $0x1a2] ss:$2 sm:$0xff] }
 0x173   : > { %2695 = vrot.lane.b32.xlu2 %v8706_v44, %s9411_s27  ;;  %v8829_v44 = vld [vmem:[%s9519_s25 + $0x194] ss:$2 sm:$0xff] }
 0x174   : > { %2207 = vrot.lane.b32.xlu1 %v8584_v43, %s9412_s28  ;;  %v3513_v43 = vsel %vm3501_vm0, %v8327_v18, %v9617_v48  ;;  %v8709_v48 = vld [vmem:[%s9519_s25 + $0x1b3] ss:$2 sm:$0xff]  ;;  %v8831_v18 = vld [vmem:[%s9519_s25 + $0x1b4] ss:$2 sm:$0xff] }
 0x175   : > { %3181 = vrot.lane.b32.xlu0 %v8827_v45, %s9413_s29  ;;  %v10009_v13 = vpop.permute.xlu2 %2673 }
 0x176   : > { %v2180_v30 = vpop.permute.xlu1 %2179 }
 0x177   : > { %v3154_v17 = vpop.permute.xlu0 %3153  ;;  %v3635_v46 = vsel %vm3624_vm1, %v3512_v25, %v2180_v30 }
 0x178   : > { %v3880_v29 = vsel %vm3870_vm3, %v3757_v58, %v3154_v17  ;;  %v3758_v36 = vsel %vm3747_vm2, %v3635_v46, %v9961_v19  ;;  %v8328_v17 = vld [vmem:[%s9519_s25 + $0xc0] ss:$2 sm:$0xff] }
 0x179   : > { %8935 = vmatmul.msk.f32.gmra.mxu0 %vm4002_vm4, %v3880_v29  ;;  %v8830_v29 = vld [vmem:[%s9519_s25 + $0x1a4] ss:$2 sm:$0xff] }
 0x17b   : > { %2697 = vrot.lane.b32.xlu2 %v8707_v4, %s9411_s27  ;;  %v3514_v4 = vsel %vm3501_vm0, %v8328_v17, %v9669_v10  ;;  %v8710_v10 = vld [vmem:[%s9519_s25 + $0x1c3] ss:$2 sm:$0xff] }
 0x17c   : > { %2209 = vrot.lane.b32.xlu1 %v8585_v61, %s9412_s28 }
 0x17d   : > { %3183 = vrot.lane.b32.xlu0 %v8828_v49, %s9413_s29  ;;  %v10025_v31 = vpop.permute.xlu2 %2675 }
 0x17e   : > { %v2182_v5 = vpop.permute.xlu1 %2181 }
 0x17f   : > { %v3156_v56 = vpop.permute.xlu0 %3155  ;;  %v3636_v45 = vsel %vm3624_vm1, %v3513_v43, %v2182_v5  ;;  %v8329_v5 = vld [vmem:[%s9519_s25 + $0xd0] ss:$2 sm:$0xff] }
 0x180   : > { %v3881_v50 = vsel %vm3870_vm3, %v3758_v36, %v3156_v56  ;;  %v3759_v30 = vsel %vm3747_vm2, %v3636_v45, %v9977_v1  ;;  %v8588_v36 = vld [vmem:[%s9519_s25 + $0x1c2] ss:$2 sm:$0xff] }
 0x181   : > { %8936 = vmatmul.msk.f32.gmra.mxu0 %vm4002_vm4, %v3881_v50  ;;  %v3515_v50 = vsel %vm3501_vm0, %v8329_v5, %v9667_v9  ;;  %v8330_v45 = vld [vmem:[%s9519_s25 + $0xe0] ss:$2 sm:$0xff]  ;;  %v8711_v9 = vld [vmem:[%s9519_s25 + $0x1d3] ss:$2 sm:$0xff] }
 0x182   : > { %v3516_v17 = vsel %vm3501_vm0, %v8330_v45, %v9629_v54  ;;  %v8712_v54 = vld [vmem:[%s9519_s25 + $0x1e3] ss:$2 sm:$0xff] }
 0x183   : > { %2699 = vrot.lane.b32.xlu2 %v8708_v3, %s9411_s27 }
 0x184   : > { %2211 = vrot.lane.b32.xlu1 %v8586_v62, %s9412_s28 }
 0x185   : > { %3185 = vrot.lane.b32.xlu0 %v8829_v44, %s9413_s29  ;;  %v10041_v19 = vpop.permute.xlu2 %2677 }
 0x186   : > { %v2184_v6 = vpop.permute.xlu1 %2183 }
 0x187   : > { %v3158_v55 = vpop.permute.xlu0 %3157  ;;  %v3637_v61 = vsel %vm3624_vm1, %v3514_v4, %v2184_v6  ;;  %v8331_v4 = vld [vmem:[%s9519_s25 + $0xf0] ss:$2 sm:$0xff] }
 0x188   : > { %v3882_v58 = vsel %vm3870_vm3, %v3759_v30, %v3158_v55  ;;  %v3760_v46 = vsel %vm3747_vm2, %v3637_v61, %v9993_v38  ;;  %v8589_v55 = vld [vmem:[%s9519_s25 + $0x1d2] ss:$2 sm:$0xff] }
 0x189   : > { %8937 = vmatmul.msk.f32.gmra.mxu0 %vm4002_vm4, %v3882_v58  ;;  %v8832_v30 = vld [vmem:[%s9519_s25 + $0x1c4] ss:$2 sm:$0xff] }
 0x18b   : > { %2701 = vrot.lane.b32.xlu2 %v8709_v48, %s9411_s27 }
 0x18c   : > { %2213 = vrot.lane.b32.xlu1 %v8587_v40, %s9412_s28 }
 0x18d   : > { %3187 = vrot.lane.b32.xlu0 %v8830_v29, %s9413_s29  ;;  %v10057_v1 = vpop.permute.xlu2 %2679 }
 0x18e   : > { %v2186_v49 = vpop.permute.xlu1 %2185 }
 0x18f   : > { %v3160_v25 = vpop.permute.xlu0 %3159  ;;  %v3638_v3 = vsel %vm3624_vm1, %v3515_v50, %v2186_v49  ;;  %v8590_v49 = vld [vmem:[%s9519_s25 + $0x1e2] ss:$2 sm:$0xff] }
 0x190   : > { %v3883_v56 = vsel %vm3870_vm3, %v3760_v46, %v3160_v25  ;;  %v3761_v43 = vsel %vm3747_vm2, %v3638_v3, %v10009_v13  ;;  %v8833_v25 = vld [vmem:[%s9519_s25 + $0x1d4] ss:$2 sm:$0xff]  ;;  %v3517_v46 = vsel %vm3501_vm0, %v8331_v4, %v9681_v16  ;;  %v8713_v16 = vld [vmem:[%s9519_s25 + $0x1f3] ss:$2 sm:$0xff] }
 0x191   : > { %8938 = vmatmul.msk.f32.gmra.mxu0 %vm4002_vm4, %v3883_v56  ;;  %v8591_v3 = vld [vmem:[%s9519_s25 + $0x1f2] ss:$2 sm:$0xff] }
 0x192   : > { %v8835_v4 = vld [vmem:[%s9519_s25 + $0x1f4] ss:$2 sm:$0xff] }
 0x193   : > { %2703 = vrot.lane.b32.xlu2 %v8710_v10, %s9411_s27 }
 0x194   : > { %2215 = vrot.lane.b32.xlu1 %v8588_v36, %s9412_s28 }
 0x195   : > { %3189 = vrot.lane.b32.xlu0 %v8831_v18, %s9413_s29  ;;  %v10073_v38 = vpop.permute.xlu2 %2681  ;;  %v8332_v18 = vld [vmem:[%s9519_s25 + $0x100] ss:$2 sm:$0xff] }
 0x196   : > { %v2188_v62 = vpop.permute.xlu1 %2187 }
 0x197   : > { %v3162_v44 = vpop.permute.xlu0 %3161  ;;  %v3639_v58 = vsel %vm3624_vm1, %v3516_v17, %v2188_v62  ;;  %v8834_v62 = vld [vmem:[%s9519_s25 + $0x1e4] ss:$2 sm:$0xff] }
 0x198   : > { %v3884_v6 = vsel %vm3870_vm3, %v3761_v43, %v3162_v44  ;;  %v3762_v29 = vsel %vm3747_vm2, %v3639_v58, %v10025_v31  ;;  %v3518_v44 = vsel %vm3501_vm0, %v8332_v18, %v9679_v15  ;;  %v10120_v43 = vld [vmem:[%s14100_s2] ss:$0 sm:$0xff]  ;;  %v8333_v17 = vld [vmem:[%s9519_s25 + $0x110] ss:$2 sm:$0xff]  ;;  %v8715_v18 = vld [vmem:[%s9519_s25 + $0x213] ss:$2 sm:$0xff] }
 0x199   : > { %8939 = vmatmul.msk.f32.gmra.mxu0 %vm4002_vm4, %v3884_v6 }
 0x19b   : > { %2705 = vrot.lane.b32.xlu2 %v8711_v9, %s9411_s27 }
 0x19c   : > { %2217 = vrot.lane.b32.xlu1 %v8589_v55, %s9412_s28 }
 0x19d   : > { %3191 = vrot.lane.b32.xlu0 %v8832_v30, %s9413_s29  ;;  %v10089_v13 = vpop.permute.xlu2 %2683 }
 0x19e   : > { %v2190_v48 = vpop.permute.xlu1 %2189 }
 0x19f   : > { %v3164_v40 = vpop.permute.xlu0 %3163  ;;  %v3640_v5 = vsel %vm3624_vm1, %v3517_v46, %v2190_v48 }
 0x1a0   : > { %v3885_v61 = vsel %vm3870_vm3, %v3762_v29, %v3164_v40  ;;  %v3763_v36 = vsel %vm3747_vm2, %v3640_v5, %v10041_v19  ;;  %v8714_v40 = vld [vmem:[%s9519_s25 + $0x203] ss:$2 sm:$0xff]  ;;  %v8592_v29 = vld [vmem:[%s9519_s25 + $0x202] ss:$2 sm:$0xff] }
 0x1a1   : > { %8940 = vmatmul.msk.f32.gmra.mxu0 %vm4002_vm4, %v3885_v61  ;;  %v3519_v61 = vsel %vm3501_vm0, %v8333_v17, %v9641_v60  ;;  %v8716_v17 = vld [vmem:[%s9519_s25 + $0x223] ss:$2 sm:$0xff] }
 0x1a3   : > { %2707 = vrot.lane.b32.xlu2 %v8712_v54, %s9411_s27 }
 0x1a4   : > { %2219 = vrot.lane.b32.xlu1 %v8590_v49, %s9412_s28 }
 0x1a5   : > { %3193 = vrot.lane.b32.xlu0 %v8833_v25, %s9413_s29  ;;  %v10105_v31 = vpop.permute.xlu2 %2685 }
 0x1a6   : > { %v2192_v56 = vpop.permute.xlu1 %2191 }
 0x1a7   : > { %v3166_v10 = vpop.permute.xlu0 %3165  ;;  %v3641_v19 = vsel %vm3624_vm1, %v3518_v44, %v2192_v56  ;;  %v8334_v56 = vld [vmem:[%s9519_s25 + $0x120] ss:$2 sm:$0xff] }
 0x1a8   : > { %v3886_v50 = vsel %vm3870_vm3, %v3763_v36, %v3166_v10  ;;  %v3764_v30 = vsel %vm3747_vm2, %v3641_v19, %v10057_v1 }
 0x1a9   : > { %8941 = vmatmul.msk.f32.gmra.mxu0 %vm4002_vm4, %v3886_v50  ;;  %v8593_v50 = vld [vmem:[%s9519_s25 + $0x212] ss:$2 sm:$0xff] }
 0x1ab   : > { %2709 = vrot.lane.b32.xlu2 %v8713_v16, %s9411_s27  ;;  %v8836_v16 = vld [vmem:[%s9519_s25 + $0x204] ss:$2 sm:$0xff] }
 0x1ac   : > { %2221 = vrot.lane.b32.xlu1 %v8591_v3, %s9412_s28  ;;  %v3520_v3 = vsel %vm3501_vm0, %v8334_v56, %v9693_v22 }
 0x1ad   : > { %3195 = vrot.lane.b32.xlu0 %v8834_v62, %s9413_s29  ;;  %v10126_v6 = vpop.permute.xlu2 %2687 }
 0x1ae   : > { %v4386_v45 = vpop.f32.mrf.mxu0  ;;  %v2194_v9 = vpop.permute.xlu1 %2193 }
 0x1af   : > { %v4387_v15 = vadd.f32 %v10120_v43, %v4386_v45  ;;  %v3168_v55 = vpop.permute.xlu0 %3167  ;;  %v3642_v54 = vsel %vm3624_vm1, %v3519_v61, %v2194_v9  ;;  %v8335_v9 = vld [vmem:[%s9519_s25 + $0x130] ss:$2 sm:$0xff] }
 0x1b0   : > { %v3887_v58 = vsel %vm3870_vm3, %v3764_v30, %v3168_v55  ;;  %v3765_v5 = vsel %vm3747_vm2, %v3642_v54, %v10073_v38 }
 0x1b1   : > { %v4752_v48 = vmax.f32 %v4387_v15, 0.0  ;;  %8942 = vmatmul.msk.f32.gmra.mxu0 %vm4002_vm4, %v3887_v58  ;;  %v8594_v58 = vld [vmem:[%s9519_s25 + $0x222] ss:$2 sm:$0xff] }
 0x1b3   : > { %4874 = vst.msk [vmem:[#allocation2] sm:$0xff] %vm3870_vm3, %v4752_v48  ;;  %2711 = vrot.lane.b32.xlu2 %v8714_v40, %s9411_s27  ;;  %v8837_v48 = vld [vmem:[%s9519_s25 + $0x214] ss:$2 sm:$0xff]  ;;  %v3521_v40 = vsel %vm3501_vm0, %v8335_v9, %v9691_v21 }
 0x1b4   : > { %2223 = vrot.lane.b32.xlu1 %v8592_v29, %s9412_s28  ;;  %v8337_v9 = vld [vmem:[%s9519_s25 + $0x150] ss:$2 sm:$0xff] }
 0x1b5   : > { %3197 = vrot.lane.b32.xlu0 %v8835_v4, %s9413_s29  ;;  %v10144_v49 = vpop.permute.xlu2 %2689 }
 0x1b6   : > { %v4389_v1 = vpop.f32.mrf.mxu0  ;;  %v2196_v46 = vpop.permute.xlu1 %2195 }
 0x1b7   : > { %v4390_v25 = vadd.f32 %v10120_v43, %v4389_v1  ;;  %v3170_v60 = vpop.permute.xlu0 %3169  ;;  %v3643_v62 = vsel %vm3624_vm1, %v3520_v3, %v2196_v46 }
 0x1b8   : > { %v3888_v10 = vsel %vm3870_vm3, %v3765_v5, %v3170_v60  ;;  %v3766_v15 = vsel %vm3747_vm2, %v3643_v62, %v10089_v13  ;;  %v8336_v60 = vld [vmem:[%s9519_s25 + $0x140] ss:$2 sm:$0xff] }
 0x1b9   : > { %v4753_v36 = vmax.f32 %v4390_v25, 0.0  ;;  %8943 = vmatmul.msk.f32.gmra.mxu0 %vm4002_vm4, %v3888_v10  ;;  %v3522_v3 = vsel %vm3501_vm0, %v8336_v60, %v9653_v2 }
 0x1bb   : > { %4875 = vst.msk [vmem:[#allocation2 + $0x8] sm:$0xff] %vm3870_vm3, %v4753_v36  ;;  %2713 = vrot.lane.b32.xlu2 %v8715_v18, %s9411_s27  ;;  %v8717_v36 = vld [vmem:[%s9519_s25 + $0x233] ss:$2 sm:$0xff]  ;;  %v8595_v18 = vld [vmem:[%s9519_s25 + $0x232] ss:$2 sm:$0xff] }
 0x1bc   : > { %2225 = vrot.lane.b32.xlu1 %v8593_v50, %s9412_s28 }
 0x1bd   : > { %3199 = vrot.lane.b32.xlu0 %v8836_v16, %s9413_s29  ;;  %v10162_v44 = vpop.permute.xlu2 %2691  ;;  %v8838_v16 = vld [vmem:[%s9519_s25 + $0x224] ss:$2 sm:$0xff] }
 0x1be   : > { %v4392_v38 = vpop.f32.mrf.mxu0  ;;  %v2198_v45 = vpop.permute.xlu1 %2197 }
 0x1bf   : > { %v4393_v19 = vadd.f32 %v10120_v43, %v4392_v38  ;;  %v3172_v22 = vpop.permute.xlu0 %3171  ;;  %v3644_v29 = vsel %vm3624_vm1, %v3521_v40, %v2198_v45  ;;  %v3523_v40 = vsel %vm3501_vm0, %v8337_v9, %v9705_v28 }
 0x1c0   : > { %v3889_v55 = vsel %vm3870_vm3, %v3766_v15, %v3172_v22  ;;  %v3767_v46 = vsel %vm3747_vm2, %v3644_v29, %v10105_v31 }
 0x1c1   : > { %v4754_v30 = vmax.f32 %v4393_v19, 0.0  ;;  %8944 = vmatmul.msk.f32.gmra.mxu0 %vm4002_vm4, %v3889_v55 }
 0x1c2   : > { %v4997_v13 = vld [vmem:[#allocation2] ss:$2 sm:$0xff]  ;;  %v5119_v4 = vld [vmem:[#allocation2 + $0x1] ss:$2 sm:$0xff] }
 0x1c3   : > { %4876 = vst.msk [vmem:[#allocation2 + $0x10] sm:$0xff] %vm3870_vm3, %v4754_v30  ;;  %2715 = vrot.lane.b32.xlu2 %v8716_v17, %s9411_s27  ;;  %v5362_v56 = vmax.f32 %v4997_v13, %v5119_v4  ;;  %v8718_v17 = vld [vmem:[%s9519_s25 + $0x243] ss:$2 sm:$0xff] }
 0x1c4   : > { %2227 = vrot.lane.b32.xlu1 %v8594_v58, %s9412_s28  ;;  %v8596_v58 = vld [vmem:[%s9519_s25 + $0x242] ss:$2 sm:$0xff] }
 0x1c5   : > { %3201 = vrot.lane.b32.xlu0 %v8837_v48, %s9413_s29  ;;  %v10180_v54 = vpop.permute.xlu2 %2693  ;;  %v8839_v48 = vld [vmem:[%s9519_s25 + $0x234] ss:$2 sm:$0xff] }
 0x1c6   : > { %v4395_v61 = vpop.f32.mrf.mxu0  ;;  %v2200_v1 = vpop.permute.xlu1 %2199 }
 0x1c7   : > { %v4396_v21 = vadd.f32 %v10120_v43, %v4395_v61  ;;  %v3174_v25 = vpop.permute.xlu0 %3173  ;;  %v3645_v31 = vsel %vm3624_vm1, %v3522_v3, %v2200_v1 }
 0x1c8   : > { %v3890_v5 = vsel %vm3870_vm3, %v3767_v46, %v3174_v25  ;;  %v3768_v15 = vsel %vm3747_vm2, %v3645_v31, %v10126_v6  ;;  %v8338_v46 = vld [vmem:[%s9519_s25 + $0x160] ss:$2 sm:$0xff] }
 0x1c9   : > { %v4755_v10 = vmax.f32 %v4396_v21, 0.0  ;;  %8945 = vmatmul.msk.f32.gmra.mxu0 %vm4002_vm4, %v3890_v5 }
 0x1ca   : > { %v5241_v50 = vld [vmem:[#allocation2 + $0x2] ss:$2 sm:$0xff] }
 0x1cb   : > { %v5423_v62 = vmax.f32 %v5362_v56, %v5241_v50  ;;  %4877 = vst.msk [vmem:[#allocation2 + $0x18] sm:$0xff] %vm3870_vm3, %v4755_v10  ;;  %2717 = vrot.lane.b32.xlu2 %v8717_v36, %s9411_s27  ;;  %v8719_v10 = vld [vmem:[%s9519_s25 + $0x253] ss:$2 sm:$0xff]  ;;  %v8597_v36 = vld [vmem:[%s9519_s25 + $0x252] ss:$2 sm:$0xff] }
 0x1cc   : > { %2229 = vrot.lane.b32.xlu1 %v8595_v18, %s9412_s28  ;;  %v8840_v50 = vld [vmem:[%s9519_s25 + $0x244] ss:$2 sm:$0xff] }
 0x1cd   : > { %5484 = vst.msk [vmem:[#allocation3] sm:$0xff] %vm3870_vm3, %v5423_v62  ;;  %3203 = vrot.lane.b32.xlu0 %v8838_v16, %s9413_s29  ;;  %v10199_v19 = vpop.permute.xlu2 %2695  ;;  %v3524_v16 = vsel %vm3501_vm0, %v8338_v46, %v9703_v27 }
 0x1ce   : > { %v4398_v38 = vpop.f32.mrf.mxu0  ;;  %v2202_v45 = vpop.permute.xlu1 %2201 }
 0x1cf   : > { %v4399_v2 = vadd.f32 %v10120_v43, %v4398_v38  ;;  %v3176_v22 = vpop.permute.xlu0 %3175  ;;  %v3646_v29 = vsel %vm3624_vm1, %v3523_v40, %v2202_v45 }
 0x1d0   : > { %v3891_v55 = vsel %vm3870_vm3, %v3768_v15, %v3176_v22  ;;  %v3769_v25 = vsel %vm3747_vm2, %v3646_v29, %v10144_v49  ;;  %v8339_v22 = vld [vmem:[%s9519_s25 + $0x170] ss:$2 sm:$0xff] }
 0x1d1   : > { %v4756_v30 = vmax.f32 %v4399_v2, 0.0  ;;  %8946 = vmatmul.msk.f32.gmra.mxu0 %vm4002_vm4, %v3891_v55  ;;  %v8720_v55 = vld [vmem:[%s9519_s25 + $0x263] ss:$2 sm:$0xff] }
 0x1d2   : > { %v4999_v6 = vld [vmem:[#allocation2 + $0x10] ss:$2 sm:$0xff]  ;;  %v5121_v13 = vld [vmem:[#allocation2 + $0x11] ss:$2 sm:$0xff] }
 0x1d3   : > { %4878 = vst.msk [vmem:[#allocation2 + $0x20] sm:$0xff] %vm3870_vm3, %v4756_v30  ;;  %2719 = vrot.lane.b32.xlu2 %v8718_v17, %s9411_s27  ;;  %v5363_v5 = vmax.f32 %v4999_v6, %v5121_v13  ;;  %v8598_v30 = vld [vmem:[%s9519_s25 + $0x262] ss:$2 sm:$0xff] }
 0x1d4   : > { %2231 = vrot.lane.b32.xlu1 %v8596_v58, %s9412_s28  ;;  %v8841_v17 = vld [vmem:[%s9519_s25 + $0x254] ss:$2 sm:$0xff]  ;;  %v3525_v58 = vsel %vm3501_vm0, %v8339_v22, %v9665_v8 }
 0x1d5   : > { %3205 = vrot.lane.b32.xlu0 %v8839_v48, %s9413_s29  ;;  %v10217_v61 = vpop.permute.xlu2 %2697  ;;  %v8600_v22 = vld [vmem:[%s9519_s25 + $0x282] ss:$2 sm:$0xff] }
 0x1d6   : > { %v4401_v4 = vpop.f32.mrf.mxu0  ;;  %v2204_v21 = vpop.permute.xlu1 %2203 }
 0x1d7   : > { %v4402_v28 = vadd.f32 %v10120_v43, %v4401_v4  ;;  %v3178_v1 = vpop.permute.xlu0 %3177  ;;  %v3647_v49 = vsel %vm3624_vm1, %v3524_v16, %v2204_v21  ;;  %v8340_v21 = vld [vmem:[%s9519_s25 + $0x180] ss:$2 sm:$0xff] }
 0x1d8   : > { %v3892_v60 = vsel %vm3870_vm3, %v3769_v25, %v3178_v1  ;;  %v3770_v45 = vsel %vm3747_vm2, %v3647_v49, %v10162_v44 }
 0x1d9   : > { %v4757_v56 = vmax.f32 %v4402_v28, 0.0  ;;  %8947 = vmatmul.msk.f32.gmra.mxu0 %vm4002_vm4, %v3892_v60  ;;  %v8721_v60 = vld [vmem:[%s9519_s25 + $0x273] ss:$2 sm:$0xff] }
 0x1da   : > { %v5243_v18 = vld [vmem:[#allocation2 + $0x12] ss:$2 sm:$0xff] }
 0x1db   : > { %v5424_v3 = vmax.f32 %v5363_v5, %v5243_v18  ;;  %4879 = vst.msk [vmem:[#allocation2 + $0x28] sm:$0xff] %vm3870_vm3, %v4757_v56  ;;  %2721 = vrot.lane.b32.xlu2 %v8719_v10, %s9411_s27  ;;  %v8599_v5 = vld [vmem:[%s9519_s25 + $0x272] ss:$2 sm:$0xff] }
 0x1dc   : > { %2233 = vrot.lane.b32.xlu1 %v8597_v36, %s9412_s28  ;;  %v8842_v10 = vld [vmem:[%s9519_s25 + $0x264] ss:$2 sm:$0xff]  ;;  %v3526_v36 = vsel %vm3501_vm0, %v8340_v21, %v9717_v34 }
 0x1dd   : > { %5485 = vst.msk [vmem:[#allocation3 + $0x8] sm:$0xff] %vm3870_vm3, %v5424_v3  ;;  %3207 = vrot.lane.b32.xlu0 %v8840_v50, %s9413_s29  ;;  %v10236_v31 = vpop.permute.xlu2 %2699  ;;  %v8601_v21 = vld [vmem:[%s9519_s25 + $0x292] ss:$2 sm:$0xff] }
 0x1de   : > { %v4404_v62 = vpop.f32.mrf.mxu0  ;;  %v2206_v38 = vpop.permute.xlu1 %2205 }
 0x1df   : > { %v4405_v27 = vadd.f32 %v10120_v43, %v4404_v62  ;;  %v3180_v2 = vpop.permute.xlu0 %3179  ;;  %v3648_v48 = vsel %vm3624_vm1, %v3525_v58, %v2206_v38 }
 0x1e0   : > { %v3893_v15 = vsel %vm3870_vm3, %v3770_v45, %v3180_v2  ;;  %v3771_v28 = vsel %vm3747_vm2, %v3648_v48, %v10180_v54  ;;  %v8722_v45 = vld [vmem:[%s9519_s25 + $0x283] ss:$2 sm:$0xff] }
 0x1e1   : > { %v4758_v9 = vmax.f32 %v4405_v27, 0.0  ;;  %8948 = vmatmul.msk.f32.gmra.mxu0 %vm4002_vm4, %v3893_v15  ;;  %v8341_v27 = vld [vmem:[%s9519_s25 + $0x190] ss:$2 sm:$0xff] }
 0x1e2   : > { %v5001_v44 = vld [vmem:[#allocation2 + $0x20] ss:$2 sm:$0xff]  ;;  %v5123_v40 = vld [vmem:[#allocation2 + $0x21] ss:$2 sm:$0xff] }
 0x1e3   : > { %4880 = vst.msk [vmem:[#allocation2 + $0x30] sm:$0xff] %vm3870_vm3, %v4758_v9  ;;  %2723 = vrot.lane.b32.xlu2 %v8720_v55, %s9411_s27  ;;  %v5364_v25 = vmax.f32 %v5001_v44, %v5123_v40  ;;  %v8843_v15 = vld [vmem:[%s9519_s25 + $0x274] ss:$2 sm:$0xff]  ;;  %v3527_v9 = vsel %vm3501_vm0, %v8341_v27, %v9715_v33 }
 0x1e4   : > { %2235 = vrot.lane.b32.xlu1 %v8598_v30, %s9412_s28 }
 0x1e5   : > { %3209 = vrot.lane.b32.xlu0 %v8841_v17, %s9413_s29  ;;  %v10254_v6 = vpop.permute.xlu2 %2701 }
 0x1e6   : > { %v4407_v29 = vpop.f32.mrf.mxu0  ;;  %v2208_v13 = vpop.permute.xlu1 %2207 }
 0x1e7   : > { %v4408_v8 = vadd.f32 %v10120_v43, %v4407_v29  ;;  %v3182_v4 = vpop.permute.xlu0 %3181  ;;  %v3649_v54 = vsel %vm3624_vm1, %v3526_v36, %v2208_v13  ;;  %v8342_v29 = vld [vmem:[%s9519_s25 + $0x1a0] ss:$2 sm:$0xff] }
 0x1e8   : > { %v3894_v1 = vsel %vm3870_vm3, %v3771_v28, %v3182_v4  ;;  %v3772_v62 = vsel %vm3747_vm2, %v3649_v54, %v10199_v19  ;;  %v8723_v28 = vld [vmem:[%s9519_s25 + $0x293] ss:$2 sm:$0xff]  ;;  %v8343_v54 = vld [vmem:[%s9519_s25 + $0x1b0] ss:$2 sm:$0xff] }
 0x1e9   : > { %v4759_v46 = vmax.f32 %v4408_v8, 0.0  ;;  %8949 = vmatmul.msk.f32.gmra.mxu0 %vm4002_vm4, %v3894_v1  ;;  %v3529_v27 = vsel %vm3501_vm0, %v8343_v54, %v9729_v42 }
 0x1ea   : > { %v5245_v56 = vld [vmem:[#allocation2 + $0x22] ss:$2 sm:$0xff] }
 0x1eb   : > { %v5425_v18 = vmax.f32 %v5364_v25, %v5245_v56  ;;  %4881 = vst.msk [vmem:[#allocation2 + $0x38] sm:$0xff] %vm3870_vm3, %v4759_v46  ;;  %2725 = vrot.lane.b32.xlu2 %v8721_v60, %s9411_s27  ;;  %v8844_v25 = vld [vmem:[%s9519_s25 + $0x284] ss:$2 sm:$0xff]  ;;  %v3528_v46 = vsel %vm3501_vm0, %v8342_v29, %v9677_v14 }
 0x1ec   : > { %2237 = vrot.lane.b32.xlu1 %v8599_v5, %s9412_s28  ;;  %v8846_v29 = vld [vmem:[%s9519_s25 + $0x2a4] ss:$2 sm:$0xff] }
 0x1ed   : > { %5486 = vst.msk [vmem:[#allocation3 + $0x10] sm:$0xff] %vm3870_vm3, %v5425_v18  ;;  %3211 = vrot.lane.b32.xlu0 %v8842_v10, %s9413_s29  ;;  %v10273_v16 = vpop.permute.xlu2 %2703 }
 0x1ee   : > { %v4410_v50 = vpop.f32.mrf.mxu0  ;;  %v2210_v3 = vpop.permute.xlu1 %2209 }
 0x1ef   : > { %v4411_v34 = vadd.f32 %v10120_v43, %v4410_v50  ;;  %v3184_v49 = vpop.permute.xlu0 %3183  ;;  %v3650_v55 = vsel %vm3624_vm1, %v3527_v9, %v2210_v3  ;;  %v8724_v3 = vld [vmem:[%s9519_s25 + $0x2a3] ss:$2 sm:$0xff] }
 0x1f0   : > { %v3895_v38 = vsel %vm3870_vm3, %v3772_v62, %v3184_v49  ;;  %v3773_v40 = vsel %vm3747_vm2, %v3650_v55, %v10217_v61  ;;  %v8602_v49 = vld [vmem:[%s9519_s25 + $0x2a2] ss:$2 sm:$0xff] }
 0x1f1   : > { %v4760_v2 = vmax.f32 %v4411_v34, 0.0  ;;  %8950 = vmatmul.msk.f32.gmra.mxu0 %vm4002_vm4, %v3895_v38  ;;  %v8845_v62 = vld [vmem:[%s9519_s25 + $0x294] ss:$2 sm:$0xff] }
 0x1f2   : > { %v5003_v19 = vld [vmem:[#allocation2 + $0x30] ss:$2 sm:$0xff]  ;;  %v5125_v30 = vld [vmem:[#allocation2 + $0x31] ss:$2 sm:$0xff] }
 0x1f3   : > { %4882 = vst.msk [vmem:[#allocation2 + $0x40] sm:$0xff] %vm3870_vm3, %v4760_v2  ;;  %2727 = vrot.lane.b32.xlu2 %v8722_v45, %s9411_s27  ;;  %v5365_v13 = vmax.f32 %v5003_v19, %v5125_v30  ;;  %v8344_v19 = vld [vmem:[%s9519_s25 + $0x1c0] ss:$2 sm:$0xff] }
 0x1f4   : > { %2239 = vrot.lane.b32.xlu1 %v8600_v22, %s9412_s28 }
 0x1f5   : > { %3213 = vrot.lane.b32.xlu0 %v8843_v15, %s9413_s29  ;;  %v10291_v58 = vpop.permute.xlu2 %2705 }
 0x1f6   : > { %v4413_v17 = vpop.f32.mrf.mxu0  ;;  %v2212_v48 = vpop.permute.xlu1 %2211 }
 0x1f7   : > { %v4414_v33 = vadd.f32 %v10120_v43, %v4413_v17  ;;  %v3186_v44 = vpop.permute.xlu0 %3185  ;;  %v3651_v61 = vsel %vm3624_vm1, %v3528_v46, %v2212_v48  ;;  %v8725_v48 = vld [vmem:[%s9519_s25 + $0x2b3] ss:$2 sm:$0xff]  ;;  %v8345_v46 = vld [vmem:[%s9519_s25 + $0x1d0] ss:$2 sm:$0xff] }
 0x1f8   : > { %v3896_v8 = vsel %vm3870_vm3, %v3773_v40, %v3186_v44  ;;  %v3774_v18 = vsel %vm3747_vm2, %v3651_v61, %v10236_v31  ;;  %v8603_v44 = vld [vmem:[%s9519_s25 + $0x2b2] ss:$2 sm:$0xff] }
 0x1f9   : > { %v4761_v4 = vmax.f32 %v4414_v33, 0.0  ;;  %8951 = vmatmul.msk.f32.gmra.mxu0 %vm4002_vm4, %v3896_v8  ;;  %v3530_v8 = vsel %vm3501_vm0, %v8344_v19, %v9727_v41 }
 0x1fa   : > { %v5247_v1 = vld [vmem:[#allocation2 + $0x32] ss:$2 sm:$0xff] }
 0x1fb   : > { %v5426_v60 = vmax.f32 %v5365_v13, %v5247_v1  ;;  %4883 = vst.msk [vmem:[#allocation2 + $0x48] sm:$0xff] %vm3870_vm3, %v4761_v4  ;;  %2729 = vrot.lane.b32.xlu2 %v8723_v28, %s9411_s27 }
 0x1fc   : > { %2241 = vrot.lane.b32.xlu1 %v8601_v21, %s9412_s28 }
 0x1fd   : > { %5487 = vst.msk [vmem:[#allocation3 + $0x18] sm:$0xff] %vm3870_vm3, %v5426_v60  ;;  %3215 = vrot.lane.b32.xlu0 %v8844_v25, %s9413_s29  ;;  %v10310_v56 = vpop.permute.xlu2 %2707 }
 0x1fe   : > { %v4416_v5 = vpop.f32.mrf.mxu0  ;;  %v2214_v10 = vpop.permute.xlu1 %2213 }
 0x1ff   : > { %v4417_v14 = vadd.f32 %v10120_v43, %v4416_v5  ;;  %v3188_v36 = vpop.permute.xlu0 %3187  ;;  %v3652_v38 = vsel %vm3624_vm1, %v3529_v27, %v2214_v10  ;;  %v8726_v5 = vld [vmem:[%s9519_s25 + $0x2c3] ss:$2 sm:$0xff]  ;;  %v8847_v10 = vld [vmem:[%s9519_s25 + $0x2b4] ss:$2 sm:$0xff] }
 0x200   : > { %v3897_v50 = vsel %vm3870_vm3, %v3774_v18, %v3188_v36  ;;  %v3775_v55 = vsel %vm3747_vm2, %v3652_v38, %v10254_v6  ;;  %v3531_v36 = vsel %vm3501_vm0, %v8345_v46, %v9689_v20  ;;  %v8346_v27 = vld [vmem:[%s9519_s25 + $0x1e0] ss:$2 sm:$0xff] }
 0x201   : > { %v4762_v34 = vmax.f32 %v4417_v14, 0.0  ;;  %8952 = vmatmul.msk.f32.gmra.mxu0 %vm4002_vm4, %v3897_v50  ;;  %v8604_v14 = vld [vmem:[%s9519_s25 + $0x2c2] ss:$2 sm:$0xff] }
 0x202   : > { %v5005_v31 = vld [vmem:[#allocation2 + $0x40] ss:$2 sm:$0xff]  ;;  %v5127_v2 = vld [vmem:[#allocation2 + $0x41] ss:$2 sm:$0xff] }
 0x203   : > { %4884 = vst.msk [vmem:[#allocation2 + $0x50] sm:$0xff] %vm3870_vm3, %v4762_v34  ;;  %2731 = vrot.lane.b32.xlu2 %v8724_v3, %s9411_s27  ;;  %v5366_v17 = vmax.f32 %v5005_v31, %v5127_v2 }
 0x204   : > { %2243 = vrot.lane.b32.xlu1 %v8602_v49, %s9412_s28 }
 0x205   : > { %3217 = vrot.lane.b32.xlu0 %v8845_v62, %s9413_s29  ;;  %v10328_v22 = vpop.permute.xlu2 %2709 }
 0x206   : > { %v4419_v45 = vpop.f32.mrf.mxu0  ;;  %v2216_v15 = vpop.permute.xlu1 %2215 }
 0x207   : > { %v4420_v42 = vadd.f32 %v10120_v43, %v4419_v45  ;;  %v3190_v9 = vpop.permute.xlu0 %3189  ;;  %v3653_v6 = vsel %vm3624_vm1, %v3530_v8, %v2216_v15  ;;  %v8727_v45 = vld [vmem:[%s9519_s25 + $0x2d3] ss:$2 sm:$0xff] }
 0x208   : > { %v3898_v30 = vsel %vm3870_vm3, %v3775_v55, %v3190_v9  ;;  %v3776_v25 = vsel %vm3747_vm2, %v3653_v6, %v10273_v16  ;;  %v8848_v9 = vld [vmem:[%s9519_s25 + $0x2c4] ss:$2 sm:$0xff]  ;;  %v3532_v55 = vsel %vm3501_vm0, %v8346_v27, %v9741_v52 }
 0x209   : > { %v4763_v33 = vmax.f32 %v4420_v42, 0.0  ;;  %8953 = vmatmul.msk.f32.gmra.mxu0 %vm4002_vm4, %v3898_v30  ;;  %v8605_v42 = vld [vmem:[%s9519_s25 + $0x2d2] ss:$2 sm:$0xff]  ;;  %v8606_v6 = vld [vmem:[%s9519_s25 + $0x2e2] ss:$2 sm:$0xff] }
 0x20a   : > { %v5249_v40 = vld [vmem:[#allocation2 + $0x42] ss:$2 sm:$0xff] }
 0x20b   : > { %v5427_v13 = vmax.f32 %v5366_v17, %v5249_v40  ;;  %4885 = vst.msk [vmem:[#allocation2 + $0x58] sm:$0xff] %vm3870_vm3, %v4763_v33  ;;  %2733 = vrot.lane.b32.xlu2 %v8725_v48, %s9411_s27  ;;  %v8347_v40 = vld [vmem:[%s9519_s25 + $0x1f0] ss:$2 sm:$0xff] }
 0x20c   : > { %2245 = vrot.lane.b32.xlu1 %v8603_v44, %s9412_s28 }
 0x20d   : > { %5488 = vst.msk [vmem:[#allocation3 + $0x20] sm:$0xff] %vm3870_vm3, %v5427_v13  ;;  %3219 = vrot.lane.b32.xlu0 %v8846_v29, %s9413_s29  ;;  %v10347_v28 = vpop.permute.xlu2 %2711  ;;  %v8728_v13 = vld [vmem:[%s9519_s25 + $0x2e3] ss:$2 sm:$0xff] }
 0x20e   : > { %v4422_v4 = vpop.f32.mrf.mxu0  ;;  %v2218_v21 = vpop.permute.xlu1 %2217 }
 0x20f   : > { %v4423_v41 = vadd.f32 %v10120_v43, %v4422_v4  ;;  %v3192_v1 = vpop.permute.xlu0 %3191  ;;  %v3654_v18 = vsel %vm3624_vm1, %v3531_v36, %v2218_v21  ;;  %v8849_v4 = vld [vmem:[%s9519_s25 + $0x2d4] ss:$2 sm:$0xff] }
 0x210   : > { %v3899_v60 = vsel %vm3870_vm3, %v3776_v25, %v3192_v1  ;;  %v3777_v62 = vsel %vm3747_vm2, %v3654_v18, %v10291_v58 }
 0x211   : > { %v4764_v61 = vmax.f32 %v4423_v41, 0.0  ;;  %8954 = vmatmul.msk.f32.gmra.mxu0 %vm4002_vm4, %v3899_v60  ;;  %v3533_v41 = vsel %vm3501_vm0, %v8347_v40, %v9739_v51 }
 0x212   : > { %v5007_v16 = vld [vmem:[#allocation2 + $0x50] ss:$2 sm:$0xff]  ;;  %v5129_v54 = vld [vmem:[#allocation2 + $0x51] ss:$2 sm:$0xff] }
 0x213   : > { %4886 = vst.msk [vmem:[#allocation2 + $0x60] sm:$0xff] %vm3870_vm3, %v4764_v61  ;;  %2735 = vrot.lane.b32.xlu2 %v8726_v5, %s9411_s27  ;;  %v5367_v31 = vmax.f32 %v5007_v16, %v5129_v54  ;;  %v8729_v16 = vld [vmem:[%s9519_s25 + $0x2f3] ss:$2 sm:$0xff]  ;;  %v8607_v54 = vld [vmem:[%s9519_s25 + $0x2f2] ss:$2 sm:$0xff] }
 0x214   : > { %2247 = vrot.lane.b32.xlu1 %v8604_v14, %s9412_s28  ;;  %v8348_v14 = vld [vmem:[%s9519_s25 + $0x200] ss:$2 sm:$0xff] }
 0x215   : > { %3221 = vrot.lane.b32.xlu0 %v8847_v10, %s9413_s29  ;;  %v10365_v34 = vpop.permute.xlu2 %2713 }
 0x216   : > { %v4425_v50 = vpop.f32.mrf.mxu0  ;;  %v2220_v3 = vpop.permute.xlu1 %2219 }
 0x217   : > { %v4426_v20 = vadd.f32 %v10120_v43, %v4425_v50  ;;  %v3194_v49 = vpop.permute.xlu0 %3193  ;;  %v3655_v58 = vsel %vm3624_vm1, %v3532_v55, %v2220_v3  ;;  %v3534_v3 = vsel %vm3501_vm0, %v8348_v14, %v9701_v26  ;;  %v8608_v55 = vld [vmem:[%s9519_s25 + $0x302] ss:$2 sm:$0xff] }
 0x218   : > { %v3900_v38 = vsel %vm3870_vm3, %v3777_v62, %v3194_v49  ;;  %v3778_v44 = vsel %vm3747_vm2, %v3655_v58, %v10310_v56 }
 0x219   : > { %v4765_v2 = vmax.f32 %v4426_v20, 0.0  ;;  %8955 = vmatmul.msk.f32.gmra.mxu0 %vm4002_vm4, %v3900_v38  ;;  %v8850_v20 = vld [vmem:[%s9519_s25 + $0x2e4] ss:$2 sm:$0xff] }
 0x21a   : > { %v5251_v15 = vld [vmem:[#allocation2 + $0x52] ss:$2 sm:$0xff] }
 0x21b   : > { %v5428_v19 = vmax.f32 %v5367_v31, %v5251_v15  ;;  %4887 = vst.msk [vmem:[#allocation2 + $0x68] sm:$0xff] %vm3870_vm3, %v4765_v2  ;;  %2737 = vrot.lane.b32.xlu2 %v8727_v45, %s9411_s27  ;;  %v8349_v45 = vld [vmem:[%s9519_s25 + $0x210] ss:$2 sm:$0xff] }
 0x21c   : > { %2249 = vrot.lane.b32.xlu1 %v8605_v42, %s9412_s28  ;;  %v3535_v58 = vsel %vm3501_vm0, %v8349_v45, %v9753_v0  ;;  %v8352_v45 = vld [vmem:[%s9519_s25 + $0x240] ss:$2 sm:$0xff] }
 0x21d   : > { %5489 = vst.msk [vmem:[#allocation3 + $0x28] sm:$0xff] %vm3870_vm3, %v5428_v19  ;;  %3223 = vrot.lane.b32.xlu0 %v8848_v9, %s9413_s29  ;;  %v10384_v17 = vpop.permute.xlu2 %2715  ;;  %v8730_v9 = vld [vmem:[%s9519_s25 + $0x303] ss:$2 sm:$0xff]  ;;  %v8851_v19 = vld [vmem:[%s9519_s25 + $0x2f4] ss:$2 sm:$0xff] }
 0x21e   : > { %v4428_v30 = vpop.f32.mrf.mxu0  ;;  %v2222_v33 = vpop.permute.xlu1 %2221 }
 0x21f   : > { %v4429_v52 = vadd.f32 %v10120_v43, %v4428_v30  ;;  %v3196_v48 = vpop.permute.xlu0 %3195  ;;  %v3656_v21 = vsel %vm3624_vm1, %v3533_v41, %v2222_v33  ;;  %v8731_v41 = vld [vmem:[%s9519_s25 + $0x313] ss:$2 sm:$0xff] }
 0x220   : > { %v3901_v29 = vsel %vm3870_vm3, %v3778_v44, %v3196_v48  ;;  %v3779_v5 = vsel %vm3747_vm2, %v3656_v21, %v10328_v22  ;;  %v8609_v21 = vld [vmem:[%s9519_s25 + $0x312] ss:$2 sm:$0xff] }
 0x221   : > { %v4766_v8 = vmax.f32 %v4429_v52, 0.0  ;;  %8956 = vmatmul.msk.f32.gmra.mxu0 %vm4002_vm4, %v3901_v29 }
 0x222   : > { %v5009_v56 = vld [vmem:[#allocation2 + $0x60] ss:$2 sm:$0xff]  ;;  %v5131_v1 = vld [vmem:[#allocation2 + $0x61] ss:$2 sm:$0xff] }
 0x223   : > { %4888 = vst.msk [vmem:[#allocation2 + $0x70] sm:$0xff] %vm3870_vm3, %v4766_v8  ;;  %2739 = vrot.lane.b32.xlu2 %v8728_v13, %s9411_s27  ;;  %v5368_v36 = vmax.f32 %v5009_v56, %v5131_v1  ;;  %v8350_v8 = vld [vmem:[%s9519_s25 + $0x220] ss:$2 sm:$0xff] }
 0x224   : > { %2251 = vrot.lane.b32.xlu1 %v8606_v6, %s9412_s28  ;;  %v8852_v1 = vld [vmem:[%s9519_s25 + $0x304] ss:$2 sm:$0xff] }
 0x225   : > { %3225 = vrot.lane.b32.xlu0 %v8849_v4, %s9413_s29  ;;  %v10402_v46 = vpop.permute.xlu2 %2717 }
 0x226   : > { %v4431_v25 = vpop.f32.mrf.mxu0  ;;  %v2224_v60 = vpop.permute.xlu1 %2223 }
 0x227   : > { %v4432_v51 = vadd.f32 %v10120_v43, %v4431_v25  ;;  %v3198_v61 = vpop.permute.xlu0 %3197  ;;  %v3657_v22 = vsel %vm3624_vm1, %v3534_v3, %v2224_v60  ;;  %v3536_v25 = vsel %vm3501_vm0, %v8350_v8, %v9751_v63  ;;  %v8353_v8 = vld [vmem:[%s9519_s25 + $0x250] ss:$2 sm:$0xff] }
 0x228   : > { %v3902_v10 = vsel %vm3870_vm3, %v3779_v5, %v3198_v61  ;;  %v3780_v2 = vsel %vm3747_vm2, %v3657_v22, %v10347_v28 }
 0x229   : > { %v4767_v18 = vmax.f32 %v4432_v51, 0.0  ;;  %8957 = vmatmul.msk.f32.gmra.mxu0 %vm4002_vm4, %v3902_v10 }
 0x22a   : > { %v5253_v50 = vld [vmem:[#allocation2 + $0x62] ss:$2 sm:$0xff] }
 0x22b   : > { %v5429_v49 = vmax.f32 %v5368_v36, %v5253_v50  ;;  %4889 = vst.msk [vmem:[#allocation2 + $0x78] sm:$0xff] %vm3870_vm3, %v4767_v18  ;;  %2741 = vrot.lane.b32.xlu2 %v8729_v16, %s9411_s27  ;;  %v8351_v36 = vld [vmem:[%s9519_s25 + $0x230] ss:$2 sm:$0xff] }
 0x22c   : > { %2253 = vrot.lane.b32.xlu1 %v8607_v54, %s9412_s28  ;;  %v8732_v54 = vld [vmem:[%s9519_s25 + $0x323] ss:$2 sm:$0xff]  ;;  %v8610_v50 = vld [vmem:[%s9519_s25 + $0x322] ss:$2 sm:$0xff]  ;;  %v3537_v3 = vsel %vm3501_vm0, %v8351_v36, %v9713_v32 }
 0x22d   : > { %5490 = vst.msk [vmem:[#allocation3 + $0x30] sm:$0xff] %vm3870_vm3, %v5429_v49  ;;  %3227 = vrot.lane.b32.xlu0 %v8850_v20, %s9413_s29  ;;  %v10421_v27 = vpop.permute.xlu2 %2719  ;;  %v8853_v20 = vld [vmem:[%s9519_s25 + $0x314] ss:$2 sm:$0xff] }
 0x22e   : > { %v4434_v62 = vpop.f32.mrf.mxu0  ;;  %v2226_v38 = vpop.permute.xlu1 %2225 }
 0x22f   : > { %v4435_v26 = vadd.f32 %v10120_v43, %v4434_v62  ;;  %v3200_v31 = vpop.permute.xlu0 %3199  ;;  %v3658_v30 = vsel %vm3624_vm1, %v3535_v58, %v2226_v38 }
 0x230   : > { %v3903_v42 = vsel %vm3870_vm3, %v3780_v2, %v3200_v31  ;;  %v3781_v29 = vsel %vm3747_vm2, %v3658_v30, %v10365_v34  ;;  %v8854_v30 = vld [vmem:[%s9519_s25 + $0x324] ss:$2 sm:$0xff] }
 0x231   : > { %v4768_v15 = vmax.f32 %v4435_v26, 0.0  ;;  %8958 = vmatmul.msk.f32.gmra.mxu0 %vm4002_vm4, %v3903_v42 }
 0x232   : > { %v5011_v28 = vld [vmem:[#allocation2 + $0x70] ss:$2 sm:$0xff]  ;;  %v5133_v52 = vld [vmem:[#allocation2 + $0x71] ss:$2 sm:$0xff] }
 0x233   : > { %4890 = vst.msk [vmem:[#allocation2 + $0x80] sm:$0xff] %vm3870_vm3, %v4768_v15  ;;  %2743 = vrot.lane.b32.xlu2 %v8730_v9, %s9411_s27  ;;  %v5369_v6 = vmax.f32 %v5011_v28, %v5133_v52  ;;  %v3538_v28 = vsel %vm3501_vm0, %v8352_v45, %v9765_v12 }
 0x234   : > { %2255 = vrot.lane.b32.xlu1 %v8608_v55, %s9412_s28  ;;  %v8733_v55 = vld [vmem:[%s9519_s25 + $0x333] ss:$2 sm:$0xff] }
 0x235   : > { %3229 = vrot.lane.b32.xlu0 %v8851_v19, %s9413_s29  ;;  %v10439_v48 = vpop.permute.xlu2 %2721  ;;  %v8611_v19 = vld [vmem:[%s9519_s25 + $0x332] ss:$2 sm:$0xff] }
 0x236   : > { %v4437_v33 = vpop.f32.mrf.mxu0  ;;  %v2228_v44 = vpop.permute.xlu1 %2227 }
 0x237   : > { %v4438_v0 = vadd.f32 %v10120_v43, %v4437_v33  ;;  %v3202_v40 = vpop.permute.xlu0 %3201  ;;  %v3659_v34 = vsel %vm3624_vm1, %v3536_v25, %v2228_v44 }
 0x238   : > { %v3904_v13 = vsel %vm3870_vm3, %v3781_v29, %v3202_v40  ;;  %v3782_v10 = vsel %vm3747_vm2, %v3659_v34, %v10384_v17 }
 0x239   : > { %v4769_v4 = vmax.f32 %v4438_v0, 0.0  ;;  %8959 = vmatmul.msk.f32.gmra.mxu0 %vm4002_vm4, %v3904_v13 }
 0x23a   : > { %v5255_v56 = vld [vmem:[#allocation2 + $0x72] ss:$2 sm:$0xff] }
 0x23b   : > { %v5430_v51 = vmax.f32 %v5369_v6, %v5255_v56  ;;  %4891 = vst.msk [vmem:[#allocation2 + $0x88] sm:$0xff] %vm3870_vm3, %v4769_v4  ;;  %2745 = vrot.lane.b32.xlu2 %v8731_v41, %s9411_s27  ;;  %v8734_v4 = vld [vmem:[%s9519_s25 + $0x343] ss:$2 sm:$0xff]  ;;  %v8612_v41 = vld [vmem:[%s9519_s25 + $0x342] ss:$2 sm:$0xff]  ;;  %v3539_v56 = vsel %vm3501_vm0, %v8353_v8, %v9763_v11 }
 0x23c   : > { %2257 = vrot.lane.b32.xlu1 %v8609_v21, %s9412_s28  ;;  %v8855_v21 = vld [vmem:[%s9519_s25 + $0x334] ss:$2 sm:$0xff]  ;;  %v8737_v8 = vld [vmem:[%s9519_s25 + $0x373] ss:$2 sm:$0xff] }
 0x23d   : > { %5491 = vst.msk [vmem:[#allocation3 + $0x38] sm:$0xff] %vm3870_vm3, %v5430_v51  ;;  %3231 = vrot.lane.b32.xlu0 %v8852_v1, %s9413_s29  ;;  %v10458_v61 = vpop.permute.xlu2 %2723 }
 0x23e   : > { %v4440_v60 = vpop.f32.mrf.mxu0  ;;  %v2230_v5 = vpop.permute.xlu1 %2229 }
 0x23f   : > { %v4441_v63 = vadd.f32 %v10120_v43, %v4440_v60  ;;  %v3204_v14 = vpop.permute.xlu0 %3203  ;;  %v3660_v49 = vsel %vm3624_vm1, %v3537_v3, %v2230_v5 }
 0x240   : > { %v3905_v18 = vsel %vm3870_vm3, %v3782_v10, %v3204_v14  ;;  %v3783_v2 = vsel %vm3747_vm2, %v3660_v49, %v10402_v46  ;;  %v8354_v14 = vld [vmem:[%s9519_s25 + $0x260] ss:$2 sm:$0xff] }
 0x241   : > { %v4770_v16 = vmax.f32 %v4441_v63, 0.0  ;;  %8960 = vmatmul.msk.f32.gmra.mxu0 %vm4002_vm4, %v3905_v18  ;;  %v3540_v3 = vsel %vm3501_vm0, %v8354_v14, %v9725_v39  ;;  %v8616_v14 = vld [vmem:[%s9519_s25 + $0x382] ss:$2 sm:$0xff] }
 0x242   : > { %v5013_v17 = vld [vmem:[#allocation2 + $0x80] ss:$2 sm:$0xff]  ;;  %v5135_v22 = vld [vmem:[#allocation2 + $0x81] ss:$2 sm:$0xff] }
 0x243   : > { %4892 = vst.msk [vmem:[#allocation2 + $0x90] sm:$0xff] %vm3870_vm3, %v4770_v16  ;;  %2747 = vrot.lane.b32.xlu2 %v8732_v54, %s9411_s27  ;;  %v5370_v15 = vmax.f32 %v5013_v17, %v5135_v22  ;;  %v8735_v16 = vld [vmem:[%s9519_s25 + $0x353] ss:$2 sm:$0xff]  ;;  %v8613_v54 = vld [vmem:[%s9519_s25 + $0x352] ss:$2 sm:$0xff] }
 0x244   : > { %2259 = vrot.lane.b32.xlu1 %v8610_v50, %s9412_s28 }
 0x245   : > { %3233 = vrot.lane.b32.xlu0 %v8853_v20, %s9413_s29  ;;  %v10476_v26 = vpop.permute.xlu2 %2725  ;;  %v8856_v20 = vld [vmem:[%s9519_s25 + $0x344] ss:$2 sm:$0xff] }
 0x246   : > { %v4443_v62 = vpop.f32.mrf.mxu0  ;;  %v2232_v38 = vpop.permute.xlu1 %2231 }
 0x247   : > { %v4444_v32 = vadd.f32 %v10120_v43, %v4443_v62  ;;  %v3206_v31 = vpop.permute.xlu0 %3205  ;;  %v3661_v46 = vsel %vm3624_vm1, %v3538_v28, %v2232_v38 }
 0x248   : > { %v3906_v42 = vsel %vm3870_vm3, %v3783_v2, %v3206_v31  ;;  %v3784_v29 = vsel %vm3747_vm2, %v3661_v46, %v10421_v27  ;;  %v8355_v31 = vld [vmem:[%s9519_s25 + $0x270] ss:$2 sm:$0xff] }
 0x249   : > { %v4771_v9 = vmax.f32 %v4444_v32, 0.0  ;;  %8961 = vmatmul.msk.f32.gmra.mxu0 %vm4002_vm4, %v3906_v42  ;;  %v8736_v42 = vld [vmem:[%s9519_s25 + $0x363] ss:$2 sm:$0xff] }
 0x24a   : > { %v5257_v58 = vld [vmem:[#allocation2 + $0x82] ss:$2 sm:$0xff] }
 0x24b   : > { %v5431_v52 = vmax.f32 %v5370_v15, %v5257_v58  ;;  %4893 = vst.msk [vmem:[#allocation2 + $0x98] sm:$0xff] %vm3870_vm3, %v4771_v9  ;;  %2749 = vrot.lane.b32.xlu2 %v8733_v55, %s9411_s27  ;;  %v8614_v15 = vld [vmem:[%s9519_s25 + $0x362] ss:$2 sm:$0xff]  ;;  %v3541_v55 = vsel %vm3501_vm0, %v8355_v31, %v9777_v24 }
 0x24c   : > { %2261 = vrot.lane.b32.xlu1 %v8611_v19, %s9412_s28  ;;  %v8857_v9 = vld [vmem:[%s9519_s25 + $0x354] ss:$2 sm:$0xff] }
 0x24d   : > { %5492 = vst.msk [vmem:[#allocation3 + $0x40] sm:$0xff] %vm3870_vm3, %v5431_v52  ;;  %3235 = vrot.lane.b32.xlu0 %v8854_v30, %s9413_s29  ;;  %v10495_v0 = vpop.permute.xlu2 %2727 }
 0x24e   : > { %v4446_v33 = vpop.f32.mrf.mxu0  ;;  %v2234_v44 = vpop.permute.xlu1 %2233 }
 0x24f   : > { %v4447_v12 = vadd.f32 %v10120_v43, %v4446_v33  ;;  %v3208_v40 = vpop.permute.xlu0 %3207  ;;  %v3662_v1 = vsel %vm3624_vm1, %v3539_v56, %v2234_v44 }
 0x250   : > { %v3907_v13 = vsel %vm3870_vm3, %v3784_v29, %v3208_v40  ;;  %v3785_v5 = vsel %vm3747_vm2, %v3662_v1, %v10439_v48 }
 0x251   : > { %v4772_v6 = vmax.f32 %v4447_v12, 0.0  ;;  %8962 = vmatmul.msk.f32.gmra.mxu0 %vm4002_vm4, %v3907_v13  ;;  %v8356_v12 = vld [vmem:[%s9519_s25 + $0x280] ss:$2 sm:$0xff] }
 0x252   : > { %v5015_v27 = vld [vmem:[#allocation2 + $0x90] ss:$2 sm:$0xff]  ;;  %v5137_v25 = vld [vmem:[#allocation2 + $0x91] ss:$2 sm:$0xff] }
 0x253   : > { %4894 = vst.msk [vmem:[#allocation2 + $0xa0] sm:$0xff] %vm3870_vm3, %v4772_v6  ;;  %2751 = vrot.lane.b32.xlu2 %v8734_v4, %s9411_s27  ;;  %v5371_v36 = vmax.f32 %v5015_v27, %v5137_v25  ;;  %v8615_v13 = vld [vmem:[%s9519_s25 + $0x372] ss:$2 sm:$0xff] }
 0x254   : > { %2263 = vrot.lane.b32.xlu1 %v8612_v41, %s9412_s28  ;;  %v8858_v4 = vld [vmem:[%s9519_s25 + $0x364] ss:$2 sm:$0xff] }
 0x255   : > { %3237 = vrot.lane.b32.xlu0 %v8855_v21, %s9413_s29  ;;  %v10513_v34 = vpop.permute.xlu2 %2729 }
 0x256   : > { %v4449_v51 = vpop.f32.mrf.mxu0  ;;  %v2236_v60 = vpop.permute.xlu1 %2235 }
 0x257   : > { %v4450_v11 = vadd.f32 %v10120_v43, %v4449_v51  ;;  %v3210_v63 = vpop.permute.xlu0 %3209  ;;  %v3663_v48 = vsel %vm3624_vm1, %v3540_v3, %v2236_v60 }
 0x258   : > { %v3908_v10 = vsel %vm3870_vm3, %v3785_v5, %v3210_v63  ;;  %v3786_v38 = vsel %vm3747_vm2, %v3663_v48, %v10458_v61  ;;  %v8738_v5 = vld [vmem:[%s9519_s25 + $0x383] ss:$2 sm:$0xff]  ;;  %v8358_v48 = vld [vmem:[%s9519_s25 + $0x2a0] ss:$2 sm:$0xff] }
 0x259   : > { %v4773_v18 = vmax.f32 %v4450_v11, 0.0  ;;  %8963 = vmatmul.msk.f32.gmra.mxu0 %vm4002_vm4, %v3908_v10  ;;  %v8357_v11 = vld [vmem:[%s9519_s25 + $0x290] ss:$2 sm:$0xff] }
 0x25a   : > { %v5259_v50 = vld [vmem:[#allocation2 + $0x92] ss:$2 sm:$0xff] }
 0x25b   : > { %v5432_v49 = vmax.f32 %v5371_v36, %v5259_v50  ;;  %4895 = vst.msk [vmem:[#allocation2 + $0xa8] sm:$0xff] %vm3870_vm3, %v4773_v18  ;;  %2753 = vrot.lane.b32.xlu2 %v8735_v16, %s9411_s27  ;;  %v8859_v10 = vld [vmem:[%s9519_s25 + $0x374] ss:$2 sm:$0xff]  ;;  %v3543_v36 = vsel %vm3501_vm0, %v8357_v11, %v9737_v47 }
 0x25c   : > { %2265 = vrot.lane.b32.xlu1 %v8613_v54, %s9412_s28 }
 0x25d   : > { %5493 = vst.msk [vmem:[#allocation3 + $0x48] sm:$0xff] %vm3870_vm3, %v5432_v49  ;;  %3239 = vrot.lane.b32.xlu0 %v8856_v20, %s9413_s29  ;;  %v10532_v22 = vpop.permute.xlu2 %2731 }
 0x25e   : > { %v4452_v17 = vpop.f32.mrf.mxu0  ;;  %v2238_v62 = vpop.permute.xlu1 %2237 }
 0x25f   : > { %v4453_v39 = vadd.f32 %v10120_v43, %v4452_v17  ;;  %v3212_v32 = vpop.permute.xlu0 %3211  ;;  %v3664_v19 = vsel %vm3624_vm1, %v3541_v55, %v2238_v62 }
 0x260   : > { %v3909_v2 = vsel %vm3870_vm3, %v3786_v38, %v3212_v32  ;;  %v3787_v33 = vsel %vm3747_vm2, %v3664_v19, %v10476_v26  ;;  %v8739_v32 = vld [vmem:[%s9519_s25 + $0x393] ss:$2 sm:$0xff]  ;;  %v8617_v38 = vld [vmem:[%s9519_s25 + $0x392] ss:$2 sm:$0xff] }
 0x261   : > { %v4774_v45 = vmax.f32 %v4453_v39, 0.0  ;;  %8964 = vmatmul.msk.f32.gmra.mxu0 %vm4002_vm4, %v3909_v2  ;;  %v8860_v2 = vld [vmem:[%s9519_s25 + $0x384] ss:$2 sm:$0xff] }
 0x262   : > { %v5017_v61 = vld [vmem:[#allocation2 + $0xa0] ss:$2 sm:$0xff]  ;;  %v5139_v58 = vld [vmem:[#allocation2 + $0xa1] ss:$2 sm:$0xff] }
 0x263   : > { %4896 = vst.msk [vmem:[#allocation2 + $0xb0] sm:$0xff] %vm3870_vm3, %v4774_v45  ;;  %2755 = vrot.lane.b32.xlu2 %v8736_v42, %s9411_s27  ;;  %v5372_v40 = vmax.f32 %v5017_v61, %v5139_v58  ;;  %v3544_v45 = vsel %vm3501_vm0, %v8358_v48, %v9789_v37  ;;  %v8359_v58 = vld [vmem:[%s9519_s25 + $0x2b0] ss:$2 sm:$0xff] }
 0x264   : > { %2267 = vrot.lane.b32.xlu1 %v8614_v15, %s9412_s28 }
 0x265   : > { %3241 = vrot.lane.b32.xlu0 %v8857_v9, %s9413_s29  ;;  %v10550_v28 = vpop.permute.xlu2 %2733 }
 0x266   : > { %v4455_v30 = vpop.f32.mrf.mxu0  ;;  %v2240_v52 = vpop.permute.xlu1 %2239 }
 0x267   : > { %v4456_v24 = vadd.f32 %v10120_v43, %v4455_v30  ;;  %v3214_v46 = vpop.permute.xlu0 %3213  ;;  %v3542_v43 = vsel %vm3501_vm0, %v8356_v12, %v9775_v23  ;;  %v10574_v23 = vld [vmem:[%s14100_s2] ss:$0 sm:$0xff]  ;;  %v3545_v12 = vsel %vm3501_vm0, %v8359_v58, %v9787_v35 }
 0x268   : > { %v3910_v44 = vsel %vm3870_vm3, %v3787_v33, %v3214_v46  ;;  %v3665_v26 = vsel %vm3624_vm1, %v3542_v43, %v2240_v52  ;;  %v8618_v52 = vld [vmem:[%s9519_s25 + $0x3a2] ss:$2 sm:$0xff]  ;;  %v8496_v46 = vld [vmem:[%s9519_s25 + $0x3a1] ss:$2 sm:$0xff] }
 0x269   : > { %v4775_v29 = vmax.f32 %v4456_v24, 0.0  ;;  %8965 = vmatmul.msk.f32.gmra.mxu0 %vm4002_vm4, %v3910_v44  ;;  %v3788_v51 = vsel %vm3747_vm2, %v3665_v26, %v10495_v0  ;;  %v8861_v33 = vld [vmem:[%s9519_s25 + $0x394] ss:$2 sm:$0xff] }
 0x26a   : > { %v5261_v6 = vld [vmem:[#allocation2 + $0xa2] ss:$2 sm:$0xff] }
 0x26b   : > { %v5433_v41 = vmax.f32 %v5372_v40, %v5261_v6  ;;  %4897 = vst.msk [vmem:[#allocation2 + $0xb8] sm:$0xff] %vm3870_vm3, %v4775_v29  ;;  %2757 = vrot.lane.b32.xlu2 %v8737_v8, %s9411_s27  ;;  %v8360_v43 = vld [vmem:[%s9519_s25 + $0x2c0] ss:$2 sm:$0xff] }
 0x26c   : > { %2269 = vrot.lane.b32.xlu1 %v8615_v13, %s9412_s28  ;;  %v3546_v11 = vsel %vm3501_vm0, %v8360_v43, %v9749_v59 }
 0x26d   : > { %5494 = vst.msk [vmem:[#allocation3 + $0x50] sm:$0xff] %vm3870_vm3, %v5433_v41  ;;  %3243 = vrot.lane.b32.xlu0 %v8858_v4, %s9413_s29  ;;  %v10569_v56 = vpop.permute.xlu2 %2735 }
 0x26e   : > { %v4458_v21 = vpop.f32.mrf.mxu0  ;;  %v2242_v27 = vpop.permute.xlu1 %2241 }
 0x26f   : > { %v4459_v1 = vadd.f32 %v10574_v23, %v4458_v21  ;;  %v3216_v25 = vpop.permute.xlu0 %3215  ;;  %v3666_v18 = vsel %vm3624_vm1, %v3543_v36, %v2242_v27  ;;  %v8862_v27 = vld [vmem:[%s9519_s25 + $0x3a4] ss:$2 sm:$0xff] }
 0x270   : > { %v3911_v60 = vsel %vm3870_vm3, %v3788_v51, %v3216_v25  ;;  %v3789_v49 = vsel %vm3747_vm2, %v3666_v18, %v10513_v34  ;;  %v8740_v51 = vld [vmem:[%s9519_s25 + $0x3a3] ss:$2 sm:$0xff]  ;;  %v8361_v18 = vld [vmem:[%s9519_s25 + $0x2d0] ss:$2 sm:$0xff] }
 0x271   : > { %v4776_v63 = vmax.f32 %v4459_v1, 0.0  ;;  %8966 = vmatmul.msk.f32.gmra.mxu0 %vm4002_vm4, %v3911_v60  ;;  %v8497_v1 = vld [vmem:[%s9519_s25 + $0x3b1] ss:$2 sm:$0xff] }
 0x272   : > { %v5019_v0 = vld [vmem:[#allocation2 + $0xb0] ss:$2 sm:$0xff]  ;;  %v5141_v16 = vld [vmem:[#allocation2 + $0xb1] ss:$2 sm:$0xff] }
 0x273   : > { %4898 = vst.msk [vmem:[#allocation2 + $0xc0] sm:$0xff] %vm3870_vm3, %v4776_v63  ;;  %2759 = vrot.lane.b32.xlu2 %v8738_v5, %s9411_s27  ;;  %v5373_v39 = vmax.f32 %v5019_v0, %v5141_v16 }
 0x274   : > { %2271 = vrot.lane.b32.xlu1 %v8616_v14, %s9412_s28 }
 0x275   : > { %3245 = vrot.lane.b32.xlu0 %v8859_v10, %s9413_s29  ;;  %v10592_v50 = vpop.permute.xlu2 %2737 }
 0x276   : > { %v4461_v54 = vpop.f32.mrf.mxu0  ;;  %v2244_v20 = vpop.permute.xlu1 %2243 }
 0x277   : > { %v4462_v47 = vadd.f32 %v10574_v23, %v4461_v54  ;;  %v3218_v3 = vpop.permute.xlu0 %3217  ;;  %v3667_v34 = vsel %vm3624_vm1, %v3544_v45, %v2244_v20  ;;  %v8863_v54 = vld [vmem:[%s9519_s25 + $0x3b4] ss:$2 sm:$0xff] }
 0x278   : > { %v3912_v17 = vsel %vm3870_vm3, %v3789_v49, %v3218_v3  ;;  %v3790_v61 = vsel %vm3747_vm2, %v3667_v34, %v10532_v22  ;;  %v8619_v20 = vld [vmem:[%s9519_s25 + $0x3b2] ss:$2 sm:$0xff]  ;;  %v3547_v3 = vsel %vm3501_vm0, %v8361_v18, %v9801_v57  ;;  %v8742_v34 = vld [vmem:[%s9519_s25 + $0x3c3] ss:$2 sm:$0xff] }
 0x279   : > { %v4777_v62 = vmax.f32 %v4462_v47, 0.0  ;;  %8967 = vmatmul.msk.f32.gmra.mxu0 %vm4002_vm4, %v3912_v17  ;;  %v8741_v47 = vld [vmem:[%s9519_s25 + $0x3b3] ss:$2 sm:$0xff] }
 0x27a   : > { %v5263_v31 = vld [vmem:[#allocation2 + $0xb2] ss:$2 sm:$0xff] }
 0x27b   : > { %v5434_v42 = vmax.f32 %v5373_v39, %v5263_v31  ;;  %4899 = vst.msk [vmem:[#allocation2 + $0xc8] sm:$0xff] %vm3870_vm3, %v4777_v62  ;;  %2761 = vrot.lane.b32.xlu2 %v8739_v32, %s9411_s27  ;;  %v8362_v31 = vld [vmem:[%s9519_s25 + $0x2e0] ss:$2 sm:$0xff] }
 0x27c   : > { %2273 = vrot.lane.b32.xlu1 %v8617_v38, %s9412_s28 }
 0x27d   : > { %5495 = vst.msk [vmem:[#allocation3 + $0x58] sm:$0xff] %vm3870_vm3, %v5434_v42  ;;  %3247 = vrot.lane.b32.xlu0 %v8860_v2, %s9413_s29  ;;  %v10611_v9 = vpop.permute.xlu2 %2739 }
 0x27e   : > { %v4464_v15 = vpop.f32.mrf.mxu0  ;;  %v2246_v55 = vpop.permute.xlu1 %2245 }
 0x27f   : > { %v4465_v37 = vadd.f32 %v10574_v23, %v4464_v15  ;;  %v3220_v19 = vpop.permute.xlu0 %3219  ;;  %v3668_v44 = vsel %vm3624_vm1, %v3545_v12, %v2246_v55  ;;  %v8620_v15 = vld [vmem:[%s9519_s25 + $0x3c2] ss:$2 sm:$0xff]  ;;  %v8498_v55 = vld [vmem:[%s9519_s25 + $0x3c1] ss:$2 sm:$0xff] }
 0x280   : > { %v3913_v30 = vsel %vm3870_vm3, %v3790_v61, %v3220_v19  ;;  %v3791_v4 = vsel %vm3747_vm2, %v3668_v44, %v10550_v28  ;;  %v3548_v19 = vsel %vm3501_vm0, %v8362_v31, %v9799_v53 }
 0x281   : > { %v4778_v24 = vmax.f32 %v4465_v37, 0.0  ;;  %8968 = vmatmul.msk.f32.gmra.mxu0 %vm4002_vm4, %v3913_v30 }
 0x282   : > { %v5021_v22 = vld [vmem:[#allocation2 + $0xc0] ss:$2 sm:$0xff]  ;;  %v5143_v40 = vld [vmem:[#allocation2 + $0xc1] ss:$2 sm:$0xff] }
 0x283   : > { %4900 = vst.msk [vmem:[#allocation2 + $0xd0] sm:$0xff] %vm3870_vm3, %v4778_v24  ;;  %2275 = vrot.lane.b32.xlu2 %v8618_v52, %s9412_s28  ;;  %v5374_v26 = vmax.f32 %v5021_v22, %v5143_v40  ;;  %v8621_v22 = vld [vmem:[%s9519_s25 + $0x3d2] ss:$2 sm:$0xff]  ;;  %v8499_v40 = vld [vmem:[%s9519_s25 + $0x3d1] ss:$2 sm:$0xff] }
 0x284   : > { %1787 = vrot.lane.b32.xlu1 %v8496_v46, %s9410_s26 }
 0x285   : > { %3249 = vrot.lane.b32.xlu0 %v8861_v33, %s9413_s29  ;;  %v10629_v8 = vpop.permute.xlu2 %2741  ;;  %v8363_v33 = vld [vmem:[%s9519_s25 + $0x2f0] ss:$2 sm:$0xff] }
 0x286   : > { %v4467_v29 = vpop.f32.mrf.mxu0  ;;  %v2248_v13 = vpop.permute.xlu1 %2247 }
 0x287   : > { %v4468_v35 = vadd.f32 %v10574_v23, %v4467_v29  ;;  %v3222_v6 = vpop.permute.xlu0 %3221  ;;  %v3669_v28 = vsel %vm3624_vm1, %v3546_v11, %v2248_v13  ;;  %v8864_v29 = vld [vmem:[%s9519_s25 + $0x3c4] ss:$2 sm:$0xff]  ;;  %v8500_v11 = vld [vmem:[%s9519_s25 + $0x3e1] ss:$2 sm:$0xff] }
 0x288   : > { %v3914_v41 = vsel %vm3870_vm3, %v3791_v4, %v3222_v6  ;;  %v3792_v36 = vsel %vm3747_vm2, %v3669_v28, %v10569_v56 }
 0x289   : > { %v4779_v21 = vmax.f32 %v4468_v35, 0.0  ;;  %8969 = vmatmul.msk.f32.gmra.mxu0 %vm4002_vm4, %v3914_v41  ;;  %v3549_v35 = vsel %vm3501_vm0, %v8363_v33, %v9761_v7 }
 0x28a   : > { %v5265_v25 = vld [vmem:[#allocation2 + $0xc2] ss:$2 sm:$0xff] }
 0x28b   : > { %v5435_v60 = vmax.f32 %v5374_v26, %v5265_v25  ;;  %4901 = vst.msk [vmem:[#allocation2 + $0xd8] sm:$0xff] %vm3870_vm3, %v4779_v21  ;;  %1789 = vrot.lane.b32.xlu2 %v8497_v1, %s9410_s26  ;;  %v8364_v1 = vld [vmem:[%s9519_s25 + $0x300] ss:$2 sm:$0xff] }
 0x28c   : > { %3251 = vrot.lane.b32.xlu1 %v8862_v27, %s9413_s29 }
 0x28d   : > { %5496 = vst.msk [vmem:[#allocation3 + $0x60] sm:$0xff] %vm3870_vm3, %v5435_v60  ;;  %2763 = vrot.lane.b32.xlu0 %v8740_v51, %s9411_s27  ;;  %v10648_v5 = vpop.permute.xlu2 %2743  ;;  %v8865_v60 = vld [vmem:[%s9519_s25 + $0x3d4] ss:$2 sm:$0xff] }
 0x28e   : > { %v4470_v63 = vpop.f32.mrf.mxu0  ;;  %v2250_v14 = vpop.permute.xlu1 %2249 }
 0x28f   : > { %v4471_v59 = vadd.f32 %v10574_v23, %v4470_v63  ;;  %v3224_v10 = vpop.permute.xlu0 %3223  ;;  %v3670_v49 = vsel %vm3624_vm1, %v3547_v3, %v2250_v14  ;;  %v8743_v63 = vld [vmem:[%s9519_s25 + $0x3d3] ss:$2 sm:$0xff] }
 0x290   : > { %v3915_v0 = vsel %vm3870_vm3, %v3792_v36, %v3224_v10  ;;  %v3793_v38 = vsel %vm3747_vm2, %v3670_v49, %v10592_v50 }
 0x291   : > { %v4780_v16 = vmax.f32 %v4471_v59, 0.0  ;;  %8970 = vmatmul.msk.f32.gmra.mxu0 %vm4002_vm4, %v3915_v0  ;;  %v14124_v59 = vld [vmem:[#allocation15_spill] sm:$0xff] }
 0x292   : > { %v5023_v56 = vld [vmem:[#allocation2 + $0xd0] ss:$2 sm:$0xff]  ;;  %v5145_v48 = vld [vmem:[#allocation2 + $0xd1] ss:$2 sm:$0xff]  ;;  %v3550_v14 = vsel %vm3501_vm0, %v8364_v1, %v14124_v59  ;;  %v8368_v59 = vld [vmem:[%s9519_s25 + $0x340] ss:$2 sm:$0xff] }
 0x293   : > { %4902 = vst.msk [vmem:[#allocation2 + $0xe0] sm:$0xff] %vm3870_vm3, %v4780_v16  ;;  %3253 = vrot.lane.b32.xlu2 %v8863_v54, %s9413_s29  ;;  %v5375_v45 = vmax.f32 %v5023_v56, %v5145_v48  ;;  %v8866_v56 = vld [vmem:[%s9519_s25 + $0x3e4] ss:$2 sm:$0xff]  ;;  %v8744_v48 = vld [vmem:[%s9519_s25 + $0x3e3] ss:$2 sm:$0xff] }
 0x294   : > { %2765 = vrot.lane.b32.xlu1 %v8741_v47, %s9411_s27 }
 0x295   : > { %2277 = vrot.lane.b32.xlu0 %v8619_v20, %s9412_s28  ;;  %v10666_v39 = vpop.permute.xlu2 %2745  ;;  %v8365_v20 = vld [vmem:[%s9519_s25 + $0x310] ss:$2 sm:$0xff] }
 0x296   : > { %v4473_v17 = vpop.f32.mrf.mxu0  ;;  %v2252_v62 = vpop.permute.xlu1 %2251 }
 0x297   : > { %v4474_v57 = vadd.f32 %v10574_v23, %v4473_v17  ;;  %v3226_v32 = vpop.permute.xlu0 %3225  ;;  %v3671_v50 = vsel %vm3624_vm1, %v3548_v19, %v2252_v62  ;;  %v8622_v17 = vld [vmem:[%s9519_s25 + $0x3e2] ss:$2 sm:$0xff] }
 0x298   : > { %v3916_v2 = vsel %vm3870_vm3, %v3793_v38, %v3226_v32  ;;  %v3794_v46 = vsel %vm3747_vm2, %v3671_v50, %v10611_v9  ;;  %v8745_v50 = vld [vmem:[%s9519_s25 + $0x3f3] ss:$2 sm:$0xff] }
 0x299   : > { %v4781_v42 = vmax.f32 %v4474_v57, 0.0  ;;  %8971 = vmatmul.msk.f32.gmra.mxu0 %vm4002_vm4, %v3916_v2  ;;  %v14125_v57 = vld [vmem:[#allocation14_spill] sm:$0xff] }
 0x29a   : > { %v5267_v37 = vld [vmem:[#allocation2 + $0xd2] ss:$2 sm:$0xff]  ;;  %v3551_v62 = vsel %vm3501_vm0, %v8365_v20, %v14125_v57 }
 0x29b   : > { %v5436_v61 = vmax.f32 %v5375_v45, %v5267_v37  ;;  %4903 = vst.msk [vmem:[#allocation2 + $0xe8] sm:$0xff] %vm3870_vm3, %v4781_v42  ;;  %2767 = vrot.lane.b32.xlu2 %v8742_v34, %s9411_s27  ;;  %v8366_v37 = vld [vmem:[%s9519_s25 + $0x320] ss:$2 sm:$0xff] }
 0x29c   : > { %2279 = vrot.lane.b32.xlu1 %v8620_v15, %s9412_s28 }
 0x29d   : > { %5497 = vst.msk [vmem:[#allocation3 + $0x68] sm:$0xff] %vm3870_vm3, %v5436_v61  ;;  %1791 = vrot.lane.b32.xlu0 %v8498_v55, %s9410_s26  ;;  %v10685_v30 = vpop.permute.xlu2 %2747 }
 0x29e   : > { %v4476_v58 = vpop.f32.mrf.mxu0  ;;  %v2254_v24 = vpop.permute.xlu1 %2253 }
 0x29f   : > { %v4477_v53 = vadd.f32 %v10574_v23, %v4476_v58  ;;  %v3228_v52 = vpop.permute.xlu0 %3227  ;;  %v3672_v13 = vsel %vm3624_vm1, %v3549_v35, %v2254_v24  ;;  %v8623_v58 = vld [vmem:[%s9519_s25 + $0x3f2] ss:$2 sm:$0xff]  ;;  %v8501_v24 = vld [vmem:[%s9519_s25 + $0x3f1] ss:$2 sm:$0xff] }
 0x2a0   : > { %v3917_v12 = vsel %vm3870_vm3, %v3794_v46, %v3228_v52  ;;  %v3795_v21 = vsel %vm3747_vm2, %v3672_v13, %v10629_v8  ;;  %v14126_v52 = vld [vmem:[#allocation11_spill] sm:$0xff] }
 0x2a1   : > { %v4782_v44 = vmax.f32 %v4477_v53, 0.0  ;;  %8972 = vmatmul.msk.f32.gmra.mxu0 %vm4002_vm4, %v3917_v12  ;;  %v3552_v46 = vsel %vm3501_vm0, %v8366_v37, %v14126_v52  ;;  %v8367_v13 = vld [vmem:[%s9519_s25 + $0x330] ss:$2 sm:$0xff]  ;;  %v8370_v52 = vld [vmem:[%s9519_s25 + $0x360] ss:$2 sm:$0xff] }
 0x2a2   : > { %v5025_v9 = vld [vmem:[#allocation2 + $0xe0] ss:$2 sm:$0xff]  ;;  %v5147_v6 = vld [vmem:[#allocation2 + $0xe1] ss:$2 sm:$0xff] }
 0x2a3   : > { %4904 = vst.msk [vmem:[#allocation2 + $0xf0] sm:$0xff] %vm3870_vm3, %v4782_v44  ;;  %2281 = vrot.lane.b32.xlu2 %v8621_v22, %s9412_s28  ;;  %v5376_v25 = vmax.f32 %v5025_v9, %v5147_v6 }
 0x2a4   : > { %1793 = vrot.lane.b32.xlu1 %v8499_v40, %s9410_s26 }
 0x2a5   : > { %3255 = vrot.lane.b32.xlu0 %v8864_v29, %s9413_s29  ;;  %v10703_v43 = vpop.permute.xlu2 %2749 }
 0x2a6   : > { %v4479_v4 = vpop.f32.mrf.mxu0  ;;  %v2256_v41 = vpop.permute.xlu1 %2255 }
 0x2a7   : > { %v4480_v7 = vadd.f32 %v10574_v23, %v4479_v4  ;;  %v3230_v26 = vpop.permute.xlu0 %3229  ;;  %v3673_v8 = vsel %vm3624_vm1, %v3550_v14, %v2256_v41  ;;  %v8624_v4 = vld [vmem:[%s9519_s25 + $0x402] ss:$2 sm:$0xff] }
 0x2a8   : > { %v3918_v27 = vsel %vm3870_vm3, %v3795_v21, %v3230_v26  ;;  %v3796_v47 = vsel %vm3747_vm2, %v3673_v8, %v10648_v5  ;;  %v8867_v41 = vld [vmem:[%s9519_s25 + $0x3f4] ss:$2 sm:$0xff] }
 0x2a9   : > { %v4783_v51 = vmax.f32 %v4480_v7, 0.0  ;;  %8973 = vmatmul.msk.f32.gmra.mxu0 %vm4002_vm4, %v3918_v27  ;;  %v8502_v7 = vld [vmem:[%s9519_s25 + $0x401] ss:$2 sm:$0xff] }
 0x2aa   : > { %v5269_v28 = vld [vmem:[#allocation2 + $0xe2] ss:$2 sm:$0xff]  ;;  %v14127_v26 = vld [vmem:[#allocation17_spill] sm:$0xff] }
 0x2ab   : > { %v5437_v10 = vmax.f32 %v5376_v25, %v5269_v28  ;;  %4905 = vst.msk [vmem:[#allocation2 + $0xf8] sm:$0xff] %vm3870_vm3, %v4783_v51  ;;  %1795 = vrot.lane.b32.xlu2 %v8500_v11, %s9410_s26  ;;  %v3553_v21 = vsel %vm3501_vm0, %v8367_v13, %v14127_v26 }
 0x2ac   : > { %3257 = vrot.lane.b32.xlu1 %v8865_v60, %s9413_s29 }
 0x2ad   : > { %5498 = vst.msk [vmem:[#allocation3 + $0x70] sm:$0xff] %vm3870_vm3, %v5437_v10  ;;  %2769 = vrot.lane.b32.xlu0 %v8743_v63, %s9411_s27  ;;  %v10722_v18 = vpop.permute.xlu2 %2751 }
 0x2ae   : > { %v4482_v36 = vpop.f32.mrf.mxu0  ;;  %v2258_v16 = vpop.permute.xlu1 %2257 }
 0x2af   : > { %v4483_v0 = vadd.f32 %v10574_v23, %v4482_v36  ;;  %v3232_v54 = vpop.permute.xlu0 %3231  ;;  %v3674_v32 = vsel %vm3624_vm1, %v3551_v62, %v2258_v16  ;;  %v8516_v36 = vld [vmem:[%s9519_s25 + $0x4e1] ss:$2 sm:$0xff] }
 0x2b0   : > { %v3919_v3 = vsel %vm3870_vm3, %v3796_v47, %v3232_v54  ;;  %v3797_v15 = vsel %vm3747_vm2, %v3674_v32, %v10666_v39  ;;  %v8746_v54 = vld [vmem:[%s9519_s25 + $0x403] ss:$2 sm:$0xff]  ;;  %v14128_v47 = vld [vmem:[#allocation16_spill] sm:$0xff] }
 0x2b1   : > { %v4784_v49 = vmax.f32 %v4483_v0, 0.0  ;;  %8974 = vmatmul.msk.f32.gmra.mxu0 %vm4002_vm4, %v3919_v3  ;;  %v8868_v0 = vld [vmem:[%s9519_s25 + $0x404] ss:$2 sm:$0xff]  ;;  %v3554_v20 = vsel %vm3501_vm0, %v8368_v59, %v14128_v47 }
 0x2b2   : > { %v5027_v5 = vld [vmem:[#allocation2 + $0xf0] ss:$2 sm:$0xff]  ;;  %v5149_v38 = vld [vmem:[#allocation2 + $0xf1] ss:$2 sm:$0xff]  ;;  %v8372_v47 = vld [vmem:[%s9519_s25 + $0x380] ss:$2 sm:$0xff] }
 0x2b3   : > { %4906 = vst.msk [vmem:[#allocation2 + $0x100] sm:$0xff] %vm3870_vm3, %v4784_v49  ;;  %3259 = vrot.lane.b32.xlu2 %v8866_v56, %s9413_s29  ;;  %v5377_v19 = vmax.f32 %v5027_v5, %v5149_v38  ;;  %v8369_v32 = vld [vmem:[%s9519_s25 + $0x350] ss:$2 sm:$0xff] }
 0x2b4   : > { %2771 = vrot.lane.b32.xlu1 %v8744_v48, %s9411_s27 }
 0x2b5   : > { %2283 = vrot.lane.b32.xlu0 %v8622_v17, %s9412_s28  ;;  %v10740_v2 = vpop.permute.xlu2 %2753 }
 0x2b6   : > { %v4485_v31 = vpop.f32.mrf.mxu0  ;;  %v2260_v42 = vpop.permute.xlu1 %2259 }
 0x2b7   : > { %v4486_v45 = vadd.f32 %v10574_v23, %v4485_v31  ;;  %v3234_v34 = vpop.permute.xlu0 %3233  ;;  %v3675_v39 = vsel %vm3624_vm1, %v3552_v46, %v2260_v42  ;;  %v8625_v31 = vld [vmem:[%s9519_s25 + $0x412] ss:$2 sm:$0xff]  ;;  %v8503_v42 = vld [vmem:[%s9519_s25 + $0x411] ss:$2 sm:$0xff] }
 0x2b8   : > { %v3920_v55 = vsel %vm3870_vm3, %v3797_v15, %v3234_v34  ;;  %v3798_v35 = vsel %vm3747_vm2, %v3675_v39, %v10685_v30  ;;  %v14129_v34 = vld [vmem:[#allocation12_spill] sm:$0xff] }
 0x2b9   : > { %v4785_v61 = vmax.f32 %v4486_v45, 0.0  ;;  %8975 = vmatmul.msk.f32.gmra.mxu0 %vm4002_vm4, %v3920_v55  ;;  %v8638_v45 = vld [vmem:[%s9519_s25 + $0x4e2] ss:$2 sm:$0xff]  ;;  %v3555_v15 = vsel %vm3501_vm0, %v8369_v32, %v14129_v34 }
 0x2ba   : > { %v5271_v53 = vld [vmem:[#allocation2 + $0xf2] ss:$2 sm:$0xff] }
 0x2bb   : > { %v5438_v33 = vmax.f32 %v5377_v19, %v5271_v53  ;;  %4907 = vst.msk [vmem:[#allocation2 + $0x108] sm:$0xff] %vm3870_vm3, %v4785_v61  ;;  %2773 = vrot.lane.b32.xlu2 %v8745_v50, %s9411_s27 }
 0x2bc   : > { %2285 = vrot.lane.b32.xlu1 %v8623_v58, %s9412_s28 }
 0x2bd   : > { %5499 = vst.msk [vmem:[#allocation3 + $0x78] sm:$0xff] %vm3870_vm3, %v5438_v33  ;;  %1797 = vrot.lane.b32.xlu0 %v8501_v24, %s9410_s26  ;;  %v10759_v44 = vpop.permute.xlu2 %2755 }
 0x2be   : > { %v4488_v12 = vpop.f32.mrf.mxu0  ;;  %v2262_v40 = vpop.permute.xlu1 %2261 }
 0x2bf   : > { %v4489_v22 = vadd.f32 %v10574_v23, %v4488_v12  ;;  %v3236_v29 = vpop.permute.xlu0 %3235  ;;  %v3676_v1 = vsel %vm3624_vm1, %v3553_v21, %v2262_v40  ;;  %v8882_v12 = vld [vmem:[%s9519_s25 + $0x4e4] ss:$2 sm:$0xff] }
 0x2c0   : > { %v3921_v9 = vsel %vm3870_vm3, %v3798_v35, %v3236_v29  ;;  %v3799_v63 = vsel %vm3747_vm2, %v3676_v1, %v10703_v43  ;;  %v8760_v29 = vld [vmem:[%s9519_s25 + $0x4e3] ss:$2 sm:$0xff]  ;;  %v8371_v1 = vld [vmem:[%s9519_s25 + $0x370] ss:$2 sm:$0xff] }
 0x2c1   : > { %v4786_v6 = vmax.f32 %v4489_v22, 0.0  ;;  %8976 = vmatmul.msk.f32.gmra.mxu0 %vm4002_vm4, %v3921_v9  ;;  %v8747_v22 = vld [vmem:[%s9519_s25 + $0x413] ss:$2 sm:$0xff]  ;;  %v14130_v35 = vld [vmem:[#allocation19_spill] sm:$0xff] }
 0x2c2   : > { %v5029_v30 = vld [vmem:[#allocation2 + $0x100] ss:$2 sm:$0xff]  ;;  %v5151_v27 = vld [vmem:[#allocation2 + $0x101] ss:$2 sm:$0xff]  ;;  %v3556_v13 = vsel %vm3501_vm0, %v8370_v52, %v14130_v35 }
 0x2c3   : > { %4908 = vst.msk [vmem:[#allocation2 + $0x110] sm:$0xff] %vm3870_vm3, %v4786_v6  ;;  %2287 = vrot.lane.b32.xlu2 %v8624_v4, %s9412_s28  ;;  %v5378_v10 = vmax.f32 %v5029_v30, %v5151_v27  ;;  %v8374_v35 = vld [vmem:[%s9519_s25 + $0x3a0] ss:$2 sm:$0xff] }
 0x2c4   : > { %1799 = vrot.lane.b32.xlu1 %v8502_v7, %s9410_s26 }
 0x2c5   : > { %3261 = vrot.lane.b32.xlu0 %v8867_v41, %s9413_s29  ;;  %v10777_v51 = vpop.permute.xlu2 %2757 }
 0x2c6   : > { %v4491_v25 = vpop.f32.mrf.mxu0  ;;  %v2264_v60 = vpop.permute.xlu1 %2263 }
 0x2c7   : > { %v4492_v11 = vadd.f32 %v10574_v23, %v4491_v25  ;;  %v3238_v28 = vpop.permute.xlu0 %3237  ;;  %v3677_v43 = vsel %vm3624_vm1, %v3554_v20, %v2264_v60  ;;  %v8504_v25 = vld [vmem:[%s9519_s25 + $0x421] ss:$2 sm:$0xff]  ;;  %v8869_v60 = vld [vmem:[%s9519_s25 + $0x414] ss:$2 sm:$0xff] }
 0x2c8   : > { %v3922_v14 = vsel %vm3870_vm3, %v3799_v63, %v3238_v28  ;;  %v3800_v62 = vsel %vm3747_vm2, %v3677_v43, %v10722_v18  ;;  %v14131_v28 = vld [vmem:[#allocation18_spill] sm:$0xff] }
 0x2c9   : > { %v4787_v8 = vmax.f32 %v4492_v11, 0.0  ;;  %8977 = vmatmul.msk.f32.gmra.mxu0 %vm4002_vm4, %v3922_v14  ;;  %v8517_v11 = vld [vmem:[%s9519_s25 + $0x4f1] ss:$2 sm:$0xff]  ;;  %v3557_v63 = vsel %vm3501_vm0, %v8371_v1, %v14131_v28 }
 0x2ca   : > { %v5273_v16 = vld [vmem:[#allocation2 + $0x102] ss:$2 sm:$0xff] }
 0x2cb   : > { %v5439_v3 = vmax.f32 %v5378_v10, %v5273_v16  ;;  %4909 = vst.msk [vmem:[#allocation2 + $0x118] sm:$0xff] %vm3870_vm3, %v4787_v8  ;;  %1827 = vrot.lane.b32.xlu2 %v8516_v36, %s9410_s26 }
 0x2cc   : > { %3263 = vrot.lane.b32.xlu1 %v8868_v0, %s9413_s29 }
 0x2cd   : > { %5500 = vst.msk [vmem:[#allocation3 + $0x80] sm:$0xff] %vm3870_vm3, %v5439_v3  ;;  %2775 = vrot.lane.b32.xlu0 %v8746_v54, %s9411_s27  ;;  %v10796_v56 = vpop.permute.xlu2 %2759 }
 0x2ce   : > { %v4494_v49 = vpop.f32.mrf.mxu0  ;;  %v2266_v17 = vpop.permute.xlu1 %2265 }
 0x2cf   : > { %v4495_v48 = vadd.f32 %v10574_v23, %v4494_v49  ;;  %v3240_v57 = vpop.permute.xlu0 %3239  ;;  %v3678_v37 = vsel %vm3624_vm1, %v3555_v15, %v2266_v17  ;;  %v8761_v49 = vld [vmem:[%s9519_s25 + $0x4f3] ss:$2 sm:$0xff] }
 0x2d0   : > { %v3923_v5 = vsel %vm3870_vm3, %v3800_v62, %v3240_v57  ;;  %v3801_v24 = vsel %vm3747_vm2, %v3678_v37, %v10740_v2  ;;  %v8639_v57 = vld [vmem:[%s9519_s25 + $0x4f2] ss:$2 sm:$0xff] }
 0x2d1   : > { %v4788_v38 = vmax.f32 %v4495_v48, 0.0  ;;  %8978 = vmatmul.msk.f32.gmra.mxu0 %vm4002_vm4, %v3923_v5  ;;  %v8626_v48 = vld [vmem:[%s9519_s25 + $0x422] ss:$2 sm:$0xff]  ;;  %v14132_v62 = vld [vmem:[#allocation13_spill] sm:$0xff] }
 0x2d2   : > { %v5031_v18 = vld [vmem:[#allocation2 + $0x110] ss:$2 sm:$0xff]  ;;  %v5153_v55 = vld [vmem:[#allocation2 + $0x111] ss:$2 sm:$0xff]  ;;  %v3558_v32 = vsel %vm3501_vm0, %v8372_v47, %v14132_v62 }
 0x2d3   : > { %4910 = vst.msk [vmem:[#allocation2 + $0x120] sm:$0xff] %vm3870_vm3, %v4788_v38  ;;  %2289 = vrot.lane.b32.xlu2 %v8625_v31, %s9412_s28  ;;  %v5379_v33 = vmax.f32 %v5031_v18, %v5153_v55  ;;  %v8373_v37 = vld [vmem:[%s9519_s25 + $0x390] ss:$2 sm:$0xff] }
 0x2d4   : > { %2315 = vrot.lane.b32.xlu1 %v8638_v45, %s9412_s28  ;;  %v8871_v62 = vld [vmem:[%s9519_s25 + $0x434] ss:$2 sm:$0xff] }
 0x2d5   : > { %1801 = vrot.lane.b32.xlu0 %v8503_v42, %s9410_s26  ;;  %v10814_v61 = vpop.permute.xlu2 %2761 }
 0x2d6   : > { %v4497_v19 = vpop.f32.mrf.mxu0  ;;  %v2268_v58 = vpop.permute.xlu1 %2267 }
 0x2d7   : > { %v4498_v50 = vadd.f32 %v10574_v23, %v4497_v19  ;;  %v3242_v53 = vpop.permute.xlu0 %3241  ;;  %v3679_v2 = vsel %vm3624_vm1, %v3556_v13, %v2268_v58  ;;  %v8870_v19 = vld [vmem:[%s9519_s25 + $0x424] ss:$2 sm:$0xff]  ;;  %v8748_v58 = vld [vmem:[%s9519_s25 + $0x423] ss:$2 sm:$0xff] }
 0x2d8   : > { %v3924_v46 = vsel %vm3870_vm3, %v3801_v24, %v3242_v53  ;;  %v3802_v21 = vsel %vm3747_vm2, %v3679_v2, %v10759_v44  ;;  %v14133_v53 = vld [vmem:[#allocation20_spill] sm:$0xff] }
 0x2d9   : > { %v4789_v39 = vmax.f32 %v4498_v50, 0.0  ;;  %8979 = vmatmul.msk.f32.gmra.mxu0 %vm4002_vm4, %v3924_v46  ;;  %v8883_v50 = vld [vmem:[%s9519_s25 + $0x4f4] ss:$2 sm:$0xff]  ;;  %v3559_v24 = vsel %vm3501_vm0, %v8373_v37, %v14133_v53 }
 0x2da   : > { %v5275_v40 = vld [vmem:[#allocation2 + $0x112] ss:$2 sm:$0xff] }
 0x2db   : > { %v5440_v9 = vmax.f32 %v5379_v33, %v5275_v40  ;;  %4911 = vst.msk [vmem:[#allocation2 + $0x128] sm:$0xff] %vm3870_vm3, %v4789_v39  ;;  %3291 = vrot.lane.b32.xlu2 %v8882_v12, %s9413_s29 }
 0x2dc   : > { %2777 = vrot.lane.b32.xlu1 %v8747_v22, %s9411_s27 }
 0x2dd   : > { %5501 = vst.msk [vmem:[#allocation3 + $0x88] sm:$0xff] %vm3870_vm3, %v5440_v9  ;;  %2803 = vrot.lane.b32.xlu0 %v8760_v29, %s9411_s27  ;;  %v10833_v4 = vpop.permute.xlu2 %2275 }
 0x2de   : > { %v4500_v6 = vpop.f32.mrf.mxu0  ;;  %v2270_v41 = vpop.permute.xlu1 %2269 }
 0x2df   : > { %v4501_v7 = vadd.f32 %v10574_v23, %v4500_v6  ;;  %v3244_v26 = vpop.permute.xlu0 %3243  ;;  %v3680_v59 = vsel %vm3624_vm1, %v3557_v63, %v2270_v41  ;;  %v8640_v6 = vld [vmem:[%s9519_s25 + $0x502] ss:$2 sm:$0xff] }
 0x2e0   : > { %v3925_v30 = vsel %vm3870_vm3, %v3802_v21, %v3244_v26  ;;  %v3803_v54 = vsel %vm3747_vm2, %v3680_v59, %v10777_v51  ;;  %v8518_v26 = vld [vmem:[%s9519_s25 + $0x501] ss:$2 sm:$0xff] }
 0x2e1   : > { %v4790_v27 = vmax.f32 %v4501_v7, 0.0  ;;  %8980 = vmatmul.msk.f32.gmra.mxu0 %vm4002_vm4, %v3925_v30  ;;  %v8505_v7 = vld [vmem:[%s9519_s25 + $0x431] ss:$2 sm:$0xff] }
 0x2e2   : > { %v5033_v44 = vld [vmem:[#allocation2 + $0x120] ss:$2 sm:$0xff]  ;;  %v5155_v14 = vld [vmem:[#allocation2 + $0x121] ss:$2 sm:$0xff] }
 0x2e3   : > { %4912 = vst.msk [vmem:[#allocation2 + $0x130] sm:$0xff] %vm3870_vm3, %v4790_v27  ;;  %1803 = vrot.lane.b32.xlu2 %v8504_v25, %s9410_s26  ;;  %v5380_v3 = vmax.f32 %v5033_v44, %v5155_v14  ;;  %v8749_v44 = vld [vmem:[%s9519_s25 + $0x433] ss:$2 sm:$0xff]  ;;  %v8762_v14 = vld [vmem:[%s9519_s25 + $0x503] ss:$2 sm:$0xff] }
 0x2e4   : > { %1829 = vrot.lane.b32.xlu1 %v8517_v11, %s9410_s26 }
 0x2e5   : > { %3265 = vrot.lane.b32.xlu0 %v8869_v60, %s9413_s29  ;;  %v10851_v8 = vpop.permute.xlu2 %1789 }
 0x2e6   : > { %v4503_v10 = vpop.f32.mrf.mxu0  ;;  %v2272_v0 = vpop.permute.xlu1 %2271 }
 0x2e7   : > { %v4504_v36 = vadd.f32 %v10574_v23, %v4503_v10  ;;  %v3246_v16 = vpop.permute.xlu0 %3245  ;;  %v3681_v51 = vsel %vm3624_vm1, %v3558_v32, %v2272_v0  ;;  %v8375_v10 = vld [vmem:[%s9519_s25 + $0x3b0] ss:$2 sm:$0xff] }
 0x2e8   : > { %v3926_v20 = vsel %vm3870_vm3, %v3803_v54, %v3246_v16  ;;  %v3804_v15 = vsel %vm3747_vm2, %v3681_v51, %v10796_v56  ;;  %v8884_v51 = vld [vmem:[%s9519_s25 + $0x504] ss:$2 sm:$0xff] }
 0x2e9   : > { %v4791_v43 = vmax.f32 %v4504_v36, 0.0  ;;  %8981 = vmatmul.msk.f32.gmra.mxu0 %vm4002_vm4, %v3926_v20  ;;  %v8627_v36 = vld [vmem:[%s9519_s25 + $0x432] ss:$2 sm:$0xff] }
 0x2ea   : > { %v5277_v17 = vld [vmem:[#allocation2 + $0x122] ss:$2 sm:$0xff] }
 0x2eb   : > { %v5441_v5 = vmax.f32 %v5380_v3, %v5277_v17  ;;  %4913 = vst.msk [vmem:[#allocation2 + $0x138] sm:$0xff] %vm3870_vm3, %v4791_v43  ;;  %2805 = vrot.lane.b32.xlu2 %v8761_v49, %s9411_s27 }
 0x2ec   : > { %2291 = vrot.lane.b32.xlu1 %v8626_v48, %s9412_s28 }
 0x2ed   : > { %5502 = vst.msk [vmem:[#allocation3 + $0x90] sm:$0xff] %vm3870_vm3, %v5441_v5  ;;  %2317 = vrot.lane.b32.xlu0 %v8639_v57, %s9412_s28  ;;  %v10870_v31 = vpop.permute.xlu2 %3253 }
 0x2ee   : > { %v4506_v38 = vpop.f32.mrf.mxu0  ;;  %v2274_v42 = vpop.permute.xlu1 %2273 }
 0x2ef   : > { %v4507_v45 = vadd.f32 %v10574_v23, %v4506_v38  ;;  %v3248_v34 = vpop.permute.xlu0 %3247  ;;  %v3682_v52 = vsel %vm3624_vm1, %v3559_v24, %v2274_v42 }
 0x2f0   : > { %v3927_v18 = vsel %vm3870_vm3, %v3804_v15, %v3248_v34  ;;  %v3805_v29 = vsel %vm3747_vm2, %v3682_v52, %v10814_v61 }
 0x2f1   : > { %v4792_v55 = vmax.f32 %v4507_v45, 0.0  ;;  %8982 = vmatmul.msk.f32.gmra.mxu0 %vm4002_vm4, %v3927_v18 }
 0x2f2   : > { %v5035_v56 = vld [vmem:[#allocation2 + $0x130] ss:$2 sm:$0xff]  ;;  %v5157_v46 = vld [vmem:[#allocation2 + $0x131] ss:$2 sm:$0xff] }
 0x2f3   : > { %4914 = vst.msk [vmem:[#allocation2 + $0x140] sm:$0xff] %vm3870_vm3, %v4792_v55  ;;  %3267 = vrot.lane.b32.xlu2 %v8870_v19, %s9413_s29  ;;  %v5381_v9 = vmax.f32 %v5035_v56, %v5157_v46  ;;  %v8628_v19 = vld [vmem:[%s9519_s25 + $0x442] ss:$2 sm:$0xff] }
 0x2f4   : > { %3293 = vrot.lane.b32.xlu1 %v8883_v50, %s9413_s29  ;;  %v8641_v50 = vld [vmem:[%s9519_s25 + $0x512] ss:$2 sm:$0xff] }
 0x2f5   : > { %2779 = vrot.lane.b32.xlu0 %v8748_v58, %s9411_s27  ;;  %v10888_v39 = vpop.permute.xlu2 %2767  ;;  %v8506_v58 = vld [vmem:[%s9519_s25 + $0x441] ss:$2 sm:$0xff] }
 0x2f6   : > { %v4509_v33 = vpop.f32.mrf.mxu0  ;;  %v1788_v22 = vpop.permute.xlu1 %1787 }
 0x2f7   : > { %v4510_v12 = vadd.f32 %v10574_v23, %v4509_v33  ;;  %v3250_v40 = vpop.permute.xlu0 %3249  ;;  %v3560_v1 = vsel %vm3501_vm0, %v8374_v35, %v1788_v22 }
 0x2f8   : > { %v3928_v13 = vsel %vm3870_vm3, %v3805_v29, %v3250_v40  ;;  %v3683_v60 = vsel %vm3624_vm1, %v3560_v1, %v10833_v4  ;;  %v3561_v4 = vsel %vm3501_vm0, %v8375_v10, %v10851_v8  ;;  %v8519_v8 = vld [vmem:[%s9519_s25 + $0x511] ss:$2 sm:$0xff]  ;;  %v8377_v29 = vld [vmem:[%s9519_s25 + $0x3d0] ss:$2 sm:$0xff] }
 0x2f9   : > { %v4793_v2 = vmax.f32 %v4510_v12, 0.0  ;;  %8983 = vmatmul.msk.f32.gmra.mxu0 %vm4002_vm4, %v3928_v13  ;;  %v8872_v10 = vld [vmem:[%s9519_s25 + $0x444] ss:$2 sm:$0xff] }
 0x2fa   : > { %v5279_v41 = vld [vmem:[#allocation2 + $0x132] ss:$2 sm:$0xff] }
 0x2fb   : > { %v5442_v21 = vmax.f32 %v5381_v9, %v5279_v41  ;;  %4915 = vst.msk [vmem:[#allocation2 + $0x148] sm:$0xff] %vm3870_vm3, %v4793_v2  ;;  %2319 = vrot.lane.b32.xlu2 %v8640_v6, %s9412_s28  ;;  %v8885_v2 = vld [vmem:[%s9519_s25 + $0x514] ss:$2 sm:$0xff]  ;;  %v8750_v6 = vld [vmem:[%s9519_s25 + $0x443] ss:$2 sm:$0xff] }
 0x2fc   : > { %1805 = vrot.lane.b32.xlu1 %v8505_v7, %s9410_s26  ;;  %v8763_v41 = vld [vmem:[%s9519_s25 + $0x513] ss:$2 sm:$0xff] }
 0x2fd   : > { %5503 = vst.msk [vmem:[#allocation3 + $0x98] sm:$0xff] %vm3870_vm3, %v5442_v21  ;;  %1831 = vrot.lane.b32.xlu0 %v8518_v26, %s9410_s26  ;;  %v10905_v30 = vpop.permute.xlu2 %2281 }
 0x2fe   : > { %v4512_v61 = vpop.f32.mrf.mxu0  ;;  %v3252_v25 = vpop.permute.xlu1 %3251 }
 0x2ff   : > { %v4513_v27 = vadd.f32 %v10574_v23, %v4512_v61  ;;  %v2764_v11 = vpop.permute.xlu0 %2763 }
 0x300   : > { %v3806_v28 = vsel %vm3747_vm2, %v3683_v60, %v2764_v11 }
 0x301   : > { %v4794_v63 = vmax.f32 %v4513_v27, 0.0  ;;  %v3929_v59 = vsel %vm3870_vm3, %v3806_v28, %v3252_v25 }
 0x302   : > { %8984 = vmatmul.msk.f32.gmra.mxu0 %vm4002_vm4, %v3929_v59  ;;  %v5037_v0 = vld [vmem:[#allocation2 + $0x140] ss:$2 sm:$0xff]  ;;  %v5159_v16 = vld [vmem:[#allocation2 + $0x141] ss:$2 sm:$0xff]  ;;  %v8507_v59 = vld [vmem:[%s9519_s25 + $0x451] ss:$2 sm:$0xff] }
 0x303   : > { %4916 = vst.msk [vmem:[#allocation2 + $0x150] sm:$0xff] %vm3870_vm3, %v4794_v63  ;;  %2781 = vrot.lane.b32.xlu2 %v8749_v44, %s9411_s27  ;;  %v5382_v48 = vmax.f32 %v5037_v0, %v5159_v16  ;;  %v8520_v44 = vld [vmem:[%s9519_s25 + $0x521] ss:$2 sm:$0xff] }
 0x304   : > { %2807 = vrot.lane.b32.xlu1 %v8762_v14, %s9411_s27  ;;  %v8378_v14 = vld [vmem:[%s9519_s25 + $0x3e0] ss:$2 sm:$0xff] }
 0x305   : > { %2293 = vrot.lane.b32.xlu0 %v8627_v36, %s9412_s28  ;;  %v10923_v47 = vpop.permute.xlu2 %1795 }
 0x306   : > { %v4515_v54 = vpop.f32.mrf.mxu0  ;;  %v2766_v3 = vpop.permute.xlu1 %2765 }
 0x307   : > { %v4516_v20 = vadd.f32 %v10574_v23, %v4515_v54  ;;  %v2278_v43 = vpop.permute.xlu0 %2277 }
 0x308   : > { %v3684_v49 = vsel %vm3624_vm1, %v3561_v4, %v2278_v43 }
 0x309   : > { %v4795_v17 = vmax.f32 %v4516_v20, 0.0  ;;  %v3807_v57 = vsel %vm3747_vm2, %v3684_v49, %v2766_v3 }
 0x30a   : > { %v5281_v32 = vld [vmem:[#allocation2 + $0x142] ss:$2 sm:$0xff]  ;;  %v3930_v5 = vsel %vm3870_vm3, %v3807_v57, %v10870_v31  ;;  %v8629_v57 = vld [vmem:[%s9519_s25 + $0x452] ss:$2 sm:$0xff] }
 0x30b   : > { %v5443_v38 = vmax.f32 %v5382_v48, %v5281_v32  ;;  %4917 = vst.msk [vmem:[#allocation2 + $0x158] sm:$0xff] %vm3870_vm3, %v4795_v17  ;;  %8985 = vmatmul.msk.f32.gmra.mxu0 %vm4002_vm4, %v3930_v5  ;;  %1833 = vrot.lane.b32.xlu2 %v8519_v8, %s9410_s26  ;;  %v8376_v31 = vld [vmem:[%s9519_s25 + $0x3c0] ss:$2 sm:$0xff] }
 0x30c   : > { %3269 = vrot.lane.b32.xlu1 %v8871_v62, %s9413_s29  ;;  %v8642_v32 = vld [vmem:[%s9519_s25 + $0x522] ss:$2 sm:$0xff] }
 0x30d   : > { %5504 = vst.msk [vmem:[#allocation3 + $0xa0] sm:$0xff] %vm3870_vm3, %v5443_v38  ;;  %3295 = vrot.lane.b32.xlu0 %v8884_v51, %s9413_s29  ;;  %v10939_v42 = vpop.permute.xlu2 %3259  ;;  %v8379_v38 = vld [vmem:[%s9519_s25 + $0x3f0] ss:$2 sm:$0xff] }
 0x30e   : > { %v4518_v45 = vpop.f32.mrf.mxu0  ;;  %v2280_v15 = vpop.permute.xlu1 %2279 }
 0x30f   : > { %v4519_v34 = vadd.f32 %v10574_v23, %v4518_v45  ;;  %v1792_v37 = vpop.permute.xlu0 %1791  ;;  %v11009_v45 = vld [vmem:[%s14100_s2] ss:$0 sm:$0xff] }
 0x310   : > { %v3562_v55 = vsel %vm3501_vm0, %v8376_v31, %v1792_v37 }
 0x311   : > { %v4796_v18 = vmax.f32 %v4519_v34, 0.0  ;;  %v3685_v53 = vsel %vm3624_vm1, %v3562_v55, %v2280_v15  ;;  %v8886_v55 = vld [vmem:[%s9519_s25 + $0x524] ss:$2 sm:$0xff] }
 0x312   : > { %v5039_v24 = vld [vmem:[#allocation2 + $0x150] ss:$2 sm:$0xff]  ;;  %v5161_v52 = vld [vmem:[#allocation2 + $0x151] ss:$2 sm:$0xff]  ;;  %v3808_v40 = vsel %vm3747_vm2, %v3685_v53, %v10888_v39 }
 0x313   : > { %4918 = vst.msk [vmem:[#allocation2 + $0x160] sm:$0xff] %vm3870_vm3, %v4796_v18  ;;  %2295 = vrot.lane.b32.xlu2 %v8628_v19, %s9412_s28  ;;  %v5383_v13 = vmax.f32 %v5039_v24, %v5161_v52  ;;  %v8534_v18 = vld [vmem:[%s9519_s25 + $0x601] ss:$2 sm:$0xff] }
 0x314   : > { %2321 = vrot.lane.b32.xlu1 %v8641_v50, %s9412_s28  ;;  %v8751_v19 = vld [vmem:[%s9519_s25 + $0x453] ss:$2 sm:$0xff] }
 0x315   : > { %1807 = vrot.lane.b32.xlu0 %v8506_v58, %s9410_s26  ;;  %v10952_v46 = vpop.permute.xlu2 %2773 }
 0x316   : > { %v4521_v56 = vpop.f32.mrf.mxu0  ;;  %v1794_v12 = vpop.permute.xlu1 %1793 }
 0x317   : > { %v4522_v33 = vadd.f32 %v10574_v23, %v4521_v56  ;;  %v3256_v22 = vpop.permute.xlu0 %3255  ;;  %v3563_v21 = vsel %vm3501_vm0, %v8377_v29, %v1794_v12 }
 0x318   : > { %v3931_v35 = vsel %vm3870_vm3, %v3808_v40, %v3256_v22  ;;  %v3686_v11 = vsel %vm3624_vm1, %v3563_v21, %v10905_v30  ;;  %v3564_v30 = vsel %vm3501_vm0, %v8378_v14, %v10923_v47  ;;  %v8764_v47 = vld [vmem:[%s9519_s25 + $0x523] ss:$2 sm:$0xff]  ;;  %v8380_v40 = vld [vmem:[%s9519_s25 + $0x400] ss:$2 sm:$0xff] }
 0x319   : > { %v4797_v9 = vmax.f32 %v4522_v33, 0.0  ;;  %8986 = vmatmul.msk.f32.gmra.mxu0 %vm4002_vm4, %v3931_v35 }
 0x31a   : > { %v5283_v7 = vld [vmem:[#allocation2 + $0x152] ss:$2 sm:$0xff] }
 0x31b   : > { %v5444_v26 = vmax.f32 %v5383_v13, %v5283_v7  ;;  %4919 = vst.msk [vmem:[#allocation2 + $0x168] sm:$0xff] %vm3870_vm3, %v4797_v9  ;;  %3297 = vrot.lane.b32.xlu2 %v8885_v2, %s9413_s29  ;;  %v8778_v9 = vld [vmem:[%s9519_s25 + $0x603] ss:$2 sm:$0xff]  ;;  %v8656_v2 = vld [vmem:[%s9519_s25 + $0x602] ss:$2 sm:$0xff] }
 0x31c   : > { %2783 = vrot.lane.b32.xlu1 %v8750_v6, %s9411_s27  ;;  %v8873_v7 = vld [vmem:[%s9519_s25 + $0x454] ss:$2 sm:$0xff] }
 0x31d   : > { %5505 = vst.msk [vmem:[#allocation3 + $0xa8] sm:$0xff] %vm3870_vm3, %v5444_v26  ;;  %2809 = vrot.lane.b32.xlu0 %v8763_v41, %s9411_s27  ;;  %v10969_v1 = vpop.permute.xlu2 %2287 }
 0x31e   : > { %v4524_v39 = vpop.f32.mrf.mxu0  ;;  %v3258_v27 = vpop.permute.xlu1 %3257 }
 0x31f   : > { %v4525_v61 = vadd.f32 %v10574_v23, %v4524_v39  ;;  %v2770_v25 = vpop.permute.xlu0 %2769 }
 0x320   : > { %v3809_v60 = vsel %vm3747_vm2, %v3686_v11, %v2770_v25 }
 0x321   : > { %v4798_v28 = vmax.f32 %v4525_v61, 0.0  ;;  %v3932_v63 = vsel %vm3870_vm3, %v3809_v60, %v3258_v27 }
 0x322   : > { %8987 = vmatmul.msk.f32.gmra.mxu0 %vm4002_vm4, %v3932_v63  ;;  %v5041_v36 = vld [vmem:[#allocation2 + $0x160] ss:$2 sm:$0xff]  ;;  %v5163_v4 = vld [vmem:[#allocation2 + $0x161] ss:$2 sm:$0xff] }
 0x323   : > { %4920 = vst.msk [vmem:[#allocation2 + $0x170] sm:$0xff] %vm3870_vm3, %v4798_v28  ;;  %1809 = vrot.lane.b32.xlu2 %v8507_v59, %s9410_s26  ;;  %v5384_v49 = vmax.f32 %v5041_v36, %v5163_v4  ;;  %v8508_v63 = vld [vmem:[%s9519_s25 + $0x461] ss:$2 sm:$0xff]  ;;  %v8521_v59 = vld [vmem:[%s9519_s25 + $0x531] ss:$2 sm:$0xff] }
 0x324   : > { %1835 = vrot.lane.b32.xlu1 %v8520_v44, %s9410_s26  ;;  %v8900_v44 = vld [vmem:[%s9519_s25 + $0x604] ss:$2 sm:$0xff] }
 0x325   : > { %3271 = vrot.lane.b32.xlu0 %v8872_v10, %s9413_s29  ;;  %v10987_v16 = vpop.permute.xlu2 %1827 }
 0x326   : > { %v4527_v0 = vpop.f32.mrf.mxu0  ;;  %v2772_v20 = vpop.permute.xlu1 %2771 }
 0x327   : > { %v4528_v54 = vadd.f32 %v10574_v23, %v4527_v0  ;;  %v2284_v3 = vpop.permute.xlu0 %2283 }
 0x328   : > { %v3687_v43 = vsel %vm3624_vm1, %v3564_v30, %v2284_v3 }
 0x329   : > { %v4799_v48 = vmax.f32 %v4528_v54, 0.0  ;;  %v3810_v17 = vsel %vm3747_vm2, %v3687_v43, %v2772_v20  ;;  %v8394_v54 = vld [vmem:[%s9519_s25 + $0x4e0] ss:$2 sm:$0xff]  ;;  %v8765_v43 = vld [vmem:[%s9519_s25 + $0x533] ss:$2 sm:$0xff] }
 0x32a   : > { %v5285_v8 = vld [vmem:[#allocation2 + $0x162] ss:$2 sm:$0xff]  ;;  %v3933_v62 = vsel %vm3870_vm3, %v3810_v17, %v10939_v42  ;;  %v8643_v17 = vld [vmem:[%s9519_s25 + $0x532] ss:$2 sm:$0xff] }
 0x32b   : > { %v5445_v5 = vmax.f32 %v5384_v49, %v5285_v8  ;;  %4921 = vst.msk [vmem:[#allocation2 + $0x178] sm:$0xff] %vm3870_vm3, %v4799_v48  ;;  %8988 = vmatmul.msk.f32.gmra.mxu0 %vm4002_vm4, %v3933_v62  ;;  %2811 = vrot.lane.b32.xlu2 %v8764_v47, %s9411_s27  ;;  %v8630_v49 = vld [vmem:[%s9519_s25 + $0x462] ss:$2 sm:$0xff] }
 0x32c   : > { %2297 = vrot.lane.b32.xlu1 %v8629_v57, %s9412_s28  ;;  %v3580_v57 = vsel %vm3501_vm0, %v8394_v54, %v10987_v16  ;;  %v8381_v16 = vld [vmem:[%s9519_s25 + $0x410] ss:$2 sm:$0xff] }
 0x32d   : > { %5506 = vst.msk [vmem:[#allocation3 + $0xb0] sm:$0xff] %vm3870_vm3, %v5445_v5  ;;  %2323 = vrot.lane.b32.xlu0 %v8642_v32, %s9412_s28  ;;  %v11003_v51 = vpop.permute.xlu2 %2289 }
 0x32e   : > { %v4530_v23 = vpop.f32.mrf.mxu0  ;;  %v2286_v31 = vpop.permute.xlu1 %2285 }
 0x32f   : > { %v4531_v42 = vadd.f32 %v11009_v45, %v4530_v23  ;;  %v1798_v34 = vpop.permute.xlu0 %1797 }
 0x330   : > { %v3565_v37 = vsel %vm3501_vm0, %v8379_v38, %v1798_v34 }
 0x331   : > { %v4800_v15 = vmax.f32 %v4531_v42, 0.0  ;;  %v3688_v50 = vsel %vm3624_vm1, %v3565_v37, %v2286_v31  ;;  %v8887_v37 = vld [vmem:[%s9519_s25 + $0x534] ss:$2 sm:$0xff] }
 0x332   : > { %v5043_v58 = vld [vmem:[#allocation2 + $0x170] ss:$2 sm:$0xff]  ;;  %v5165_v53 = vld [vmem:[#allocation2 + $0x171] ss:$2 sm:$0xff]  ;;  %v3811_v22 = vsel %vm3747_vm2, %v3688_v50, %v10952_v46 }
 0x333   : > { %4922 = vst.msk [vmem:[#allocation2 + $0x180] sm:$0xff] %vm3870_vm3, %v4800_v15  ;;  %1863 = vrot.lane.b32.xlu2 %v8534_v18, %s9410_s26  ;;  %v5385_v35 = vmax.f32 %v5043_v58, %v5165_v53  ;;  %v8535_v15 = vld [vmem:[%s9519_s25 + $0x611] ss:$2 sm:$0xff] }
 0x334   : > { %3299 = vrot.lane.b32.xlu1 %v8886_v55, %s9413_s29  ;;  %v8752_v18 = vld [vmem:[%s9519_s25 + $0x463] ss:$2 sm:$0xff] }
 0x335   : > { %2785 = vrot.lane.b32.xlu0 %v8751_v19, %s9411_s27  ;;  %v11021_v52 = vpop.permute.xlu2 %3291 }
 0x336   : > { %v4533_v24 = vpop.f32.mrf.mxu0  ;;  %v1800_v33 = vpop.permute.xlu1 %1799 }
 0x337   : > { %v4534_v56 = vadd.f32 %v11009_v45, %v4533_v24  ;;  %v3262_v12 = vpop.permute.xlu0 %3261  ;;  %v3566_v26 = vsel %vm3501_vm0, %v8380_v40, %v1800_v33 }
 0x338   : > { %v3934_v29 = vsel %vm3870_vm3, %v3811_v22, %v3262_v12  ;;  %v3689_v25 = vsel %vm3624_vm1, %v3566_v26, %v10969_v1 }
 0x339   : > { %v4801_v13 = vmax.f32 %v4534_v56, 0.0  ;;  %8989 = vmatmul.msk.f32.gmra.mxu0 %vm4002_vm4, %v3934_v29 }
 0x33a   : > { %v5287_v6 = vld [vmem:[#allocation2 + $0x172] ss:$2 sm:$0xff] }
 0x33b   : > { %v5446_v41 = vmax.f32 %v5385_v35, %v5287_v6  ;;  %4923 = vst.msk [vmem:[#allocation2 + $0x188] sm:$0xff] %vm3870_vm3, %v4801_v13  ;;  %2839 = vrot.lane.b32.xlu2 %v8778_v9, %s9411_s27  ;;  %v8779_v35 = vld [vmem:[%s9519_s25 + $0x613] ss:$2 sm:$0xff]  ;;  %v8657_v13 = vld [vmem:[%s9519_s25 + $0x612] ss:$2 sm:$0xff] }
 0x33c   : > { %2351 = vrot.lane.b32.xlu1 %v8656_v2, %s9412_s28  ;;  %v8874_v9 = vld [vmem:[%s9519_s25 + $0x464] ss:$2 sm:$0xff] }
 0x33d   : > { %5507 = vst.msk [vmem:[#allocation3 + $0xb8] sm:$0xff] %vm3870_vm3, %v5446_v41  ;;  %3273 = vrot.lane.b32.xlu0 %v8873_v7, %s9413_s29  ;;  %v11038_v21 = vpop.permute.xlu2 %1803 }
 0x33e   : > { %v4536_v46 = vpop.f32.mrf.mxu0  ;;  %v3264_v61 = vpop.permute.xlu1 %3263 }
 0x33f   : > { %v4537_v39 = vadd.f32 %v11009_v45, %v4536_v46  ;;  %v2776_v27 = vpop.permute.xlu0 %2775 }
 0x340   : > { %v3812_v11 = vsel %vm3747_vm2, %v3689_v25, %v2776_v27  ;;  %v8509_v25 = vld [vmem:[%s9519_s25 + $0x471] ss:$2 sm:$0xff] }
 0x341   : > { %v4802_v60 = vmax.f32 %v4537_v39, 0.0  ;;  %v3935_v28 = vsel %vm3870_vm3, %v3812_v11, %v3264_v61  ;;  %v8382_v39 = vld [vmem:[%s9519_s25 + $0x420] ss:$2 sm:$0xff]  ;;  %v8395_v61 = vld [vmem:[%s9519_s25 + $0x4f0] ss:$2 sm:$0xff] }
 0x342   : > { %8990 = vmatmul.msk.f32.gmra.mxu0 %vm4002_vm4, %v3935_v28  ;;  %v5045_v1 = vld [vmem:[#allocation2 + $0x180] ss:$2 sm:$0xff]  ;;  %v5167_v14 = vld [vmem:[#allocation2 + $0x181] ss:$2 sm:$0xff] }
 0x343   : > { %4924 = vst.msk [vmem:[#allocation2 + $0x190] sm:$0xff] %vm3870_vm3, %v4802_v60  ;;  %1811 = vrot.lane.b32.xlu2 %v8508_v63, %s9410_s26  ;;  %v5386_v20 = vmax.f32 %v5045_v1, %v5167_v14  ;;  %v8522_v11 = vld [vmem:[%s9519_s25 + $0x541] ss:$2 sm:$0xff]  ;;  %v8901_v60 = vld [vmem:[%s9519_s25 + $0x614] ss:$2 sm:$0xff]  ;;  %v3568_v63 = vsel %vm3501_vm0, %v8382_v39, %v11038_v21 }
 0x344   : > { %1837 = vrot.lane.b32.xlu1 %v8521_v59, %s9410_s26 }
 0x345   : > { %3327 = vrot.lane.b32.xlu0 %v8900_v44, %s9413_s29  ;;  %v11053_v30 = vpop.permute.xlu2 %2805 }
 0x346   : > { %v4539_v10 = vpop.f32.mrf.mxu0  ;;  %v2316_v4 = vpop.permute.xlu1 %2315 }
 0x347   : > { %v4540_v36 = vadd.f32 %v11009_v45, %v4539_v10  ;;  %v1802_v0 = vpop.permute.xlu0 %1801  ;;  %v3703_v32 = vsel %vm3624_vm1, %v3580_v57, %v2316_v4 }
 0x348   : > { %v3567_v55 = vsel %vm3501_vm0, %v8381_v16, %v1802_v0 }
 0x349   : > { %v4803_v3 = vmax.f32 %v4540_v36, 0.0  ;;  %v3690_v58 = vsel %vm3624_vm1, %v3567_v55, %v11003_v51 }
 0x34a   : > { %v5289_v48 = vld [vmem:[#allocation2 + $0x182] ss:$2 sm:$0xff] }
 0x34b   : > { %v5447_v47 = vmax.f32 %v5386_v20, %v5289_v48  ;;  %4925 = vst.msk [vmem:[#allocation2 + $0x198] sm:$0xff] %vm3870_vm3, %v4803_v3  ;;  %2813 = vrot.lane.b32.xlu2 %v8765_v43, %s9411_s27 }
 0x34c   : > { %2299 = vrot.lane.b32.xlu1 %v8630_v49, %s9412_s28 }
 0x34d   : > { %5508 = vst.msk [vmem:[#allocation3 + $0xc0] sm:$0xff] %vm3870_vm3, %v5447_v47  ;;  %2325 = vrot.lane.b32.xlu0 %v8643_v17, %s9412_s28  ;;  %v11067_v62 = vpop.permute.xlu2 %3267  ;;  %v8766_v17 = vld [vmem:[%s9519_s25 + $0x543] ss:$2 sm:$0xff]  ;;  %v8631_v47 = vld [vmem:[%s9519_s25 + $0x472] ss:$2 sm:$0xff] }
 0x34e   : > { %v4542_v8 = vpop.f32.mrf.mxu0  ;;  %v2778_v23 = vpop.permute.xlu1 %2777 }
 0x34f   : > { %v4543_v5 = vadd.f32 %v11009_v45, %v4542_v8  ;;  %v2804_v38 = vpop.permute.xlu0 %2803 }
 0x350   : > { %v3826_v42 = vsel %vm3747_vm2, %v3703_v32, %v2804_v38 }
 0x351   : > { %v4804_v31 = vmax.f32 %v4543_v5, 0.0  ;;  %v3949_v34 = vsel %vm3870_vm3, %v3826_v42, %v11021_v52  ;;  %v3813_v52 = vsel %vm3747_vm2, %v3690_v58, %v2778_v23  ;;  %v8536_v42 = vld [vmem:[%s9519_s25 + $0x621] ss:$2 sm:$0xff] }
 0x352   : > { %9004 = vmatmul.msk.f32.vlgmr.msra.gmra.mxu1 %vm4002_vm4, %v3949_v34  ;;  %v5047_v19 = vld [vmem:[#allocation2 + $0x190] ss:$2 sm:$0xff]  ;;  %v5169_v50 = vld [vmem:[#allocation2 + $0x191] ss:$2 sm:$0xff] }
 0x353   : > { %4926 = vst.msk [vmem:[#allocation2 + $0x1a0] sm:$0xff] %vm3870_vm3, %v4804_v31  ;;  %1865 = vrot.lane.b32.xlu2 %v8535_v15, %s9410_s26  ;;  %v5387_v40 = vmax.f32 %v5047_v19, %v5169_v50  ;;  %v8888_v31 = vld [vmem:[%s9519_s25 + $0x544] ss:$2 sm:$0xff]  ;;  %v8753_v34 = vld [vmem:[%s9519_s25 + $0x473] ss:$2 sm:$0xff] }
 0x354   : > { %3301 = vrot.lane.b32.xlu1 %v8887_v37, %s9413_s29 }
 0x355   : > { %2787 = vrot.lane.b32.xlu0 %v8752_v18, %s9411_s27  ;;  %v11086_v24 = vpop.permute.xlu2 %2319 }
 0x356   : > { %v4545_v53 = vpop.f32.mrf.mxu0  ;;  %v1830_v33 = vpop.permute.xlu1 %1829 }
 0x357   : > { %v4546_v56 = vadd.f32 %v11009_v45, %v4545_v53  ;;  %v3266_v12 = vpop.permute.xlu0 %3265  ;;  %v3581_v28 = vsel %vm3501_vm0, %v8395_v61, %v1830_v33  ;;  %v8383_v53 = vld [vmem:[%s9519_s25 + $0x430] ss:$2 sm:$0xff] }
 0x358   : > { %v3936_v22 = vsel %vm3870_vm3, %v3813_v52, %v3266_v12  ;;  %v8396_v52 = vld [vmem:[%s9519_s25 + $0x500] ss:$2 sm:$0xff]  ;;  %v8780_v12 = vld [vmem:[%s9519_s25 + $0x623] ss:$2 sm:$0xff] }
 0x359   : > { %v4805_v29 = vmax.f32 %v4546_v56, 0.0  ;;  %8991 = vmatmul.msk.f32.gmra.mxu0 %vm4002_vm4, %v3936_v22  ;;  %v8658_v22 = vld [vmem:[%s9519_s25 + $0x622] ss:$2 sm:$0xff] }
 0x35a   : > { %v5291_v51 = vld [vmem:[#allocation2 + $0x192] ss:$2 sm:$0xff] }
 0x35b   : > { %v5448_v2 = vmax.f32 %v5387_v40, %v5291_v51  ;;  %4927 = vst.msk [vmem:[#allocation2 + $0x1a8] sm:$0xff] %vm3870_vm3, %v4805_v29  ;;  %2841 = vrot.lane.b32.xlu2 %v8779_v35, %s9411_s27  ;;  %v8875_v29 = vld [vmem:[%s9519_s25 + $0x474] ss:$2 sm:$0xff] }
 0x35c   : > { %2353 = vrot.lane.b32.xlu1 %v8657_v13, %s9412_s28 }
 0x35d   : > { %5509 = vst.msk [vmem:[#allocation3 + $0xc8] sm:$0xff] %vm3870_vm3, %v5448_v2  ;;  %3275 = vrot.lane.b32.xlu0 %v8874_v9, %s9413_s29  ;;  %v11100_v7 = vpop.permute.xlu2 %2781 }
 0x35e   : > { %v4548_v6 = vpop.f32.mrf.mxu0  ;;  %v2292_v26 = vpop.permute.xlu1 %2291 }
 0x35f   : > { %v4549_v41 = vadd.f32 %v11009_v45, %v4548_v6  ;;  %v2318_v46 = vpop.permute.xlu0 %2317  ;;  %v3691_v36 = vsel %vm3624_vm1, %v3568_v63, %v2292_v26 }
 0x360   : > { %v3704_v59 = vsel %vm3624_vm1, %v3581_v28, %v2318_v46  ;;  %v8902_v28 = vld [vmem:[%s9519_s25 + $0x624] ss:$2 sm:$0xff] }
 0x361   : > { %v4806_v27 = vmax.f32 %v4549_v41, 0.0  ;;  %v3827_v54 = vsel %vm3747_vm2, %v3704_v59, %v11053_v30  ;;  %v8644_v30 = vld [vmem:[%s9519_s25 + $0x542] ss:$2 sm:$0xff] }
 0x362   : > { %v5049_v44 = vld [vmem:[#allocation2 + $0x1a0] ss:$2 sm:$0xff]  ;;  %v5171_v1 = vld [vmem:[#allocation2 + $0x1a1] ss:$2 sm:$0xff] }
 0x363   : > { %4928 = vst.msk [vmem:[#allocation2 + $0x1b0] sm:$0xff] %vm3870_vm3, %v4806_v27  ;;  %1813 = vrot.lane.b32.xlu2 %v8509_v25, %s9410_s26  ;;  %v5388_v43 = vmax.f32 %v5049_v44, %v5171_v1 }
 0x364   : > { %1839 = vrot.lane.b32.xlu1 %v8522_v11, %s9410_s26 }
 0x365   : > { %3329 = vrot.lane.b32.xlu0 %v8901_v60, %s9413_s29  ;;  %v11116_v10 = vpop.permute.xlu2 %1833  ;;  %v8523_v60 = vld [vmem:[%s9519_s25 + $0x551] ss:$2 sm:$0xff] }
 0x366   : > { %v4551_v14 = vpop.f32.mrf.mxu0  ;;  %v3294_v4 = vpop.permute.xlu1 %3293 }
 0x367   : > { %v4552_v21 = vadd.f32 %v11009_v45, %v4551_v14  ;;  %v2780_v0 = vpop.permute.xlu0 %2779  ;;  %v3950_v3 = vsel %vm3870_vm3, %v3827_v54, %v3294_v4  ;;  %v8632_v54 = vld [vmem:[%s9519_s25 + $0x482] ss:$2 sm:$0xff] }
 0x368   : > { %v3814_v20 = vsel %vm3747_vm2, %v3691_v36, %v2780_v0  ;;  %9005 = vmatmul.msk.f32.gmra.mxu1 %vm4002_vm4, %v3950_v3  ;;  %v8767_v0 = vld [vmem:[%s9519_s25 + $0x553] ss:$2 sm:$0xff] }
 0x369   : > { %v4807_v49 = vmax.f32 %v4552_v21, 0.0  ;;  %v3937_v48 = vsel %vm3870_vm3, %v3814_v20, %v11067_v62  ;;  %v8397_v21 = vld [vmem:[%s9519_s25 + $0x510] ss:$2 sm:$0xff] }
 0x36a   : > { %v5293_v57 = vld [vmem:[#allocation2 + $0x1a2] ss:$2 sm:$0xff]  ;;  %8992 = vmatmul.msk.f32.gmra.mxu0 %vm4002_vm4, %v3937_v48  ;;  %v8645_v20 = vld [vmem:[%s9519_s25 + $0x552] ss:$2 sm:$0xff] }
 0x36b   : > { %v5449_v8 = vmax.f32 %v5388_v43, %v5293_v57  ;;  %4929 = vst.msk [vmem:[#allocation2 + $0x1b8] sm:$0xff] %vm3870_vm3, %v4807_v49  ;;  %2815 = vrot.lane.b32.xlu2 %v8766_v17, %s9411_s27  ;;  %v3583_v49 = vsel %vm3501_vm0, %v8397_v21, %v11116_v10 }
 0x36c   : > { %2301 = vrot.lane.b32.xlu1 %v8631_v47, %s9412_s28 }
 0x36d   : > { %5510 = vst.msk [vmem:[#allocation3 + $0xd0] sm:$0xff] %vm3870_vm3, %v5449_v8  ;;  %2327 = vrot.lane.b32.xlu0 %v8644_v30, %s9412_s28  ;;  %v11136_v32 = vpop.permute.xlu2 %2295  ;;  %v8384_v8 = vld [vmem:[%s9519_s25 + $0x440] ss:$2 sm:$0xff] }
 0x36e   : > { %v4554_v62 = vpop.f32.mrf.mxu0  ;;  %v1806_v23 = vpop.permute.xlu1 %1805 }
 0x36f   : > { %v4555_v5 = vadd.f32 %v11009_v45, %v4554_v62  ;;  %v1832_v38 = vpop.permute.xlu0 %1831  ;;  %v3569_v13 = vsel %vm3501_vm0, %v8383_v53, %v1806_v23  ;;  %v8537_v23 = vld [vmem:[%s9519_s25 + $0x631] ss:$2 sm:$0xff] }
 0x370   : > { %v3582_v51 = vsel %vm3501_vm0, %v8396_v52, %v1832_v38  ;;  %v8889_v38 = vld [vmem:[%s9519_s25 + $0x554] ss:$2 sm:$0xff]  ;;  %v8781_v53 = vld [vmem:[%s9519_s25 + $0x633] ss:$2 sm:$0xff] }
 0x371   : > { %v4808_v16 = vmax.f32 %v4555_v5, 0.0  ;;  %v3705_v2 = vsel %vm3624_vm1, %v3582_v51, %v11086_v24  ;;  %v8510_v24 = vld [vmem:[%s9519_s25 + $0x481] ss:$2 sm:$0xff]  ;;  %v8659_v52 = vld [vmem:[%s9519_s25 + $0x632] ss:$2 sm:$0xff] }
 0x372   : > { %v5051_v15 = vld [vmem:[#allocation2 + $0x1b0] ss:$2 sm:$0xff]  ;;  %v5173_v37 = vld [vmem:[#allocation2 + $0x1b1] ss:$2 sm:$0xff] }
 0x373   : > { %4930 = vst.msk [vmem:[#allocation2 + $0x1c0] sm:$0xff] %vm3870_vm3, %v4808_v16  ;;  %1867 = vrot.lane.b32.xlu2 %v8536_v42, %s9410_s26  ;;  %v5389_v56 = vmax.f32 %v5051_v15, %v5173_v37  ;;  %v8754_v16 = vld [vmem:[%s9519_s25 + $0x483] ss:$2 sm:$0xff] }
 0x374   : > { %3303 = vrot.lane.b32.xlu1 %v8888_v31, %s9413_s29 }
 0x375   : > { %2789 = vrot.lane.b32.xlu0 %v8753_v34, %s9411_s27  ;;  %v11146_v55 = vpop.permute.xlu2 %3297 }
 0x376   : > { %v4557_v18 = vpop.f32.mrf.mxu0  ;;  %v2808_v50 = vpop.permute.xlu1 %2807 }
 0x377   : > { %v4558_v19 = vadd.f32 %v11009_v45, %v4557_v18  ;;  %v2294_v58 = vpop.permute.xlu0 %2293  ;;  %v3828_v41 = vsel %vm3747_vm2, %v3705_v2, %v2808_v50  ;;  %v8524_v2 = vld [vmem:[%s9519_s25 + $0x561] ss:$2 sm:$0xff] }
 0x378   : > { %v3692_v9 = vsel %vm3624_vm1, %v3569_v13, %v2294_v58 }
 0x379   : > { %v4809_v33 = vmax.f32 %v4558_v19, 0.0  ;;  %v3815_v46 = vsel %vm3747_vm2, %v3692_v9, %v11100_v7  ;;  %v8511_v9 = vld [vmem:[%s9519_s25 + $0x491] ss:$2 sm:$0xff] }
 0x37a   : > { %v5295_v40 = vld [vmem:[#allocation2 + $0x1b2] ss:$2 sm:$0xff] }
 0x37b   : > { %v5450_v35 = vmax.f32 %v5389_v56, %v5295_v40  ;;  %4931 = vst.msk [vmem:[#allocation2 + $0x1c8] sm:$0xff] %vm3870_vm3, %v4809_v33  ;;  %2843 = vrot.lane.b32.xlu2 %v8780_v12, %s9411_s27 }
 0x37c   : > { %2355 = vrot.lane.b32.xlu1 %v8658_v22, %s9412_s28 }
 0x37d   : > { %5511 = vst.msk [vmem:[#allocation3 + $0xd8] sm:$0xff] %vm3870_vm3, %v5450_v35  ;;  %3277 = vrot.lane.b32.xlu0 %v8875_v29, %s9413_s29  ;;  %v11164_v6 = vpop.permute.xlu2 %1809  ;;  %v8398_v29 = vld [vmem:[%s9519_s25 + $0x520] ss:$2 sm:$0xff] }
 0x37e   : > { %v3270_v26 = vpop.permute.xlu1 %3269 }
 0x37f   : > { %v3296_v39 = vpop.permute.xlu0 %3295  ;;  %v3938_v61 = vsel %vm3870_vm3, %v3815_v46, %v3270_v26  ;;  %v4560_v27 = vpop.f32.mrf.mxu0  ;;  %v8903_v26 = vld [vmem:[%s9519_s25 + $0x634] ss:$2 sm:$0xff] }
 0x380   : > { %v3951_v25 = vsel %vm3870_vm3, %v3828_v41, %v3296_v39  ;;  %v4561_v11 = vadd.f32 %v11009_v45, %v4560_v27  ;;  %8993 = vmatmul.msk.f32.gmra.mxu0 %vm4002_vm4, %v3938_v61 }
 0x381   : > { %9006 = vmatmul.msk.f32.gmra.mxu1 %vm4002_vm4, %v3951_v25 }
 0x382   : > { %v4810_v7 = vmax.f32 %v4561_v11, 0.0  ;;  %v5053_v1 = vld [vmem:[#allocation2 + $0x1c0] ss:$2 sm:$0xff]  ;;  %v5175_v14 = vld [vmem:[#allocation2 + $0x1c1] ss:$2 sm:$0xff] }
 0x383   : > { %1815 = vrot.lane.b32.xlu2 %v8510_v24, %s9410_s26  ;;  %v5390_v3 = vmax.f32 %v5053_v1, %v5175_v14  ;;  %v8768_v1 = vld [vmem:[%s9519_s25 + $0x563] ss:$2 sm:$0xff]  ;;  %v8633_v14 = vld [vmem:[%s9519_s25 + $0x492] ss:$2 sm:$0xff] }
 0x384   : > { %1841 = vrot.lane.b32.xlu1 %v8523_v60, %s9410_s26  ;;  %4932 = vst.msk [vmem:[#allocation2 + $0x1d0] sm:$0xff] %vm3870_vm3, %v4810_v7 }
 0x385   : > { %3331 = vrot.lane.b32.xlu0 %v8902_v28, %s9413_s29  ;;  %v11181_v63 = vpop.permute.xlu2 %2811  ;;  %v8385_v28 = vld [vmem:[%s9519_s25 + $0x450] ss:$2 sm:$0xff] }
 0x386   : > { %v2322_v59 = vpop.permute.xlu1 %2321  ;;  %v3571_v21 = vsel %vm3501_vm0, %v8385_v28, %v11164_v6 }
 0x387   : > { %v1808_v44 = vpop.permute.xlu0 %1807  ;;  %v3706_v57 = vsel %vm3624_vm1, %v3583_v49, %v2322_v59 }
 0x388   : > { %v4563_v36 = vpop.f32.mrf.mxu0  ;;  %v3570_v42 = vsel %vm3501_vm0, %v8384_v8, %v1808_v44 }
 0x389   : > { %v4564_v4 = vadd.f32 %v11009_v45, %v4563_v36  ;;  %v3693_v31 = vsel %vm3624_vm1, %v3570_v42, %v11136_v32  ;;  %v8876_v32 = vld [vmem:[%s9519_s25 + $0x484] ss:$2 sm:$0xff] }
 0x38a   : > { %v8646_v36 = vld [vmem:[%s9519_s25 + $0x562] ss:$2 sm:$0xff] }
 0x38b   : > { %v4811_v43 = vmax.f32 %v4564_v4, 0.0  ;;  %v5297_v48 = vld [vmem:[#allocation2 + $0x1c2] ss:$2 sm:$0xff]  ;;  %2817 = vrot.lane.b32.xlu2 %v8767_v0, %s9411_s27 }
 0x38c   : > { %2303 = vrot.lane.b32.xlu1 %v8632_v54, %s9412_s28  ;;  %v5451_v17 = vmax.f32 %v5390_v3, %v5297_v48 }
 0x38d   : > { %4933 = vst.msk [vmem:[#allocation2 + $0x1d8] sm:$0xff] %vm3870_vm3, %v4811_v43  ;;  %2329 = vrot.lane.b32.xlu0 %v8645_v20, %s9412_s28  ;;  %v11194_v47 = vpop.permute.xlu2 %1863 }
 0x38e   : > { %5512 = vst.msk [vmem:[#allocation3 + $0xe0] sm:$0xff] %vm3870_vm3, %v5451_v17  ;;  %v2784_v30 = vpop.permute.xlu1 %2783 }
 0x38f   : > { %v2810_v10 = vpop.permute.xlu0 %2809  ;;  %v3816_v37 = vsel %vm3747_vm2, %v3693_v31, %v2784_v30  ;;  %v8890_v30 = vld [vmem:[%s9519_s25 + $0x564] ss:$2 sm:$0xff] }
 0x390   : > { %v3829_v62 = vsel %vm3747_vm2, %v3706_v57, %v2810_v10  ;;  %v8538_v57 = vld [vmem:[%s9519_s25 + $0x641] ss:$2 sm:$0xff] }
 0x391   : > { %v3952_v5 = vsel %vm3870_vm3, %v3829_v62, %v11146_v55  ;;  %v8755_v10 = vld [vmem:[%s9519_s25 + $0x493] ss:$2 sm:$0xff] }
 0x392   : > { %9007 = vmatmul.msk.f32.gmra.mxu1 %vm4002_vm4, %v3952_v5 }
 0x393   : > { %1869 = vrot.lane.b32.xlu2 %v8537_v23, %s9410_s26 }
 0x394   : > { %3305 = vrot.lane.b32.xlu1 %v8889_v38, %s9413_s29  ;;  %v5055_v56 = vld [vmem:[#allocation2 + $0x1d0] ss:$2 sm:$0xff]  ;;  %v5177_v33 = vld [vmem:[#allocation2 + $0x1d1] ss:$2 sm:$0xff] }
 0x395   : > { %2791 = vrot.lane.b32.xlu0 %v8754_v16, %s9411_s27  ;;  %v11212_v15 = vpop.permute.xlu2 %2839  ;;  %v5391_v13 = vmax.f32 %v5055_v56, %v5177_v33  ;;  %v8512_v33 = vld [vmem:[%s9519_s25 + $0x4a1] ss:$2 sm:$0xff] }
 0x396   : > { %v4566_v34 = vpop.f32.mrf.mxu0  ;;  %v1836_v55 = vpop.permute.xlu1 %1835 }
 0x397   : > { %v4567_v18 = vadd.f32 %v11009_v45, %v4566_v34  ;;  %v3272_v19 = vpop.permute.xlu0 %3271  ;;  %v3584_v39 = vsel %vm3501_vm0, %v8398_v29, %v1836_v55  ;;  %v8782_v55 = vld [vmem:[%s9519_s25 + $0x643] ss:$2 sm:$0xff] }
 0x398   : > { %v3939_v50 = vsel %vm3870_vm3, %v3816_v37, %v3272_v19  ;;  %v8660_v19 = vld [vmem:[%s9519_s25 + $0x642] ss:$2 sm:$0xff] }
 0x399   : > { %v4812_v58 = vmax.f32 %v4567_v18, 0.0  ;;  %8994 = vmatmul.msk.f32.gmra.mxu0 %vm4002_vm4, %v3939_v50  ;;  %v8877_v50 = vld [vmem:[%s9519_s25 + $0x494] ss:$2 sm:$0xff] }
 0x39b   : > { %4934 = vst.msk [vmem:[#allocation2 + $0x1e0] sm:$0xff] %vm3870_vm3, %v4812_v58  ;;  %2845 = vrot.lane.b32.xlu2 %v8781_v53, %s9411_s27 }
 0x39c   : > { %2357 = vrot.lane.b32.xlu1 %v8659_v52, %s9412_s28  ;;  %v8399_v52 = vld [vmem:[%s9519_s25 + $0x530] ss:$2 sm:$0xff] }
 0x39d   : > { %3279 = vrot.lane.b32.xlu0 %v8876_v32, %s9413_s29  ;;  %v11225_v12 = vpop.permute.xlu2 %1811 }
 0x39e   : > { %v2298_v22 = vpop.permute.xlu1 %2297 }
 0x39f   : > { %v2324_v40 = vpop.permute.xlu0 %2323  ;;  %v4569_v35 = vpop.f32.mrf.mxu0  ;;  %v3694_v0 = vsel %vm3624_vm1, %v3571_v21, %v2298_v22  ;;  %v8525_v22 = vld [vmem:[%s9519_s25 + $0x571] ss:$2 sm:$0xff] }
 0x3a0   : > { %v4570_v51 = vadd.f32 %v11009_v45, %v4569_v35  ;;  %v3707_v27 = vsel %vm3624_vm1, %v3584_v39, %v2324_v40  ;;  %v8904_v40 = vld [vmem:[%s9519_s25 + $0x644] ss:$2 sm:$0xff] }
 0x3a1   : > { %v3830_v60 = vsel %vm3747_vm2, %v3707_v27, %v11181_v63  ;;  %v8412_v63 = vld [vmem:[%s9519_s25 + $0x600] ss:$2 sm:$0xff]  ;;  %v8769_v27 = vld [vmem:[%s9519_s25 + $0x573] ss:$2 sm:$0xff] }
 0x3a2   : > { %v5299_v41 = vld [vmem:[#allocation2 + $0x1d2] ss:$2 sm:$0xff]  ;;  %v4813_v61 = vmax.f32 %v4570_v51, 0.0  ;;  %v3598_v17 = vsel %vm3501_vm0, %v8412_v63, %v11194_v47 }
 0x3a3   : > { %v5452_v46 = vmax.f32 %v5391_v13, %v5299_v41  ;;  %1817 = vrot.lane.b32.xlu2 %v8511_v9, %s9410_s26 }
 0x3a4   : > { %1843 = vrot.lane.b32.xlu1 %v8524_v2, %s9410_s26  ;;  %4935 = vst.msk [vmem:[#allocation2 + $0x1e8] sm:$0xff] %vm3870_vm3, %v4813_v61 }
 0x3a5   : > { %5513 = vst.msk [vmem:[#allocation3 + $0xe8] sm:$0xff] %vm3870_vm3, %v5452_v46  ;;  %3333 = vrot.lane.b32.xlu0 %v8903_v26, %s9413_s29  ;;  %v11239_v25 = vpop.permute.xlu2 %2813  ;;  %v8386_v26 = vld [vmem:[%s9519_s25 + $0x460] ss:$2 sm:$0xff] }
 0x3a6   : > { %v3300_v11 = vpop.permute.xlu1 %3299 }
 0x3a7   : > { %v2786_v24 = vpop.permute.xlu0 %2785  ;;  %v3953_v59 = vsel %vm3870_vm3, %v3830_v60, %v3300_v11  ;;  %v8634_v11 = vld [vmem:[%s9519_s25 + $0x4a2] ss:$2 sm:$0xff]  ;;  %v3572_v60 = vsel %vm3501_vm0, %v8386_v26, %v11225_v12 }
 0x3a8   : > { %v4572_v7 = vpop.f32.mrf.mxu0  ;;  %9008 = vmatmul.msk.f32.gmra.mxu1 %vm4002_vm4, %v3953_v59  ;;  %v3817_v20 = vsel %vm3747_vm2, %v3694_v0, %v2786_v24  ;;  %v8647_v24 = vld [vmem:[%s9519_s25 + $0x572] ss:$2 sm:$0xff] }
 0x3a9   : > { %v4573_v44 = vadd.f32 %v11009_v45, %v4572_v7  ;;  %v8413_v59 = vld [vmem:[%s9519_s25 + $0x610] ss:$2 sm:$0xff] }
 0x3ab   : > { %v4814_v4 = vmax.f32 %v4573_v44, 0.0  ;;  %2819 = vrot.lane.b32.xlu2 %v8768_v1, %s9411_s27  ;;  %v5057_v43 = vld [vmem:[#allocation2 + $0x1e0] ss:$2 sm:$0xff]  ;;  %v5179_v49 = vld [vmem:[#allocation2 + $0x1e1] ss:$2 sm:$0xff] }
 0x3ac   : > { %2305 = vrot.lane.b32.xlu1 %v8633_v14, %s9412_s28  ;;  %v5392_v8 = vmax.f32 %v5057_v43, %v5179_v49 }
 0x3ad   : > { %4936 = vst.msk [vmem:[#allocation2 + $0x1f0] sm:$0xff] %vm3870_vm3, %v4814_v4  ;;  %2331 = vrot.lane.b32.xlu0 %v8646_v36, %s9412_s28  ;;  %v11258_v54 = vpop.permute.xlu2 %1865 }
 0x3ae   : > { %v2352_v6 = vpop.permute.xlu1 %2351  ;;  %v3599_v63 = vsel %vm3501_vm0, %v8413_v59, %v11258_v54  ;;  %v8547_v59 = vld [vmem:[%s9519_s25 + $0x6d1] ss:$2 sm:$0xff] }
 0x3af   : > { %v3274_v3 = vpop.permute.xlu0 %3273  ;;  %v3721_v5 = vsel %vm3624_vm1, %v3598_v17, %v2352_v6  ;;  %v8891_v6 = vld [vmem:[%s9519_s25 + $0x574] ss:$2 sm:$0xff] }
 0x3b0   : > { %v3940_v48 = vsel %vm3870_vm3, %v3817_v20, %v3274_v3  ;;  %v3844_v34 = vsel %vm3747_vm2, %v3721_v5, %v11212_v15  ;;  %v8539_v20 = vld [vmem:[%s9519_s25 + $0x651] ss:$2 sm:$0xff] }
 0x3b1   : > { %8995 = vmatmul.msk.f32.gmra.mxu0 %vm4002_vm4, %v3940_v48  ;;  %v8756_v3 = vld [vmem:[%s9519_s25 + $0x4a3] ss:$2 sm:$0xff]  ;;  %v8783_v5 = vld [vmem:[%s9519_s25 + $0x653] ss:$2 sm:$0xff] }
 0x3b3   : > { %1871 = vrot.lane.b32.xlu2 %v8538_v57, %s9410_s26 }
 0x3b4   : > { %v5301_v62 = vld [vmem:[#allocation2 + $0x1e2] ss:$2 sm:$0xff]  ;;  %3307 = vrot.lane.b32.xlu1 %v8890_v30, %s9413_s29 }
 0x3b5   : > { %v5453_v23 = vmax.f32 %v5392_v8, %v5301_v62  ;;  %2793 = vrot.lane.b32.xlu0 %v8755_v10, %s9411_s27  ;;  %v11272_v38 = vpop.permute.xlu2 %2841 }
 0x3b6   : > { %v4575_v47 = vpop.f32.mrf.mxu0  ;;  %v1838_v42 = vpop.permute.xlu1 %1837 }
 0x3b7   : > { %5514 = vst.msk [vmem:[#allocation3 + $0xf0] sm:$0xff] %vm3870_vm3, %v5453_v23  ;;  %v4576_v16 = vadd.f32 %v11009_v45, %v4575_v47  ;;  %v3328_v31 = vpop.permute.xlu0 %3327  ;;  %v3585_v29 = vsel %vm3501_vm0, %v8399_v52, %v1838_v42  ;;  %v8661_v23 = vld [vmem:[%s9519_s25 + $0x652] ss:$2 sm:$0xff] }
 0x3b8   : > { %v3967_v37 = vsel %vm3870_vm3, %v3844_v34, %v3328_v31  ;;  %v8878_v47 = vld [vmem:[%s9519_s25 + $0x4a4] ss:$2 sm:$0xff]  ;;  %v8513_v34 = vld [vmem:[%s9519_s25 + $0x4b1] ss:$2 sm:$0xff] }
 0x3b9   : > { %v4815_v18 = vmax.f32 %v4576_v16, 0.0  ;;  %9022 = vmatmul.msk.f32.vlgmr.msra.gmra.mxu2 %vm4002_vm4, %v3967_v37  ;;  %v8400_v31 = vld [vmem:[%s9519_s25 + $0x540] ss:$2 sm:$0xff]  ;;  %v8526_v37 = vld [vmem:[%s9519_s25 + $0x581] ss:$2 sm:$0xff] }
 0x3bb   : > { %4937 = vst.msk [vmem:[#allocation2 + $0x1f8] sm:$0xff] %vm3870_vm3, %v4815_v18  ;;  %2847 = vrot.lane.b32.xlu2 %v8782_v55, %s9411_s27  ;;  %v8905_v18 = vld [vmem:[%s9519_s25 + $0x654] ss:$2 sm:$0xff] }
 0x3bc   : > { %2359 = vrot.lane.b32.xlu1 %v8660_v19, %s9412_s28 }
 0x3bd   : > { %3281 = vrot.lane.b32.xlu0 %v8877_v50, %s9413_s29  ;;  %v11287_v15 = vpop.permute.xlu2 %1813 }
 0x3be   : > { %v2300_v58 = vpop.permute.xlu1 %2299 }
 0x3bf   : > { %v2326_v53 = vpop.permute.xlu0 %2325  ;;  %v4578_v32 = vpop.f32.mrf.mxu0  ;;  %v3695_v44 = vsel %vm3624_vm1, %v3572_v60, %v2300_v58 }
 0x3c0   : > { %v4579_v56 = vadd.f32 %v11009_v45, %v4578_v32  ;;  %v3708_v13 = vsel %vm3624_vm1, %v3585_v29, %v2326_v53 }
 0x3c1   : > { %v3831_v41 = vsel %vm3747_vm2, %v3708_v13, %v11239_v25  ;;  %v8770_v13 = vld [vmem:[%s9519_s25 + $0x583] ss:$2 sm:$0xff] }
 0x3c2   : > { %v4816_v35 = vmax.f32 %v4579_v56, 0.0  ;;  %v5059_v46 = vld [vmem:[#allocation2 + $0x1f0] ss:$2 sm:$0xff]  ;;  %v5181_v39 = vld [vmem:[#allocation2 + $0x1f1] ss:$2 sm:$0xff] }
 0x3c3   : > { %1819 = vrot.lane.b32.xlu2 %v8512_v33, %s9410_s26  ;;  %v5393_v28 = vmax.f32 %v5059_v46, %v5181_v39  ;;  %v8387_v33 = vld [vmem:[%s9519_s25 + $0x470] ss:$2 sm:$0xff] }
 0x3c4   : > { %1845 = vrot.lane.b32.xlu1 %v8525_v22, %s9410_s26  ;;  %4938 = vst.msk [vmem:[#allocation2 + $0x200] sm:$0xff] %vm3870_vm3, %v4816_v35 }
 0x3c5   : > { %3335 = vrot.lane.b32.xlu0 %v8904_v40, %s9413_s29  ;;  %v11300_v51 = vpop.permute.xlu2 %2815 }
 0x3c6   : > { %v3302_v9 = vpop.permute.xlu1 %3301 }
 0x3c7   : > { %v2788_v2 = vpop.permute.xlu0 %2787  ;;  %v3954_v61 = vsel %vm3870_vm3, %v3831_v41, %v3302_v9  ;;  %v8635_v9 = vld [vmem:[%s9519_s25 + $0x4b2] ss:$2 sm:$0xff]  ;;  %v3573_v41 = vsel %vm3501_vm0, %v8387_v33, %v11287_v15 }
 0x3c8   : > { %9009 = vmatmul.msk.f32.gmra.mxu1 %vm4002_vm4, %v3954_v61  ;;  %v3818_v12 = vsel %vm3747_vm2, %v3695_v44, %v2788_v2  ;;  %v8648_v2 = vld [vmem:[%s9519_s25 + $0x582] ss:$2 sm:$0xff] }
 0x3cb   : > { %v5303_v7 = vld [vmem:[#allocation2 + $0x1f2] ss:$2 sm:$0xff]  ;;  %2821 = vrot.lane.b32.xlu2 %v8769_v27, %s9411_s27 }
 0x3cc   : > { %2307 = vrot.lane.b32.xlu1 %v8634_v11, %s9412_s28  ;;  %v5454_v25 = vmax.f32 %v5393_v28, %v5303_v7  ;;  %v8892_v7 = vld [vmem:[%s9519_s25 + $0x584] ss:$2 sm:$0xff] }
 0x3cd   : > { %2333 = vrot.lane.b32.xlu0 %v8647_v24, %s9412_s28  ;;  %v11317_v1 = vpop.permute.xlu2 %1867 }
 0x3ce   : > { %5515 = vst.msk [vmem:[#allocation3 + $0xf8] sm:$0xff] %vm3870_vm3, %v5454_v25  ;;  %v2354_v14 = vpop.permute.xlu1 %2353  ;;  %v8757_v25 = vld [vmem:[%s9519_s25 + $0x4b3] ss:$2 sm:$0xff] }
 0x3cf   : > { %v3276_v36 = vpop.permute.xlu0 %3275  ;;  %v4620_v4 = vpop.f32.mrf.mxu1  ;;  %v3722_v49 = vsel %vm3624_vm1, %v3599_v63, %v2354_v14 }
 0x3d0   : > { %v3941_v21 = vsel %vm3870_vm3, %v3818_v12, %v3276_v36  ;;  %v4621_v0 = vadd.f32 %v11009_v45, %v4620_v4  ;;  %v3845_v10 = vsel %vm3747_vm2, %v3722_v49, %v11272_v38 }
 0x3d1   : > { %8996 = vmatmul.msk.f32.gmra.mxu0 %vm4002_vm4, %v3941_v21 }
 0x3d2   : > { %v4830_v43 = vmax.f32 %v4621_v0, 0.0 }
 0x3d3   : > { %1873 = vrot.lane.b32.xlu2 %v8539_v20, %s9410_s26  ;;  %v8879_v20 = vld [vmem:[%s9519_s25 + $0x4b4] ss:$2 sm:$0xff] }
 0x3d4   : > { %3309 = vrot.lane.b32.xlu1 %v8891_v6, %s9413_s29  ;;  %4952 = vst.msk [vmem:[#allocation2 + $0x270] sm:$0xff] %vm3870_vm3, %v4830_v43  ;;  %v8669_v6 = vld [vmem:[%s9519_s25 + $0x6d2] ss:$2 sm:$0xff] }
 0x3d5   : > { %2795 = vrot.lane.b32.xlu0 %v8756_v3, %s9411_s27  ;;  %v11334_v48 = vpop.permute.xlu2 %2843  ;;  %v8540_v3 = vld [vmem:[%s9519_s25 + $0x661] ss:$2 sm:$0xff] }
 0x3d6   : > { %v4581_v54 = vpop.f32.mrf.mxu0  ;;  %v1840_v57 = vpop.permute.xlu1 %1839 }
 0x3d7   : > { %v4582_v17 = vadd.f32 %v11009_v45, %v4581_v54  ;;  %v3330_v30 = vpop.permute.xlu0 %3329  ;;  %v3586_v55 = vsel %vm3501_vm0, %v8400_v31, %v1840_v57 }
 0x3d8   : > { %v3968_v8 = vsel %vm3870_vm3, %v3845_v10, %v3330_v30  ;;  %v8401_v30 = vld [vmem:[%s9519_s25 + $0x550] ss:$2 sm:$0xff] }
 0x3d9   : > { %v4817_v62 = vmax.f32 %v4582_v17, 0.0  ;;  %9023 = vmatmul.msk.f32.gmra.mxu2 %vm4002_vm4, %v3968_v8 }
 0x3db   : > { %4939 = vst.msk [vmem:[#allocation2 + $0x208] sm:$0xff] %vm3870_vm3, %v4817_v62  ;;  %2849 = vrot.lane.b32.xlu2 %v8783_v5, %s9411_s27  ;;  %v8784_v5 = vld [vmem:[%s9519_s25 + $0x663] ss:$2 sm:$0xff] }
 0x3dc   : > { %2361 = vrot.lane.b32.xlu1 %v8661_v23, %s9412_s28  ;;  %v8791_v23 = vld [vmem:[%s9519_s25 + $0x6d3] ss:$2 sm:$0xff] }
 0x3dd   : > { %3283 = vrot.lane.b32.xlu0 %v8878_v47, %s9413_s29  ;;  %v11348_v16 = vpop.permute.xlu2 %1815  ;;  %v8662_v47 = vld [vmem:[%s9519_s25 + $0x662] ss:$2 sm:$0xff] }
 0x3de   : > { %v2302_v38 = vpop.permute.xlu1 %2301 }
 0x3df   : > { %v2328_v42 = vpop.permute.xlu0 %2327  ;;  %v3696_v46 = vsel %vm3624_vm1, %v3573_v41, %v2302_v38 }
 0x3e0   : > { %v3709_v19 = vsel %vm3624_vm1, %v3586_v55, %v2328_v42 }
 0x3e1   : > { %v3832_v56 = vsel %vm3747_vm2, %v3709_v19, %v11300_v51  ;;  %v8414_v51 = vld [vmem:[%s9519_s25 + $0x620] ss:$2 sm:$0xff] }
 0x3e2   : > { %v5061_v11 = vld [vmem:[#allocation2 + $0x200] ss:$2 sm:$0xff]  ;;  %v5183_v24 = vld [vmem:[#allocation2 + $0x201] ss:$2 sm:$0xff]  ;;  %v3600_v28 = vsel %vm3501_vm0, %v8414_v51, %v11317_v1 }
 0x3e3   : > { %1821 = vrot.lane.b32.xlu2 %v8513_v34, %s9410_s26  ;;  %v5394_v44 = vmax.f32 %v5061_v11, %v5183_v24 }
 0x3e4   : > { %1847 = vrot.lane.b32.xlu1 %v8526_v37, %s9410_s26 }
 0x3e5   : > { %3337 = vrot.lane.b32.xlu0 %v8905_v18, %s9413_s29  ;;  %v4623_v50 = vpop.f32.mrf.mxu1  ;;  %v11359_v58 = vpop.permute.xlu2 %2817 }
 0x3e6   : > { %v4624_v53 = vadd.f32 %v11009_v45, %v4623_v50  ;;  %v3304_v52 = vpop.permute.xlu1 %3303  ;;  %v8388_v50 = vld [vmem:[%s9519_s25 + $0x480] ss:$2 sm:$0xff] }
 0x3e7   : > { %v2790_v32 = vpop.permute.xlu0 %2789  ;;  %v4584_v22 = vpop.f32.mrf.mxu0  ;;  %v3955_v40 = vsel %vm3870_vm3, %v3832_v56, %v3304_v52  ;;  %v8906_v52 = vld [vmem:[%s9519_s25 + $0x664] ss:$2 sm:$0xff]  ;;  %v8913_v56 = vld [vmem:[%s9519_s25 + $0x6d4] ss:$2 sm:$0xff] }
 0x3e8   : > { %v4831_v29 = vmax.f32 %v4624_v53, 0.0  ;;  %v4585_v35 = vadd.f32 %v11009_v45, %v4584_v22  ;;  %9010 = vmatmul.msk.f32.gmra.mxu1 %vm4002_vm4, %v3955_v40  ;;  %v3819_v15 = vsel %vm3747_vm2, %v3696_v46, %v2790_v32  ;;  %v8527_v53 = vld [vmem:[%s9519_s25 + $0x591] ss:$2 sm:$0xff]  ;;  %v3574_v22 = vsel %vm3501_vm0, %v8388_v50, %v11348_v16  ;;  %v8636_v46 = vld [vmem:[%s9519_s25 + $0x4c2] ss:$2 sm:$0xff] }
 0x3ea   : > { %4953 = vst.msk [vmem:[#allocation2 + $0x278] sm:$0xff] %vm3870_vm3, %v4831_v29  ;;  %v4818_v26 = vmax.f32 %v4585_v35, 0.0 }
 0x3eb   : > { %2823 = vrot.lane.b32.xlu2 %v8770_v13, %s9411_s27 }
 0x3ec   : > { %2309 = vrot.lane.b32.xlu1 %v8635_v9, %s9412_s28  ;;  %4940 = vst.msk [vmem:[#allocation2 + $0x210] sm:$0xff] %vm3870_vm3, %v4818_v26  ;;  %v11447_v26 = vld [vmem:[%s14100_s2] ss:$0 sm:$0xff] }
 0x3ed   : > { %2335 = vrot.lane.b32.xlu0 %v8648_v2, %s9412_s28  ;;  %v11380_v39 = vpop.permute.xlu2 %1869 }
 0x3ee   : > { %v2356_v61 = vpop.permute.xlu1 %2355 }
 0x3ef   : > { %v3278_v27 = vpop.permute.xlu0 %3277  ;;  %v3723_v14 = vsel %vm3624_vm1, %v3600_v28, %v2356_v61 }
 0x3f0   : > { %v3942_v60 = vsel %vm3870_vm3, %v3819_v15, %v3278_v27  ;;  %v3846_v63 = vsel %vm3747_vm2, %v3723_v14, %v11334_v48  ;;  %v8649_v15 = vld [vmem:[%s9519_s25 + $0x592] ss:$2 sm:$0xff]  ;;  %v8514_v27 = vld [vmem:[%s9519_s25 + $0x4c1] ss:$2 sm:$0xff] }
 0x3f1   : > { %8997 = vmatmul.msk.f32.gmra.mxu0 %vm4002_vm4, %v3942_v60  ;;  %v5075_v42 = vld [vmem:[#allocation2 + $0x270] ss:$2 sm:$0xff]  ;;  %v5197_v31 = vld [vmem:[#allocation2 + $0x271] ss:$2 sm:$0xff] }
 0x3f2   : > { %v5401_v32 = vmax.f32 %v5075_v42, %v5197_v31  ;;  %v8758_v14 = vld [vmem:[%s9519_s25 + $0x4c3] ss:$2 sm:$0xff] }
 0x3f3   : > { %v5305_v12 = vld [vmem:[#allocation2 + $0x202] ss:$2 sm:$0xff]  ;;  %3311 = vrot.lane.b32.xlu2 %v8892_v7, %s9413_s29 }
 0x3f4   : > { %2797 = vrot.lane.b32.xlu1 %v8757_v25, %s9411_s27  ;;  %v5455_v36 = vmax.f32 %v5394_v44, %v5305_v12 }
 0x3f5   : > { %1889 = vrot.lane.b32.xlu0 %v8547_v59, %s9410_s26  ;;  %v11394_v1 = vpop.permute.xlu2 %2845 }
 0x3f6   : > { %5516 = vst.msk [vmem:[#allocation3 + $0x100] sm:$0xff] %vm3870_vm3, %v5455_v36  ;;  %v1842_v21 = vpop.permute.xlu1 %1841  ;;  %v8548_v36 = vld [vmem:[%s9519_s25 + $0x6e1] ss:$2 sm:$0xff] }
 0x3f7   : > { %v3332_v4 = vpop.permute.xlu0 %3331  ;;  %v3587_v38 = vsel %vm3501_vm0, %v8401_v30, %v1842_v21  ;;  %v8771_v21 = vld [vmem:[%s9519_s25 + $0x593] ss:$2 sm:$0xff] }
 0x3f8   : > { %v3969_v0 = vsel %vm3870_vm3, %v3846_v63, %v3332_v4 }
 0x3f9   : > { %9024 = vmatmul.msk.f32.gmra.mxu2 %vm4002_vm4, %v3969_v0 }
 0x3fb   : > { %3285 = vrot.lane.b32.xlu2 %v8879_v20, %s9413_s29  ;;  %v8402_v20 = vld [vmem:[%s9519_s25 + $0x560] ss:$2 sm:$0xff] }
 0x3fc   : > { %2377 = vrot.lane.b32.xlu1 %v8669_v6, %s9412_s28 }
 0x3fd   : > { %1875 = vrot.lane.b32.xlu0 %v8540_v3, %s9410_s26  ;;  %v4587_v43 = vpop.f32.mrf.mxu0  ;;  %v11409_v17 = vpop.permute.xlu2 %1817 }
 0x3fe   : > { %v4626_v49 = vpop.f32.mrf.mxu1  ;;  %v4588_v54 = vadd.f32 %v11009_v45, %v4587_v43  ;;  %v2304_v57 = vpop.permute.xlu1 %2303  ;;  %v8670_v43 = vld [vmem:[%s9519_s25 + $0x6e2] ss:$2 sm:$0xff] }
 0x3ff   : > { %v4627_v48 = vadd.f32 %v11009_v45, %v4626_v49  ;;  %v2330_v10 = vpop.permute.xlu0 %2329  ;;  %v3697_v29 = vsel %vm3624_vm1, %v3574_v22, %v2304_v57  ;;  %v8541_v49 = vld [vmem:[%s9519_s25 + $0x671] ss:$2 sm:$0xff] }
 0x400   : > { %v4819_v8 = vmax.f32 %v4588_v54, 0.0  ;;  %v3710_v45 = vsel %vm3624_vm1, %v3587_v38, %v2330_v10  ;;  %v8389_v38 = vld [vmem:[%s9519_s25 + $0x490] ss:$2 sm:$0xff] }
 0x401   : > { %v4832_v62 = vmax.f32 %v4627_v48, 0.0  ;;  %v3833_v18 = vsel %vm3747_vm2, %v3710_v45, %v11359_v58  ;;  %v8415_v58 = vld [vmem:[%s9519_s25 + $0x630] ss:$2 sm:$0xff] }
 0x402   : > { %4941 = vst.msk [vmem:[#allocation2 + $0x218] sm:$0xff] %vm3870_vm3, %v4819_v8  ;;  %v3601_v61 = vsel %vm3501_vm0, %v8415_v58, %v11380_v39  ;;  %v8893_v48 = vld [vmem:[%s9519_s25 + $0x594] ss:$2 sm:$0xff] }
 0x403   : > { %4954 = vst.msk [vmem:[#allocation2 + $0x280] sm:$0xff] %vm3870_vm3, %v4832_v62  ;;  %2851 = vrot.lane.b32.xlu2 %v8784_v5, %s9411_s27 }
 0x404   : > { %2865 = vrot.lane.b32.xlu1 %v8791_v23, %s9411_s27 }
 0x405   : > { %2363 = vrot.lane.b32.xlu0 %v8662_v47, %s9412_s28  ;;  %v11422_v34 = vpop.permute.xlu2 %2819 }
 0x406   : > { %v3306_v37 = vpop.permute.xlu1 %3305 }
 0x407   : > { %v2792_v55 = vpop.permute.xlu0 %2791  ;;  %v3956_v19 = vsel %vm3870_vm3, %v3833_v18, %v3306_v37  ;;  %v8792_v37 = vld [vmem:[%s9519_s25 + $0x6e3] ss:$2 sm:$0xff]  ;;  %v8663_v18 = vld [vmem:[%s9519_s25 + $0x672] ss:$2 sm:$0xff] }
 0x408   : > { %9011 = vmatmul.msk.f32.gmra.mxu1 %vm4002_vm4, %v3956_v19  ;;  %v3820_v16 = vsel %vm3747_vm2, %v3697_v29, %v2792_v55  ;;  %v8880_v55 = vld [vmem:[%s9519_s25 + $0x4c4] ss:$2 sm:$0xff]  ;;  %v3575_v19 = vsel %vm3501_vm0, %v8389_v38, %v11409_v17 }
 0x409   : > { %v5185_v4 = vld [vmem:[#allocation2 + $0x211] ss:$2 sm:$0xff]  ;;  %v8417_v38 = vld [vmem:[%s9519_s25 + $0x650] ss:$2 sm:$0xff] }
 0x40a   : > { %v5319_v33 = vld [vmem:[#allocation2 + $0x272] ss:$2 sm:$0xff] }
 0x40b   : > { %v5462_v40 = vmax.f32 %v5401_v32, %v5319_v33  ;;  %1849 = vrot.lane.b32.xlu2 %v8527_v53, %s9410_s26 }
 0x40c   : > { %3339 = vrot.lane.b32.xlu1 %v8906_v52, %s9413_s29  ;;  %v8416_v52 = vld [vmem:[%s9519_s25 + $0x640] ss:$2 sm:$0xff] }
 0x40d   : > { %3353 = vrot.lane.b32.xlu0 %v8913_v56, %s9413_s29  ;;  %5523 = vst.msk [vmem:[#allocation3 + $0x138] sm:$0xff] %vm3870_vm3, %v5462_v40  ;;  %v11440_v35 = vpop.permute.xlu2 %1871 }
 0x40e   : > { %v2358_v13 = vpop.permute.xlu1 %2357 }
 0x40f   : > { %v3280_v9 = vpop.permute.xlu0 %3279  ;;  %v4629_v2 = vpop.f32.mrf.mxu1  ;;  %v3724_v24 = vsel %vm3624_vm1, %v3601_v61, %v2358_v13 }
 0x410   : > { %v3943_v41 = vsel %vm3870_vm3, %v3820_v16, %v3280_v9  ;;  %v4630_v51 = vadd.f32 %v11447_v26, %v4629_v2  ;;  %v3847_v59 = vsel %vm3747_vm2, %v3724_v24, %v11394_v1  ;;  %v5063_v1 = vld [vmem:[#allocation2 + $0x210] ss:$2 sm:$0xff]  ;;  %v3602_v2 = vsel %vm3501_vm0, %v8416_v52, %v11440_v35 }
 0x411   : > { %8998 = vmatmul.msk.f32.gmra.mxu0 %vm4002_vm4, %v3943_v41  ;;  %v5395_v3 = vmax.f32 %v5063_v1, %v5185_v4  ;;  %v8907_v16 = vld [vmem:[%s9519_s25 + $0x674] ss:$2 sm:$0xff]  ;;  %v8914_v9 = vld [vmem:[%s9519_s25 + $0x6e4] ss:$2 sm:$0xff]  ;;  %v8772_v1 = vld [vmem:[%s9519_s25 + $0x5a3] ss:$2 sm:$0xff] }
 0x412   : > { %v4833_v11 = vmax.f32 %v4630_v51, 0.0  ;;  %v8785_v51 = vld [vmem:[%s9519_s25 + $0x673] ss:$2 sm:$0xff]  ;;  %v8637_v4 = vld [vmem:[%s9519_s25 + $0x4d2] ss:$2 sm:$0xff] }
 0x413   : > { %2311 = vrot.lane.b32.xlu2 %v8636_v46, %s9412_s28  ;;  %v8671_v52 = vld [vmem:[%s9519_s25 + $0x6f2] ss:$2 sm:$0xff] }
 0x414   : > { %2337 = vrot.lane.b32.xlu1 %v8649_v15, %s9412_s28  ;;  %4955 = vst.msk [vmem:[#allocation2 + $0x288] sm:$0xff] %vm3870_vm3, %v4833_v11 }
 0x415   : > { %1823 = vrot.lane.b32.xlu0 %v8514_v27, %s9410_s26  ;;  %v11462_v28 = vpop.permute.xlu2 %2847 }
 0x416   : > { %v4590_v60 = vpop.f32.mrf.mxu0  ;;  %v1844_v7 = vpop.permute.xlu1 %1843 }
 0x417   : > { %v4591_v39 = vadd.f32 %v11447_v26, %v4590_v60  ;;  %v3334_v25 = vpop.permute.xlu0 %3333  ;;  %v3588_v30 = vsel %vm3501_vm0, %v8402_v20, %v1844_v7  ;;  %v8650_v60 = vld [vmem:[%s9519_s25 + $0x5a2] ss:$2 sm:$0xff]  ;;  %v8528_v7 = vld [vmem:[%s9519_s25 + $0x5a1] ss:$2 sm:$0xff] }
 0x418   : > { %v3970_v12 = vsel %vm3870_vm3, %v3847_v59, %v3334_v25 }
 0x419   : > { %v4820_v44 = vmax.f32 %v4591_v39, 0.0  ;;  %9025 = vmatmul.msk.f32.gmra.mxu2 %vm4002_vm4, %v3970_v12  ;;  %v8515_v39 = vld [vmem:[%s9519_s25 + $0x4d1] ss:$2 sm:$0xff] }
 0x41b   : > { %4942 = vst.msk [vmem:[#allocation2 + $0x220] sm:$0xff] %vm3870_vm3, %v4820_v44  ;;  %2799 = vrot.lane.b32.xlu2 %v8758_v14, %s9411_s27  ;;  %v5199_v50 = vld [vmem:[#allocation2 + $0x281] ss:$2 sm:$0xff]  ;;  %v8403_v14 = vld [vmem:[%s9519_s25 + $0x570] ss:$2 sm:$0xff] }
 0x41c   : > { %1891 = vrot.lane.b32.xlu1 %v8548_v36, %s9410_s26 }
 0x41d   : > { %2825 = vrot.lane.b32.xlu0 %v8771_v21, %s9411_s27  ;;  %v11475_v63 = vpop.permute.xlu2 %1819  ;;  %v8549_v21 = vld [vmem:[%s9519_s25 + $0x6f1] ss:$2 sm:$0xff] }
 0x41e   : > { %v2306_v0 = vpop.permute.xlu1 %2305 }
 0x41f   : > { %v2332_v6 = vpop.permute.xlu0 %2331  ;;  %v3698_v32 = vsel %vm3624_vm1, %v3575_v19, %v2306_v0 }
 0x420   : > { %v3711_v10 = vsel %vm3624_vm1, %v3588_v30, %v2332_v6 }
 0x421   : > { %v3834_v47 = vsel %vm3747_vm2, %v3711_v10, %v11422_v34  ;;  %v5077_v34 = vld [vmem:[#allocation2 + $0x280] ss:$2 sm:$0xff] }
 0x422   : > { %v5307_v54 = vld [vmem:[#allocation2 + $0x212] ss:$2 sm:$0xff]  ;;  %v5402_v58 = vmax.f32 %v5077_v34, %v5199_v50  ;;  %v8664_v34 = vld [vmem:[%s9519_s25 + $0x682] ss:$2 sm:$0xff] }
 0x423   : > { %v5456_v57 = vmax.f32 %v5395_v3, %v5307_v54  ;;  %2379 = vrot.lane.b32.xlu2 %v8670_v43, %s9412_s28  ;;  %v8881_v50 = vld [vmem:[%s9519_s25 + $0x4d4] ss:$2 sm:$0xff] }
 0x424   : > { %1877 = vrot.lane.b32.xlu1 %v8541_v49, %s9410_s26 }
 0x425   : > { %5517 = vst.msk [vmem:[#allocation3 + $0x108] sm:$0xff] %vm3870_vm3, %v5456_v57  ;;  %3313 = vrot.lane.b32.xlu0 %v8893_v48, %s9413_s29  ;;  %v4632_v8 = vpop.f32.mrf.mxu1  ;;  %v11488_v5 = vpop.permute.xlu2 %2821  ;;  %v8390_v48 = vld [vmem:[%s9519_s25 + $0x4a0] ss:$2 sm:$0xff] }
 0x426   : > { %v4633_v62 = vadd.f32 %v11447_v26, %v4632_v8  ;;  %v3308_v23 = vpop.permute.xlu1 %3307  ;;  %v8542_v8 = vld [vmem:[%s9519_s25 + $0x681] ss:$2 sm:$0xff] }
 0x427   : > { %v2794_v45 = vpop.permute.xlu0 %2793  ;;  %v3957_v42 = vsel %vm3870_vm3, %v3834_v47, %v3308_v23  ;;  %v8759_v23 = vld [vmem:[%s9519_s25 + $0x4d3] ss:$2 sm:$0xff]  ;;  %v3576_v47 = vsel %vm3501_vm0, %v8390_v48, %v11475_v63 }
 0x428   : > { %v4834_v31 = vmax.f32 %v4633_v62, 0.0  ;;  %9012 = vmatmul.msk.f32.gmra.mxu1 %vm4002_vm4, %v3957_v42  ;;  %v3821_v22 = vsel %vm3747_vm2, %v3698_v32, %v2794_v45  ;;  %v8894_v62 = vld [vmem:[%s9519_s25 + $0x5a4] ss:$2 sm:$0xff]  ;;  %v8773_v48 = vld [vmem:[%s9519_s25 + $0x5b3] ss:$2 sm:$0xff] }
 0x42a   : > { %4956 = vst.msk [vmem:[#allocation2 + $0x290] sm:$0xff] %vm3870_vm3, %v4834_v31 }
 0x42b   : > { %2867 = vrot.lane.b32.xlu2 %v8792_v37, %s9411_s27 }
 0x42c   : > { %2365 = vrot.lane.b32.xlu1 %v8663_v18, %s9412_s28 }
 0x42d   : > { %3287 = vrot.lane.b32.xlu0 %v8880_v55, %s9413_s29  ;;  %v11507_v33 = vpop.permute.xlu2 %1873 }
 0x42e   : > { %v4593_v53 = vpop.f32.mrf.mxu0  ;;  %v2360_v17 = vpop.permute.xlu1 %2359 }
 0x42f   : > { %v4594_v56 = vadd.f32 %v11447_v26, %v4593_v53  ;;  %v3282_v40 = vpop.permute.xlu0 %3281  ;;  %v3725_v15 = vsel %vm3624_vm1, %v3602_v2, %v2360_v17  ;;  %v3603_v53 = vsel %vm3501_vm0, %v8417_v38, %v11507_v33 }
 0x430   : > { %v3944_v13 = vsel %vm3870_vm3, %v3821_v22, %v3282_v40  ;;  %v3848_v11 = vsel %vm3747_vm2, %v3725_v15, %v11462_v28  ;;  %v8404_v15 = vld [vmem:[%s9519_s25 + $0x580] ss:$2 sm:$0xff] }
 0x431   : > { %v4821_v29 = vmax.f32 %v4594_v56, 0.0  ;;  %v5321_v41 = vld [vmem:[#allocation2 + $0x282] ss:$2 sm:$0xff]  ;;  %8999 = vmatmul.msk.f32.gmra.mxu0 %vm4002_vm4, %v3944_v13 }
 0x432   : > { %v5463_v46 = vmax.f32 %v5402_v58, %v5321_v41  ;;  %v8793_v41 = vld [vmem:[%s9519_s25 + $0x6f3] ss:$2 sm:$0xff] }
 0x433   : > { %4943 = vst.msk [vmem:[#allocation2 + $0x228] sm:$0xff] %vm3870_vm3, %v4821_v29  ;;  %3341 = vrot.lane.b32.xlu2 %v8907_v16, %s9413_s29  ;;  %v8915_v16 = vld [vmem:[%s9519_s25 + $0x6f4] ss:$2 sm:$0xff] }
 0x434   : > { %3355 = vrot.lane.b32.xlu1 %v8914_v9, %s9413_s29  ;;  %5524 = vst.msk [vmem:[#allocation3 + $0x140] sm:$0xff] %vm3870_vm3, %v5463_v46  ;;  %v8786_v9 = vld [vmem:[%s9519_s25 + $0x683] ss:$2 sm:$0xff] }
 0x435   : > { %2853 = vrot.lane.b32.xlu0 %v8785_v51, %s9411_s27  ;;  %v11523_v35 = vpop.permute.xlu2 %2849 }
 0x436   : > { %v1846_v61 = vpop.permute.xlu1 %1845 }
 0x437   : > { %v3336_v27 = vpop.permute.xlu0 %3335  ;;  %v3589_v0 = vsel %vm3501_vm0, %v8403_v14, %v1846_v61 }
 0x438   : > { %v3971_v24 = vsel %vm3870_vm3, %v3848_v11, %v3336_v27 }
 0x439   : > { %9026 = vmatmul.msk.f32.gmra.mxu2 %vm4002_vm4, %v3971_v24 }
 0x43a   : > { %v5065_v56 = vld [vmem:[#allocation2 + $0x220] ss:$2 sm:$0xff]  ;;  %v5187_v17 = vld [vmem:[#allocation2 + $0x221] ss:$2 sm:$0xff] }
 0x43b   : > { %2339 = vrot.lane.b32.xlu2 %v8650_v60, %s9412_s28  ;;  %v5396_v29 = vmax.f32 %v5065_v56, %v5187_v17 }
 0x43c   : > { %v4674_v25 = vpop.f32.mrf.mxu2  ;;  %1825 = vrot.lane.b32.xlu1 %v8515_v39, %s9410_s26  ;;  %v8391_v39 = vld [vmem:[%s9519_s25 + $0x4b0] ss:$2 sm:$0xff] }
 0x43d   : > { %v4675_v59 = vadd.f32 %v11447_v26, %v4674_v25  ;;  %1851 = vrot.lane.b32.xlu0 %v8528_v7, %s9410_s26  ;;  %v11536_v44 = vpop.permute.xlu2 %1821  ;;  %v8651_v25 = vld [vmem:[%s9519_s25 + $0x5b2] ss:$2 sm:$0xff] }
 0x43e   : > { %v2308_v12 = vpop.permute.xlu1 %2307 }
 0x43f   : > { %v4848_v28 = vmax.f32 %v4675_v59, 0.0  ;;  %v2334_v36 = vpop.permute.xlu0 %2333  ;;  %v3699_v45 = vsel %vm3624_vm1, %v3576_v47, %v2308_v12  ;;  %v8908_v12 = vld [vmem:[%s9519_s25 + $0x684] ss:$2 sm:$0xff] }
 0x440   : > { %v3712_v20 = vsel %vm3624_vm1, %v3589_v0, %v2334_v36  ;;  %v3577_v36 = vsel %vm3501_vm0, %v8391_v39, %v11536_v44 }
 0x441   : > { %4970 = vst.msk [vmem:[#allocation2 + $0x300] sm:$0xff] %vm3870_vm3, %v4848_v28  ;;  %v3835_v54 = vsel %vm3747_vm2, %v3712_v20, %v11488_v5  ;;  %v8529_v28 = vld [vmem:[%s9519_s25 + $0x5b1] ss:$2 sm:$0xff] }
 0x443   : > { %1893 = vrot.lane.b32.xlu2 %v8549_v21, %s9410_s26 }
 0x444   : > { %2827 = vrot.lane.b32.xlu1 %v8772_v1, %s9411_s27 }
 0x445   : > { %2313 = vrot.lane.b32.xlu0 %v8637_v4, %s9412_s28  ;;  %v4635_v6 = vpop.f32.mrf.mxu1  ;;  %v11549_v43 = vpop.permute.xlu2 %2823 }
 0x446   : > { %v4636_v3 = vadd.f32 %v11447_v26, %v4635_v6  ;;  %v3310_v49 = vpop.permute.xlu1 %3309 }
 0x447   : > { %v2796_v57 = vpop.permute.xlu0 %2795  ;;  %v3958_v30 = vsel %vm3870_vm3, %v3835_v54, %v3310_v49  ;;  %v8895_v49 = vld [vmem:[%s9519_s25 + $0x5b4] ss:$2 sm:$0xff]  ;;  %v8550_v54 = vld [vmem:[%s9519_s25 + $0x701] ss:$2 sm:$0xff] }
 0x448   : > { %v4835_v10 = vmax.f32 %v4636_v3, 0.0  ;;  %9013 = vmatmul.msk.f32.gmra.mxu1 %vm4002_vm4, %v3958_v30  ;;  %v3822_v18 = vsel %vm3747_vm2, %v3699_v45, %v2796_v57  ;;  %v8665_v45 = vld [vmem:[%s9519_s25 + $0x692] ss:$2 sm:$0xff] }
 0x44a   : > { %4957 = vst.msk [vmem:[#allocation2 + $0x298] sm:$0xff] %vm3870_vm3, %v4835_v10 }
 0x44b   : > { %1879 = vrot.lane.b32.xlu2 %v8542_v8, %s9410_s26 }
 0x44c   : > { %3315 = vrot.lane.b32.xlu1 %v8894_v62, %s9413_s29 }
 0x44d   : > { %2801 = vrot.lane.b32.xlu0 %v8759_v23, %s9411_s27  ;;  %v3312_v31 = vpop.permute.xlu2 %3311 }
 0x44e   : > { %v4596_v5 = vpop.f32.mrf.mxu0  ;;  %v2362_v37 = vpop.permute.xlu1 %2361 }
 0x44f   : > { %v4597_v42 = vadd.f32 %v11447_v26, %v4596_v5  ;;  %v3284_v55 = vpop.permute.xlu0 %3283  ;;  %v3726_v32 = vsel %vm3624_vm1, %v3603_v53, %v2362_v37  ;;  %v8543_v37 = vld [vmem:[%s9519_s25 + $0x691] ss:$2 sm:$0xff] }
 0x450   : > { %v3945_v63 = vsel %vm3870_vm3, %v3822_v18, %v3284_v55  ;;  %v3849_v58 = vsel %vm3747_vm2, %v3726_v32, %v11523_v35  ;;  %v8787_v53 = vld [vmem:[%s9519_s25 + $0x693] ss:$2 sm:$0xff]  ;;  %v8425_v32 = vld [vmem:[%s9519_s25 + $0x6d0] ss:$2 sm:$0xff] }
 0x451   : > { %v4822_v19 = vmax.f32 %v4597_v42, 0.0  ;;  %9000 = vmatmul.msk.f32.gmra.mxu0 %vm4002_vm4, %v3945_v63  ;;  %v5079_v57 = vld [vmem:[#allocation2 + $0x290] ss:$2 sm:$0xff]  ;;  %v5201_v30 = vld [vmem:[#allocation2 + $0x291] ss:$2 sm:$0xff] }
 0x452   : > { %v5403_v5 = vmax.f32 %v5079_v57, %v5201_v30  ;;  %v8418_v63 = vld [vmem:[%s9519_s25 + $0x660] ss:$2 sm:$0xff]  ;;  %v8544_v57 = vld [vmem:[%s9519_s25 + $0x6a1] ss:$2 sm:$0xff] }
 0x453   : > { %4944 = vst.msk [vmem:[#allocation2 + $0x230] sm:$0xff] %vm3870_vm3, %v4822_v19  ;;  %2367 = vrot.lane.b32.xlu2 %v8664_v34, %s9412_s28 }
 0x454   : > { %3289 = vrot.lane.b32.xlu1 %v8881_v50, %s9413_s29  ;;  %v8916_v50 = vld [vmem:[%s9519_s25 + $0x704] ss:$2 sm:$0xff] }
 0x455   : > { %2381 = vrot.lane.b32.xlu0 %v8671_v52, %s9412_s28  ;;  %v3286_v22 = vpop.permute.xlu2 %3285  ;;  %v8794_v52 = vld [vmem:[%s9519_s25 + $0x703] ss:$2 sm:$0xff] }
 0x456   : > { %v1848_v33 = vpop.permute.xlu1 %1847 }
 0x457   : > { %v3338_v40 = vpop.permute.xlu0 %3337  ;;  %v3590_v24 = vsel %vm3501_vm0, %v8404_v15, %v1848_v33  ;;  %v8652_v15 = vld [vmem:[%s9519_s25 + $0x5c2] ss:$2 sm:$0xff] }
 0x458   : > { %v3972_v13 = vsel %vm3870_vm3, %v3849_v58, %v3338_v40 }
 0x459   : > { %9027 = vmatmul.msk.f32.gmra.mxu2 %vm4002_vm4, %v3972_v13 }
 0x45a   : > { %v5309_v2 = vld [vmem:[#allocation2 + $0x222] ss:$2 sm:$0xff] }
 0x45b   : > { %v5457_v51 = vmax.f32 %v5396_v29, %v5309_v2  ;;  %3357 = vrot.lane.b32.xlu2 %v8915_v16, %s9413_s29 }
 0x45c   : > { %v4677_v46 = vpop.f32.mrf.mxu2  ;;  %2855 = vrot.lane.b32.xlu1 %v8786_v9, %s9411_s27 }
 0x45d   : > { %5518 = vst.msk [vmem:[#allocation3 + $0x110] sm:$0xff] %vm3870_vm3, %v5457_v51  ;;  %v4678_v35 = vadd.f32 %v11447_v26, %v4677_v46  ;;  %2869 = vrot.lane.b32.xlu0 %v8793_v41, %s9411_s27  ;;  %v11594_v27 = vpop.permute.xlu2 %2851 }
 0x45e   : > { %v2310_v11 = vpop.permute.xlu1 %2309 }
 0x45f   : > { %v4849_v61 = vmax.f32 %v4678_v35, 0.0  ;;  %v2336_v60 = vpop.permute.xlu0 %2335  ;;  %v3700_v1 = vsel %vm3624_vm1, %v3577_v36, %v2310_v11  ;;  %v8530_v35 = vld [vmem:[%s9519_s25 + $0x5c1] ss:$2 sm:$0xff]  ;;  %v8896_v36 = vld [vmem:[%s9519_s25 + $0x5c4] ss:$2 sm:$0xff] }
 0x460   : > { %v3713_v7 = vsel %vm3624_vm1, %v3590_v24, %v2336_v60 }
 0x461   : > { %4971 = vst.msk [vmem:[#allocation2 + $0x308] sm:$0xff] %vm3870_vm3, %v4849_v61  ;;  %v3836_v59 = vsel %vm3747_vm2, %v3713_v7, %v11549_v43  ;;  %v8909_v61 = vld [vmem:[%s9519_s25 + $0x694] ss:$2 sm:$0xff] }
 0x462   : > { %v3959_v14 = vsel %vm3870_vm3, %v3836_v59, %v3312_v31  ;;  %v8672_v31 = vld [vmem:[%s9519_s25 + $0x702] ss:$2 sm:$0xff] }
 0x463   : > { %9014 = vmatmul.msk.f32.gmra.mxu1 %vm4002_vm4, %v3959_v14  ;;  %2341 = vrot.lane.b32.xlu2 %v8651_v25, %s9412_s28 }
 0x464   : > { %1853 = vrot.lane.b32.xlu1 %v8529_v28, %s9410_s26 }
 0x465   : > { %3343 = vrot.lane.b32.xlu0 %v8908_v12, %s9413_s29  ;;  %v4638_v21 = vpop.f32.mrf.mxu1  ;;  %v11614_v0 = vpop.permute.xlu2 %1849 }
 0x466   : > { %v4639_v4 = vadd.f32 %v11447_v26, %v4638_v21  ;;  %v2798_v20 = vpop.permute.xlu1 %2797  ;;  %v8551_v21 = vld [vmem:[%s9519_s25 + $0x711] ss:$2 sm:$0xff] }
 0x467   : > { %v3823_v44 = vsel %vm3747_vm2, %v3700_v1, %v2798_v20  ;;  %v1890_v6 = vpop.permute.xlu0 %1889  ;;  %v8774_v1 = vld [vmem:[%s9519_s25 + $0x5c3] ss:$2 sm:$0xff] }
 0x468   : > { %v4836_v3 = vmax.f32 %v4639_v4, 0.0  ;;  %v3946_v43 = vsel %vm3870_vm3, %v3823_v44, %v3286_v22  ;;  %v3611_v40 = vsel %vm3501_vm0, %v8425_v32, %v1890_v6  ;;  %v5093_v11 = vld [vmem:[#allocation2 + $0x300] ss:$2 sm:$0xff] }
 0x469   : > { %9001 = vmatmul.msk.f32.gmra.mxu0 %vm4002_vm4, %v3946_v43  ;;  %v8405_v43 = vld [vmem:[%s9519_s25 + $0x590] ss:$2 sm:$0xff] }
 0x46a   : > { %4958 = vst.msk [vmem:[#allocation2 + $0x2a0] sm:$0xff] %vm3870_vm3, %v4836_v3  ;;  %v3591_v30 = vsel %vm3501_vm0, %v8405_v43, %v11614_v0 }
 0x46b   : > { %3317 = vrot.lane.b32.xlu2 %v8895_v49, %s9413_s29  ;;  %v8666_v49 = vld [vmem:[%s9519_s25 + $0x6a2] ss:$2 sm:$0xff] }
 0x46c   : > { %1895 = vrot.lane.b32.xlu1 %v8550_v54, %s9410_s26 }
 0x46d   : > { %2829 = vrot.lane.b32.xlu0 %v8773_v48, %s9411_s27  ;;  %v11627_v62 = vpop.permute.xlu2 %2311  ;;  %v8673_v48 = vld [vmem:[%s9519_s25 + $0x712] ss:$2 sm:$0xff] }
 0x46e   : > { %v4599_v10 = vpop.f32.mrf.mxu0  ;;  %v2378_v23 = vpop.permute.xlu1 %2377 }
 0x46f   : > { %v4600_v8 = vadd.f32 %v11447_v26, %v4599_v10  ;;  %v1876_v47 = vpop.permute.xlu0 %1875  ;;  %v3734_v58 = vsel %vm3624_vm1, %v3611_v40, %v2378_v23 }
 0x470   : > { %v3604_v56 = vsel %vm3501_vm0, %v8418_v63, %v1876_v47  ;;  %v8392_v47 = vld [vmem:[%s9519_s25 + $0x4c0] ss:$2 sm:$0xff]  ;;  %v8795_v63 = vld [vmem:[%s9519_s25 + $0x713] ss:$2 sm:$0xff] }
 0x471   : > { %v4823_v38 = vmax.f32 %v4600_v8, 0.0  ;;  %v5323_v42 = vld [vmem:[#allocation2 + $0x292] ss:$2 sm:$0xff] }
 0x472   : > { %v5464_v18 = vmax.f32 %v5403_v5, %v5323_v42 }
 0x473   : > { %4945 = vst.msk [vmem:[#allocation2 + $0x238] sm:$0xff] %vm3870_vm3, %v4823_v38  ;;  %2369 = vrot.lane.b32.xlu2 %v8665_v45, %s9412_s28 }
 0x474   : > { %5525 = vst.msk [vmem:[#allocation3 + $0x148] sm:$0xff] %vm3870_vm3, %v5464_v18  ;;  %2383 = vrot.lane.b32.xlu1 %v8672_v31, %s9412_s28  ;;  %v8917_v31 = vld [vmem:[%s9519_s25 + $0x714] ss:$2 sm:$0xff] }
 0x475   : > { %1881 = vrot.lane.b32.xlu0 %v8543_v37, %s9410_s26  ;;  %v11637_v55 = vpop.permute.xlu2 %2799 }
 0x476   : > { %v2866_v19 = vpop.permute.xlu1 %2865 }
 0x477   : > { %v2364_v34 = vpop.permute.xlu0 %2363  ;;  %v3857_v2 = vsel %vm3747_vm2, %v3734_v58, %v2866_v19  ;;  %v8788_v19 = vld [vmem:[%s9519_s25 + $0x6a3] ss:$2 sm:$0xff] }
 0x478   : > { %v3727_v17 = vsel %vm3624_vm1, %v3604_v56, %v2364_v34  ;;  %v8426_v56 = vld [vmem:[%s9519_s25 + $0x6e0] ss:$2 sm:$0xff] }
 0x479   : > { %v3850_v9 = vsel %vm3747_vm2, %v3727_v17, %v11594_v27  ;;  %v5215_v27 = vld [vmem:[#allocation2 + $0x301] ss:$2 sm:$0xff] }
 0x47a   : > { %v5410_v60 = vmax.f32 %v5093_v11, %v5215_v27  ;;  %v5067_v10 = vld [vmem:[#allocation2 + $0x230] ss:$2 sm:$0xff]  ;;  %v5189_v8 = vld [vmem:[#allocation2 + $0x231] ss:$2 sm:$0xff] }
 0x47b   : > { %3359 = vrot.lane.b32.xlu2 %v8916_v50, %s9413_s29  ;;  %v5397_v37 = vmax.f32 %v5067_v10, %v5189_v8  ;;  %v8406_v8 = vld [vmem:[%s9519_s25 + $0x5a0] ss:$2 sm:$0xff] }
 0x47c   : > { %v4680_v22 = vpop.f32.mrf.mxu2  ;;  %2857 = vrot.lane.b32.xlu1 %v8787_v53, %s9411_s27 }
 0x47d   : > { %v4681_v33 = vadd.f32 %v11447_v26, %v4680_v22  ;;  %2871 = vrot.lane.b32.xlu0 %v8794_v52, %s9411_s27  ;;  %v11652_v13 = vpop.permute.xlu2 %2379 }
 0x47e   : > { %v3340_v16 = vpop.permute.xlu1 %3339 }
 0x47f   : > { %v4850_v29 = vmax.f32 %v4681_v33, 0.0  ;;  %v3354_v41 = vpop.permute.xlu0 %3353  ;;  %v3973_v51 = vsel %vm3870_vm3, %v3850_v9, %v3340_v16  ;;  %v8531_v9 = vld [vmem:[%s9519_s25 + $0x5d1] ss:$2 sm:$0xff] }
 0x480   : > { %9028 = vmatmul.msk.f32.gmra.mxu2 %vm4002_vm4, %v3973_v51  ;;  %v3980_v46 = vsel %vm3870_vm3, %v3857_v2, %v3354_v41  ;;  %v8910_v2 = vld [vmem:[%s9519_s25 + $0x6a4] ss:$2 sm:$0xff] }
 0x481   : > { %4972 = vst.msk [vmem:[#allocation2 + $0x310] sm:$0xff] %vm3870_vm3, %v4850_v29  ;;  %9035 = vmatmul.msk.f32.vlgmr.msra.gmra.mxu3 %vm4002_vm4, %v3980_v46  ;;  %v8653_v29 = vld [vmem:[%s9519_s25 + $0x5d2] ss:$2 sm:$0xff] }
 0x482   : > { %v8419_v41 = vld [vmem:[%s9519_s25 + $0x670] ss:$2 sm:$0xff] }
 0x483   : > { %2343 = vrot.lane.b32.xlu2 %v8652_v15, %s9412_s28 }
 0x484   : > { %1855 = vrot.lane.b32.xlu1 %v8530_v35, %s9410_s26 }
 0x485   : > { %3345 = vrot.lane.b32.xlu0 %v8909_v61, %s9413_s29  ;;  %v4641_v24 = vpop.f32.mrf.mxu1  ;;  %v11669_v7 = vpop.permute.xlu2 %2867 }
 0x486   : > { %v4642_v39 = vadd.f32 %v11447_v26, %v4641_v24  ;;  %v2338_v25 = vpop.permute.xlu1 %2337 }
 0x487   : > { %v1824_v28 = vpop.permute.xlu0 %1823  ;;  %v3714_v23 = vsel %vm3624_vm1, %v3591_v30, %v2338_v25  ;;  %v8897_v25 = vld [vmem:[%s9519_s25 + $0x5d4] ss:$2 sm:$0xff] }
 0x488   : > { %v5337_v59 = vld [vmem:[#allocation2 + $0x302] ss:$2 sm:$0xff]  ;;  %v4837_v14 = vmax.f32 %v4642_v39, 0.0  ;;  %v3578_v18 = vsel %vm3501_vm0, %v8392_v47, %v1824_v28  ;;  %v8552_v28 = vld [vmem:[%s9519_s25 + $0x721] ss:$2 sm:$0xff] }
 0x489   : > { %v5471_v12 = vmax.f32 %v5410_v60, %v5337_v59  ;;  %v3701_v53 = vsel %vm3624_vm1, %v3578_v18, %v11627_v62  ;;  %v8789_v47 = vld [vmem:[%s9519_s25 + $0x6b3] ss:$2 sm:$0xff] }
 0x48a   : > { %4959 = vst.msk [vmem:[#allocation2 + $0x2a8] sm:$0xff] %vm3870_vm3, %v4837_v14  ;;  %v3824_v62 = vsel %vm3747_vm2, %v3701_v53, %v11637_v55  ;;  %v8654_v53 = vld [vmem:[%s9519_s25 + $0x5e2] ss:$2 sm:$0xff] }
 0x48b   : > { %5532 = vst.msk [vmem:[#allocation3 + $0x180] sm:$0xff] %vm3870_vm3, %v5471_v12  ;;  %3319 = vrot.lane.b32.xlu2 %v8896_v36, %s9413_s29  ;;  %v8775_v12 = vld [vmem:[%s9519_s25 + $0x5d3] ss:$2 sm:$0xff] }
 0x48c   : > { %1897 = vrot.lane.b32.xlu1 %v8551_v21, %s9410_s26 }
 0x48d   : > { %2831 = vrot.lane.b32.xlu0 %v8774_v1, %s9411_s27  ;;  %v11679_v20 = vpop.permute.xlu2 %3341 }
 0x48e   : > { %v4602_v4 = vpop.f32.mrf.mxu0  ;;  %v1892_v6 = vpop.permute.xlu1 %1891 }
 0x48f   : > { %v4603_v44 = vadd.f32 %v11447_v26, %v4602_v4  ;;  %v2826_v3 = vpop.permute.xlu0 %2825  ;;  %v3612_v16 = vsel %vm3501_vm0, %v8426_v56, %v1892_v6  ;;  %v8667_v6 = vld [vmem:[%s9519_s25 + $0x6b2] ss:$2 sm:$0xff] }
 0x490   : > { %v3837_v38 = vsel %vm3747_vm2, %v3714_v23, %v2826_v3  ;;  %v3735_v51 = vsel %vm3624_vm1, %v3612_v16, %v11652_v13  ;;  %v8674_v3 = vld [vmem:[%s9519_s25 + $0x722] ss:$2 sm:$0xff] }
 0x491   : > { %v4824_v54 = vmax.f32 %v4603_v44, 0.0  ;;  %v3858_v13 = vsel %vm3747_vm2, %v3735_v51, %v11669_v7  ;;  %v5081_v7 = vld [vmem:[#allocation2 + $0x2a0] ss:$2 sm:$0xff]  ;;  %v5203_v14 = vld [vmem:[#allocation2 + $0x2a1] ss:$2 sm:$0xff] }
 0x492   : > { %v5404_v44 = vmax.f32 %v5081_v7, %v5203_v14  ;;  %v8918_v23 = vld [vmem:[%s9519_s25 + $0x724] ss:$2 sm:$0xff] }
 0x493   : > { %4946 = vst.msk [vmem:[#allocation2 + $0x240] sm:$0xff] %vm3870_vm3, %v4824_v54  ;;  %2371 = vrot.lane.b32.xlu2 %v8666_v49, %s9412_s28  ;;  %v8545_v54 = vld [vmem:[%s9519_s25 + $0x6b1] ss:$2 sm:$0xff]  ;;  %v8393_v56 = vld [vmem:[%s9519_s25 + $0x4d0] ss:$2 sm:$0xff] }
 0x494   : > { %2385 = vrot.lane.b32.xlu1 %v8673_v48, %s9412_s28  ;;  %v8420_v7 = vld [vmem:[%s9519_s25 + $0x680] ss:$2 sm:$0xff] }
 0x495   : > { %1883 = vrot.lane.b32.xlu0 %v8544_v57, %s9410_s26  ;;  %v11694_v5 = vpop.permute.xlu2 %2339 }
 0x496   : > { %v1878_v0 = vpop.permute.xlu1 %1877 }
 0x497   : > { %v3314_v45 = vpop.permute.xlu0 %3313  ;;  %v3605_v46 = vsel %vm3501_vm0, %v8419_v41, %v1878_v0 }
 0x498   : > { %v3960_v42 = vsel %vm3870_vm3, %v3837_v38, %v3314_v45  ;;  %v8796_v38 = vld [vmem:[%s9519_s25 + $0x723] ss:$2 sm:$0xff] }
 0x499   : > { %9015 = vmatmul.msk.f32.gmra.mxu1 %vm4002_vm4, %v3960_v42 }
 0x49a   : > { %v5311_v34 = vld [vmem:[#allocation2 + $0x232] ss:$2 sm:$0xff] }
 0x49b   : > { %v5458_v50 = vmax.f32 %v5397_v37, %v5311_v34  ;;  %3361 = vrot.lane.b32.xlu2 %v8917_v31, %s9413_s29 }
 0x49c   : > { %v4683_v52 = vpop.f32.mrf.mxu2  ;;  %2859 = vrot.lane.b32.xlu1 %v8788_v19, %s9411_s27 }
 0x49d   : > { %2873 = vrot.lane.b32.xlu0 %v8795_v63, %s9411_s27  ;;  %5519 = vst.msk [vmem:[#allocation3 + $0x118] sm:$0xff] %vm3870_vm3, %v5458_v50  ;;  %v4684_v32 = vadd.f32 %v11447_v26, %v4683_v52  ;;  %v11711_v17 = vpop.permute.xlu2 %1893  ;;  %v8532_v52 = vld [vmem:[%s9519_s25 + $0x5e1] ss:$2 sm:$0xff] }
 0x49e   : > { %v2366_v33 = vpop.permute.xlu1 %2365 }
 0x49f   : > { %v4851_v22 = vmax.f32 %v4684_v32, 0.0  ;;  %v3288_v40 = vpop.permute.xlu0 %3287  ;;  %v3728_v61 = vsel %vm3624_vm1, %v3605_v46, %v2366_v33  ;;  %v8911_v32 = vld [vmem:[%s9519_s25 + $0x6b4] ss:$2 sm:$0xff] }
 0x4a0   : > { %v3947_v58 = vsel %vm3870_vm3, %v3824_v62, %v3288_v40 }
 0x4a1   : > { %4973 = vst.msk [vmem:[#allocation2 + $0x318] sm:$0xff] %vm3870_vm3, %v4851_v22  ;;  %9002 = vmatmul.msk.f32.gmra.mxu0 %vm4002_vm4, %v3947_v58 }
 0x4a3   : > { %2345 = vrot.lane.b32.xlu2 %v8653_v29, %s9412_s28 }
 0x4a4   : > { %1857 = vrot.lane.b32.xlu1 %v8531_v9, %s9410_s26 }
 0x4a5   : > { %3347 = vrot.lane.b32.xlu0 %v8910_v2, %s9413_s29  ;;  %v4644_v55 = vpop.f32.mrf.mxu1  ;;  %v11730_v35 = vpop.permute.xlu2 %1879 }
 0x4a6   : > { %v4645_v15 = vadd.f32 %v11447_v26, %v4644_v55  ;;  %v3356_v11 = vpop.permute.xlu1 %3355 }
 0x4a7   : > { %v2854_v27 = vpop.permute.xlu0 %2853  ;;  %v3981_v39 = vsel %vm3870_vm3, %v3858_v13, %v3356_v11  ;;  %v8553_v11 = vld [vmem:[%s9519_s25 + $0x731] ss:$2 sm:$0xff]  ;;  %v8427_v13 = vld [vmem:[%s9519_s25 + $0x6f0] ss:$2 sm:$0xff] }
 0x4a8   : > { %v4838_v24 = vmax.f32 %v4645_v15, 0.0  ;;  %v3851_v60 = vsel %vm3747_vm2, %v3728_v61, %v2854_v27  ;;  %9036 = vmatmul.msk.f32.gmra.mxu3 %vm4002_vm4, %v3981_v39  ;;  %v5217_v22 = vld [vmem:[#allocation2 + $0x311] ss:$2 sm:$0xff]  ;;  %v8898_v15 = vld [vmem:[%s9519_s25 + $0x5e4] ss:$2 sm:$0xff] }
 0x4a9   : > { %v3974_v59 = vsel %vm3870_vm3, %v3851_v60, %v11679_v20  ;;  %v8776_v27 = vld [vmem:[%s9519_s25 + $0x5e3] ss:$2 sm:$0xff] }
 0x4aa   : > { %4960 = vst.msk [vmem:[#allocation2 + $0x2b0] sm:$0xff] %vm3870_vm3, %v4838_v24  ;;  %9029 = vmatmul.msk.f32.gmra.mxu2 %vm4002_vm4, %v3974_v59  ;;  %v3613_v24 = vsel %vm3501_vm0, %v8427_v13, %v11711_v17  ;;  %v8546_v17 = vld [vmem:[%s9519_s25 + $0x6c1] ss:$2 sm:$0xff] }
 0x4ab   : > { %3321 = vrot.lane.b32.xlu2 %v8897_v25, %s9413_s29 }
 0x4ac   : > { %1899 = vrot.lane.b32.xlu1 %v8552_v28, %s9410_s26 }
 0x4ad   : > { %2833 = vrot.lane.b32.xlu0 %v8775_v12, %s9411_s27  ;;  %v11748_v21 = vpop.permute.xlu2 %2367 }
 0x4ae   : > { %v4605_v36 = vpop.f32.mrf.mxu0  ;;  %v1826_v4 = vpop.permute.xlu1 %1825 }
 0x4af   : > { %v4606_v1 = vadd.f32 %v11447_v26, %v4605_v36  ;;  %v1852_v20 = vpop.permute.xlu0 %1851  ;;  %v3579_v33 = vsel %vm3501_vm0, %v8393_v56, %v1826_v4  ;;  %v8668_v36 = vld [vmem:[%s9519_s25 + $0x6c2] ss:$2 sm:$0xff] }
 0x4b0   : > { %v3592_v0 = vsel %vm3501_vm0, %v8406_v8, %v1852_v20  ;;  %v8675_v20 = vld [vmem:[%s9519_s25 + $0x732] ss:$2 sm:$0xff] }
 0x4b1   : > { %v5325_v43 = vld [vmem:[#allocation2 + $0x2a2] ss:$2 sm:$0xff]  ;;  %v4825_v49 = vmax.f32 %v4606_v1, 0.0  ;;  %v3715_v31 = vsel %vm3624_vm1, %v3592_v0, %v11694_v5 }
 0x4b2   : > { %v5465_v48 = vmax.f32 %v5404_v44, %v5325_v43  ;;  %v5095_v5 = vld [vmem:[#allocation2 + $0x310] ss:$2 sm:$0xff]  ;;  %v3606_v44 = vsel %vm3501_vm0, %v8420_v7, %v11730_v35  ;;  %v8798_v7 = vld [vmem:[%s9519_s25 + $0x743] ss:$2 sm:$0xff] }
 0x4b3   : > { %4947 = vst.msk [vmem:[#allocation2 + $0x248] sm:$0xff] %vm3870_vm3, %v4825_v49  ;;  %2373 = vrot.lane.b32.xlu2 %v8667_v6, %s9412_s28  ;;  %v5411_v16 = vmax.f32 %v5095_v5, %v5217_v22  ;;  %v3729_v43 = vsel %vm3624_vm1, %v3606_v44, %v11748_v21  ;;  %v8407_v8 = vld [vmem:[%s9519_s25 + $0x5b0] ss:$2 sm:$0xff]  ;;  %v8533_v5 = vld [vmem:[%s9519_s25 + $0x5f1] ss:$2 sm:$0xff] }
 0x4b4   : > { %5526 = vst.msk [vmem:[#allocation3 + $0x150] sm:$0xff] %vm3870_vm3, %v5465_v48  ;;  %2387 = vrot.lane.b32.xlu1 %v8674_v3, %s9412_s28  ;;  %v8912_v22 = vld [vmem:[%s9519_s25 + $0x6c4] ss:$2 sm:$0xff] }
 0x4b5   : > { %1885 = vrot.lane.b32.xlu0 %v8545_v54, %s9410_s26  ;;  %v11759_v57 = vpop.permute.xlu2 %3357 }
 0x4b6   : > { %v2828_v30 = vpop.permute.xlu1 %2827 }
 0x4b7   : > { %v2314_v10 = vpop.permute.xlu0 %2313  ;;  %v3838_v18 = vsel %vm3747_vm2, %v3715_v31, %v2828_v30  ;;  %v8919_v30 = vld [vmem:[%s9519_s25 + $0x734] ss:$2 sm:$0xff] }
 0x4b8   : > { %v3702_v62 = vsel %vm3624_vm1, %v3579_v33, %v2314_v10 }
 0x4ba   : > { %v5069_v6 = vld [vmem:[#allocation2 + $0x240] ss:$2 sm:$0xff]  ;;  %v5191_v3 = vld [vmem:[#allocation2 + $0x241] ss:$2 sm:$0xff] }
 0x4bb   : > { %3363 = vrot.lane.b32.xlu2 %v8918_v23, %s9413_s29  ;;  %v5398_v10 = vmax.f32 %v5069_v6, %v5191_v3  ;;  %v8790_v23 = vld [vmem:[%s9519_s25 + $0x6c3] ss:$2 sm:$0xff]  ;;  %v5672_v6 = vld [vmem:[#allocation3 + $0x12] ss:$2 sm:$0xff] }
 0x4bc   : > { %v4686_v45 = vpop.f32.mrf.mxu2  ;;  %2861 = vrot.lane.b32.xlu1 %v8789_v47, %s9411_s27  ;;  %v8797_v47 = vld [vmem:[%s9519_s25 + $0x733] ss:$2 sm:$0xff] }
 0x4bd   : > { %2875 = vrot.lane.b32.xlu0 %v8796_v38, %s9411_s27  ;;  %v4687_v42 = vadd.f32 %v11447_v26, %v4686_v45  ;;  %v11772_v37 = vpop.permute.xlu2 %2341  ;;  %v5610_v3 = vld [vmem:[#allocation3 + $0x11] ss:$2 sm:$0xff] }
 0x4be   : > { %v3316_v63 = vpop.permute.xlu1 %3315 }
 0x4bf   : > { %v4852_v19 = vmax.f32 %v4687_v42, 0.0  ;;  %v2802_v34 = vpop.permute.xlu0 %2801  ;;  %v3961_v50 = vsel %vm3870_vm3, %v3838_v18, %v3316_v63 }
 0x4c0   : > { %9016 = vmatmul.msk.f32.gmra.mxu1 %vm4002_vm4, %v3961_v50  ;;  %v3825_v9 = vsel %vm3747_vm2, %v3702_v62, %v2802_v34 }
 0x4c1   : > { %4974 = vst.msk [vmem:[#allocation2 + $0x320] sm:$0xff] %vm3870_vm3, %v4852_v19 }
 0x4c3   : > { %2347 = vrot.lane.b32.xlu2 %v8654_v53, %s9412_s28 }
 0x4c4   : > { %1859 = vrot.lane.b32.xlu1 %v8532_v52, %s9410_s26  ;;  %v8655_v52 = vld [vmem:[%s9519_s25 + $0x5f2] ss:$2 sm:$0xff] }
 0x4c5   : > { %3349 = vrot.lane.b32.xlu0 %v8911_v32, %s9413_s29  ;;  %v4647_v40 = vpop.f32.mrf.mxu1  ;;  %v11788_v29 = vpop.permute.xlu2 %3317 }
 0x4c6   : > { %v4648_v58 = vadd.f32 %v11447_v26, %v4647_v40  ;;  %v3290_v2 = vpop.permute.xlu1 %3289 }
 0x4c7   : > { %v2382_v41 = vpop.permute.xlu0 %2381  ;;  %v3948_v46 = vsel %vm3870_vm3, %v3825_v9, %v3290_v2  ;;  %v8899_v2 = vld [vmem:[%s9519_s25 + $0x5f4] ss:$2 sm:$0xff] }
 0x4c8   : > { %v5339_v51 = vld [vmem:[#allocation2 + $0x312] ss:$2 sm:$0xff]  ;;  %v4839_v55 = vmax.f32 %v4648_v58, 0.0  ;;  %9003 = vmatmul.msk.f32.gmra.mxu0 %vm4002_vm4, %v3948_v46  ;;  %v3736_v25 = vsel %vm3624_vm1, %v3613_v24, %v2382_v41 }
 0x4c9   : > { %v5472_v61 = vmax.f32 %v5411_v16, %v5339_v51  ;;  %v8554_v51 = vld [vmem:[%s9519_s25 + $0x741] ss:$2 sm:$0xff] }
 0x4ca   : > { %4961 = vst.msk [vmem:[#allocation2 + $0x2b8] sm:$0xff] %vm3870_vm3, %v4839_v55  ;;  %v8777_v55 = vld [vmem:[%s9519_s25 + $0x5f3] ss:$2 sm:$0xff] }
 0x4cb   : > { %5533 = vst.msk [vmem:[#allocation3 + $0x188] sm:$0xff] %vm3870_vm3, %v5472_v61  ;;  %3323 = vrot.lane.b32.xlu2 %v8898_v15, %s9413_s29  ;;  %v8428_v15 = vld [vmem:[%s9519_s25 + $0x700] ss:$2 sm:$0xff] }
 0x4cc   : > { %1901 = vrot.lane.b32.xlu1 %v8553_v11, %s9410_s26 }
 0x4cd   : > { %2835 = vrot.lane.b32.xlu0 %v8776_v27, %s9411_s27  ;;  %v11804_v39 = vpop.permute.xlu2 %2369 }
 0x4ce   : > { %v4608_v60 = vpop.f32.mrf.mxu0  ;;  %v2856_v28 = vpop.permute.xlu1 %2855 }
 0x4cf   : > { %v4609_v59 = vadd.f32 %v11447_v26, %v4608_v60  ;;  %v2870_v12 = vpop.permute.xlu0 %2869  ;;  %v3852_v54 = vsel %vm3747_vm2, %v3729_v43, %v2856_v28  ;;  %v8920_v28 = vld [vmem:[%s9519_s25 + $0x744] ss:$2 sm:$0xff] }
 0x4d0   : > { %v3859_v14 = vsel %vm3747_vm2, %v3736_v25, %v2870_v12  ;;  %v8421_v25 = vld [vmem:[%s9519_s25 + $0x690] ss:$2 sm:$0xff] }
 0x4d1   : > { %v4826_v1 = vmax.f32 %v4609_v59, 0.0  ;;  %v3982_v4 = vsel %vm3870_vm3, %v3859_v14, %v11759_v57  ;;  %v5083_v16 = vld [vmem:[#allocation2 + $0x2b0] ss:$2 sm:$0xff]  ;;  %v5205_v9 = vld [vmem:[#allocation2 + $0x2b1] ss:$2 sm:$0xff] }
 0x4d2   : > { %9037 = vmatmul.msk.f32.gmra.mxu3 %vm4002_vm4, %v3982_v4  ;;  %v5405_v46 = vmax.f32 %v5083_v16, %v5205_v9  ;;  %v8676_v14 = vld [vmem:[%s9519_s25 + $0x742] ss:$2 sm:$0xff] }
 0x4d3   : > { %4948 = vst.msk [vmem:[#allocation2 + $0x250] sm:$0xff] %vm3870_vm3, %v4826_v1  ;;  %2375 = vrot.lane.b32.xlu2 %v8668_v36, %s9412_s28 }
 0x4d4   : > { %2389 = vrot.lane.b32.xlu1 %v8675_v20, %s9412_s28 }
 0x4d5   : > { %1887 = vrot.lane.b32.xlu0 %v8546_v17, %s9410_s26  ;;  %v11824_v49 = vpop.permute.xlu2 %3359 }
 0x4d6   : > { %v1854_v35 = vpop.permute.xlu1 %1853 }
 0x4d7   : > { %v3344_v48 = vpop.permute.xlu0 %3343  ;;  %v3593_v21 = vsel %vm3501_vm0, %v8407_v8, %v1854_v35  ;;  %v8408_v35 = vld [vmem:[%s9519_s25 + $0x5c0] ss:$2 sm:$0xff] }
 0x4d8   : > { %v3975_v57 = vsel %vm3870_vm3, %v3852_v54, %v3344_v48  ;;  %v3716_v34 = vsel %vm3624_vm1, %v3593_v21, %v11772_v37  ;;  %v5608_v54 = vld [vmem:[#allocation3 + $0x1] ss:$2 sm:$0xff]  ;;  %v5670_v48 = vld [vmem:[#allocation3 + $0x2] ss:$2 sm:$0xff] }
 0x4d9   : > { %9030 = vmatmul.msk.f32.gmra.mxu2 %vm4002_vm4, %v3975_v57  ;;  %v9147_v57 = vpack.i.bf16 %v5672_v6, %v5670_v48  ;;  %v8799_v21 = vld [vmem:[%s9519_s25 + $0x753] ss:$2 sm:$0xff] }
 0x4da   : > { %v5313_v38 = vld [vmem:[#allocation2 + $0x242] ss:$2 sm:$0xff] }
 0x4db   : > { %v5459_v0 = vmax.f32 %v5398_v10, %v5313_v38  ;;  %3365 = vrot.lane.b32.xlu2 %v8919_v30, %s9413_s29  ;;  %v5734_v38 = vld [vmem:[#allocation3 + $0x13] ss:$2 sm:$0xff] }
 0x4dc   : > { %v4689_v45 = vpop.f32.mrf.mxu2  ;;  %2863 = vrot.lane.b32.xlu1 %v8790_v23, %s9411_s27 }
 0x4dd   : > { %2877 = vrot.lane.b32.xlu0 %v8797_v47, %s9411_s27  ;;  %5520 = vst.msk [vmem:[#allocation3 + $0x120] sm:$0xff] %vm3870_vm3, %v5459_v0  ;;  %v4690_v42 = vadd.f32 %v11447_v26, %v4689_v45  ;;  %v11839_v31 = vpop.permute.xlu2 %2343 }
 0x4de   : > { %v1896_v19 = vpop.permute.xlu1 %1895 }
 0x4df   : > { %v4853_v18 = vmax.f32 %v4690_v42, 0.0  ;;  %v2830_v63 = vpop.permute.xlu0 %2829  ;;  %v3614_v11 = vsel %vm3501_vm0, %v8428_v15, %v1896_v19  ;;  %v8677_v42 = vld [vmem:[%s9519_s25 + $0x752] ss:$2 sm:$0xff] }
 0x4e0   : > { %v3839_v50 = vsel %vm3747_vm2, %v3716_v34, %v2830_v63  ;;  %v4650_v53 = vpop.f32.mrf.mxu1 }
 0x4e1   : > { %4975 = vst.msk [vmem:[#allocation2 + $0x328] sm:$0xff] %vm3870_vm3, %v4853_v18  ;;  %v4651_v32 = vadd.f32 %v11447_v26, %v4650_v53  ;;  %v3962_v56 = vsel %vm3870_vm3, %v3839_v50, %v11788_v29  ;;  %v5732_v18 = vld [vmem:[#allocation3 + $0x3] ss:$2 sm:$0xff] }
 0x4e2   : > { %9017 = vmatmul.msk.f32.gmra.mxu1 %vm4002_vm4, %v3962_v56  ;;  %v9152_v19 = vpack.i.bf16 %v5734_v38, %v5732_v18  ;;  %v8801_v18 = vld [vmem:[%s9519_s25 + $0x773] ss:$2 sm:$0xff] }
 0x4e3   : > { %v4840_v33 = vmax.f32 %v4651_v32, 0.0  ;;  %2349 = vrot.lane.b32.xlu2 %v8655_v52, %s9412_s28 }
 0x4e4   : > { %1861 = vrot.lane.b32.xlu1 %v8533_v5, %s9410_s26 }
 0x4e5   : > { %3351 = vrot.lane.b32.xlu0 %v8912_v22, %s9413_s29  ;;  %4962 = vst.msk [vmem:[#allocation2 + $0x2c0] sm:$0xff] %vm3870_vm3, %v4840_v33  ;;  %v11856_v37 = vpop.permute.xlu2 %3319  ;;  %v8678_v33 = vld [vmem:[%s9519_s25 + $0x762] ss:$2 sm:$0xff] }
 0x4e6   : > { %v4611_v40 = vpop.f32.mrf.mxu0  ;;  %v2384_v62 = vpop.permute.xlu1 %2383 }
 0x4e7   : > { %v1882_v58 = vpop.permute.xlu0 %1881  ;;  %v4612_v29 = vadd.f32 %v11447_v26, %v4611_v40  ;;  %v3737_v13 = vsel %vm3624_vm1, %v3614_v11, %v2384_v62  ;;  %v8921_v40 = vld [vmem:[%s9519_s25 + $0x754] ss:$2 sm:$0xff] }
 0x4e8   : > { %v3607_v36 = vsel %vm3501_vm0, %v8421_v25, %v1882_v58  ;;  %v5097_v62 = vld [vmem:[#allocation2 + $0x320] ss:$2 sm:$0xff]  ;;  %v5219_v58 = vld [vmem:[#allocation2 + $0x321] ss:$2 sm:$0xff] }
 0x4e9   : > { %v4827_v41 = vmax.f32 %v4612_v29, 0.0  ;;  %v3730_v1 = vsel %vm3624_vm1, %v3607_v36, %v11804_v39  ;;  %v9142_v39 = vpack.i.bf16 %v5610_v3, %v5608_v54  ;;  %v8429_v29 = vld [vmem:[%s9519_s25 + $0x710] ss:$2 sm:$0xff]  ;;  %v5412_v16 = vmax.f32 %v5097_v62, %v5219_v58  ;;  %v5738_v36 = vld [vmem:[#allocation3 + $0x33] ss:$2 sm:$0xff] }
 0x4ea   : > { %v8922_v25 = vld [vmem:[%s9519_s25 + $0x764] ss:$2 sm:$0xff]  ;;  %v5736_v3 = vld [vmem:[#allocation3 + $0x23] ss:$2 sm:$0xff] }
 0x4eb   : > { %4949 = vst.msk [vmem:[#allocation2 + $0x258] sm:$0xff] %vm3870_vm3, %v4827_v41  ;;  %3325 = vrot.lane.b32.xlu2 %v8899_v2, %s9413_s29  ;;  %v5614_v41 = vld [vmem:[#allocation3 + $0x31] ss:$2 sm:$0xff]  ;;  %v8409_v54 = vld [vmem:[%s9519_s25 + $0x5d0] ss:$2 sm:$0xff] }
 0x4ec   : > { %v5327_v61 = vld [vmem:[#allocation2 + $0x2b2] ss:$2 sm:$0xff]  ;;  %1903 = vrot.lane.b32.xlu1 %v8554_v51, %s9410_s26 }
 0x4ed   : > { %2837 = vrot.lane.b32.xlu0 %v8777_v55, %s9411_s27  ;;  %v5466_v26 = vmax.f32 %v5405_v46, %v5327_v61  ;;  %v11868_v27 = vpop.permute.xlu2 %2371 }
 0x4ee   : > { %v2858_v24 = vpop.permute.xlu1 %2857 }
 0x4ef   : > { %5527 = vst.msk [vmem:[#allocation3 + $0x158] sm:$0xff] %vm3870_vm3, %v5466_v26  ;;  %v2872_v60 = vpop.permute.xlu0 %2871  ;;  %v3853_v20 = vsel %vm3747_vm2, %v3730_v1, %v2858_v24  ;;  %v8422_v26 = vld [vmem:[%s9519_s25 + $0x6a0] ss:$2 sm:$0xff] }
 0x4f0   : > { %v3860_v59 = vsel %vm3747_vm2, %v3737_v13, %v2872_v60  ;;  %v5612_v13 = vld [vmem:[#allocation3 + $0x21] ss:$2 sm:$0xff] }
 0x4f1   : > { %v3983_v12 = vsel %vm3870_vm3, %v3860_v59, %v11824_v49  ;;  %v8555_v49 = vld [vmem:[%s9519_s25 + $0x751] ss:$2 sm:$0xff]  ;;  %v9157_v60 = vpack.i.bf16 %v5614_v41, %v5612_v13  ;;  %v5680_v41 = vld [vmem:[#allocation3 + $0x52] ss:$2 sm:$0xff] }
 0x4f2   : > { %9038 = vmatmul.msk.f32.gmra.mxu3 %vm4002_vm4, %v3983_v12  ;;  %v8800_v59 = vld [vmem:[%s9519_s25 + $0x763] ss:$2 sm:$0xff] }
 0x4f3   : > { %3367 = vrot.lane.b32.xlu2 %v8920_v28, %s9413_s29 }
 0x4f4   : > { %2879 = vrot.lane.b32.xlu1 %v8798_v7, %s9411_s27 }
 0x4f5   : > { %2391 = vrot.lane.b32.xlu0 %v8676_v14, %s9412_s28  ;;  %v11886_v4 = vpop.permute.xlu2 %3361 }
 0x4f6   : > { %v1856_v17 = vpop.permute.xlu1 %1855 }
 0x4f7   : > { %v3346_v44 = vpop.permute.xlu0 %3345  ;;  %v3594_v30 = vsel %vm3501_vm0, %v8408_v35, %v1856_v17  ;;  %v8557_v35 = vld [vmem:[%s9519_s25 + $0x771] ss:$2 sm:$0xff] }
 0x4f8   : > { %v3976_v43 = vsel %vm3870_vm3, %v3853_v20, %v3346_v44  ;;  %v3717_v47 = vsel %vm3624_vm1, %v3594_v30, %v11839_v31  ;;  %v11911_v31 = vld [vmem:[%s14100_s2] ss:$0 sm:$0xff]  ;;  %v5676_v44 = vld [vmem:[#allocation3 + $0x32] ss:$2 sm:$0xff] }
 0x4f9   : > { %9031 = vmatmul.msk.f32.gmra.mxu2 %vm4002_vm4, %v3976_v43  ;;  %v5674_v43 = vld [vmem:[#allocation3 + $0x22] ss:$2 sm:$0xff] }
 0x4fa   : > { %v9162_v48 = vpack.i.bf16 %v5676_v44, %v5674_v43  ;;  %v8410_v43 = vld [vmem:[%s9519_s25 + $0x5e0] ss:$2 sm:$0xff] }
 0x4fb   : > { %1905 = vrot.lane.b32.xlu2 %v8555_v49, %s9410_s26 }
 0x4fc   : > { %9148 = vrot.lane.b32.xlu1 %v9147_v57, %s14108_s22 }
 0x4fd   : > { %9143 = vrot.lane.b32.xlu0 %v9142_v39, %s9413_s29  ;;  %v11897_v10 = vpop.permute.xlu2 %2345 }
 0x4fe   : > { %v1898_v8 = vpop.permute.xlu1 %1897 }
 0x4ff   : > { %v2832_v23 = vpop.permute.xlu0 %2831  ;;  %v3615_v9 = vsel %vm3501_vm0, %v8429_v29, %v1898_v8 }
 0x500   : > { %v3840_v0 = vsel %vm3747_vm2, %v3717_v47, %v2832_v23 }
 0x501   : > { %v3963_v45 = vsel %vm3870_vm3, %v3840_v0, %v11856_v37  ;;  %v8556_v37 = vld [vmem:[%s9519_s25 + $0x761] ss:$2 sm:$0xff] }
 0x502   : > { %9018 = vmatmul.msk.f32.gmra.mxu1 %vm4002_vm4, %v3963_v45 }
 0x503   : > { %v4692_v63 = vpop.f32.mrf.mxu2  ;;  %2881 = vrot.lane.b32.xlu2 %v8799_v21, %s9411_s27  ;;  %v8923_v21 = vld [vmem:[%s9519_s25 + $0x774] ss:$2 sm:$0xff] }
 0x504   : > { %v4693_v34 = vadd.f32 %v11911_v31, %v4692_v63  ;;  %v4713_v50 = vpop.f32.mrf.mxu3  ;;  %2393 = vrot.lane.b32.xlu1 %v8677_v42, %s9412_s28  ;;  %v5193_v63 = vld [vmem:[#allocation2 + $0x251] ss:$2 sm:$0xff] }
 0x505   : > { %9153 = vrot.lane.b32.xlu0 %v9152_v19, %s14110_s14  ;;  %v4714_v53 = vadd.f32 %v11911_v31, %v4713_v50  ;;  %v11917_v32 = vpop.permute.xlu2 %3321  ;;  %v8679_v19 = vld [vmem:[%s9519_s25 + $0x772] ss:$2 sm:$0xff] }
 0x506   : > { %v4854_v52 = vmax.f32 %v4693_v34, 0.0  ;;  %v2386_v5 = vpop.permute.xlu1 %2385 }
 0x507   : > { %v4861_v56 = vmax.f32 %v4714_v53, 0.0  ;;  %v1884_v22 = vpop.permute.xlu0 %1883  ;;  %v3738_v55 = vsel %vm3624_vm1, %v3615_v9, %v2386_v5  ;;  %v8558_v5 = vld [vmem:[%s9519_s25 + $0x781] ss:$2 sm:$0xff] }
 0x508   : > { %4976 = vst.msk [vmem:[#allocation2 + $0x330] sm:$0xff] %vm3870_vm3, %v4854_v52  ;;  %v3608_v28 = vsel %vm3501_vm0, %v8422_v26, %v1884_v22  ;;  %v8802_v52 = vld [vmem:[%s9519_s25 + $0x783] ss:$2 sm:$0xff]  ;;  %v8423_v26 = vld [vmem:[%s9519_s25 + $0x6b0] ss:$2 sm:$0xff] }
 0x509   : > { %4983 = vst.msk [vmem:[#allocation2 + $0x368] sm:$0xff] %vm3870_vm3, %v4861_v56  ;;  %v3731_v12 = vsel %vm3624_vm1, %v3608_v28, %v11868_v27  ;;  %v9167_v27 = vpack.i.bf16 %v5738_v36, %v5736_v3  ;;  %v8680_v56 = vld [vmem:[%s9519_s25 + $0x782] ss:$2 sm:$0xff]  ;;  %v5740_v3 = vld [vmem:[#allocation3 + $0x43] ss:$2 sm:$0xff] }
 0x50a   : > { %v8924_v28 = vld [vmem:[%s9519_s25 + $0x784] ss:$2 sm:$0xff] }
 0x50b   : > { %2395 = vrot.lane.b32.xlu2 %v8678_v33, %s9412_s28 }
 0x50c   : > { %1907 = vrot.lane.b32.xlu1 %v8556_v37, %s9410_s26  ;;  %v8430_v37 = vld [vmem:[%s9519_s25 + $0x720] ss:$2 sm:$0xff] }
 0x50d   : > { %3369 = vrot.lane.b32.xlu0 %v8921_v40, %s9413_s29  ;;  %v11929_v2 = vpop.permute.xlu2 %2373 }
 0x50e   : > { %v2860_v46 = vpop.permute.xlu1 %2859 }
 0x50f   : > { %v5341_v51 = vld [vmem:[#allocation2 + $0x322] ss:$2 sm:$0xff]  ;;  %v2874_v15 = vpop.permute.xlu0 %2873  ;;  %v3854_v1 = vsel %vm3747_vm2, %v3731_v12, %v2860_v46 }
 0x510   : > { %v5473_v61 = vmax.f32 %v5412_v16, %v5341_v51  ;;  %v3861_v11 = vsel %vm3747_vm2, %v3738_v55, %v2874_v15 }
 0x511   : > { %v3984_v24 = vsel %vm3870_vm3, %v3861_v11, %v11886_v4 }
 0x512   : > { %5534 = vst.msk [vmem:[#allocation3 + $0x190] sm:$0xff] %vm3870_vm3, %v5473_v61  ;;  %9039 = vmatmul.msk.f32.gmra.mxu3 %vm4002_vm4, %v3984_v24  ;;  %v5618_v61 = vld [vmem:[#allocation3 + $0x51] ss:$2 sm:$0xff]  ;;  %v5678_v24 = vld [vmem:[#allocation3 + $0x42] ss:$2 sm:$0xff] }
 0x513   : > { %9158 = vrot.lane.b32.xlu2 %v9157_v60, %s9413_s29 }
 0x514   : > { %3371 = vrot.lane.b32.xlu1 %v8922_v25, %s9413_s29  ;;  %v9177_v25 = vpack.i.bf16 %v5680_v41, %v5678_v24  ;;  %v5624_v41 = vld [vmem:[#allocation3 + $0x81] ss:$2 sm:$0xff] }
 0x515   : > { %2883 = vrot.lane.b32.xlu0 %v8800_v59, %s9411_s27  ;;  %v11946_v14 = vpop.permute.xlu2 %3363  ;;  %v5616_v59 = vld [vmem:[#allocation3 + $0x41] ss:$2 sm:$0xff] }
 0x516   : > { %v4653_v7 = vpop.f32.mrf.mxu1  ;;  %v1858_v20 = vpop.permute.xlu1 %1857  ;;  %v9172_v12 = vpack.i.bf16 %v5618_v61, %v5616_v59  ;;  %v5744_v61 = vld [vmem:[#allocation3 + $0x63] ss:$2 sm:$0xff]  ;;  %v8431_v59 = vld [vmem:[%s9519_s25 + $0x730] ss:$2 sm:$0xff] }
 0x517   : > { %v4654_v4 = vadd.f32 %v11911_v31, %v4653_v7  ;;  %v3348_v17 = vpop.permute.xlu0 %3347  ;;  %v3595_v57 = vsel %vm3501_vm0, %v8409_v54, %v1858_v20  ;;  %v5742_v20 = vld [vmem:[#allocation3 + $0x53] ss:$2 sm:$0xff] }
 0x518   : > { %v3977_v6 = vsel %vm3870_vm3, %v3854_v1, %v3348_v17  ;;  %v3718_v38 = vsel %vm3624_vm1, %v3595_v57, %v11897_v10  ;;  %v5071_v10 = vld [vmem:[#allocation2 + $0x250] ss:$2 sm:$0xff]  ;;  %v9182_v54 = vpack.i.bf16 %v5742_v20, %v5740_v3  ;;  %v8424_v3 = vld [vmem:[%s9519_s25 + $0x6c0] ss:$2 sm:$0xff] }
 0x519   : > { %v4841_v49 = vmax.f32 %v4654_v4, 0.0  ;;  %9032 = vmatmul.msk.f32.gmra.mxu2 %vm4002_vm4, %v3977_v6  ;;  %v8681_v6 = vld [vmem:[%s9519_s25 + $0x792] ss:$2 sm:$0x7] }
 0x51b   : > { %4963 = vst.msk [vmem:[#allocation2 + $0x2c8] sm:$0xff] %vm3870_vm3, %v4841_v49  ;;  %9168 = vrot.lane.b32.xlu2 %v9167_v27, %s14110_s14  ;;  %v8559_v49 = vld [vmem:[%s9519_s25 + $0x791] ss:$2 sm:$0x7] }
 0x51c   : > { %1909 = vrot.lane.b32.xlu1 %v8557_v35, %s9410_s26  ;;  %v6337_v35 = vld [vmem:[%s14101_s3 + $0x78] sm:$0xff] }
 0x51d   : > { %9163 = vrot.lane.b32.xlu0 %v9162_v48, %s14108_s22  ;;  %v11959_v30 = vpop.permute.xlu2 %2347  ;;  %v6340_v48 = vld [vmem:[%s14101_s3 + $0x90] sm:$0xff]  ;;  %6439 = vmatpush.msrb.mxu1 %v6337_v35 }
 0x51e   : > { %v4614_v39 = vpop.f32.mrf.mxu0  ;;  %v1900_v23 = vpop.permute.xlu1 %1899  ;;  %v5748_v35 = vld [vmem:[#allocation3 + $0x83] ss:$2 sm:$0xff] }
 0x51f   : > { %v4615_v8 = vadd.f32 %v11911_v31, %v4614_v39  ;;  %v2834_v47 = vpop.permute.xlu0 %2833  ;;  %v3616_v29 = vsel %vm3501_vm0, %v8430_v37, %v1900_v23  ;;  %v5622_v39 = vld [vmem:[#allocation3 + $0x71] ss:$2 sm:$0xff]  ;;  %v6332_v37 = vld [vmem:[%s14101_s3 + $0x50] sm:$0xff] }
 0x520   : > { %v3841_v0 = vsel %vm3747_vm2, %v3718_v38, %v2834_v47  ;;  %v6339_v23 = vld [vmem:[%s14101_s3 + $0x88] sm:$0xff] }
 0x521   : > { %v4828_v45 = vmax.f32 %v4615_v8, 0.0  ;;  %v3964_v42 = vsel %vm3870_vm3, %v3841_v0, %v11917_v32  ;;  %v5399_v32 = vmax.f32 %v5071_v10, %v5193_v63  ;;  %v6336_v8 = vld [vmem:[%s14101_s3 + $0x70] sm:$0xff]  ;;  %v6338_v10 = vld [vmem:[%s14101_s3 + $0x80] sm:$0xff] }
 0x522   : > { %9019 = vmatmul.msk.f32.gmra.mxu1 %vm4002_vm4, %v3964_v42 }
 0x523   : > { %4950 = vst.msk [vmem:[#allocation2 + $0x260] sm:$0xff] %vm3870_vm3, %v4828_v45  ;;  %3373 = vrot.lane.b32.xlu2 %v8923_v21, %s9413_s29  ;;  %v5620_v45 = vld [vmem:[#allocation3 + $0x61] ss:$2 sm:$0xff]  ;;  %6440 = vmatpush.msrb.mxu1 %v6336_v8 }
 0x524   : > { %2885 = vrot.lane.b32.xlu1 %v8801_v18, %s9411_s27  ;;  %v8925_v18 = vld [vmem:[%s9519_s25 + $0x794] ss:$2 sm:$0x7] }
 0x525   : > { %2397 = vrot.lane.b32.xlu0 %v8679_v19, %s9412_s28  ;;  %v11975_v34 = vpop.permute.xlu2 %3323  ;;  %v6335_v19 = vld [vmem:[%s14101_s3 + $0x68] sm:$0xff] }
 0x526   : > { %v2388_v50 = vpop.permute.xlu1 %2387  ;;  %6441 = vmatpush.msrb.mxu1 %v6335_v19 }
 0x527   : > { %v1886_v53 = vpop.permute.xlu0 %1885  ;;  %v3739_v51 = vsel %vm3624_vm1, %v3616_v29, %v2388_v50  ;;  %v5746_v29 = vld [vmem:[#allocation3 + $0x73] ss:$2 sm:$0xff] }
 0x528   : > { %v3609_v7 = vsel %vm3501_vm0, %v8423_v26, %v1886_v53  ;;  %v9187_v53 = vpack.i.bf16 %v5622_v39, %v5620_v45  ;;  %v5682_v26 = vld [vmem:[#allocation3 + $0x62] ss:$2 sm:$0xff] }
 0x52a   : > { %v5315_v22 = vld [vmem:[#allocation2 + $0x252] ss:$2 sm:$0xff] }
 0x52b   : > { %v5460_v33 = vmax.f32 %v5399_v32, %v5315_v22  ;;  %2887 = vrot.lane.b32.xlu2 %v8802_v52, %s9411_s27  ;;  %v4716_v40 = vpop.f32.mrf.mxu3  ;;  %v6334_v32 = vld [vmem:[%s14101_s3 + $0x60] sm:$0xff] }
 0x52c   : > { %2399 = vrot.lane.b32.xlu1 %v8680_v56, %s9412_s28  ;;  %v4717_v62 = vadd.f32 %v11911_v31, %v4716_v40  ;;  %6442 = vmatpush.msrb.mxu1 %v6334_v32  ;;  %v5626_v56 = vld [vmem:[#allocation3 + $0x91] ss:$2 sm:$0xff] }
 0x52d   : > { %1911 = vrot.lane.b32.xlu0 %v8558_v5, %s9410_s26  ;;  %5521 = vst.msk [vmem:[#allocation3 + $0x128] sm:$0xff] %vm3870_vm3, %v5460_v33  ;;  %v4695_v58 = vpop.f32.mrf.mxu2  ;;  %v11988_v9 = vpop.permute.xlu2 %2375  ;;  %v5085_v5 = vld [vmem:[#allocation2 + $0x2c0] ss:$2 sm:$0xff]  ;;  %v5207_v22 = vld [vmem:[#allocation2 + $0x2c1] ss:$2 sm:$0xff] }
 0x52e   : > { %v4696_v16 = vadd.f32 %v11911_v31, %v4695_v58  ;;  %v4862_v55 = vmax.f32 %v4717_v62, 0.0  ;;  %v2862_v46 = vpop.permute.xlu1 %2861 }
 0x52f   : > { %v2876_v15 = vpop.permute.xlu0 %2875 }
 0x530   : > { %v4855_v11 = vmax.f32 %v4696_v16, 0.0  ;;  %v3862_v13 = vsel %vm3747_vm2, %v3739_v51, %v2876_v15  ;;  %4984 = vst.msk [vmem:[#allocation2 + $0x370] sm:$0xff] %vm3870_vm3, %v4862_v55  ;;  %v5684_v16 = vld [vmem:[#allocation3 + $0x72] ss:$2 sm:$0xff]  ;;  %v5406_v55 = vmax.f32 %v5085_v5, %v5207_v22  ;;  %v9202_v15 = vpack.i.bf16 %v5626_v56, %v5624_v41 }
 0x531   : > { %v3985_v60 = vsel %vm3870_vm3, %v3862_v13, %v11946_v14  ;;  %v3732_v14 = vsel %vm3624_vm1, %v3609_v7, %v11929_v2  ;;  %v6341_v2 = vld [vmem:[%s14101_s3 + $0x98] sm:$0xff]  ;;  %v6331_v51 = vld [vmem:[%s14101_s3 + $0x48] sm:$0xff]  ;;  %v9197_v13 = vpack.i.bf16 %v5746_v29, %v5744_v61  ;;  %v9192_v24 = vpack.i.bf16 %v5684_v16, %v5682_v26  ;;  %v6328_v7 = vld [vmem:[%s14101_s3 + $0x30] sm:$0xff] }
 0x532   : > { %4977 = vst.msk [vmem:[#allocation2 + $0x338] sm:$0xff] %vm3870_vm3, %v4855_v11  ;;  %9040 = vmatmul.msk.f32.gmra.mxu3 %vm4002_vm4, %v3985_v60  ;;  %v3855_v36 = vsel %vm3747_vm2, %v3732_v14, %v2862_v46  ;;  %6561 = vmatpush.msrb.mxu2 %v6341_v2  ;;  %v6330_v60 = vld [vmem:[%s14101_s3 + $0x40] sm:$0xff] }
 0x533   : > { %9178 = vrot.lane.b32.xlu2 %v9177_v25, %s14108_s22  ;;  %v5692_v56 = vld [vmem:[#allocation3 + $0xb2] ss:$2 sm:$0xff]  ;;  %s9366_s22 = scalar_lea.hbm %s14107_s9, 2 }
 0x534   : > { %9173 = vrot.lane.b32.xlu1 %v9172_v12, %s9413_s29  ;;  %6562 = vmatpush.msrb.mxu2 %v6340_v48  ;;  %v6329_v12 = vld [vmem:[%s14101_s3 + $0x38] sm:$0xff]  ;;  %v6322_v41 = vld [vmem:[%s14101_s3] sm:$0xff] }
 0x535   : > { %3375 = vrot.lane.b32.xlu0 %v8924_v28, %s9413_s29  ;;  %v12006_v17 = vpop.permute.xlu2 %3365  ;;  %v5686_v48 = vld [vmem:[#allocation3 + $0x82] ss:$2 sm:$0xff] }
 0x536   : > { %v1860_v1 = vpop.permute.xlu1 %1859  ;;  %6563 = vmatpush.msrb.mxu2 %v6339_v23 }
 0x537   : > { %v3350_v4 = vpop.permute.xlu0 %3349  ;;  %v3596_v27 = vsel %vm3501_vm0, %v8410_v43, %v1860_v1 }
 0x538   : > { %v3978_v44 = vsel %vm3870_vm3, %v3855_v36, %v3350_v4  ;;  %v3719_v21 = vsel %vm3624_vm1, %v3596_v27, %v11959_v30  ;;  %v8803_v30 = vld [vmem:[%s9519_s25 + $0x793] ss:$2 sm:$0x7]  ;;  %6564 = vmatpush.msrb.mxu2 %v6338_v10  ;;  %v5630_v36 = vld [vmem:[#allocation3 + $0xb1] ss:$2 sm:$0xff] }
 0x539   : > { %9033 = vmatmul.msk.f32.gmra.mxu2 %vm4002_vm4, %v3978_v44  ;;  %v5750_v44 = vld [vmem:[#allocation3 + $0x93] ss:$2 sm:$0xff] }
 0x53a   : > { %v9212_v23 = vpack.i.bf16 %v5750_v44, %v5748_v35 }
 0x53b   : > { %2401 = vrot.lane.b32.xlu2 %v8681_v6, %s9412_s28  ;;  %v5688_v6 = vld [vmem:[#allocation3 + $0x92] ss:$2 sm:$0xff]  ;;  %s8253_s28 = scalar_lea.hbm %s14107_s9, %s9487_s13 }
 0x53c   : > { %9183 = vrot.lane.b32.xlu1 %v9182_v54, %s14110_s14  ;;  %v6327_v54 = vld [vmem:[%s14101_s3 + $0x28] sm:$0xff]  ;;  %s8257_s17 = sshll.u32 %s8253_s28, 4  ;;  %s8258_s17 = int_to_ptr.hbm [resolvable:$true] %s8257_s17 }
 0x53d   : > { %1913 = vrot.lane.b32.xlu0 %v8559_v49, %s9410_s26  ;;  %v4656_v57 = vpop.f32.mrf.mxu1  ;;  %v12046_v52 = vpop.permute.xlu2 %2349  ;;  %v5628_v49 = vld [vmem:[#allocation3 + $0xa1] ss:$2 sm:$0xff] }
 0x53e   : > { %v4657_v47 = vadd.f32 %v11911_v31, %v4656_v57  ;;  %v1902_v38 = vpop.permute.xlu1 %1901  ;;  %v9217_v27 = vpack.i.bf16 %v5630_v36, %v5628_v49  ;;  %v6326_v57 = vld [vmem:[%s14101_s3 + $0x20] sm:$0xff]  ;;  %v5221_v49 = vld [vmem:[#allocation2 + $0x331] ss:$2 sm:$0xff] }
 0x53f   : > { %v2836_v0 = vpop.permute.xlu0 %2835  ;;  %v3617_v14 = vsel %vm3501_vm0, %v8431_v59, %v1902_v38  ;;  %v6325_v38 = vld [vmem:[%s14101_s3 + $0x18] sm:$0xff] }
 0x540   : > { %v3842_v42 = vsel %vm3747_vm2, %v3719_v21, %v2836_v0  ;;  %v4842_v63 = vmax.f32 %v4657_v47, 0.0  ;;  %v9207_v47 = vpack.i.bf16 %v5688_v6, %v5686_v48 }
 0x541   : > { %v3965_v50 = vsel %vm3870_vm3, %v3842_v42, %v11975_v34  ;;  %v6333_v34 = vld [vmem:[%s14101_s3 + $0x58] sm:$0xff] }
 0x542   : > { %9020 = vmatmul.msk.f32.gmra.mxu1 %vm4002_vm4, %v3965_v50  ;;  %4964 = vst.msk [vmem:[#allocation2 + $0x2d0] sm:$0xff] %vm3870_vm3, %v4842_v63  ;;  %v5634_v63 = vld [vmem:[#allocation3 + $0xd1] ss:$2 sm:$0xff]  ;;  %v6324_v50 = vld [vmem:[%s14101_s3 + $0x10] sm:$0xff] }
 0x543   : > { %9188 = vrot.lane.b32.xlu2 %v9187_v53, %s9413_s29  ;;  %6443 = vmatpush.msrb.mxu1 %v6333_v34  ;;  %v5754_v34 = vld [vmem:[#allocation3 + $0xb3] ss:$2 sm:$0xff] }
 0x544   : > { %3377 = vrot.lane.b32.xlu1 %v8925_v18, %s9413_s29 }
 0x545   : > { %2889 = vrot.lane.b32.xlu0 %v8803_v30, %s9411_s27  ;;  %v4617_v33 = vpop.f32.mrf.mxu0  ;;  %6444 = vmatpush.msrb.mxu1 %v6332_v37  ;;  %v12072_v28 = vpop.permute.xlu2 %3325  ;;  %v8411_v37 = vld [vmem:[%s9519_s25 + $0x5f0] ss:$2 sm:$0xff] }
 0x546   : > { %v4618_v40 = vadd.f32 %v11911_v31, %v4617_v33  ;;  %v2390_v62 = vpop.permute.xlu1 %2389  ;;  %v6323_v33 = vld [vmem:[%s14101_s3 + $0x8] sm:$0xff] }
 0x547   : > { %v1888_v58 = vpop.permute.xlu0 %1887  ;;  %6445 = vmatpush.msrb.mxu1 %v6331_v51  ;;  %v3740_v1 = vsel %vm3624_vm1, %v3617_v14, %v2390_v62  ;;  %v5752_v62 = vld [vmem:[#allocation3 + $0xa3] ss:$2 sm:$0xff] }
 0x548   : > { %v4829_v46 = vmax.f32 %v4618_v40, 0.0  ;;  %v9227_v29 = vpack.i.bf16 %v5754_v34, %v5752_v62  ;;  %v5636_v14 = vld [vmem:[#allocation3 + $0xe1] ss:$2 sm:$0xff] }
 0x549   : > { %v5329_v11 = vld [vmem:[#allocation2 + $0x2c2] ss:$2 sm:$0xff]  ;;  %6446 = vmatpush.msrb.mxu1 %v6330_v60  ;;  %v5766_v34 = vld [vmem:[#allocation3 + $0x113] ss:$2 sm:$0xff] }
 0x54a   : > { %v5467_v25 = vmax.f32 %v5406_v55, %v5329_v11  ;;  %4951 = vst.msk [vmem:[#allocation2 + $0x268] sm:$0xff] %vm3870_vm3, %v4829_v46  ;;  %v5696_v60 = vld [vmem:[#allocation3 + $0xd2] ss:$2 sm:$0xff] }
 0x54b   : > { %9203 = vrot.lane.b32.xlu2 %v9202_v15, %s9413_s29  ;;  %6447 = vmatpush.msrb.mxu1 %v6329_v12  ;;  %v5638_v15 = vld [vmem:[#allocation3 + $0xf1] ss:$2 sm:$0xff] }
 0x54c   : > { %9198 = vrot.lane.b32.xlu1 %v9197_v13, %s14134_s23  ;;  %5528 = vst.msk [vmem:[#allocation3 + $0x160] sm:$0xff] %vm3870_vm3, %v5467_v25 }
 0x54d   : > { %9193 = vrot.lane.b32.xlu0 %v9192_v24, %s14135_s24  ;;  %6448 = vmatpush.msrb.mxu1 %v6328_v7  ;;  %v12103_v18 = vpop.permute.xlu2 %3367  ;;  %v5758_v24 = vld [vmem:[#allocation3 + $0xd3] ss:$2 sm:$0xff]  ;;  %v5794_v7 = vld [vmem:[#allocation3 + $0x4] ss:$2 sm:$0xff] }
 0x54e   : > { %v2864_v4 = vpop.permute.xlu1 %2863 }
 0x54f   : > { %v2878_v20 = vpop.permute.xlu0 %2877  ;;  %6449 = vmatpush.msrb.mxu1 %v6327_v54  ;;  %v8432_v54 = vld [vmem:[%s9519_s25 + $0x740] ss:$2 sm:$0xff] }
 0x550   : > { %v3863_v43 = vsel %vm3747_vm2, %v3740_v1, %v2878_v20  ;;  %v5694_v20 = vld [vmem:[#allocation3 + $0xc2] ss:$2 sm:$0xff] }
 0x551   : > { %v3986_v2 = vsel %vm3870_vm3, %v3863_v43, %v12006_v17  ;;  %v5073_v39 = vld [vmem:[#allocation2 + $0x260] ss:$2 sm:$0xff]  ;;  %v5195_v8 = vld [vmem:[#allocation2 + $0x261] ss:$2 sm:$0xff]  ;;  %v3610_v17 = vsel %vm3501_vm0, %v8424_v3, %v1888_v58  ;;  %6450 = vmatpush.msrb.mxu1 %v6326_v57  ;;  %v9237_v6 = vpack.i.bf16 %v5696_v60, %v5694_v20  ;;  %v5099_v43 = vld [vmem:[#allocation2 + $0x330] ss:$2 sm:$0xff] }
 0x552   : > { %9041 = vmatmul.msk.f32.gmra.mxu3 %vm4002_vm4, %v3986_v2  ;;  %v5400_v0 = vmax.f32 %v5073_v39, %v5195_v8  ;;  %v5317_v21 = vld [vmem:[#allocation2 + $0x262] ss:$2 sm:$0xff]  ;;  %v3733_v19 = vsel %vm3624_vm1, %v3610_v17, %v11988_v9  ;;  %v5632_v9 = vld [vmem:[#allocation3 + $0xc1] ss:$2 sm:$0xff]  ;;  %v5690_v58 = vld [vmem:[#allocation3 + $0xa2] ss:$2 sm:$0xff]  ;;  %v5413_v2 = vmax.f32 %v5099_v43, %v5221_v49 }
 0x553   : > { %9218 = vrot.lane.b32.xlu2 %v9217_v27, %s9413_s29  ;;  %6451 = vmatpush.msrb.mxu1 %v6325_v38  ;;  %v3856_v53 = vsel %vm3747_vm2, %v3733_v19, %v2864_v4  ;;  %v9232_v40 = vpack.i.bf16 %v5634_v63, %v5632_v9  ;;  %v9222_v16 = vpack.i.bf16 %v5692_v56, %v5690_v58  ;;  %v5756_v4 = vld [vmem:[#allocation3 + $0xc3] ss:$2 sm:$0xff]  ;;  %v5762_v57 = vld [vmem:[#allocation3 + $0xf3] ss:$2 sm:$0xff]  ;;  %v5700_v39 = vld [vmem:[#allocation3 + $0xf2] ss:$2 sm:$0xff] }
 0x554   : > { %9213 = vrot.lane.b32.xlu1 %v9212_v23, %s14134_s23  ;;  %v5461_v45 = vmax.f32 %v5400_v0, %v5317_v21  ;;  %v9242_v44 = vpack.i.bf16 %v5758_v24, %v5756_v4  ;;  %v5640_v38 = vld [vmem:[#allocation3 + $0x101] ss:$2 sm:$0xff]  ;;  %v5704_v56 = vld [vmem:[#allocation3 + $0x112] ss:$2 sm:$0xff] }
 0x555   : > { %9208 = vrot.lane.b32.xlu0 %v9207_v47, %s14135_s24  ;;  %v4719_v42 = vpop.f32.mrf.mxu3  ;;  %6452 = vmatpush.msrb.mxu1 %v6324_v50  ;;  %v12130_v25 = vpop.permute.xlu2 %1905  ;;  %v5796_v47 = vld [vmem:[#allocation3 + $0x14] ss:$2 sm:$0xff]  ;;  %v5764_v9 = vld [vmem:[#allocation3 + $0x103] ss:$2 sm:$0xff] }
 0x556   : > { %v4720_v10 = vadd.f32 %v11911_v31, %v4719_v42  ;;  %5522 = vst.msk [vmem:[#allocation3 + $0x130] sm:$0xff] %vm3870_vm3, %v5461_v45  ;;  %v1862_v30 = vpop.permute.xlu1 %1861  ;;  %v5760_v45 = vld [vmem:[#allocation3 + $0xe3] ss:$2 sm:$0xff]  ;;  %v5698_v42 = vld [vmem:[#allocation3 + $0xe2] ss:$2 sm:$0xff] }
 0x557   : > { %v3352_v32 = vpop.permute.xlu0 %3351  ;;  %6453 = vmatpush.msrb.mxu1 %v6323_v33  ;;  %v3597_v51 = vsel %vm3501_vm0, %v8411_v37, %v1862_v30  ;;  %v9257_v63 = vpack.i.bf16 %v5762_v57, %v5760_v45  ;;  %v9252_v50 = vpack.i.bf16 %v5700_v39, %v5698_v42  ;;  %v5702_v33 = vld [vmem:[#allocation3 + $0x102] ss:$2 sm:$0xff]  ;;  %v5774_v57 = vld [vmem:[#allocation3 + $0x153] ss:$2 sm:$0xff]  ;;  %v5772_v42 = vld [vmem:[#allocation3 + $0x143] ss:$2 sm:$0xff] }
 0x558   : > { %v4863_v5 = vmax.f32 %v4720_v10, 0.0  ;;  %v3979_v22 = vsel %vm3870_vm3, %v3856_v53, %v3352_v32  ;;  %v3720_v13 = vsel %vm3624_vm1, %v3597_v51, %v12046_v52  ;;  %v9247_v52 = vpack.i.bf16 %v5638_v15, %v5636_v14  ;;  %v5650_v51 = vld [vmem:[#allocation3 + $0x151] ss:$2 sm:$0xff]  ;;  %v5648_v14 = vld [vmem:[#allocation3 + $0x141] ss:$2 sm:$0xff] }
 0x559   : > { %9034 = vmatmul.msk.f32.gmra.mxu2 %vm4002_vm4, %v3979_v22  ;;  %6454 = vmatpush.msrb.mxu1 %v6322_v41  ;;  %v9267_v62 = vpack.i.bf16 %v5704_v56, %v5702_v33  ;;  %v5546_v41 = vld [vmem:[#allocation3] ss:$2 sm:$0xff]  ;;  %v8434_v56 = vld [vmem:[%s9519_s25 + $0x760] ss:$2 sm:$0xff] }
 0x55a   : > { %4985 = vst.msk [vmem:[#allocation2 + $0x378] sm:$0xff] %vm3870_vm3, %v4863_v5  ;;  %v5798_v5 = vld [vmem:[#allocation3 + $0x24] ss:$2 sm:$0xff] }
 0x55b   : > { %9233 = vrot.lane.b32.xlu2 %v9232_v40, %s9413_s29  ;;  %v9272_v40 = vpack.i.bf16 %v5766_v34, %v5764_v9  ;;  %v5802_v45 = vld [vmem:[#allocation3 + $0x44] ss:$2 sm:$0xff] }
 0x55c   : > { %v4698_v55 = vpop.f32.mrf.mxu2  ;;  %9228 = vrot.lane.b32.xlu1 %v9227_v29, %s14134_s23 }
 0x55d   : > { %9223 = vrot.lane.b32.xlu0 %v9222_v16, %s14135_s24  ;;  %v4699_v46 = vadd.f32 %v11911_v31, %v4698_v55  ;;  %v12148_v19 = vpop.permute.xlu2 %2881  ;;  %v5646_v53 = vld [vmem:[#allocation3 + $0x131] ss:$2 sm:$0xff]  ;;  %v8433_v55 = vld [vmem:[%s9519_s25 + $0x750] ss:$2 sm:$0xff] }
 0x55e   : > { %v1904_v26 = vpop.permute.xlu1 %1903  ;;  %v5706_v24 = vld [vmem:[#allocation3 + $0x122] ss:$2 sm:$0xff]  ;;  %v5708_v60 = vld [vmem:[#allocation3 + $0x132] ss:$2 sm:$0xff] }
 0x55f   : > { %v4856_v61 = vmax.f32 %v4699_v46, 0.0  ;;  %v2838_v11 = vpop.permute.xlu0 %2837  ;;  %v4659_v12 = vpop.f32.mrf.mxu1  ;;  %v3618_v27 = vsel %vm3501_vm0, %v8432_v54, %v1904_v26 }
 0x560   : > { %v3843_v59 = vsel %vm3747_vm2, %v3720_v13, %v2838_v11  ;;  %v4660_v36 = vadd.f32 %v11911_v31, %v4659_v12  ;;  %v5770_v13 = vld [vmem:[#allocation3 + $0x133] ss:$2 sm:$0xff] }
 0x561   : > { %4978 = vst.msk [vmem:[#allocation2 + $0x340] sm:$0xff] %vm3870_vm3, %v4856_v61  ;;  %9048 = vmatmul.msk.f32.vlgmr.msrb.gmra.mxu2 %vm3870_vm3, %v5794_v7  ;;  %v3966_v1 = vsel %vm3870_vm3, %v3843_v59, %v12072_v28  ;;  %v5642_v28 = vld [vmem:[#allocation3 + $0x111] ss:$2 sm:$0xff]  ;;  %v5800_v7 = vld [vmem:[#allocation3 + $0x34] ss:$2 sm:$0xff] }
 0x562   : > { %9021 = vmatmul.msk.f32.gmra.mxu1 %vm4002_vm4, %v3966_v1  ;;  %v4843_v3 = vmax.f32 %v4660_v36, 0.0  ;;  %v9262_v21 = vpack.i.bf16 %v5642_v28, %v5640_v38  ;;  %v5768_v61 = vld [vmem:[#allocation3 + $0x123] ss:$2 sm:$0xff]  ;;  %v3619_v36 = vsel %vm3501_vm0, %v8433_v55, %v12130_v25  ;;  %v5107_v25 = vld [vmem:[#allocation2 + $0x370] ss:$2 sm:$0xff] }
 0x563   : > { %9248 = vrot.lane.b32.xlu2 %v9247_v52, %s9413_s29  ;;  %v9292_v52 = vpack.i.bf16 %v5650_v51, %v5648_v14  ;;  %v5229_v43 = vld [vmem:[#allocation2 + $0x371] ss:$2 sm:$0xff] }
 0x564   : > { %9243 = vrot.lane.b32.xlu1 %v9242_v44, %s14134_s23  ;;  %4965 = vst.msk [vmem:[#allocation2 + $0x2d8] sm:$0xff] %vm3870_vm3, %v4843_v3  ;;  %v9287_v44 = vpack.i.bf16 %v5770_v13, %v5768_v61  ;;  %v5417_v38 = vmax.f32 %v5107_v25, %v5229_v43  ;;  %v5550_v13 = vld [vmem:[#allocation3 + $0x20] ss:$2 sm:$0xff] }
 0x565   : > { %9238 = vrot.lane.b32.xlu0 %v9237_v6, %s14135_s24  ;;  %v12161_v58 = vpop.permute.xlu2 %2395  ;;  %v9282_v6 = vpack.i.bf16 %v5708_v60, %v5706_v24  ;;  %v5808_v43 = vld [vmem:[#allocation3 + $0x74] ss:$2 sm:$0xff] }
 0x566   : > { %v2880_v35 = vpop.permute.xlu1 %2879 }
 0x567   : > { %v2392_v48 = vpop.permute.xlu0 %2391 }
 0x568   : > { %v5343_v8 = vld [vmem:[#allocation2 + $0x332] ss:$2 sm:$0xff]  ;;  %v3741_v23 = vsel %vm3624_vm1, %v3618_v27, %v2392_v48 }
 0x569   : > { %v5474_v0 = vmax.f32 %v5413_v2, %v5343_v8  ;;  %9049 = vmatmul.msk.f32.gmra.mxu2 %vm3870_vm3, %v5796_v47  ;;  %v3864_v17 = vsel %vm3747_vm2, %v3741_v23, %v2880_v35  ;;  %v5548_v2 = vld [vmem:[#allocation3 + $0x10] ss:$2 sm:$0xff] }
 0x56a   : > { %v3987_v10 = vsel %vm3870_vm3, %v3864_v17, %v12103_v18  ;;  %v5644_v18 = vld [vmem:[#allocation3 + $0x121] ss:$2 sm:$0xff]  ;;  %v5712_v47 = vld [vmem:[#allocation3 + $0x152] ss:$2 sm:$0xff] }
 0x56b   : > { %5535 = vst.msk [vmem:[#allocation3 + $0x198] sm:$0xff] %vm3870_vm3, %v5474_v0  ;;  %9042 = vmatmul.msk.f32.gmra.mxu3 %vm4002_vm4, %v3987_v10  ;;  %9263 = vrot.lane.b32.xlu2 %v9262_v21, %s9413_s29  ;;  %v9277_v22 = vpack.i.bf16 %v5646_v53, %v5644_v18  ;;  %v9302_v53 = vpack.i.bf16 %v5774_v57, %v5772_v42  ;;  %v5087_v9 = vld [vmem:[#allocation2 + $0x2d0] ss:$2 sm:$0xff]  ;;  %v5209_v33 = vld [vmem:[#allocation2 + $0x2d1] ss:$2 sm:$0xff] }
 0x56c   : > { %9258 = vrot.lane.b32.xlu1 %v9257_v63, %s14134_s23  ;;  %v5407_v51 = vmax.f32 %v5087_v9, %v5209_v33  ;;  %v5554_v33 = vld [vmem:[#allocation3 + $0x40] ss:$2 sm:$0xff] }
 0x56d   : > { %9253 = vrot.lane.b32.xlu0 %v9252_v50, %s14135_s24  ;;  %v12181_v27 = vpop.permute.xlu2 %9158 }
 0x56e   : > { %v12157_v30 = vpop.permute.xlu1 %9148 }
 0x56f   : > { %v9144_v32 = vpop.permute.xlu0 %9143  ;;  %v9150_v29 = vunpack.i.l.bf16 %v12157_v30  ;;  %v9151_v49 = vunpack.i.h.bf16 %v12157_v30  ;;  %v5710_v30 = vld [vmem:[#allocation3 + $0x142] ss:$2 sm:$0xff] }
 0x570   : > { %v9145_v37 = vunpack.i.l.bf16 %v9144_v32  ;;  %v9146_v4 = vunpack.i.h.bf16 %v9144_v32 }
 0x571   : > { %9050 = vmatmul.msk.f32.gmra.mxu2 %vm3870_vm3, %v5798_v5  ;;  %v9297_v5 = vpack.i.bf16 %v5712_v47, %v5710_v30 }
 0x572   : > { %v6227_v15 = vsel %vm3870_vm3, %v5546_v41, %v9145_v37  ;;  %v6228_v48 = vsel %vm3870_vm3, %v5548_v2, %v9146_v4 }
 0x573   : > { %9278 = vrot.lane.b32.xlu2 %v9277_v22, %s9413_s29  ;;  %v6259_v1 = vsel %vm6258_vm5, %v6227_v15, %v9150_v29  ;;  %v6260_v50 = vsel %vm6258_vm5, %v6228_v48, %v9151_v49  ;;  %v9160_v15 = vunpack.i.l.bf16 %v12181_v27 }
 0x574   : > { %9273 = vrot.lane.b32.xlu1 %v9272_v40, %s14134_s23 }
 0x575   : > { %9268 = vrot.lane.b32.xlu0 %v9267_v62, %s14135_s24  ;;  %v4722_v16 = vpop.f32.mrf.mxu3  ;;  %v5804_v62 = vld [vmem:[#allocation3 + $0x54] ss:$2 sm:$0xff]  ;;  %v9169_v29 = vpop.permute.xlu2 %9168  ;;  %v6229_v60 = vsel %vm3870_vm3, %v5550_v13, %v9160_v15 }
 0x576   : > { %v4723_v46 = vadd.f32 %v11911_v31, %v4722_v16  ;;  %v2394_v26 = vpop.permute.xlu1 %2393  ;;  %v9170_v24 = vunpack.i.l.bf16 %v9169_v29  ;;  %v9171_v2 = vunpack.i.h.bf16 %v9169_v29  ;;  %v8437_v15 = vld [vmem:[%s9519_s25 + $0x790] ss:$2 sm:$0x7] }
 0x577   : > { %v9154_v11 = vpop.permute.xlu0 %9153  ;;  %v3742_v54 = vsel %vm3624_vm1, %v3619_v36, %v2394_v26  ;;  %v5806_v26 = vld [vmem:[#allocation3 + $0x64] ss:$2 sm:$0xff] }
 0x578   : > { %v4864_v59 = vmax.f32 %v4723_v46, 0.0  ;;  %v9155_v12 = vunpack.i.l.bf16 %v9154_v11  ;;  %v9156_v35 = vunpack.i.h.bf16 %v9154_v11  ;;  %v3865_v21 = vsel %vm3747_vm2, %v3742_v54, %v12148_v19  ;;  %v8435_v36 = vld [vmem:[%s9519_s25 + $0x770] ss:$2 sm:$0xff] }
 0x579   : > { %9051 = vmatmul.msk.f32.gmra.mxu2 %vm3870_vm3, %v5800_v7  ;;  %v9161_v7 = vunpack.i.h.bf16 %v12181_v27 }
 0x57a   : > { %4986 = vst.msk [vmem:[#allocation2 + $0x380] sm:$0xff] %vm3870_vm3, %v4864_v59  ;;  %v6291_v20 = vsel %vm6290_vm6, %v6259_v1, %v9155_v12  ;;  %v6292_v19 = vsel %vm6290_vm6, %v6260_v50, %v9156_v35 }
 0x57b   : > { %6455 = vmatmul.f32.vlgmr.msrb.gmra.mxu1 %v6291_v20  ;;  %9293 = vrot.lane.b32.xlu2 %v9292_v52, %s9413_s29 }
 0x57c   : > { %v4701_v3 = vpop.f32.mrf.mxu2  ;;  %9288 = vrot.lane.b32.xlu1 %v9287_v44, %s14134_s23  ;;  %v5552_v44 = vld [vmem:[#allocation3 + $0x30] ss:$2 sm:$0xff] }
 0x57d   : > { %9283 = vrot.lane.b32.xlu0 %v9282_v6, %s14135_s24  ;;  %v4702_v28 = vadd.f32 %v11911_v31, %v4701_v3  ;;  %v3374_v59 = vpop.permute.xlu2 %3373  ;;  %v6230_v49 = vsel %vm3870_vm3, %v5552_v44, %v9161_v7 }
 0x57e   : > { %v1908_v23 = vpop.permute.xlu1 %1907 }
 0x57f   : > { %v4857_v39 = vmax.f32 %v4702_v28, 0.0  ;;  %v4662_v8 = vpop.f32.mrf.mxu1  ;;  %v3370_v17 = vpop.permute.xlu0 %3369  ;;  %v3620_v18 = vsel %vm3501_vm0, %v8434_v56, %v1908_v23 }
 0x580   : > { %v4663_v0 = vadd.f32 %v11911_v31, %v4662_v8  ;;  %v3988_v63 = vsel %vm3870_vm3, %v3865_v21, %v3370_v17  ;;  %v3743_v37 = vsel %vm3624_vm1, %v3620_v18, %v12161_v58 }
 0x581   : > { %v5351_v10 = vld [vmem:[#allocation2 + $0x372] ss:$2 sm:$0xff]  ;;  %4979 = vst.msk [vmem:[#allocation2 + $0x348] sm:$0xff] %vm3870_vm3, %v4857_v39  ;;  %9052 = vmatmul.msk.f32.gmra.mxu2 %vm3870_vm3, %v5802_v45  ;;  %9043 = vmatmul.msk.f32.gmra.mxu3 %vm4002_vm4, %v3988_v63 }
 0x582   : > { %v5478_v32 = vmax.f32 %v5417_v38, %v5351_v10  ;;  %v4844_v34 = vmax.f32 %v4663_v0, 0.0  ;;  %v8436_v0 = vld [vmem:[%s9519_s25 + $0x780] ss:$2 sm:$0xff] }
 0x583   : > { %6458 = vmatmul.f32.gmra.mxu1 %v6292_v19  ;;  %v5810_v45 = vld [vmem:[#allocation3 + $0x84] ss:$2 sm:$0xff] }
 0x584   : > { %5539 = vst.msk [vmem:[#allocation3 + $0x1b8] sm:$0xff] %vm3870_vm3, %v5478_v32  ;;  %9303 = vrot.lane.b32.xlu1 %v9302_v53, %s14134_s23 }
 0x585   : > { %9298 = vrot.lane.b32.xlu0 %v9297_v5, %s14135_s24  ;;  %4966 = vst.msk [vmem:[#allocation2 + $0x2e0] sm:$0xff] %vm3870_vm3, %v4844_v34  ;;  %v2888_v39 = vpop.permute.xlu2 %2887  ;;  %v5812_v5 = vld [vmem:[#allocation3 + $0x94] ss:$2 sm:$0xff] }
 0x586   : > { %v3372_v22 = vpop.permute.xlu1 %3371 }
 0x587   : > { %v2884_v40 = vpop.permute.xlu0 %2883 }
 0x588   : > { %v3866_v16 = vsel %vm3747_vm2, %v3743_v37, %v2884_v40  ;;  %v5101_v63 = vld [vmem:[#allocation2 + $0x340] ss:$2 sm:$0xff]  ;;  %v5223_v50 = vld [vmem:[#allocation2 + $0x341] ss:$2 sm:$0xff] }
 0x589   : > { %9053 = vmatmul.msk.f32.gmra.mxu2 %vm3870_vm3, %v5804_v62  ;;  %v3989_v41 = vsel %vm3870_vm3, %v3866_v16, %v3372_v22  ;;  %v5414_v30 = vmax.f32 %v5101_v63, %v5223_v50 }
 0x58a   : > { %9044 = vmatmul.msk.f32.gmra.mxu3 %vm4002_vm4, %v3989_v41  ;;  %v5814_v41 = vld [vmem:[#allocation3 + $0xa4] ss:$2 sm:$0xff] }
 0x58c   : > { %v5331_v55 = vld [vmem:[#allocation2 + $0x2d2] ss:$2 sm:$0xff] }
 0x58d   : > { %v5468_v46 = vmax.f32 %v5407_v51, %v5331_v55  ;;  %v9179_v32 = vpop.permute.xlu2 %9178 }
 0x58e   : > { %v1910_v58 = vpop.permute.xlu1 %1909  ;;  %v9180_v40 = vunpack.i.l.bf16 %v9179_v32 }
 0x58f   : > { %5529 = vst.msk [vmem:[#allocation3 + $0x168] sm:$0xff] %vm3870_vm3, %v5468_v46  ;;  %v9164_v61 = vpop.permute.xlu0 %9163  ;;  %v3621_v6 = vsel %vm3501_vm0, %v8435_v36, %v1910_v58 }
 0x590   : > { %v9165_v11 = vunpack.i.l.bf16 %v9164_v61  ;;  %v9166_v1 = vunpack.i.h.bf16 %v9164_v61 }
 0x591   : > { %9054 = vmatmul.msk.f32.gmra.mxu2 %vm3870_vm3, %v5806_v26 }
 0x592   : > { %v6261_v12 = vsel %vm6258_vm5, %v6229_v60, %v9165_v11  ;;  %v6262_v28 = vsel %vm6258_vm5, %v6230_v49, %v9166_v1  ;;  %v5556_v11 = vld [vmem:[#allocation3 + $0x50] ss:$2 sm:$0xff] }
 0x593   : > { %v6293_v14 = vsel %vm6290_vm6, %v6261_v12, %v9170_v24  ;;  %v6294_v57 = vsel %vm6290_vm6, %v6262_v28, %v9171_v2  ;;  %v12246_v24 = vld [vmem:[%s14100_s2] ss:$0 sm:$0xff]  ;;  %v9181_v12 = vunpack.i.h.bf16 %v9179_v32 }
 0x594   : > { %6461 = vmatmul.f32.gmra.mxu1 %v6293_v14 }
 0x595   : > { %v4725_v52 = vpop.f32.mrf.mxu3  ;;  %v2402_v51 = vpop.permute.xlu2 %2401 }
 0x596   : > { %v4726_v4 = vadd.f32 %v11911_v31, %v4725_v52  ;;  %v2886_v20 = vpop.permute.xlu1 %2885  ;;  %v5816_v52 = vld [vmem:[#allocation3 + $0xb4] ss:$2 sm:$0xff] }
 0x597   : > { %v2398_v25 = vpop.permute.xlu0 %2397 }
 0x598   : > { %v4865_v3 = vmax.f32 %v4726_v4, 0.0  ;;  %v3744_v54 = vsel %vm3624_vm1, %v3621_v6, %v2398_v25 }
 0x599   : > { %9055 = vmatmul.msk.f32.gmra.mxu2 %vm3870_vm3, %v5808_v43  ;;  %v3867_v27 = vsel %vm3747_vm2, %v3744_v54, %v2886_v20 }
 0x59a   : > { %4987 = vst.msk [vmem:[#allocation2 + $0x388] sm:$0xff] %vm3870_vm3, %v4865_v3  ;;  %v3990_v35 = vsel %vm3870_vm3, %v3867_v27, %v3374_v59 }
 0x59b   : > { %9045 = vmatmul.msk.f32.gmra.mxu3 %vm4002_vm4, %v3990_v35 }
 0x59c   : > { %v4704_v48 = vpop.f32.mrf.mxu2  ;;  %6464 = vmatmul.f32.gmra.mxu1 %v6294_v57 }
 0x59d   : > { %v4705_v8 = vadd.f32 %v11911_v31, %v4704_v48  ;;  %v9189_v3 = vpop.permute.xlu2 %9188 }
 0x59e   : > { %v2400_v38 = vpop.permute.xlu1 %2399  ;;  %v9190_v28 = vunpack.i.l.bf16 %v9189_v3 }
 0x59f   : > { %v4858_v23 = vmax.f32 %v4705_v8, 0.0  ;;  %v4665_v47 = vpop.f32.mrf.mxu1  ;;  %v1912_v21 = vpop.permute.xlu0 %1911 }
 0x5a0   : > { %v4666_v17 = vadd.f32 %v11911_v31, %v4665_v47  ;;  %v3622_v10 = vsel %vm3501_vm0, %v8436_v0, %v1912_v21  ;;  %v5558_v0 = vld [vmem:[#allocation3 + $0x60] ss:$2 sm:$0xff] }
 0x5a1   : > { %4980 = vst.msk [vmem:[#allocation2 + $0x350] sm:$0xff] %vm3870_vm3, %v4858_v23  ;;  %9056 = vmatmul.msk.f32.gmra.mxu2 %vm3870_vm3, %v5810_v45  ;;  %v3745_v53 = vsel %vm3624_vm1, %v3622_v10, %v2400_v38  ;;  %v5109_v43 = vld [vmem:[#allocation2 + $0x380] ss:$2 sm:$0xff]  ;;  %v5231_v49 = vld [vmem:[#allocation2 + $0x381] ss:$2 sm:$0xff]  ;;  %v6233_v45 = vsel %vm3870_vm3, %v5558_v0, %v9190_v28  ;;  %v9191_v10 = vunpack.i.h.bf16 %v9189_v3 }
 0x5a2   : > { %v4845_v42 = vmax.f32 %v4666_v17, 0.0  ;;  %v3868_v19 = vsel %vm3747_vm2, %v3745_v53, %v2888_v39  ;;  %v5418_v48 = vmax.f32 %v5109_v43, %v5231_v49  ;;  %v5818_v23 = vld [vmem:[#allocation3 + $0xc4] ss:$2 sm:$0xff]  ;;  %v5828_v0 = vld [vmem:[#allocation3 + $0x114] ss:$2 sm:$0xff] }
 0x5a3   : > { %v5560_v53 = vld [vmem:[#allocation3 + $0x70] ss:$2 sm:$0xff]  ;;  %v5566_v49 = vld [vmem:[#allocation3 + $0xa0] ss:$2 sm:$0xff] }
 0x5a4   : > { %4967 = vst.msk [vmem:[#allocation2 + $0x2e8] sm:$0xff] %vm3870_vm3, %v4845_v42 }
 0x5a6   : > { %v9174_v34 = vpop.permute.xlu1 %9173 }
 0x5a7   : > { %v3376_v31 = vpop.permute.xlu0 %3375  ;;  %v9175_v9 = vunpack.i.l.bf16 %v9174_v34  ;;  %v9176_v46 = vunpack.i.h.bf16 %v9174_v34 }
 0x5a8   : > { %v5345_v56 = vld [vmem:[#allocation2 + $0x342] ss:$2 sm:$0xff]  ;;  %v3991_v22 = vsel %vm3870_vm3, %v3868_v19, %v3376_v31  ;;  %v6234_v31 = vsel %vm3870_vm3, %v5560_v53, %v9191_v10  ;;  %v9204_v19 = vpop.permute.xlu2 %9203 }
 0x5a9   : > { %v5475_v18 = vmax.f32 %v5414_v30, %v5345_v56  ;;  %9057 = vmatmul.msk.f32.gmra.mxu2 %vm3870_vm3, %v5812_v5  ;;  %9046 = vmatmul.msk.f32.gmra.mxu3 %vm4002_vm4, %v3991_v22  ;;  %v6231_v37 = vsel %vm3870_vm3, %v5554_v33, %v9175_v9  ;;  %v6232_v59 = vsel %vm3870_vm3, %v5556_v11, %v9176_v46  ;;  %v5820_v56 = vld [vmem:[#allocation3 + $0xd4] ss:$2 sm:$0xff]  ;;  %v9205_v9 = vunpack.i.l.bf16 %v9204_v19 }
 0x5aa   : > { %v6263_v55 = vsel %vm6258_vm5, %v6231_v37, %v9180_v40  ;;  %v6264_v20 = vsel %vm6258_vm5, %v6232_v59, %v9181_v12  ;;  %v5824_v12 = vld [vmem:[#allocation3 + $0xf4] ss:$2 sm:$0xff] }
 0x5ab   : > { %5536 = vst.msk [vmem:[#allocation3 + $0x1a0] sm:$0xff] %vm3870_vm3, %v5475_v18  ;;  %v5089_v30 = vld [vmem:[#allocation2 + $0x2e0] ss:$2 sm:$0xff]  ;;  %v5211_v32 = vld [vmem:[#allocation2 + $0x2e1] ss:$2 sm:$0xff] }
 0x5ac   : > { %v5408_v22 = vmax.f32 %v5089_v30, %v5211_v32 }
 0x5ae   : > { %v9184_v62 = vpop.permute.xlu1 %9183 }
 0x5af   : > { %v9185_v29 = vunpack.i.l.bf16 %v9184_v62  ;;  %v1914_v16 = vpop.permute.xlu0 %1913  ;;  %v9186_v13 = vunpack.i.h.bf16 %v9184_v62 }
 0x5b0   : > { %v3623_v61 = vsel %vm3501_vm0, %v8437_v15, %v1914_v16  ;;  %v5562_v16 = vld [vmem:[#allocation3 + $0x80] ss:$2 sm:$0xff]  ;;  %v9206_v15 = vunpack.i.h.bf16 %v9204_v19 }
 0x5b1   : > { %9058 = vmatmul.msk.f32.gmra.mxu2 %vm3870_vm3, %v5814_v41  ;;  %v6295_v58 = vsel %vm6290_vm6, %v6263_v55, %v9185_v29  ;;  %v3746_v36 = vsel %vm3624_vm1, %v3623_v61, %v2402_v51  ;;  %v6296_v6 = vsel %vm6290_vm6, %v6264_v20, %v9186_v13  ;;  %v5822_v51 = vld [vmem:[#allocation3 + $0xe4] ss:$2 sm:$0xff]  ;;  %v6235_v55 = vsel %vm3870_vm3, %v5562_v16, %v9205_v9 }
 0x5b2   : > { %6467 = vmatmul.f32.gmra.mxu1 %v6295_v58  ;;  %v5564_v13 = vld [vmem:[#allocation3 + $0x90] ss:$2 sm:$0xff] }
 0x5b5   : > { %v4728_v26 = vpop.f32.mrf.mxu3 }
 0x5b6   : > { %v4729_v60 = vadd.f32 %v12246_v24, %v4728_v26  ;;  %v3378_v7 = vpop.permute.xlu1 %3377 }
 0x5b7   : > { %v2890_v1 = vpop.permute.xlu0 %2889 }
 0x5b8   : > { %v4866_v14 = vmax.f32 %v4729_v60, 0.0  ;;  %v3869_v4 = vsel %vm3747_vm2, %v3746_v36, %v2890_v1 }
 0x5b9   : > { %9059 = vmatmul.msk.f32.gmra.mxu2 %vm3870_vm3, %v5816_v52  ;;  %v3992_v44 = vsel %vm3870_vm3, %v3869_v4, %v3378_v7  ;;  %v6236_v7 = vsel %vm3870_vm3, %v5564_v13, %v9206_v15 }
 0x5ba   : > { %4988 = vst.msk [vmem:[#allocation2 + $0x390] sm:$0xff] %vm3870_vm3, %v4866_v14  ;;  %9047 = vmatmul.msk.f32.gmra.mxu3 %vm4002_vm4, %v3992_v44  ;;  %6470 = vmatmul.f32.gmra.mxu1 %v6296_v6  ;;  %v9219_v14 = vpop.permute.xlu2 %9218 }
 0x5bb   : > { %v9220_v52 = vunpack.i.l.bf16 %v9219_v14 }
 0x5bc   : > { %v4707_v25 = vpop.f32.mrf.mxu2 }
 0x5bd   : > { %v4708_v54 = vadd.f32 %v12246_v24, %v4707_v25 }
 0x5be   : > { %v9199_v35 = vpop.permute.xlu1 %9198 }
 0x5bf   : > { %v4859_v2 = vmax.f32 %v4708_v54, 0.0  ;;  %v4668_v27 = vpop.f32.mrf.mxu1  ;;  %v9200_v39 = vunpack.i.l.bf16 %v9199_v35  ;;  %v9194_v8 = vpop.permute.xlu0 %9193  ;;  %v9201_v34 = vunpack.i.h.bf16 %v9199_v35 }
 0x5c0   : > { %v4669_v57 = vadd.f32 %v12246_v24, %v4668_v27  ;;  %v9195_v38 = vunpack.i.l.bf16 %v9194_v8  ;;  %v9196_v50 = vunpack.i.h.bf16 %v9194_v8  ;;  %v6237_v27 = vsel %vm3870_vm3, %v5566_v49, %v9220_v52 }
 0x5c1   : > { %v5353_v47 = vld [vmem:[#allocation2 + $0x382] ss:$2 sm:$0xff]  ;;  %4981 = vst.msk [vmem:[#allocation2 + $0x358] sm:$0xff] %vm3870_vm3, %v4859_v2  ;;  %9060 = vmatmul.msk.f32.gmra.mxu2 %vm3870_vm3, %v5818_v23 }
 0x5c2   : > { %v5479_v17 = vmax.f32 %v5418_v48, %v5353_v47  ;;  %v4846_v21 = vmax.f32 %v4669_v57, 0.0  ;;  %v6265_v42 = vsel %vm6258_vm5, %v6233_v45, %v9195_v38  ;;  %v6266_v5 = vsel %vm6258_vm5, %v6234_v31, %v9196_v50  ;;  %v5826_v2 = vld [vmem:[#allocation3 + $0x104] ss:$2 sm:$0xff]  ;;  %v9234_v50 = vpop.permute.xlu2 %9233 }
 0x5c3   : > { %v6297_v63 = vsel %vm6290_vm6, %v6265_v42, %v9200_v39  ;;  %v6298_v37 = vsel %vm6290_vm6, %v6266_v5, %v9201_v34  ;;  %v9221_v57 = vunpack.i.h.bf16 %v9219_v14 }
 0x5c4   : > { %5540 = vst.msk [vmem:[#allocation3 + $0x1c0] sm:$0xff] %vm3870_vm3, %v5479_v17  ;;  %6473 = vmatmul.f32.gmra.mxu1 %v6297_v63  ;;  %v5568_v17 = vld [vmem:[#allocation3 + $0xb0] ss:$2 sm:$0xff] }
 0x5c5   : > { %4968 = vst.msk [vmem:[#allocation2 + $0x2f0] sm:$0xff] %vm3870_vm3, %v4846_v21  ;;  %v6238_v63 = vsel %vm3870_vm3, %v5568_v17, %v9221_v57 }
 0x5c6   : > { %v9214_v62 = vpop.permute.xlu1 %9213 }
 0x5c7   : > { %v9209_v18 = vpop.permute.xlu0 %9208  ;;  %v9215_v41 = vunpack.i.l.bf16 %v9214_v62  ;;  %v9216_v60 = vunpack.i.h.bf16 %v9214_v62 }
 0x5c8   : > { %v9210_v29 = vunpack.i.l.bf16 %v9209_v18  ;;  %v9211_v61 = vunpack.i.h.bf16 %v9209_v18  ;;  %v5103_v39 = vld [vmem:[#allocation2 + $0x350] ss:$2 sm:$0xff]  ;;  %v5225_v8 = vld [vmem:[#allocation2 + $0x351] ss:$2 sm:$0xff] }
 0x5c9   : > { %9061 = vmatmul.msk.f32.gmra.mxu2 %vm3870_vm3, %v5820_v56  ;;  %v5415_v38 = vmax.f32 %v5103_v39, %v5225_v8 }
 0x5ca   : > { %v6267_v46 = vsel %vm6258_vm5, %v6235_v55, %v9210_v29  ;;  %v6268_v36 = vsel %vm6258_vm5, %v6236_v7, %v9211_v61  ;;  %v5572_v7 = vld [vmem:[#allocation3 + $0xd0] ss:$2 sm:$0xff] }
 0x5cb   : > { %v6299_v58 = vsel %vm6290_vm6, %v6267_v46, %v9215_v41  ;;  %v6300_v20 = vsel %vm6290_vm6, %v6268_v36, %v9216_v60  ;;  %v5830_v46 = vld [vmem:[#allocation3 + $0x124] ss:$2 sm:$0xff] }
 0x5cc   : > { %v5333_v33 = vld [vmem:[#allocation2 + $0x2e2] ss:$2 sm:$0xff]  ;;  %6476 = vmatmul.f32.gmra.mxu1 %v6298_v37 }
 0x5cd   : > { %v5469_v40 = vmax.f32 %v5408_v22, %v5333_v33  ;;  %v9235_v22 = vunpack.i.l.bf16 %v9234_v50 }
 0x5ce   : > { %v9229_v44 = vpop.permute.xlu1 %9228 }
 0x5cf   : > { %5530 = vst.msk [vmem:[#allocation3 + $0x170] sm:$0xff] %vm3870_vm3, %v5469_v40  ;;  %v9224_v1 = vpop.permute.xlu0 %9223  ;;  %v9230_v54 = vunpack.i.l.bf16 %v9229_v44  ;;  %v9231_v21 = vunpack.i.h.bf16 %v9229_v44 }
 0x5d0   : > { %v9225_v6 = vunpack.i.l.bf16 %v9224_v1  ;;  %v9226_v47 = vunpack.i.h.bf16 %v9224_v1 }
 0x5d1   : > { %9062 = vmatmul.msk.f32.gmra.mxu2 %vm3870_vm3, %v5822_v51  ;;  %v5570_v51 = vld [vmem:[#allocation3 + $0xc0] ss:$2 sm:$0xff] }
 0x5d2   : > { %v6269_v35 = vsel %vm6258_vm5, %v6237_v27, %v9225_v6  ;;  %v6270_v32 = vsel %vm6258_vm5, %v6238_v63, %v9226_v47  ;;  %v6239_v15 = vsel %vm3870_vm3, %v5570_v51, %v9235_v22  ;;  %v5656_v63 = vld [vmem:[#allocation3 + $0x181] ss:$2 sm:$0xff]  ;;  %v5576_v51 = vld [vmem:[#allocation3 + $0xf0] ss:$2 sm:$0xff] }
 0x5d3   : > { %v6301_v23 = vsel %vm6290_vm6, %v6269_v35, %v9230_v54  ;;  %v6302_v33 = vsel %vm6290_vm6, %v6270_v32, %v9231_v21  ;;  %v5834_v32 = vld [vmem:[#allocation3 + $0x144] ss:$2 sm:$0xff] }
 0x5d4   : > { %6479 = vmatmul.f32.gmra.mxu1 %v6299_v58 }
 0x5d5   : > { %v4731_v26 = vpop.f32.mrf.mxu3 }
 0x5d6   : > { %v4732_v11 = vadd.f32 %v12246_v24, %v4731_v26  ;;  %v9244_v37 = vpop.permute.xlu1 %9243  ;;  %v9236_v26 = vunpack.i.h.bf16 %v9234_v50  ;;  %v5776_v1 = vld [vmem:[#allocation3 + $0x163] ss:$2 sm:$0xff]  ;;  %v5714_v49 = vld [vmem:[#allocation3 + $0x162] ss:$2 sm:$0xff] }
 0x5d7   : > { %v9239_v34 = vpop.permute.xlu0 %9238  ;;  %v9245_v55 = vunpack.i.l.bf16 %v9244_v37  ;;  %v9246_v44 = vunpack.i.h.bf16 %v9244_v37  ;;  %v5574_v50 = vld [vmem:[#allocation3 + $0xe0] ss:$2 sm:$0xff] }
 0x5d8   : > { %v4867_v59 = vmax.f32 %v4732_v11, 0.0  ;;  %v9240_v40 = vunpack.i.l.bf16 %v9239_v34  ;;  %v9241_v60 = vunpack.i.h.bf16 %v9239_v34  ;;  %v6240_v54 = vsel %vm3870_vm3, %v5572_v7, %v9236_v26 }
 0x5d9   : > { %9063 = vmatmul.msk.f32.gmra.mxu2 %vm3870_vm3, %v5824_v12  ;;  %v5652_v12 = vld [vmem:[#allocation3 + $0x161] ss:$2 sm:$0xff] }
 0x5da   : > { %4989 = vst.msk [vmem:[#allocation2 + $0x398] sm:$0xff] %vm3870_vm3, %v4867_v59  ;;  %v6271_v61 = vsel %vm6258_vm5, %v6239_v15, %v9240_v40  ;;  %v12306_v59 = vld [vmem:[%s14102_s4] ss:$0 sm:$0xff] }
 0x5db   : > { %v6303_v13 = vsel %vm6290_vm6, %v6271_v61, %v9245_v55 }
 0x5dc   : > { %v4710_v4 = vpop.f32.mrf.mxu2  ;;  %6482 = vmatmul.f32.gmra.mxu1 %v6300_v20 }
 0x5dd   : > { %v4711_v3 = vadd.f32 %v12246_v24, %v4710_v4 }
 0x5df   : > { %v4860_v25 = vmax.f32 %v4711_v3, 0.0  ;;  %v4671_v43 = vpop.f32.mrf.mxu1  ;;  %v5832_v3 = vld [vmem:[#allocation3 + $0x134] ss:$2 sm:$0xff]  ;;  %v9254_v57 = vpop.permute.xlu0 %9253 }
 0x5e0   : > { %v4672_v28 = vadd.f32 %v12246_v24, %v4671_v43  ;;  %v9255_v17 = vunpack.i.l.bf16 %v9254_v57  ;;  %v9256_v40 = vunpack.i.h.bf16 %v9254_v57 }
 0x5e1   : > { %4982 = vst.msk [vmem:[#allocation2 + $0x360] sm:$0xff] %vm3870_vm3, %v4860_v25  ;;  %9064 = vmatmul.msk.f32.gmra.mxu2 %vm3870_vm3, %v5826_v2  ;;  %v5111_v14 = vld [vmem:[#allocation2 + $0x390] ss:$2 sm:$0xff]  ;;  %v5233_v36 = vld [vmem:[#allocation2 + $0x391] ss:$2 sm:$0xff] }
 0x5e2   : > { %v4847_v48 = vmax.f32 %v4672_v28, 0.0  ;;  %v9249_v28 = vpop.permute.xlu2 %9248  ;;  %v5419_v2 = vmax.f32 %v5111_v14, %v5233_v36 }
 0x5e3   : > { %v9250_v47 = vunpack.i.l.bf16 %v9249_v28 }
 0x5e4   : > { %4969 = vst.msk [vmem:[#allocation2 + $0x2f8] sm:$0xff] %vm3870_vm3, %v4847_v48  ;;  %6485 = vmatmul.f32.gmra.mxu1 %v6301_v23  ;;  %v6566_v31 = vpop.f32.mrf.mxu2  ;;  %v6272_v48 = vsel %vm6258_vm5, %v6240_v54, %v9241_v60 }
 0x5e7   : > { %v9269_v14 = vpop.permute.xlu0 %9268 }
 0x5e8   : > { %v5105_v45 = vld [vmem:[#allocation2 + $0x360] ss:$2 sm:$0xff]  ;;  %v5227_v42 = vld [vmem:[#allocation2 + $0x361] ss:$2 sm:$0xff] }
 0x5e9   : > { %v5347_v10 = vld [vmem:[#allocation2 + $0x352] ss:$2 sm:$0xff]  ;;  %v5416_v53 = vmax.f32 %v5105_v45, %v5227_v42  ;;  %9065 = vmatmul.msk.f32.gmra.mxu2 %vm3870_vm3, %v5828_v0  ;;  %v5349_v56 = vld [vmem:[#allocation2 + $0x362] ss:$2 sm:$0xff]  ;;  %v9259_v0 = vpop.permute.xlu1 %9258  ;;  %v5658_v45 = vld [vmem:[#allocation3 + $0x191] ss:$2 sm:$0xff] }
 0x5ea   : > { %v5476_v30 = vmax.f32 %v5415_v38, %v5347_v10  ;;  %v6304_v38 = vsel %vm6290_vm6, %v6272_v48, %v9246_v44  ;;  %v5720_v10 = vld [vmem:[#allocation3 + $0x192] ss:$2 sm:$0xff]  ;;  %v9322_v34 = vpack.i.bf16 %v5658_v45, %v5656_v63  ;;  %v9261_v55 = vunpack.i.h.bf16 %v9259_v0 }
 0x5eb   : > { %v5477_v19 = vmax.f32 %v5416_v53, %v5349_v56  ;;  %v5091_v5 = vld [vmem:[#allocation2 + $0x2f0] ss:$2 sm:$0xff]  ;;  %v5213_v18 = vld [vmem:[#allocation2 + $0x2f1] ss:$2 sm:$0xff]  ;;  %v9260_v53 = vunpack.i.l.bf16 %v9259_v0 }
 0x5ec   : > { %5537 = vst.msk [vmem:[#allocation3 + $0x1a8] sm:$0xff] %vm3870_vm3, %v5476_v30  ;;  %v5409_v9 = vmax.f32 %v5091_v5, %v5213_v18  ;;  %v5335_v62 = vld [vmem:[#allocation2 + $0x2f2] ss:$2 sm:$0xff]  ;;  %6488 = vmatmul.f32.gmra.mxu1 %v6302_v33  ;;  %v6569_v11 = vpop.f32.mrf.mxu2  ;;  %v5780_v5 = vld [vmem:[#allocation3 + $0x183] ss:$2 sm:$0xff]  ;;  %v9251_v33 = vunpack.i.h.bf16 %v9249_v28 }
 0x5ed   : > { %5538 = vst.msk [vmem:[#allocation3 + $0x1b0] sm:$0xff] %vm3870_vm3, %v5477_v19  ;;  %v5718_v56 = vld [vmem:[#allocation3 + $0x182] ss:$2 sm:$0xff] }
 0x5ee   : > { %v5470_v29 = vmax.f32 %v5409_v9, %v5335_v62  ;;  %v4734_v16 = vpop.f32.mrf.mxu3  ;;  %v9327_v18 = vpack.i.bf16 %v5720_v10, %v5718_v56  ;;  %v6242_v26 = vsel %vm3870_vm3, %v5576_v51, %v9251_v33 }
 0x5ef   : > { %v4735_v41 = vadd.f32 %v12246_v24, %v4734_v16  ;;  %v6274_v7 = vsel %vm6258_vm5, %v6242_v26, %v9256_v40  ;;  %v9284_v56 = vpop.permute.xlu0 %9283 }
 0x5f0   : > { %5531 = vst.msk [vmem:[#allocation3 + $0x178] sm:$0xff] %vm3870_vm3, %v5470_v29 }
 0x5f1   : > { %v4868_v58 = vmax.f32 %v4735_v41, 0.0  ;;  %9066 = vmatmul.msk.f32.gmra.mxu2 %vm3870_vm3, %v5830_v46 }
 0x5f3   : > { %4990 = vst.msk [vmem:[#allocation2 + $0x3a0] sm:$0xff] %vm3870_vm3, %v4868_v58  ;;  %v5836_v58 = vld [vmem:[#allocation3 + $0x154] ss:$2 sm:$0xff]  ;;  %v5660_v61 = vld [vmem:[#allocation3 + $0x1a1] ss:$2 sm:$0xff] }
 0x5f4   : > { %6491 = vmatmul.f32.gmra.mxu1 %v6303_v13  ;;  %v12317_v42 = vpop.f32.mrf.mxu2  ;;  %v5662_v41 = vld [vmem:[#allocation3 + $0x1b1] ss:$2 sm:$0xff]  ;;  %v5722_v60 = vld [vmem:[#allocation3 + $0x1a2] ss:$2 sm:$0xff]  ;;  %v5724_v48 = vld [vmem:[#allocation3 + $0x1b2] ss:$2 sm:$0xff] }
 0x5f5   : > { %v5782_v13 = vld [vmem:[#allocation3 + $0x193] ss:$2 sm:$0xff]  ;;  %v5784_v54 = vld [vmem:[#allocation3 + $0x1a3] ss:$2 sm:$0xff] }
 0x5f6   : > { %v5786_v28 = vld [vmem:[#allocation3 + $0x1b3] ss:$2 sm:$0xff] }
 0x5f7   : > { %v5654_v52 = vld [vmem:[#allocation3 + $0x171] ss:$2 sm:$0xff]  ;;  %v5716_v20 = vld [vmem:[#allocation3 + $0x172] ss:$2 sm:$0xff] }
 0x5f8   : > { %v5778_v4 = vld [vmem:[#allocation3 + $0x173] ss:$2 sm:$0xff]  ;;  %v6456_v6 = vpop.f32.mrf.mxu1  ;;  %v9307_v25 = vpack.i.bf16 %v5654_v52, %v5652_v12  ;;  %v9312_v35 = vpack.i.bf16 %v5716_v20, %v5714_v49  ;;  %v9332_v12 = vpack.i.bf16 %v5662_v41, %v5660_v61  ;;  %v9274_v52 = vpop.permute.xlu1 %9273  ;;  %v5840_v10 = vld [vmem:[#allocation3 + $0x174] ss:$2 sm:$0xff] }
 0x5f9   : > { %v9317_v43 = vpack.i.bf16 %v5778_v4, %v5776_v1  ;;  %v6457_v27 = vadd.f32 %v12306_v59, %v6456_v6  ;;  %9067 = vmatmul.msk.f32.gmra.mxu2 %vm3870_vm3, %v5832_v3  ;;  %v6306_v1 = vsel %vm6290_vm6, %v6274_v7, %v9261_v55  ;;  %v9270_v4 = vunpack.i.l.bf16 %v9269_v14  ;;  %v5578_v6 = vld [vmem:[#allocation3 + $0x100] ss:$2 sm:$0xff] }
 0x5fa   : > { %v5355_v39 = vld [vmem:[#allocation2 + $0x392] ss:$2 sm:$0xff]  ;;  %9308 = vrot.lane.b32.xlu2 %v9307_v25, %s9413_s29  ;;  %9313 = vrot.lane.b32.xlu0 %v9312_v35, %s14135_s24  ;;  %v9275_v3 = vunpack.i.l.bf16 %v9274_v52  ;;  %v9276_v45 = vunpack.i.h.bf16 %v9274_v52 }
 0x5fb   : > { %9318 = vrot.lane.b32.xlu1 %v9317_v43, %s14134_s23  ;;  %v5480_v8 = vmax.f32 %v5419_v2, %v5355_v39  ;;  %v6567_v23 = vadd.f32 %v6566_v31, %v6457_v27  ;;  %v6241_v31 = vsel %vm3870_vm3, %v5574_v50, %v9250_v47  ;;  %v5838_v25 = vld [vmem:[#allocation3 + $0x164] ss:$2 sm:$0xff]  ;;  %v5844_v52 = vld [vmem:[#allocation3 + $0x194] ss:$2 sm:$0xff] }
 0x5fc   : > { %6494 = vmatmul.f32.gmra.mxu1 %v6304_v38  ;;  %v6273_v22 = vsel %vm6258_vm5, %v6241_v31, %v9255_v17  ;;  %v12330_v46 = vpop.f32.mrf.mxu2 }
 0x5fd   : > { %5541 = vst.msk [vmem:[#allocation3 + $0x1c8] sm:$0xff] %vm3870_vm3, %v5480_v8  ;;  %v6659_v21 = vmax.f32 %v6567_v23, 0.0  ;;  %v6305_v37 = vsel %vm6290_vm6, %v6273_v22, %v9260_v53  ;;  %v9271_v23 = vunpack.i.h.bf16 %v9269_v14 }
 0x5ff   : > { %6690 = vst.msk [vmem:[#allocation4] sm:$0xff] %vm6258_vm5, %v6659_v21  ;;  %v5580_v21 = vld [vmem:[#allocation3 + $0x110] ss:$2 sm:$0xff] }
 0x600   : > { %v6459_v30 = vpop.f32.mrf.mxu1  ;;  %v9289_v40 = vpop.permute.xlu1 %9288 }
 0x601   : > { %v6460_v19 = vadd.f32 %v12306_v59, %v6459_v30  ;;  %9068 = vmatmul.msk.f32.gmra.mxu2 %vm3870_vm3, %v5834_v32  ;;  %v9290_v61 = vunpack.i.l.bf16 %v9289_v40 }
 0x602   : > { %9323 = vrot.lane.b32.xlu2 %v9322_v34, %s9413_s29  ;;  %9328 = vrot.lane.b32.xlu0 %v9327_v18, %s14135_s24 }
 0x603   : > { %6182 = vrot.lane.b32.xlu1 %v5780_v5, %s14134_s23  ;;  %v6570_v9 = vadd.f32 %v6569_v11, %v6460_v19  ;;  %v9264_v11 = vpop.permute.xlu2 %9263 }
 0x604   : > { %v4737_v29 = vpop.f32.mrf.mxu3  ;;  %6497 = vmatmul.f32.gmra.mxu1 %v6305_v37  ;;  %v9265_v36 = vunpack.i.l.bf16 %v9264_v11  ;;  %v12344_v27 = vpop.f32.mrf.mxu2  ;;  %v9266_v39 = vunpack.i.h.bf16 %v9264_v11  ;;  %v5664_v53 = vld [vmem:[#allocation3 + $0x1c1] ss:$2 sm:$0xff] }
 0x605   : > { %v6660_v62 = vmax.f32 %v6570_v9, 0.0  ;;  %v4738_v16 = vadd.f32 %v12246_v24, %v4737_v29 }
 0x606   : > { %v6243_v43 = vsel %vm3870_vm3, %v5578_v6, %v9265_v36  ;;  %v6244_v63 = vsel %vm3870_vm3, %v5580_v21, %v9266_v39  ;;  %v9286_v36 = vunpack.i.h.bf16 %v9284_v56 }
 0x607   : > { %6691 = vst.msk [vmem:[#allocation4 + $0x8] sm:$0xff] %vm6258_vm5, %v6660_v62  ;;  %v4869_v15 = vmax.f32 %v4738_v16, 0.0  ;;  %v6275_v2 = vsel %vm6258_vm5, %v6243_v43, %v9270_v4  ;;  %v6276_v30 = vsel %vm6258_vm5, %v6244_v63, %v9271_v23  ;;  %v9285_v62 = vunpack.i.l.bf16 %v9284_v56  ;;  %v5584_v4 = vld [vmem:[#allocation3 + $0x130] ss:$2 sm:$0xff]  ;;  %v5586_v23 = vld [vmem:[#allocation3 + $0x140] ss:$2 sm:$0xff] }
 0x608   : > { %v6307_v8 = vsel %vm6290_vm6, %v6275_v2, %v9275_v3  ;;  %v6308_v9 = vsel %vm6290_vm6, %v6276_v30, %v9276_v45  ;;  %v5588_v56 = vld [vmem:[#allocation3 + $0x150] ss:$2 sm:$0xff] }
 0x609   : > { %9069 = vmatmul.msk.f32.gmra.mxu2 %vm3870_vm3, %v5836_v58  ;;  %4991 = vst.msk [vmem:[#allocation2 + $0x3a8] sm:$0xff] %vm3870_vm3, %v4869_v15  ;;  %v5842_v15 = vld [vmem:[#allocation3 + $0x184] ss:$2 sm:$0xff] }
 0x60a   : > { %6184 = vrot.lane.b32.xlu2 %v5782_v13, %s14134_s23  ;;  %9333 = vrot.lane.b32.xlu0 %v9332_v12, %s9413_s29  ;;  %v5582_v58 = vld [vmem:[#allocation3 + $0x120] ss:$2 sm:$0xff] }
 0x60b   : > { %6062 = vrot.lane.b32.xlu1 %v5722_v60, %s14135_s24  ;;  %v9279_v32 = vpop.permute.xlu2 %9278 }
 0x60c   : > { %6500 = vmatmul.f32.gmra.mxu1 %v6306_v1  ;;  %v12359_v22 = vpop.f32.mrf.mxu2  ;;  %v9280_v33 = vunpack.i.l.bf16 %v9279_v32  ;;  %v9281_v7 = vunpack.i.h.bf16 %v9279_v32 }
 0x60d   : > { %v4740_v20 = vpop.f32.mrf.mxu3 }
 0x60e   : > { %v4741_v44 = vadd.f32 %v12246_v24, %v4740_v20  ;;  %v6722_v5 = vld [vmem:[#allocation4] ss:$2 sm:$0xff]  ;;  %v6752_v18 = vld [vmem:[#allocation4 + $0x1] ss:$2 sm:$0xff]  ;;  %v6245_v26 = vsel %vm3870_vm3, %v5582_v58, %v9280_v33  ;;  %v9291_v20 = vunpack.i.h.bf16 %v9289_v40 }
 0x60f   : > { %v6811_v29 = vmax.f32 %v6722_v5, %v6752_v18  ;;  %v6277_v13 = vsel %vm6258_vm5, %v6245_v26, %v9285_v62 }
 0x610   : > { %v4870_v49 = vmax.f32 %v4741_v44, 0.0  ;;  %v5113_v38 = vld [vmem:[#allocation2 + $0x3a0] ss:$2 sm:$0xff]  ;;  %v5235_v0 = vld [vmem:[#allocation2 + $0x3a1] ss:$2 sm:$0xff]  ;;  %v6309_v14 = vsel %vm6290_vm6, %v6277_v13, %v9290_v61  ;;  %v6246_v44 = vsel %vm3870_vm3, %v5584_v4, %v9281_v7 }
 0x611   : > { %9070 = vmatmul.msk.f32.gmra.mxu2 %vm3870_vm3, %v5838_v25  ;;  %v6462_v35 = vpop.f32.mrf.mxu1  ;;  %v5420_v50 = vmax.f32 %v5113_v38, %v5235_v0  ;;  %v6278_v3 = vsel %vm6258_vm5, %v6246_v44, %v9286_v36  ;;  %v9299_v25 = vpop.permute.xlu0 %9298 }
 0x612   : > { %6186 = vrot.lane.b32.xlu2 %v5784_v54, %s14134_s23  ;;  %4992 = vst.msk [vmem:[#allocation2 + $0x3b0] sm:$0xff] %vm3870_vm3, %v4870_v49  ;;  %v6463_v57 = vadd.f32 %v12306_v59, %v6462_v35  ;;  %6064 = vrot.lane.b32.xlu0 %v5724_v48, %s14135_s24  ;;  %v6310_v54 = vsel %vm6290_vm6, %v6278_v3, %v9291_v20  ;;  %v9300_v2 = vunpack.i.l.bf16 %v9299_v25  ;;  %v9301_v30 = vunpack.i.h.bf16 %v9299_v25 }
 0x613   : > { %6188 = vrot.lane.b32.xlu1 %v5786_v28, %s14134_s23  ;;  %v9294_v6 = vpop.permute.xlu2 %9293  ;;  %v9304_v28 = vpop.permute.xlu1 %9303 }
 0x614   : > { %v6573_v47 = vadd.f32 %v12317_v42, %v6463_v57  ;;  %6503 = vmatmul.f32.gmra.mxu1 %v6307_v8  ;;  %v12374_v1 = vpop.f32.mrf.mxu2  ;;  %v9295_v43 = vunpack.i.l.bf16 %v9294_v6  ;;  %v5846_v8 = vld [vmem:[#allocation3 + $0x1a4] ss:$2 sm:$0xff]  ;;  %v9296_v45 = vunpack.i.h.bf16 %v9294_v6 }
 0x616   : > { %v6661_v17 = vmax.f32 %v6573_v47, 0.0  ;;  %v9305_v47 = vunpack.i.l.bf16 %v9304_v28  ;;  %v6247_v0 = vsel %vm3870_vm3, %v5586_v23, %v9295_v43 }
 0x618   : > { %6692 = vst.msk [vmem:[#allocation4 + $0x10] sm:$0xff] %vm6258_vm5, %v6661_v17  ;;  %v6279_v17 = vsel %vm6258_vm5, %v6247_v0, %v9300_v2 }
 0x619   : > { %9071 = vmatmul.msk.f32.gmra.mxu2 %vm3870_vm3, %v5840_v10  ;;  %v5357_v34 = vld [vmem:[#allocation2 + $0x3a2] ss:$2 sm:$0xff]  ;;  %v6465_v42 = vpop.f32.mrf.mxu1 }
 0x61a   : > { %5942 = vrot.lane.b32.xlu2 %v5664_v53, %s9413_s29  ;;  %v5481_v31 = vmax.f32 %v5420_v50, %v5357_v34  ;;  %v6466_v19 = vadd.f32 %v12306_v59, %v6465_v42  ;;  %v6311_v53 = vsel %vm6290_vm6, %v6279_v17, %v9305_v47  ;;  %v5848_v42 = vld [vmem:[#allocation3 + $0x1b4] ss:$2 sm:$0xff] }
 0x61c   : > { %5542 = vst.msk [vmem:[#allocation3 + $0x1d0] sm:$0xff] %vm3870_vm3, %v5481_v31  ;;  %v6576_v37 = vadd.f32 %v12330_v46, %v6466_v19  ;;  %6506 = vmatmul.f32.gmra.mxu1 %v6308_v9  ;;  %v12381_v48 = vpop.f32.mrf.mxu2  ;;  %v9306_v31 = vunpack.i.h.bf16 %v9304_v28 }
 0x61e   : > { %v6662_v16 = vmax.f32 %v6576_v37, 0.0  ;;  %v4743_v41 = vpop.f32.mrf.mxu3 }
 0x61f   : > { %v6782_v51 = vld [vmem:[#allocation4 + $0x2] ss:$2 sm:$0xff]  ;;  %v4744_v55 = vadd.f32 %v12246_v24, %v4743_v41 }
 0x620   : > { %6693 = vst.msk [vmem:[#allocation4 + $0x18] sm:$0xff] %vm6258_vm5, %v6662_v16  ;;  %v6826_v11 = vmax.f32 %v6811_v29, %v6782_v51 }
 0x621   : > { %9072 = vmatmul.msk.f32.gmra.mxu2 %vm3870_vm3, %v5842_v15  ;;  %v4871_v46 = vmax.f32 %v4744_v55, 0.0 }
 0x622   : > { %6841 = vst.msk [vmem:[#allocation5] sm:$0xff] %vm6258_vm5, %v6826_v11 }
 0x623   : > { %4993 = vst.msk [vmem:[#allocation2 + $0x3b8] sm:$0xff] %vm3870_vm3, %v4871_v46  ;;  %v5788_v60 = vld [vmem:[#allocation3 + $0x1c3] ss:$2 sm:$0xff]  ;;  %v5726_v12 = vld [vmem:[#allocation3 + $0x1c2] ss:$2 sm:$0xff] }
 0x624   : > { %6190 = vrot.lane.b32.xlu1 %v5788_v60, %s14134_s23  ;;  %6066 = vrot.lane.b32.xlu0 %v5726_v12, %s14135_s24  ;;  %v6590_v33 = vpop.f32.mrf.mxu2  ;;  %v5850_v61 = vld [vmem:[#allocation3 + $0x1c4] ss:$2 sm:$0xff] }
 0x625   : > { %6509 = vmatmul.f32.gmra.mxu1 %v6309_v14 }
 0x627   : > { %v6724_v18 = vld [vmem:[#allocation4 + $0x10] ss:$2 sm:$0xff]  ;;  %v6754_v9 = vld [vmem:[#allocation4 + $0x11] ss:$2 sm:$0xff] }
 0x628   : > { %v6812_v29 = vmax.f32 %v6724_v18, %v6754_v9 }
 0x629   : > { %9073 = vmatmul.msk.f32.gmra.mxu2 %vm3870_vm3, %v5844_v52 }
 0x62a   : > { %v5115_v10 = vld [vmem:[#allocation2 + $0x3b0] ss:$2 sm:$0xff]  ;;  %v5237_v63 = vld [vmem:[#allocation2 + $0x3b1] ss:$2 sm:$0xff] }
 0x62b   : > { %v5421_v32 = vmax.f32 %v5115_v10, %v5237_v63 }
 0x62c   : > { %v4746_v49 = vpop.f32.mrf.mxu3  ;;  %v6593_v13 = vpop.f32.mrf.mxu2 }
 0x62d   : > { %v4747_v35 = vadd.f32 %v12246_v24, %v4746_v49  ;;  %6512 = vmatmul.f32.gmra.mxu1 %v6310_v54 }
 0x62f   : > { %v4872_v57 = vmax.f32 %v4747_v35, 0.0  ;;  %v6468_v39 = vpop.f32.mrf.mxu1 }
 0x630   : > { %v6469_v38 = vadd.f32 %v12306_v59, %v6468_v39 }
 0x631   : > { %9074 = vmatmul.msk.f32.gmra.mxu2 %vm3870_vm3, %v5846_v8  ;;  %4994 = vst.msk [vmem:[#allocation2 + $0x3c0] sm:$0xff] %vm3870_vm3, %v4872_v57 }
 0x632   : > { %v6579_v21 = vadd.f32 %v12344_v27, %v6469_v38  ;;  %v6248_v27 = vsel %vm3870_vm3, %v5588_v56, %v9296_v45 }
 0x633   : > { %v6280_v40 = vsel %vm6258_vm5, %v6248_v27, %v9301_v30 }
 0x634   : > { %v6663_v50 = vmax.f32 %v6579_v21, 0.0  ;;  %v6312_v41 = vsel %vm6290_vm6, %v6280_v40, %v9306_v31  ;;  %v6596_v25 = vpop.f32.mrf.mxu2 }
 0x635   : > { %6515 = vmatmul.f32.gmra.mxu1 %v6311_v53 }
 0x636   : > { %6694 = vst.msk [vmem:[#allocation4 + $0x20] sm:$0xff] %vm6258_vm5, %v6663_v50 }
 0x637   : > { %v6471_v34 = vpop.f32.mrf.mxu1 }
 0x638   : > { %v5359_v19 = vld [vmem:[#allocation2 + $0x3b2] ss:$2 sm:$0xff]  ;;  %v6472_v5 = vadd.f32 %v12306_v59, %v6471_v34 }
 0x639   : > { %9075 = vmatmul.msk.f32.gmra.mxu2 %vm3870_vm3, %v5848_v42  ;;  %v5482_v37 = vmax.f32 %v5421_v32, %v5359_v19 }
 0x63a   : > { %v6582_v62 = vadd.f32 %v12359_v22, %v6472_v5 }
 0x63b   : > { %5543 = vst.msk [vmem:[#allocation3 + $0x1d8] sm:$0xff] %vm3870_vm3, %v5482_v37 }
 0x63c   : > { %v6664_v16 = vmax.f32 %v6582_v62, 0.0  ;;  %v6599_v47 = vpop.f32.mrf.mxu2 }
 0x63d   : > { %v6784_v51 = vld [vmem:[#allocation4 + $0x12] ss:$2 sm:$0xff]  ;;  %6518 = vmatmul.f32.gmra.mxu1 %v6312_v41  ;;  %v4749_v55 = vpop.f32.mrf.mxu3 }
 0x63e   : > { %6695 = vst.msk [vmem:[#allocation4 + $0x28] sm:$0xff] %vm6258_vm5, %v6664_v16  ;;  %v4750_v15 = vadd.f32 %v12246_v24, %v4749_v55  ;;  %v6827_v58 = vmax.f32 %v6812_v29, %v6784_v51 }
 0x640   : > { %v4873_v26 = vmax.f32 %v4750_v15, 0.0  ;;  %6842 = vst.msk [vmem:[#allocation5 + $0x8] sm:$0xff] %vm6258_vm5, %v6827_v58 }
 0x641   : > { %9076 = vmatmul.msk.f32.gmra.mxu2 %vm3870_vm3, %v5850_v61  ;;  %v6474_v22 = vpop.f32.mrf.mxu1  ;;  %v5590_v61 = vld [vmem:[#allocation3 + $0x160] ss:$2 sm:$0xff] }
 0x642   : > { %4996 = vst.msk [vmem:[#allocation2 + $0x3c8] sm:$0x7] %vm4995_vm7, %v4873_v26  ;;  %v6475_v11 = vadd.f32 %v12306_v59, %v6474_v22  ;;  %v5666_v46 = vld [vmem:[#allocation3 + $0x1d1] ss:$2 sm:$0xff] }
 0x643   : > { %5944 = vrot.lane.b32.xlu2 %v5666_v46, %s9413_s29 }
 0x644   : > { %v6585_v60 = vadd.f32 %v12374_v1, %v6475_v11  ;;  %v6602_v56 = vpop.f32.mrf.mxu2 }
 0x645   : > { %v6726_v36 = vld [vmem:[#allocation4 + $0x20] ss:$2 sm:$0xff]  ;;  %v6756_v20 = vld [vmem:[#allocation4 + $0x21] ss:$2 sm:$0xff] }
 0x646   : > { %v6665_v12 = vmax.f32 %v6585_v60, 0.0  ;;  %v6813_v43 = vmax.f32 %v6726_v36, %v6756_v20 }
 0x647   : > { %v6872_v32 = vld [vmem:[#allocation5 + $0x1] ss:$2 sm:$0xff] }
 0x648   : > { %6696 = vst.msk [vmem:[#allocation4 + $0x30] sm:$0xff] %vm6258_vm5, %v6665_v12 }
 0x649   : > { %v5117_v24 = vld [vmem:[#allocation2 + $0x3c0] ss:$2 sm:$0x1f]  ;;  %v5239_v7 = vld [vmem:[#allocation2 + $0x3c1] ss:$2 sm:$0x1f]  ;;  %v6477_v14 = vpop.f32.mrf.mxu1 }
 0x64a   : > { %v5422_v52 = vmax.f32 %v5117_v24, %v5239_v7  ;;  %v6478_v4 = vadd.f32 %v12306_v59, %v6477_v14  ;;  %v5361_v44 = vld [vmem:[#allocation2 + $0x3c2] ss:$2 sm:$0x1f] }
 0x64c   : > { %v5483_v6 = vmax.f32 %v5422_v52, %v5361_v44  ;;  %v6588_v3 = vadd.f32 %v12381_v48, %v6478_v4  ;;  %v6605_v62 = vpop.f32.mrf.mxu2  ;;  %v5592_v52 = vld [vmem:[#allocation3 + $0x170] ss:$2 sm:$0xff] }
 0x64e   : > { %v6666_v49 = vmax.f32 %v6588_v3, 0.0  ;;  %5545 = vst.msk [vmem:[#allocation3 + $0x1e0] sm:$0x1f] %vm5544_vm8, %v5483_v6 }
 0x64f   : > { %v6786_v1 = vld [vmem:[#allocation4 + $0x22] ss:$2 sm:$0xff] }
 0x650   : > { %6697 = vst.msk [vmem:[#allocation4 + $0x38] sm:$0xff] %vm6258_vm5, %v6666_v49  ;;  %v6828_v54 = vmax.f32 %v6813_v43, %v6786_v1 }
 0x651   : > { %v6480_v28 = vpop.f32.mrf.mxu1 }
 0x652   : > { %v6481_v2 = vadd.f32 %v12306_v59, %v6480_v28  ;;  %6843 = vst.msk [vmem:[#allocation5 + $0x10] sm:$0xff] %vm6258_vm5, %v6828_v54 }
 0x654   : > { %v6591_v35 = vadd.f32 %v6590_v33, %v6481_v2  ;;  %v9309_v18 = vpop.permute.xlu2 %9308 }
 0x655   : > { %v5852_v57 = vld [vmem:[#allocation3 + $0x1d4] ss:$2 sm:$0xff]  ;;  %v5790_v39 = vld [vmem:[#allocation3 + $0x1d3] ss:$2 sm:$0xff]  ;;  %v9310_v37 = vunpack.i.l.bf16 %v9309_v18  ;;  %v9311_v60 = vunpack.i.h.bf16 %v9309_v18 }
 0x656   : > { %v5728_v8 = vld [vmem:[#allocation3 + $0x1d2] ss:$2 sm:$0xff]  ;;  %v6667_v23 = vmax.f32 %v6591_v35, 0.0  ;;  %9077 = vmatmul.msk.f32.gmra.mxu2 %vm3870_vm3, %v5852_v57  ;;  %6192 = vrot.lane.b32.xlu1 %v5790_v39, %s14134_s23  ;;  %v5668_v48 = vld [vmem:[#allocation3 + $0x1e1] ss:$2 sm:$0x1] }
 0x657   : > { %6068 = vrot.lane.b32.xlu0 %v5728_v8, %s14135_s24  ;;  %5946 = vrot.lane.b32.xlu2 %v5668_v48, %s9413_s29  ;;  %v6728_v17 = vld [vmem:[#allocation4 + $0x30] ss:$2 sm:$0xff]  ;;  %v6758_v21 = vld [vmem:[#allocation4 + $0x31] ss:$2 sm:$0xff]  ;;  %v6249_v11 = vsel %vm3870_vm3, %v5590_v61, %v9310_v37  ;;  %v6250_v44 = vsel %vm3870_vm3, %v5592_v52, %v9311_v60  ;;  %v7011_v18 = vld [vmem:[%s14103_s5 + $0x60] sm:$0xff] }
 0x658   : > { %6698 = vst.msk [vmem:[#allocation4 + $0x40] sm:$0xff] %vm6258_vm5, %v6667_v23  ;;  %v5854_v10 = vld [vmem:[#allocation3 + $0x1e4] ss:$2 sm:$0x1]  ;;  %v6814_v50 = vmax.f32 %v6728_v17, %v6758_v21  ;;  %v7014_v17 = vld [vmem:[%s14103_s5 + $0x78] sm:$0xff]  ;;  %v7007_v60 = vld [vmem:[%s14103_s5 + $0x40] sm:$0xff] }
 0x659   : > { %v6483_v38 = vpop.f32.mrf.mxu1  ;;  %v5792_v63 = vld [vmem:[#allocation3 + $0x1e3] ss:$2 sm:$0x1]  ;;  %v5730_v30 = vld [vmem:[#allocation3 + $0x1e2] ss:$2 sm:$0x1]  ;;  %7035 = vmatpush.msrb.mxu3 %v7014_v17 }
 0x65a   : > { %v6484_v0 = vadd.f32 %v12306_v59, %v6483_v38  ;;  %v5594_v8 = vld [vmem:[#allocation3 + $0x180] ss:$2 sm:$0xff] }
 0x65b   : > { %v5602_v17 = vld [vmem:[#allocation3 + $0x1c0] ss:$2 sm:$0xff] }
 0x65c   : > { %v6594_v45 = vadd.f32 %v6593_v13, %v6484_v0  ;;  %v9324_v6 = vpop.permute.xlu2 %9323 }
 0x65d   : > { %v9325_v1 = vunpack.i.l.bf16 %v9324_v6 }
 0x65e   : > { %v6668_v53 = vmax.f32 %v6594_v45, 0.0  ;;  %9078 = vmatmul.msk.f32.gmra.mxu2 %vm3870_vm3, %v5854_v10  ;;  %6194 = vrot.lane.b32.xlu1 %v5792_v63, %s14134_s23  ;;  %v9326_v10 = vunpack.i.h.bf16 %v9324_v6  ;;  %v7005_v6 = vld [vmem:[%s14103_s5 + $0x30] sm:$0xff]  ;;  %s9360_s23 = sshra.s32 %s8258_s17, 4  ;;  %s9361_s23 = int_to_ptr.hbm [resolvable:$true] %s9360_s23 }
 0x65f   : > { %v6788_v34 = vld [vmem:[#allocation4 + $0x32] ss:$2 sm:$0xff]  ;;  %6070 = vrot.lane.b32.xlu0 %v5730_v30, %s14135_s24  ;;  %6927 = vrot.lane.b32.xlu2 %v6872_v32, %s14135_s24  ;;  %v6251_v48 = vsel %vm3870_vm3, %v5594_v8, %v9325_v1  ;;  %s9362_s26 = scalar_lea.hbm %s9361_s23, 1  ;;  %p9367_p0 = scmp.lt.s32.totalorder %s9361_s23, %s14107_s9 }
 0x660   : > { %6699 = vst.msk [vmem:[#allocation4 + $0x48] sm:$0xff] %vm6258_vm5, %v6668_v53  ;;  %v6829_v42 = vmax.f32 %v6814_v50, %v6788_v34  ;;  %v7013_v30 = vld [vmem:[%s14103_s5 + $0x70] sm:$0xff]  ;;  %v5600_v1 = vld [vmem:[#allocation3 + $0x1b0] ss:$2 sm:$0xff]  ;;  %p9363_p11 = scmp.ne.s32.totalorder %s9361_s23, %s9362_s26  ;;  %p9368_p1 = scmp.lt.s32.totalorder %s9366_s22, %s9362_s26 }
 0x661   : > { %v6486_v31 = vpop.f32.mrf.mxu1  ;;  %7036 = vmatpush.msrb.mxu3 %v7013_v30 }
 0x662   : > { %v6487_v19 = vadd.f32 %v12306_v59, %v6486_v31  ;;  %6844 = vst.msk [vmem:[#allocation5 + $0x18] sm:$0xff] %vm6258_vm5, %v6829_v42  ;;  %p9364_p12 = pnand %p9363_p11, %p9504_p5  ;;  %p9369_p2 = por %p9368_p1, %p9367_p0 }
 0x664   : > { %v6597_v5 = vadd.f32 %v6596_v25, %v6487_v19  ;;  %v6608_v25 = vpop.f32.mrf.mxu2  ;;  %v5596_v19 = vld [vmem:[#allocation3 + $0x190] ss:$2 sm:$0xff]  ;;  %p9365_p13 = pneg %p9364_p12 }
 0x666   : > { %v6669_v27 = vmax.f32 %v6597_v5, 0.0  ;;  %p9370_p3 = pnand %p9369_p2, %p9365_p13 }
 0x667   : > { %v6730_v29 = vld [vmem:[#allocation4 + $0x40] ss:$2 sm:$0xff]  ;;  %v6760_v16 = vld [vmem:[#allocation4 + $0x41] ss:$2 sm:$0xff] }
 0x668   : > { %6700 = vst.msk [vmem:[#allocation4 + $0x50] sm:$0xff] %vm6258_vm5, %v6669_v27  ;;  %v6815_v26 = vmax.f32 %v6730_v29, %v6760_v16  ;;  %v6252_v27 = vsel %vm3870_vm3, %v5596_v19, %v9326_v10  ;;  %v7009_v16 = vld [vmem:[%s14103_s5 + $0x50] sm:$0xff] }
 0x669   : > { %v6489_v9 = vpop.f32.mrf.mxu1  ;;  %v6874_v33 = vld [vmem:[#allocation5 + $0x11] ss:$2 sm:$0xff] }
 0x66a   : > { %v6490_v40 = vadd.f32 %v12306_v59, %v6489_v9  ;;  %6929 = vrot.lane.b32.xlu0 %v6874_v33, %s14135_s24  ;;  %v6185_v9 = vpop.permute.xlu2 %6184 }
 0x66c   : > { %v6600_v41 = vadd.f32 %v6599_v47, %v6490_v40  ;;  %v9314_v55 = vpop.permute.xlu0 %9313  ;;  %v6611_v63 = vpop.f32.mrf.mxu2 }
 0x66d   : > { %v9319_v51 = vpop.permute.xlu1 %9318  ;;  %v9315_v58 = vunpack.i.l.bf16 %v9314_v55  ;;  %v9316_v7 = vunpack.i.h.bf16 %v9314_v55  ;;  %v5598_v55 = vld [vmem:[#allocation3 + $0x1a0] ss:$2 sm:$0xff] }
 0x66e   : > { %v9320_v15 = vunpack.i.l.bf16 %v9319_v51  ;;  %v6670_v22 = vmax.f32 %v6600_v41, 0.0  ;;  %v9321_v4 = vunpack.i.h.bf16 %v9319_v51 }
 0x66f   : > { %v6790_v46 = vld [vmem:[#allocation4 + $0x42] ss:$2 sm:$0xff]  ;;  %v6281_v13 = vsel %vm6258_vm5, %v6249_v11, %v9315_v58  ;;  %v6282_v3 = vsel %vm6258_vm5, %v6250_v44, %v9316_v7 }
 0x670   : > { %6701 = vst.msk [vmem:[#allocation4 + $0x58] sm:$0xff] %vm6258_vm5, %v6670_v22  ;;  %v6313_v12 = vsel %vm6290_vm6, %v6281_v13, %v9320_v15  ;;  %v6830_v24 = vmax.f32 %v6815_v26, %v6790_v46  ;;  %v6314_v54 = vsel %vm6290_vm6, %v6282_v3, %v9321_v4  ;;  %v7008_v26 = vld [vmem:[%s14103_s5 + $0x48] sm:$0xff] }
 0x671   : > { %v6492_v14 = vpop.f32.mrf.mxu1  ;;  %6521 = vmatmul.f32.gmra.mxu1 %v6313_v12 }
 0x672   : > { %v6493_v36 = vadd.f32 %v12306_v59, %v6492_v14  ;;  %6845 = vst.msk [vmem:[#allocation5 + $0x20] sm:$0xff] %vm6258_vm5, %v6830_v24  ;;  %v7006_v14 = vld [vmem:[%s14103_s5 + $0x38] sm:$0xff] }
 0x674   : > { %v6603_v20 = vadd.f32 %v6602_v56, %v6493_v36  ;;  %v9329_v49 = vpop.permute.xlu0 %9328  ;;  %v7012_v56 = vld [vmem:[%s14103_s5 + $0x68] sm:$0xff]  ;;  %v6614_v15 = vpop.f32.mrf.mxu2 }
 0x675   : > { %v9330_v28 = vunpack.i.l.bf16 %v9329_v49  ;;  %v6183_v45 = vpop.permute.xlu1 %6182  ;;  %v9331_v32 = vunpack.i.h.bf16 %v9329_v49  ;;  %7037 = vmatpush.msrb.mxu3 %v7012_v56  ;;  %v6187_v36 = vpop.permute.xlu2 %6186  ;;  %v7004_v49 = vld [vmem:[%s14103_s5 + $0x28] sm:$0xff] }
 0x676   : > { %v6671_v43 = vmax.f32 %v6603_v20, 0.0 }
 0x677   : > { %v6732_v57 = vld [vmem:[#allocation4 + $0x50] ss:$2 sm:$0xff]  ;;  %v6762_v39 = vld [vmem:[#allocation4 + $0x51] ss:$2 sm:$0xff]  ;;  %v6283_v47 = vsel %vm6258_vm5, %v6251_v48, %v9330_v28  ;;  %v6284_v33 = vsel %vm6258_vm5, %v6252_v27, %v9331_v32  ;;  %7038 = vmatpush.msrb.mxu3 %v7011_v18 }
 0x678   : > { %6702 = vst.msk [vmem:[#allocation4 + $0x60] sm:$0xff] %vm6258_vm5, %v6671_v43  ;;  %v6816_v38 = vmax.f32 %v6732_v57, %v6762_v39  ;;  %v6315_v50 = vsel %vm6290_vm6, %v6283_v47, %v6183_v45  ;;  %v6316_v29 = vsel %vm6290_vm6, %v6284_v33, %v6185_v9  ;;  %v7003_v39 = vld [vmem:[%s14103_s5 + $0x20] sm:$0xff] }
 0x679   : > { %v6495_v2 = vpop.f32.mrf.mxu1  ;;  %6524 = vmatmul.f32.gmra.mxu1 %v6314_v54 }
 0x67a   : > { %v6496_v35 = vadd.f32 %v12306_v59, %v6495_v2 }
 0x67c   : > { %v6606_v23 = vadd.f32 %v6605_v62, %v6496_v35  ;;  %v9334_v31 = vpop.permute.xlu0 %9333  ;;  %v7010_v62 = vld [vmem:[%s14103_s5 + $0x58] sm:$0xff]  ;;  %v6617_v54 = vpop.f32.mrf.mxu2 }
 0x67d   : > { %v9335_v37 = vunpack.i.l.bf16 %v9334_v31  ;;  %7039 = vmatpush.msrb.mxu3 %v7010_v62  ;;  %v6063_v46 = vpop.permute.xlu1 %6062  ;;  %v9336_v4 = vunpack.i.h.bf16 %v9334_v31  ;;  %v5943_v47 = vpop.permute.xlu2 %5942 }
 0x67e   : > { %v6672_v0 = vmax.f32 %v6606_v23, 0.0  ;;  %v7002_v23 = vld [vmem:[%s14103_s5 + $0x18] sm:$0xff] }
 0x67f   : > { %v6792_v21 = vld [vmem:[#allocation4 + $0x52] ss:$2 sm:$0xff]  ;;  %7040 = vmatpush.msrb.mxu3 %v7009_v16  ;;  %v6253_v61 = vsel %vm3870_vm3, %v5598_v55, %v9335_v37  ;;  %v6254_v28 = vsel %vm3870_vm3, %v5600_v1, %v9336_v4 }
 0x680   : > { %6703 = vst.msk [vmem:[#allocation4 + $0x68] sm:$0xff] %vm6258_vm5, %v6672_v0  ;;  %v6831_v53 = vmax.f32 %v6816_v38, %v6792_v21  ;;  %v6285_v12 = vsel %vm6258_vm5, %v6253_v61, %v6063_v46  ;;  %v7001_v0 = vld [vmem:[%s14103_s5 + $0x10] sm:$0xff] }
 0x681   : > { %v6498_v34 = vpop.f32.mrf.mxu1  ;;  %6527 = vmatmul.f32.gmra.mxu1 %v6315_v50  ;;  %7041 = vmatpush.msrb.mxu3 %v7008_v26  ;;  %v6317_v20 = vsel %vm6290_vm6, %v6285_v12, %v6187_v36  ;;  %v7000_v50 = vld [vmem:[%s14103_s5 + $0x8] sm:$0xff]  ;;  %v6856_v36 = vld [vmem:[#allocation5] ss:$2 sm:$0xff] }
 0x682   : > { %v6499_v42 = vadd.f32 %v12306_v59, %v6498_v34  ;;  %6846 = vst.msk [vmem:[#allocation5 + $0x28] sm:$0xff] %vm6258_vm5, %v6831_v53  ;;  %v6255_v53 = vsel %vm3870_vm3, %v5602_v17, %v5943_v47 }
 0x683   : > { %7042 = vmatpush.msrb.mxu3 %v7007_v60 }
 0x684   : > { %v6609_v5 = vadd.f32 %v6608_v25, %v6499_v42  ;;  %v6065_v25 = vpop.permute.xlu0 %6064  ;;  %v6999_v42 = vld [vmem:[%s14103_s5] sm:$0xff]  ;;  %v6620_v56 = vpop.f32.mrf.mxu2 }
 0x685   : > { %7043 = vmatpush.msrb.mxu3 %v7006_v14  ;;  %v6189_v35 = vpop.permute.xlu1 %6188  ;;  %v6286_v57 = vsel %vm6258_vm5, %v6254_v28, %v6065_v25  ;;  %v5604_v28 = vld [vmem:[#allocation3 + $0x1d0] ss:$2 sm:$0xff] }
 0x686   : > { %v6673_v40 = vmax.f32 %v6609_v5, 0.0  ;;  %v6318_v48 = vsel %vm6290_vm6, %v6286_v57, %v6189_v35 }
 0x687   : > { %v6734_v22 = vld [vmem:[#allocation4 + $0x60] ss:$2 sm:$0xff]  ;;  %v6764_v11 = vld [vmem:[#allocation4 + $0x61] ss:$2 sm:$0xff]  ;;  %7044 = vmatpush.msrb.mxu3 %v7005_v6 }
 0x688   : > { %6704 = vst.msk [vmem:[#allocation4 + $0x70] sm:$0xff] %vm6258_vm5, %v6673_v40  ;;  %v6817_v24 = vmax.f32 %v6734_v22, %v6764_v11 }
 0x689   : > { %v6501_v41 = vpop.f32.mrf.mxu1  ;;  %6530 = vmatmul.f32.gmra.mxu1 %v6316_v29  ;;  %v6876_v51 = vld [vmem:[#allocation5 + $0x21] ss:$2 sm:$0xff]  ;;  %7045 = vmatpush.msrb.mxu3 %v7004_v49 }
 0x68a   : > { %v6502_v58 = vadd.f32 %v12306_v59, %v6501_v41  ;;  %6931 = vrot.lane.b32.xlu1 %v6876_v51, %s14135_s24 }
 0x68b   : > { %7046 = vmatpush.msrb.mxu3 %v7003_v39 }
 0x68c   : > { %v6612_v13 = vadd.f32 %v6611_v63, %v6502_v58  ;;  %v6623_v62 = vpop.f32.mrf.mxu2 }
 0x68d   : > { %7047 = vmatpush.msrb.mxu3 %v7002_v23  ;;  %v5606_v23 = vld [vmem:[#allocation3 + $0x1e0] ss:$2 sm:$0x1] }
 0x68e   : > { %v6674_v7 = vmax.f32 %v6612_v13, 0.0 }
 0x68f   : > { %v6794_v52 = vld [vmem:[#allocation4 + $0x62] ss:$2 sm:$0xff]  ;;  %7048 = vmatpush.msrb.mxu3 %v7001_v0 }
 0x690   : > { %6705 = vst.msk [vmem:[#allocation4 + $0x78] sm:$0xff] %vm6258_vm5, %v6674_v7  ;;  %v6832_v44 = vmax.f32 %v6817_v24, %v6794_v52 }
 0x691   : > { %v6504_v3 = vpop.f32.mrf.mxu1  ;;  %6533 = vmatmul.f32.gmra.mxu1 %v6317_v20  ;;  %7049 = vmatpush.msrb.mxu3 %v7000_v50 }
 0x692   : > { %v6505_v43 = vadd.f32 %v12306_v59, %v6504_v3  ;;  %6847 = vst.msk [vmem:[#allocation5 + $0x30] sm:$0xff] %vm6258_vm5, %v6832_v44 }
 0x693   : > { %7050 = vmatpush.msrb.mxu3 %v6999_v42 }
 0x694   : > { %v6615_v2 = vadd.f32 %v6614_v15, %v6505_v43  ;;  %v6626_v13 = vpop.f32.mrf.mxu2 }
 0x696   : > { %v6675_v8 = vmax.f32 %v6615_v2, 0.0  ;;  %v6067_v21 = vpop.permute.xlu0 %6066  ;;  %v6191_v32 = vpop.permute.xlu1 %6190 }
 0x697   : > { %v6736_v10 = vld [vmem:[#allocation4 + $0x70] ss:$2 sm:$0xff]  ;;  %v6766_v63 = vld [vmem:[#allocation4 + $0x71] ss:$2 sm:$0xff]  ;;  %v6287_v34 = vsel %vm6258_vm5, %v6255_v53, %v6067_v21 }
 0x698   : > { %6706 = vst.msk [vmem:[#allocation4 + $0x80] sm:$0xff] %vm6258_vm5, %v6675_v8  ;;  %v6818_v31 = vmax.f32 %v6736_v10, %v6766_v63  ;;  %v6319_v27 = vsel %vm6290_vm6, %v6287_v34, %v6191_v32 }
 0x699   : > { %v6507_v38 = vpop.f32.mrf.mxu1  ;;  %6536 = vmatmul.f32.gmra.mxu1 %v6318_v48 }
 0x69a   : > { %v6508_v45 = vadd.f32 %v12306_v59, %v6507_v38 }
 0x69c   : > { %v6618_v30 = vadd.f32 %v6617_v54, %v6508_v45  ;;  %v6629_v44 = vpop.f32.mrf.mxu2  ;;  %v6858_v45 = vld [vmem:[#allocation5 + $0x10] ss:$2 sm:$0xff] }
 0x69d   : > { %v5945_v29 = vpop.permute.xlu2 %5944 }
 0x69e   : > { %v6676_v19 = vmax.f32 %v6618_v30, 0.0  ;;  %v6256_v35 = vsel %vm3870_vm3, %v5604_v28, %v5945_v29  ;;  %v12537_v30 = vld [vmem:[%s14102_s4] ss:$0 sm:$0xff] }
 0x69f   : > { %v6796_v5 = vld [vmem:[#allocation4 + $0x72] ss:$2 sm:$0xff] }
 0x6a0   : > { %6707 = vst.msk [vmem:[#allocation4 + $0x88] sm:$0xff] %vm6258_vm5, %v6676_v19  ;;  %v6833_v18 = vmax.f32 %v6818_v31, %v6796_v5 }
 0x6a1   : > { %6539 = vmatmul.f32.gmra.mxu1 %v6319_v27 }
 0x6a2   : > { %v6510_v9 = vpop.f32.mrf.mxu1  ;;  %6848 = vst.msk [vmem:[#allocation5 + $0x38] sm:$0xff] %vm6258_vm5, %v6833_v18 }
 0x6a3   : > { %v6511_v33 = vadd.f32 %v12306_v59, %v6510_v9 }
 0x6a4   : > { %v6632_v63 = vpop.f32.mrf.mxu2 }
 0x6a5   : > { %v6621_v37 = vadd.f32 %v6620_v56, %v6511_v33 }
 0x6a7   : > { %v6677_v40 = vmax.f32 %v6621_v37, 0.0  ;;  %v6738_v55 = vld [vmem:[#allocation4 + $0x80] ss:$2 sm:$0xff]  ;;  %v6768_v15 = vld [vmem:[#allocation4 + $0x81] ss:$2 sm:$0xff] }
 0x6a8   : > { %v6819_v61 = vmax.f32 %v6738_v55, %v6768_v15 }
 0x6a9   : > { %6708 = vst.msk [vmem:[#allocation4 + $0x90] sm:$0xff] %vm6258_vm5, %v6677_v40  ;;  %v6878_v16 = vld [vmem:[#allocation5 + $0x31] ss:$2 sm:$0xff] }
 0x6aa   : > { %v6513_v41 = vpop.f32.mrf.mxu1  ;;  %6933 = vrot.lane.b32.xlu2 %v6878_v16, %s14135_s24 }
 0x6ab   : > { %v6514_v51 = vadd.f32 %v12306_v59, %v6513_v41 }
 0x6ac   : > { %v6635_v50 = vpop.f32.mrf.mxu2 }
 0x6ad   : > { %v6624_v58 = vadd.f32 %v6623_v62, %v6514_v51  ;;  %v6860_v62 = vld [vmem:[#allocation5 + $0x20] ss:$2 sm:$0xff] }
 0x6af   : > { %v6678_v26 = vmax.f32 %v6624_v58, 0.0 }
 0x6b0   : > { %v6798_v22 = vld [vmem:[#allocation4 + $0x82] ss:$2 sm:$0xff] }
 0x6b1   : > { %6709 = vst.msk [vmem:[#allocation4 + $0x98] sm:$0xff] %vm6258_vm5, %v6678_v26  ;;  %v5947_v11 = vpop.permute.xlu2 %5946  ;;  %v6834_v46 = vmax.f32 %v6819_v61, %v6798_v22  ;;  %v6862_v26 = vld [vmem:[#allocation5 + $0x30] ss:$2 sm:$0xff] }
 0x6b2   : > { %v6516_v60 = vpop.f32.mrf.mxu1  ;;  %v6257_v47 = vsel %vm3870_vm3, %v5606_v23, %v5947_v11 }
 0x6b3   : > { %v6517_v12 = vadd.f32 %v12306_v59, %v6516_v60  ;;  %6849 = vst.msk [vmem:[#allocation5 + $0x40] sm:$0xff] %vm6258_vm5, %v6834_v46 }
 0x6b4   : > { %v6638_v19 = vpop.f32.mrf.mxu2 }
 0x6b5   : > { %v6627_v24 = vadd.f32 %v6626_v13, %v6517_v12 }
 0x6b7   : > { %v6679_v7 = vmax.f32 %v6627_v24, 0.0 }
 0x6b8   : > { %v6740_v6 = vld [vmem:[#allocation4 + $0x90] ss:$2 sm:$0xff]  ;;  %v6770_v3 = vld [vmem:[#allocation4 + $0x91] ss:$2 sm:$0xff] }
 0x6b9   : > { %6710 = vst.msk [vmem:[#allocation4 + $0xa0] sm:$0xff] %vm6258_vm5, %v6679_v7  ;;  %v6928_v14 = vpop.permute.xlu2 %6927  ;;  %v6820_v43 = vmax.f32 %v6740_v6, %v6770_v3 }
 0x6ba   : > { %v6519_v52 = vpop.f32.mrf.mxu1  ;;  %v6983_v4 = vsel %vm6258_vm5, %v6856_v36, %v6928_v14 }
 0x6bb   : > { %v6520_v20 = vadd.f32 %v12306_v59, %v6519_v52  ;;  %7051 = vmatmul.f32.vlgmr.msrb.gmra.mxu3 %v6983_v4 }
 0x6bc   : > { %v6641_v15 = vpop.f32.mrf.mxu2 }
 0x6bd   : > { %v6630_v25 = vadd.f32 %v6629_v44, %v6520_v20 }
 0x6bf   : > { %v6680_v49 = vmax.f32 %v6630_v25, 0.0 }
 0x6c0   : > { %v6800_v1 = vld [vmem:[#allocation4 + $0x92] ss:$2 sm:$0xff] }
 0x6c1   : > { %6711 = vst.msk [vmem:[#allocation4 + $0xa8] sm:$0xff] %vm6258_vm5, %v6680_v49  ;;  %v6835_v54 = vmax.f32 %v6820_v43, %v6800_v1 }
 0x6c3   : > { %6850 = vst.msk [vmem:[#allocation5 + $0x48] sm:$0xff] %vm6258_vm5, %v6835_v54 }
 0x6c4   : > { %v6644_v14 = vpop.f32.mrf.mxu2 }
 0x6c8   : > { %v6193_v2 = vpop.permute.xlu1 %6192  ;;  %v6742_v5 = vld [vmem:[#allocation4 + $0xa0] ss:$2 sm:$0xff]  ;;  %v6772_v27 = vld [vmem:[#allocation4 + $0xa1] ss:$2 sm:$0xff] }
 0x6c9   : > { %v6069_v57 = vpop.permute.xlu0 %6068  ;;  %v6821_v9 = vmax.f32 %v6742_v5, %v6772_v27 }
 0x6ca   : > { %v6288_v59 = vsel %vm6258_vm5, %v6256_v35, %v6069_v57  ;;  %v6880_v39 = vld [vmem:[#allocation5 + $0x41] ss:$2 sm:$0xff] }
 0x6cb   : > { %6935 = vrot.lane.b32.xlu0 %v6880_v39, %s14135_s24  ;;  %v6320_v8 = vsel %vm6290_vm6, %v6288_v59, %v6193_v2 }
 0x6cc   : > { %6542 = vmatmul.f32.gmra.mxu1 %v6320_v8  ;;  %v6647_v3 = vpop.f32.mrf.mxu2  ;;  %v6904_v8 = vld [vmem:[#allocation5 + $0x3] ss:$2 sm:$0xff] }
 0x6d0   : > { %v6195_v48 = vpop.permute.xlu1 %6194 }
 0x6d1   : > { %v6071_v38 = vpop.permute.xlu0 %6070 }
 0x6d2   : > { %v6289_v0 = vsel %vm6258_vm5, %v6257_v47, %v6071_v38 }
 0x6d3   : > { %v6321_v17 = vsel %vm6290_vm6, %v6289_v0, %v6195_v48  ;;  %v6910_v0 = vld [vmem:[#allocation5 + $0x33] ss:$2 sm:$0xff] }
 0x6d4   : > { %6545 = vmatmul.f32.gmra.mxu1 %v6321_v17  ;;  %v6650_v48 = vpop.f32.mrf.mxu2 }
 0x6dc   : > { %v6930_v21 = vpop.permute.xlu0 %6929 }
 0x6dd   : > { %v6984_v10 = vsel %vm6258_vm5, %v6858_v45, %v6930_v21 }
 0x6de   : > { %7054 = vmatmul.f32.gmra.mxu3 %v6984_v10 }
 0x6ee   : > { %v6522_v53 = vpop.f32.mrf.mxu1 }
 0x6ef   : > { %v6523_v32 = vadd.f32 %v12537_v30, %v6522_v53 }
 0x6f1   : > { %v6633_v34 = vadd.f32 %v6632_v63, %v6523_v32  ;;  %v6864_v32 = vld [vmem:[#allocation5 + $0x40] ss:$2 sm:$0xff] }
 0x6f3   : > { %v6681_v42 = vmax.f32 %v6633_v34, 0.0 }
 0x6f5   : > { %6712 = vst.msk [vmem:[#allocation4 + $0xb0] sm:$0xff] %vm6258_vm5, %v6681_v42  ;;  %v6906_v42 = vld [vmem:[#allocation5 + $0x13] ss:$2 sm:$0xff] }
 0x6f6   : > { %v6525_v56 = vpop.f32.mrf.mxu1 }
 0x6f7   : > { %v6526_v31 = vadd.f32 %v12537_v30, %v6525_v56 }
 0x6f9   : > { %v6636_v18 = vadd.f32 %v6635_v50, %v6526_v31  ;;  %v6653_v31 = vpop.f32.mrf.mxu2 }
 0x6fb   : > { %v6682_v33 = vmax.f32 %v6636_v18, 0.0 }
 0x6fc   : > { %v6802_v37 = vld [vmem:[#allocation4 + $0xa2] ss:$2 sm:$0xff]  ;;  %v6932_v40 = vpop.permute.xlu1 %6931 }
 0x6fd   : > { %6713 = vst.msk [vmem:[#allocation4 + $0xb8] sm:$0xff] %vm6258_vm5, %v6682_v33  ;;  %v6985_v29 = vsel %vm6258_vm5, %v6860_v62, %v6932_v40  ;;  %v6836_v16 = vmax.f32 %v6821_v9, %v6802_v37 }
 0x6fe   : > { %v6528_v41 = vpop.f32.mrf.mxu1  ;;  %7057 = vmatmul.f32.gmra.mxu3 %v6985_v29 }
 0x6ff   : > { %v6529_v51 = vadd.f32 %v12537_v30, %v6528_v41  ;;  %6851 = vst.msk [vmem:[#allocation5 + $0x50] sm:$0xff] %vm6258_vm5, %v6836_v16 }
 0x701   : > { %v6639_v55 = vadd.f32 %v6638_v19, %v6529_v51  ;;  %v6656_v37 = vpop.f32.mrf.mxu2 }
 0x703   : > { %v6683_v58 = vmax.f32 %v6639_v55, 0.0 }
 0x704   : > { %v6934_v61 = vpop.permute.xlu2 %6933  ;;  %v6744_v13 = vld [vmem:[#allocation4 + $0xb0] ss:$2 sm:$0xff]  ;;  %v6774_v60 = vld [vmem:[#allocation4 + $0xb1] ss:$2 sm:$0xff] }
 0x705   : > { %6714 = vst.msk [vmem:[#allocation4 + $0xc0] sm:$0xff] %vm6258_vm5, %v6683_v58  ;;  %v6986_v22 = vsel %vm6258_vm5, %v6862_v26, %v6934_v61  ;;  %v6822_v24 = vmax.f32 %v6744_v13, %v6774_v60 }
 0x706   : > { %v6531_v11 = vpop.f32.mrf.mxu1  ;;  %7060 = vmatmul.f32.gmra.mxu3 %v6986_v22  ;;  %v6912_v56 = vld [vmem:[#allocation5 + $0x43] ss:$2 sm:$0xff] }
 0x707   : > { %v6532_v46 = vadd.f32 %v12537_v30, %v6531_v11 }
 0x709   : > { %v6642_v12 = vadd.f32 %v6641_v15, %v6532_v46 }
 0x70b   : > { %v6684_v7 = vmax.f32 %v6642_v12, 0.0 }
 0x70c   : > { %v6804_v36 = vld [vmem:[#allocation4 + $0xb2] ss:$2 sm:$0xff] }
 0x70d   : > { %6715 = vst.msk [vmem:[#allocation4 + $0xc8] sm:$0xff] %vm6258_vm5, %v6684_v7  ;;  %v6837_v52 = vmax.f32 %v6822_v24, %v6804_v36  ;;  %v7030_v24 = vld [vmem:[%s14103_s5 + $0xf8] sm:$0xff]  ;;  %v7029_v7 = vld [vmem:[%s14103_s5 + $0xf0] sm:$0xff]  ;;  %v7027_v36 = vld [vmem:[%s14103_s5 + $0xe0] sm:$0xff] }
 0x70e   : > { %v6534_v4 = vpop.f32.mrf.mxu1  ;;  %7076 = vmatpush.msra.mxu3 %v7030_v24 }
 0x70f   : > { %v6535_v20 = vadd.f32 %v12537_v30, %v6534_v4  ;;  %6852 = vst.msk [vmem:[#allocation5 + $0x58] sm:$0xff] %vm6258_vm5, %v6837_v52  ;;  %v7026_v52 = vld [vmem:[%s14103_s5 + $0xd8] sm:$0xff]  ;;  %v7025_v4 = vld [vmem:[%s14103_s5 + $0xd0] sm:$0xff] }
 0x710   : > { %7077 = vmatpush.msra.mxu3 %v7029_v7 }
 0x711   : > { %v6645_v44 = vadd.f32 %v6644_v14, %v6535_v20  ;;  %v7028_v14 = vld [vmem:[%s14103_s5 + $0xe8] sm:$0xff] }
 0x712   : > { %7078 = vmatpush.msra.mxu3 %v7028_v14  ;;  %v7024_v20 = vld [vmem:[%s14103_s5 + $0xc8] sm:$0xff] }
 0x713   : > { %v6685_v6 = vmax.f32 %v6645_v44, 0.0  ;;  %v7023_v44 = vld [vmem:[%s14103_s5 + $0xc0] sm:$0xff] }
 0x714   : > { %v6746_v1 = vld [vmem:[#allocation4 + $0xc0] ss:$2 sm:$0xff]  ;;  %v6776_v54 = vld [vmem:[#allocation4 + $0xc1] ss:$2 sm:$0xff]  ;;  %7079 = vmatpush.msra.mxu3 %v7027_v36 }
 0x715   : > { %6716 = vst.msk [vmem:[#allocation4 + $0xd0] sm:$0xff] %vm6258_vm5, %v6685_v6  ;;  %v6823_v2 = vmax.f32 %v6746_v1, %v6776_v54  ;;  %v7022_v6 = vld [vmem:[%s14103_s5 + $0xb8] sm:$0xff]  ;;  %v7017_v1 = vld [vmem:[%s14103_s5 + $0x90] sm:$0xff]  ;;  %v7016_v54 = vld [vmem:[%s14103_s5 + $0x88] sm:$0xff] }
 0x716   : > { %v6537_v25 = vpop.f32.mrf.mxu1  ;;  %v6882_v43 = vld [vmem:[#allocation5 + $0x51] ss:$2 sm:$0xff]  ;;  %v6866_v11 = vld [vmem:[#allocation5 + $0x50] ss:$2 sm:$0xff]  ;;  %7080 = vmatpush.msra.mxu3 %v7026_v52 }
 0x717   : > { %v6538_v49 = vadd.f32 %v12537_v30, %v6537_v25  ;;  %6937 = vrot.lane.b32.xlu1 %v6882_v43, %s14135_s24  ;;  %v7020_v25 = vld [vmem:[%s14103_s5 + $0xa8] sm:$0xff]  ;;  %v7019_v43 = vld [vmem:[%s14103_s5 + $0xa0] sm:$0xff] }
 0x718   : > { %7081 = vmatpush.msra.mxu3 %v7025_v4 }
 0x719   : > { %v6648_v28 = vadd.f32 %v6647_v3, %v6538_v49  ;;  %v7021_v3 = vld [vmem:[%s14103_s5 + $0xb0] sm:$0xff]  ;;  %v7018_v49 = vld [vmem:[%s14103_s5 + $0x98] sm:$0xff] }
 0x71a   : > { %7082 = vmatpush.msra.mxu3 %v7024_v20 }
 0x71b   : > { %v6686_v35 = vmax.f32 %v6648_v28, 0.0  ;;  %v7015_v28 = vld [vmem:[%s14103_s5 + $0x80] sm:$0xff] }
 0x71c   : > { %v6806_v57 = vld [vmem:[#allocation4 + $0xc2] ss:$2 sm:$0xff]  ;;  %7083 = vmatpush.msra.mxu3 %v7023_v44 }
 0x71d   : > { %6717 = vst.msk [vmem:[#allocation4 + $0xd8] sm:$0xff] %vm6258_vm5, %v6686_v35  ;;  %v6838_v59 = vmax.f32 %v6823_v2, %v6806_v57  ;;  %v7204_v44 = vld [vmem:[%s14105_s7 + $0x38] sm:$0xff] }
 0x71e   : > { %v6540_v39 = vpop.f32.mrf.mxu1  ;;  %7084 = vmatpush.msra.mxu3 %v7022_v6  ;;  %v7252_v6 = vld [vmem:[%s14105_s7 + $0x1b8] sm:$0xff] }
 0x71f   : > { %v6541_v23 = vadd.f32 %v12537_v30, %v6540_v39  ;;  %6959 = vrot.lane.b32.xlu1 %v6904_v8, %s14135_s24  ;;  %6853 = vst.msk [vmem:[#allocation5 + $0x60] sm:$0xff] %vm6258_vm5, %v6838_v59  ;;  %v6888_v39 = vld [vmem:[#allocation5 + $0x2] ss:$2 sm:$0xff] }
 0x720   : > { %7085 = vmatpush.msra.mxu3 %v7021_v3  ;;  %v7284_v3 = vld [vmem:[%s14105_s7 + $0x2b8] sm:$0xff] }
 0x721   : > { %v6651_v47 = vadd.f32 %v6650_v48, %v6541_v23  ;;  %v6890_v48 = vld [vmem:[#allocation5 + $0x12] ss:$2 sm:$0xff] }
 0x722   : > { %7086 = vmatpush.msra.mxu3 %v7020_v25  ;;  %v7203_v25 = vld [vmem:[%s14105_s7 + $0x30] sm:$0xff] }
 0x723   : > { %v6687_v38 = vmax.f32 %v6651_v47, 0.0 }
 0x724   : > { %v6748_v17 = vld [vmem:[#allocation4 + $0xd0] ss:$2 sm:$0xff]  ;;  %v6778_v21 = vld [vmem:[#allocation4 + $0xd1] ss:$2 sm:$0xff]  ;;  %7087 = vmatpush.msra.mxu3 %v7019_v43 }
 0x725   : > { %6718 = vst.msk [vmem:[#allocation4 + $0xe0] sm:$0xff] %vm6258_vm5, %v6687_v38  ;;  %v6824_v45 = vmax.f32 %v6748_v17, %v6778_v21  ;;  %v7251_v43 = vld [vmem:[%s14105_s7 + $0x1b0] sm:$0xff] }
 0x726   : > { %v6914_v26 = vld [vmem:[#allocation5 + $0x53] ss:$2 sm:$0xff]  ;;  %7088 = vmatpush.msra.mxu3 %v7018_v49 }
 0x727   : > { %6965 = vrot.lane.b32.xlu1 %v6910_v0, %s14135_s24  ;;  %v6892_v0 = vld [vmem:[#allocation5 + $0x22] ss:$2 sm:$0xff] }
 0x728   : > { %7089 = vmatpush.msra.mxu3 %v7017_v1  ;;  %v7283_v49 = vld [vmem:[%s14105_s7 + $0x2b0] sm:$0xff]  ;;  %v7202_v1 = vld [vmem:[%s14105_s7 + $0x28] sm:$0xff] }
 0x72a   : > { %7090 = vmatpush.msra.mxu3 %v7016_v54  ;;  %v7250_v54 = vld [vmem:[%s14105_s7 + $0x1a8] sm:$0xff] }
 0x72c   : > { %v6808_v10 = vld [vmem:[#allocation4 + $0xd2] ss:$2 sm:$0xff]  ;;  %7091 = vmatpush.msra.mxu3 %v7015_v28 }
 0x72d   : > { %v6839_v63 = vmax.f32 %v6824_v45, %v6808_v10  ;;  %v6894_v45 = vld [vmem:[#allocation5 + $0x32] ss:$2 sm:$0xff] }
 0x72e   : > { %v7282_v28 = vld [vmem:[%s14105_s7 + $0x2a8] sm:$0xff] }
 0x72f   : > { %6854 = vst.msk [vmem:[#allocation5 + $0x68] sm:$0xff] %vm6258_vm5, %v6839_v63  ;;  %v7260_v63 = vld [vmem:[%s14105_s7 + $0x1f8] sm:$0xff] }
 0x730   : > { %7722 = vmatpush.msra.mxu2 %v7260_v63  ;;  %v7245_v63 = vld [vmem:[%s14105_s7 + $0x180] sm:$0xff] }
 0x736   : > { %v6884_v50 = vld [vmem:[#allocation5 + $0x61] ss:$2 sm:$0xff]  ;;  %v6868_v60 = vld [vmem:[#allocation5 + $0x60] ss:$2 sm:$0xff] }
 0x737   : > { %6939 = vrot.lane.b32.xlu2 %v6884_v50, %s14135_s24  ;;  %v7212_v50 = vld [vmem:[%s14105_s7 + $0x78] sm:$0xff] }
 0x738   : > { %7662 = vmatpush.msrb.mxu3 %v7212_v50  ;;  %v7277_v50 = vld [vmem:[%s14105_s7 + $0x280] sm:$0xff] }
 0x73d   : > { %v6936_v53 = vpop.permute.xlu0 %6935 }
 0x73e   : > { %v6987_v34 = vsel %vm6258_vm5, %v6864_v32, %v6936_v53  ;;  %v7292_v53 = vld [vmem:[%s14105_s7 + $0x2f8] sm:$0xff]  ;;  %v7211_v32 = vld [vmem:[%s14105_s7 + $0x70] sm:$0xff]  ;;  %v12706_v36 = vpop.f32.mrf.mxu3 }
 0x73f   : > { %7063 = vmatmul.f32.gmra.mxu3 %v6987_v34  ;;  %6961 = vrot.lane.b32.xlu2 %v6906_v42, %s14135_s24  ;;  %v7259_v34 = vld [vmem:[%s14105_s7 + $0x1f0] sm:$0xff] }
 0x740   : > { %v7291_v42 = vld [vmem:[%s14105_s7 + $0x2f0] sm:$0xff]  ;;  %7762 = vmatpush.msra.mxu1 %v7292_v53  ;;  %7663 = vmatpush.msrb.mxu3 %v7211_v32  ;;  %v7228_v53 = vld [vmem:[%s14105_s7 + $0xf8] sm:$0xff] }
 0x741   : > { %7723 = vmatpush.msra.mxu2 %v7259_v34  ;;  %v7308_v32 = vld [vmem:[%s14105_s7 + $0x378] sm:$0xff] }
 0x742   : > { %7763 = vmatpush.msra.mxu1 %v7291_v42  ;;  %v7340_v34 = vld [vmem:[%s14105_s7 + $0x478] sm:$0xff]  ;;  %v7227_v42 = vld [vmem:[%s14105_s7 + $0xf0] sm:$0xff] }
 0x747   : > { %6967 = vrot.lane.b32.xlu2 %v6912_v56, %s14135_s24  ;;  %v7210_v56 = vld [vmem:[%s14105_s7 + $0x68] sm:$0xff] }
 0x748   : > { %7664 = vmatpush.msrb.mxu3 %v7210_v56  ;;  %v7307_v56 = vld [vmem:[%s14105_s7 + $0x370] sm:$0xff] }
 0x749   : > { %v6543_v19 = vpop.f32.mrf.mxu1 }
 0x74a   : > { %v6544_v5 = vadd.f32 %v12537_v30, %v6543_v19  ;;  %v7290_v19 = vld [vmem:[%s14105_s7 + $0x2e8] sm:$0xff] }
 0x74b   : > { %7764 = vmatpush.msra.mxu1 %v7290_v19  ;;  %v7226_v19 = vld [vmem:[%s14105_s7 + $0xe8] sm:$0xff] }
 0x74c   : > { %v6654_v27 = vadd.f32 %v6653_v31, %v6544_v5  ;;  %v7258_v31 = vld [vmem:[%s14105_s7 + $0x1e8] sm:$0xff] }
 0x74d   : > { %7724 = vmatpush.msra.mxu2 %v7258_v31  ;;  %v7339_v31 = vld [vmem:[%s14105_s7 + $0x470] sm:$0xff] }
 0x74e   : > { %v6688_v18 = vmax.f32 %v6654_v27, 0.0  ;;  %v7209_v27 = vld [vmem:[%s14105_s7 + $0x60] sm:$0xff] }
 0x74f   : > { %7665 = vmatpush.msrb.mxu3 %v7209_v27  ;;  %v7338_v27 = vld [vmem:[%s14105_s7 + $0x468] sm:$0xff] }
 0x750   : > { %6719 = vst.msk [vmem:[#allocation4 + $0xe8] sm:$0xff] %vm6258_vm5, %v6688_v18  ;;  %v7257_v18 = vld [vmem:[%s14105_s7 + $0x1e0] sm:$0xff] }
 0x751   : > { %v6546_v9 = vpop.f32.mrf.mxu1  ;;  %7725 = vmatpush.msra.mxu2 %v7257_v18 }
 0x752   : > { %v6547_v33 = vadd.f32 %v12537_v30, %v6546_v9  ;;  %v6908_v30 = vld [vmem:[#allocation5 + $0x23] ss:$2 sm:$0xff] }
 0x753   : > { %v7289_v9 = vld [vmem:[%s14105_s7 + $0x2e0] sm:$0xff] }
 0x754   : > { %v6657_v40 = vadd.f32 %v6656_v37, %v6547_v33  ;;  %v6896_v33 = vld [vmem:[#allocation5 + $0x42] ss:$2 sm:$0xff]  ;;  %7765 = vmatpush.msra.mxu1 %v7289_v9 }
 0x755   : > { %v7208_v37 = vld [vmem:[%s14105_s7 + $0x58] sm:$0xff]  ;;  %v7225_v9 = vld [vmem:[%s14105_s7 + $0xe0] sm:$0xff] }
 0x756   : > { %v6689_v62 = vmax.f32 %v6657_v40, 0.0  ;;  %v7256_v40 = vld [vmem:[%s14105_s7 + $0x1d8] sm:$0xff]  ;;  %7666 = vmatpush.msrb.mxu3 %v7208_v37  ;;  %v7337_v37 = vld [vmem:[%s14105_s7 + $0x460] sm:$0xff] }
 0x757   : > { %v6750_v29 = vld [vmem:[#allocation4 + $0xe0] ss:$2 sm:$0xff]  ;;  %v6780_v16 = vld [vmem:[#allocation4 + $0xe1] ss:$2 sm:$0xff]  ;;  %7726 = vmatpush.msra.mxu2 %v7256_v40 }
 0x758   : > { %6721 = vst.msk [vmem:[#allocation4 + $0xf0] sm:$0x1] %vm6720_vm9, %v6689_v62  ;;  %v6825_v41 = vmax.f32 %v6750_v29, %v6780_v16  ;;  %v7288_v29 = vld [vmem:[%s14105_s7 + $0x2d8] sm:$0xff]  ;;  %v7207_v16 = vld [vmem:[%s14105_s7 + $0x50] sm:$0xff] }
 0x759   : > { %7766 = vmatpush.msra.mxu1 %v7288_v29  ;;  %7667 = vmatpush.msrb.mxu3 %v7207_v16  ;;  %v7224_v40 = vld [vmem:[%s14105_s7 + $0xd8] sm:$0xff]  ;;  %v7223_v16 = vld [vmem:[%s14105_s7 + $0xd0] sm:$0xff] }
 0x75a   : > { %v7336_v29 = vld [vmem:[%s14105_s7 + $0x458] sm:$0xff] }
 0x75f   : > { %v6810_v51 = vld [vmem:[#allocation4 + $0xe2] ss:$2 sm:$0xff] }
 0x760   : > { %v6840_v55 = vmax.f32 %v6825_v41, %v6810_v51  ;;  %v7255_v41 = vld [vmem:[%s14105_s7 + $0x1d0] sm:$0xff] }
 0x761   : > { %v7287_v51 = vld [vmem:[%s14105_s7 + $0x2d0] sm:$0xff]  ;;  %7727 = vmatpush.msra.mxu2 %v7255_v41  ;;  %v12708_v52 = vpop.f32.mrf.mxu3 }
 0x762   : > { %6855 = vst.msk [vmem:[#allocation5 + $0x70] sm:$0xff] %vm6258_vm5, %v6840_v55  ;;  %v7206_v55 = vld [vmem:[%s14105_s7 + $0x48] sm:$0xff]  ;;  %7767 = vmatpush.msra.mxu1 %v7287_v51  ;;  %v7303_v41 = vld [vmem:[%s14105_s7 + $0x350] sm:$0xff] }
 0x763   : > { %7668 = vmatpush.msrb.mxu3 %v7206_v55  ;;  %v7335_v51 = vld [vmem:[%s14105_s7 + $0x450] sm:$0xff]  ;;  %v7222_v55 = vld [vmem:[%s14105_s7 + $0xc8] sm:$0xff] }
 0x769   : > { %v6886_v15 = vld [vmem:[#allocation5 + $0x71] ss:$2 sm:$0x7]  ;;  %v6870_v35 = vld [vmem:[#allocation5 + $0x70] ss:$2 sm:$0x7] }
 0x76a   : > { %v6916_v58 = vld [vmem:[#allocation5 + $0x63] ss:$2 sm:$0xff]  ;;  %6941 = vrot.lane.b32.xlu0 %v6886_v15, %s14135_s24  ;;  %v6918_v61 = vld [vmem:[#allocation5 + $0x73] ss:$2 sm:$0x7]  ;;  %v7254_v15 = vld [vmem:[%s14105_s7 + $0x1c8] sm:$0xff] }
 0x76b   : > { %6971 = vrot.lane.b32.xlu1 %v6916_v58, %s14135_s24  ;;  %6973 = vrot.lane.b32.xlu2 %v6918_v61, %s14135_s24  ;;  %v7286_v58 = vld [vmem:[%s14105_s7 + $0x2c8] sm:$0xff]  ;;  %v6902_v7 = vld [vmem:[#allocation5 + $0x72] ss:$2 sm:$0x7] }
 0x76c   : > { %7728 = vmatpush.msra.mxu2 %v7254_v15  ;;  %7768 = vmatpush.msra.mxu1 %v7286_v58  ;;  %v7302_v15 = vld [vmem:[%s14105_s7 + $0x348] sm:$0xff] }
 0x76d   : > { %v7334_v58 = vld [vmem:[%s14105_s7 + $0x448] sm:$0xff] }
 0x772   : > { %6963 = vrot.lane.b32.xlu0 %v6908_v30, %s14135_s24  ;;  %v7205_v30 = vld [vmem:[%s14105_s7 + $0x40] sm:$0xff] }
 0x773   : > { %7669 = vmatpush.msrb.mxu3 %v7205_v30  ;;  %v7221_v30 = vld [vmem:[%s14105_s7 + $0xc0] sm:$0xff] }
 0x775   : > { %7670 = vmatpush.msrb.mxu3 %v7204_v44  ;;  %v7218_v44 = vld [vmem:[%s14105_s7 + $0xa8] sm:$0xff] }
 0x777   : > { %7671 = vmatpush.msrb.mxu3 %v7203_v25 }
 0x779   : > { %7672 = vmatpush.msrb.mxu3 %v7202_v1  ;;  %v7329_v1 = vld [vmem:[%s14105_s7 + $0x420] sm:$0xff] }
 0x77a   : > { %6969 = vrot.lane.b32.xlu0 %v6914_v26, %s14135_s24  ;;  %v7253_v26 = vld [vmem:[%s14105_s7 + $0x1c0] sm:$0xff]  ;;  %s323_s24 = sand.u32 1, %s9400_s10  }
 0x77b   : > { %7729 = vmatpush.msra.mxu2 %v7253_v26  ;;  %v7301_v26 = vld [vmem:[%s14105_s7 + $0x340] sm:$0xff]  ;;  %s324_s16 = scalar_lea.vmem [#allocation8], %s323_s24  ;;  %s8245_s29 = scalar_lea.sflag [#allocation9], %s323_s24 }
 0x77c   : > { %s8255_s25 = sshll.u32 %s324_s16, 4  ;;  %s8256_s25 = int_to_ptr.vmem [resolvable:$true] %s8255_s25 }
 0x77d   : > { %7730 = vmatpush.msra.mxu2 %v7252_v6  ;;  %v7298_v6 = vld [vmem:[%s14105_s7 + $0x328] sm:$0xff] }
 0x77f   : > { %7731 = vmatpush.msra.mxu2 %v7251_v43 }
 0x781   : > { %v12710_v4 = vpop.f32.mrf.mxu3  ;;  %7732 = vmatpush.msra.mxu2 %v7250_v54 }
 0x789   : > { %v6938_v22 = vpop.permute.xlu1 %6937  ;;  %v12712_v20 = vpop.f32.mrf.mxu3 }
 0x78a   : > { %v6988_v46 = vsel %vm6258_vm5, %v6866_v11, %v6938_v22  ;;  %v7285_v22 = vld [vmem:[%s14105_s7 + $0x2c0] sm:$0xff] }
 0x78b   : > { %7066 = vmatmul.f32.gmra.mxu3 %v6988_v46  ;;  %v6898_v11 = vld [vmem:[#allocation5 + $0x52] ss:$2 sm:$0xff]  ;;  %7769 = vmatpush.msra.mxu1 %v7285_v22 }
 0x78c   : > { %v7333_v22 = vld [vmem:[%s14105_s7 + $0x440] sm:$0xff] }
 0x78d   : > { %7770 = vmatpush.msra.mxu1 %v7284_v3  ;;  %v7330_v3 = vld [vmem:[%s14105_s7 + $0x428] sm:$0xff] }
 0x78f   : > { %7771 = vmatpush.msra.mxu1 %v7283_v49  ;;  %v7297_v49 = vld [vmem:[%s14105_s7 + $0x320] sm:$0xff] }
 0x791   : > { %v6940_v13 = vpop.permute.xlu2 %6939  ;;  %v6960_v59 = vpop.permute.xlu1 %6959  ;;  %7772 = vmatpush.msra.mxu1 %v7282_v28  ;;  %v7216_v28 = vld [vmem:[%s14105_s7 + $0x98] sm:$0xff] }
 0x792   : > { %v6989_v12 = vsel %vm6258_vm5, %v6868_v60, %v6940_v13  ;;  %v6991_v8 = vsel %vm6258_vm5, %v6888_v39, %v6960_v59  ;;  %v6900_v60 = vld [vmem:[#allocation5 + $0x62] ss:$2 sm:$0xff] }
 0x793   : > { %7069 = vmatmul.f32.gmra.mxu3 %v6989_v12  ;;  %v7281_v59 = vld [vmem:[%s14105_s7 + $0x2a0] sm:$0xff]  ;;  %v7200_v39 = vld [vmem:[%s14105_s7 + $0x18] sm:$0xff] }
 0x794   : > { %7773 = vmatpush.msra.mxu1 %v7281_v59  ;;  %v7215_v59 = vld [vmem:[%s14105_s7 + $0x90] sm:$0xff] }
 0x799   : > { %v6962_v23 = vpop.permute.xlu2 %6961  ;;  %v6966_v21 = vpop.permute.xlu1 %6965 }
 0x79a   : > { %v6992_v47 = vsel %vm6258_vm5, %v6890_v48, %v6962_v23  ;;  %v6994_v10 = vsel %vm6258_vm5, %v6894_v45, %v6966_v21  ;;  %v7280_v23 = vld [vmem:[%s14105_s7 + $0x298] sm:$0xff]  ;;  %v7199_v48 = vld [vmem:[%s14105_s7 + $0x10] sm:$0xff]  ;;  %v7246_v21 = vld [vmem:[%s14105_s7 + $0x188] sm:$0xff] }
 0x79b   : > { %7774 = vmatpush.msra.mxu1 %v7280_v23  ;;  %v7278_v45 = vld [vmem:[%s14105_s7 + $0x288] sm:$0xff] }
 0x7a1   : > { %v6968_v5 = vpop.permute.xlu2 %6967 }
 0x7a2   : > { %v6995_v62 = vsel %vm6258_vm5, %v6896_v33, %v6968_v5  ;;  %v7306_v5 = vld [vmem:[%s14105_s7 + $0x368] sm:$0xff]  ;;  %v7305_v33 = vld [vmem:[%s14105_s7 + $0x360] sm:$0xff] }
 0x7c5   : > { %v6974_v24 = vpop.permute.xlu2 %6973 }
 0x7c6   : > { %v6998_v14 = vsel %vm6258_vm5, %v6902_v7, %v6974_v24  ;;  %v7299_v24 = vld [vmem:[%s14105_s7 + $0x330] sm:$0xff] }
 0x7c7   : > { %v7331_v7 = vld [vmem:[%s14105_s7 + $0x430] sm:$0xff] }
 0x7dc   : > { %v6942_v2 = vpop.permute.xlu0 %6941 }
 0x7dd   : > { %v6990_v57 = vsel %vm6258_vm5, %v6870_v35, %v6942_v2  ;;  %v6972_v13 = vpop.permute.xlu1 %6971  ;;  %v7201_v2 = vld [vmem:[%s14105_s7 + $0x20] sm:$0xff] }
 0x7de   : > { %7072 = vmatmul.f32.gmra.mxu3 %v6990_v57  ;;  %v6997_v12 = vsel %vm6258_vm5, %v6900_v60, %v6972_v13  ;;  %v7249_v35 = vld [vmem:[%s14105_s7 + $0x1a0] sm:$0xff]  ;;  %v12747_v57 = vpop.f32.mrf.mxu3  ;;  %v7300_v13 = vld [vmem:[%s14105_s7 + $0x338] sm:$0xff] }
 0x7df   : > { %7673 = vmatpush.msrb.mxu3 %v7201_v2  ;;  %7733 = vmatpush.msra.mxu2 %v7249_v35  ;;  %v7332_v60 = vld [vmem:[%s14105_s7 + $0x438] sm:$0xff] }
 0x7e0   : > { %v7296_v2 = vld [vmem:[%s14105_s7 + $0x318] sm:$0xff] }
 0x7e1   : > { %7674 = vmatpush.msrb.mxu3 %v7200_v39  ;;  %v7328_v35 = vld [vmem:[%s14105_s7 + $0x418] sm:$0xff]  ;;  %v7295_v39 = vld [vmem:[%s14105_s7 + $0x310] sm:$0xff] }
 0x7e3   : > { %7675 = vmatpush.msrb.mxu3 %v7199_v48  ;;  %v7214_v48 = vld [vmem:[%s14105_s7 + $0x88] sm:$0xff] }
 0x7e4   : > { %v6964_v38 = vpop.permute.xlu0 %6963 }
 0x7e5   : > { %v6993_v17 = vsel %vm6258_vm5, %v6892_v0, %v6964_v38  ;;  %v7279_v38 = vld [vmem:[%s14105_s7 + $0x290] sm:$0xff] }
 0x7e6   : > { %7092 = vmatmul.f32.vlgmr.msra.gmra.mxu3 %v6991_v8  ;;  %v7248_v8 = vld [vmem:[%s14105_s7 + $0x198] sm:$0xff]  ;;  %7775 = vmatpush.msra.mxu1 %v7279_v38  ;;  %v7326_v38 = vld [vmem:[%s14105_s7 + $0x408] sm:$0xff] }
 0x7e7   : > { %7734 = vmatpush.msra.mxu2 %v7248_v8  ;;  %v7327_v8 = vld [vmem:[%s14105_s7 + $0x410] sm:$0xff] }
 0x7e8   : > { %7776 = vmatpush.msra.mxu1 %v7278_v45  ;;  %v7293_v45 = vld [vmem:[%s14105_s7 + $0x300] sm:$0xff] }
 0x7ea   : > { %7777 = vmatpush.msra.mxu1 %v7277_v50 }
 0x7ec   : > { %v6970_v61 = vpop.permute.xlu0 %6969  ;;  %7822 = vmatpush.msrb.mxu1 %v7340_v34 }
 0x7ed   : > { %v6996_v46 = vsel %vm6258_vm5, %v6898_v11, %v6970_v61  ;;  %v12869_v11 = vld [vmem:[%s14104_s6] ss:$0 sm:$0xff] }
 0x7ee   : > { %7095 = vmatmul.f32.gmra.mxu3 %v6992_v47  ;;  %v7247_v47 = vld [vmem:[%s14105_s7 + $0x190] sm:$0xff]  ;;  %7823 = vmatpush.msrb.mxu1 %v7339_v31  ;;  %v7056_v23 = vadd.f32 %v12869_v11, %v12708_v52  ;;  %v7213_v52 = vld [vmem:[%s14105_s7 + $0x80] sm:$0xff]  ;;  %v7059_v50 = vadd.f32 %v12869_v11, %v12710_v4 }
 0x7ef   : > { %7735 = vmatpush.msra.mxu2 %v7247_v47  ;;  %v7294_v47 = vld [vmem:[%s14105_s7 + $0x308] sm:$0xff] }
 0x7f0   : > { %7824 = vmatpush.msrb.mxu1 %v7338_v27 }
 0x7f1   : > { %7736 = vmatpush.msra.mxu2 %v7246_v21 }
 0x7f2   : > { %7825 = vmatpush.msrb.mxu1 %v7337_v37 }
 0x7f3   : > { %7737 = vmatpush.msra.mxu2 %v7245_v63 }
 0x7f4   : > { %7826 = vmatpush.msrb.mxu1 %v7336_v29 }
 0x7f5   : > { %7782 = vmatpush.msrb.mxu2 %v7308_v32 }
 0x7f6   : > { %7098 = vmatmul.f32.gmra.mxu3 %v6993_v17  ;;  %v7198_v17 = vld [vmem:[%s14105_s7 + $0x8] sm:$0xff]  ;;  %7827 = vmatpush.msrb.mxu1 %v7335_v51 }
 0x7f7   : > { %7676 = vmatpush.msrb.mxu3 %v7198_v17  ;;  %7783 = vmatpush.msrb.mxu2 %v7307_v56 }
 0x7f8   : > { %7828 = vmatpush.msrb.mxu1 %v7334_v58  ;;  %v7243_v58 = vld [vmem:[%s14105_s7 + $0x170] sm:$0xff] }
 0x7f9   : > { %7784 = vmatpush.msrb.mxu2 %v7306_v5 }
 0x7fa   : > { %7829 = vmatpush.msrb.mxu1 %v7333_v22 }
 0x7fb   : > { %7785 = vmatpush.msrb.mxu2 %v7305_v33 }
 0x7fc   : > { %7830 = vmatpush.msrb.mxu1 %v7332_v60  ;;  %v7242_v60 = vld [vmem:[%s14105_s7 + $0x168] sm:$0xff] }
 0x7fe   : > { %7101 = vmatmul.f32.gmra.mxu3 %v6994_v10  ;;  %v7197_v10 = vld [vmem:[%s14105_s7] sm:$0xff]  ;;  %7831 = vmatpush.msrb.mxu1 %v7331_v7 }
 0x7ff   : > { %7677 = vmatpush.msrb.mxu3 %v7197_v10  ;;  %v7325_v10 = vld [vmem:[%s14105_s7 + $0x400] sm:$0xff] }
 0x800   : > { %7832 = vmatpush.msrb.mxu1 %v7330_v3  ;;  %v7353_v3 = vld [vmem:[%s14105_s7 + $0x4e0] sm:$0xff] }
 0x801   : > { %7682 = vmatpush.msra.mxu3 %v7228_v53 }
 0x802   : > { %7833 = vmatpush.msrb.mxu1 %v7329_v1 }
 0x803   : > { %7683 = vmatpush.msra.mxu3 %v7227_v42  ;;  %v7062_v42 = vadd.f32 %v12869_v11, %v12712_v20  ;;  %v7244_v20 = vld [vmem:[%s14105_s7 + $0x178] sm:$0xff] }
 0x804   : > { %7834 = vmatpush.msrb.mxu1 %v7328_v35 }
 0x805   : > { %7684 = vmatpush.msra.mxu3 %v7226_v19 }
 0x806   : > { %7104 = vmatmul.f32.gmra.mxu3 %v6995_v62  ;;  %v7304_v62 = vld [vmem:[%s14105_s7 + $0x358] sm:$0xff]  ;;  %7835 = vmatpush.msrb.mxu1 %v7327_v8  ;;  %v7383_v8 = vld [vmem:[%s14105_s7 + $0x5d0] sm:$0xff] }
 0x807   : > { %7685 = vmatpush.msra.mxu3 %v7225_v9  ;;  %7786 = vmatpush.msrb.mxu2 %v7304_v62 }
 0x808   : > { %7836 = vmatpush.msrb.mxu1 %v7326_v38  ;;  %v7382_v38 = vld [vmem:[%s14105_s7 + $0x5c8] sm:$0xff] }
 0x809   : > { %7686 = vmatpush.msra.mxu3 %v7224_v40  ;;  %7787 = vmatpush.msrb.mxu2 %v7303_v41  ;;  %v7065_v40 = vadd.f32 %v12869_v11, %v12747_v57  ;;  %v7388_v41 = vld [vmem:[%s14105_s7 + $0x5f8] sm:$0xff] }
 0x80a   : > { %7837 = vmatpush.msrb.mxu1 %v7325_v10 }
 0x80b   : > { %7687 = vmatpush.msra.mxu3 %v7223_v16  ;;  %7788 = vmatpush.msrb.mxu2 %v7302_v15  ;;  %v7356_v16 = vld [vmem:[%s14105_s7 + $0x4f8] sm:$0xff] }
 0x80d   : > { %7688 = vmatpush.msra.mxu3 %v7222_v55  ;;  %7789 = vmatpush.msrb.mxu2 %v7301_v26 }
 0x80e   : > { %7107 = vmatmul.f32.gmra.mxu3 %v6996_v46  ;;  %v12770_v0 = vpop.f32.mrf.mxu3  ;;  %v7220_v46 = vld [vmem:[%s14105_s7 + $0xb8] sm:$0xff] }
 0x80f   : > { %7689 = vmatpush.msra.mxu3 %v7221_v30  ;;  %7790 = vmatpush.msrb.mxu2 %v7300_v13  ;;  %v7068_v15 = vadd.f32 %v12869_v11, %v12770_v0  ;;  %v7355_v30 = vld [vmem:[%s14105_s7 + $0x4f0] sm:$0xff] }
 0x810   : > { %v7387_v13 = vld [vmem:[%s14105_s7 + $0x5f0] sm:$0xff] }
 0x811   : > { %7690 = vmatpush.msra.mxu3 %v7220_v46  ;;  %7791 = vmatpush.msrb.mxu2 %v7299_v24  ;;  %v7386_v24 = vld [vmem:[%s14105_s7 + $0x5e8] sm:$0xff] }
 0x813   : > { %7792 = vmatpush.msrb.mxu2 %v7298_v6 }
 0x815   : > { %7793 = vmatpush.msrb.mxu2 %v7297_v49  ;;  %v7352_v49 = vld [vmem:[%s14105_s7 + $0x4d8] sm:$0xff] }
 0x816   : > { %7110 = vmatmul.f32.gmra.mxu3 %v6997_v12  ;;  %v12817_v18 = vpop.f32.mrf.mxu3  ;;  %v7219_v12 = vld [vmem:[%s14105_s7 + $0xb0] sm:$0xff] }
 0x817   : > { %7691 = vmatpush.msra.mxu3 %v7219_v12  ;;  %7794 = vmatpush.msrb.mxu2 %v7296_v2  ;;  %v7354_v12 = vld [vmem:[%s14105_s7 + $0x4e8] sm:$0xff]  ;;  %v7071_v1 = vadd.f32 %v12869_v11, %v12817_v18  ;;  %v7384_v2 = vld [vmem:[%s14105_s7 + $0x5d8] sm:$0xff]  ;;  %v7351_v18 = vld [vmem:[%s14105_s7 + $0x4d0] sm:$0xff] }
 0x819   : > { %7692 = vmatpush.msra.mxu3 %v7218_v44  ;;  %7795 = vmatpush.msrb.mxu2 %v7295_v39  ;;  %v7241_v44 = vld [vmem:[%s14105_s7 + $0x160] sm:$0xff] }
 0x81b   : > { %7796 = vmatpush.msrb.mxu2 %v7294_v47 }
 0x81d   : > { %7797 = vmatpush.msrb.mxu2 %v7293_v45  ;;  %v7236_v45 = vld [vmem:[%s14105_s7 + $0x138] sm:$0xff] }
 0x81e   : > { %7113 = vmatmul.f32.gmra.mxu3 %v6998_v14  ;;  %v7053_v14 = vadd.f32 %v12869_v11, %v12706_v36  ;;  %v7217_v36 = vld [vmem:[%s14105_s7 + $0xa0] sm:$0xff] }
 0x81f   : > { %7693 = vmatpush.msra.mxu3 %v7217_v36  ;;  %v7240_v36 = vld [vmem:[%s14105_s7 + $0x158] sm:$0xff] }
 0x821   : > { %7694 = vmatpush.msra.mxu3 %v7216_v28 }
 0x823   : > { %7695 = vmatpush.msra.mxu3 %v7215_v59  ;;  %v7239_v59 = vld [vmem:[%s14105_s7 + $0x150] sm:$0xff] }
 0x825   : > { %7696 = vmatpush.msra.mxu3 %v7214_v48  ;;  %v7350_v48 = vld [vmem:[%s14105_s7 + $0x4c8] sm:$0xff] }
 0x827   : > { %7697 = vmatpush.msra.mxu3 %v7213_v52  ;;  %v7381_v52 = vld [vmem:[%s14105_s7 + $0x5c0] sm:$0xff] }
 0x861   : > { %v12855_v61 = vpop.f32.mrf.mxu3 }
 0x869   : > { %v7093_v25 = vpop.f32.mrf.mxu3 }
 0x86a   : > { %v7094_v43 = vadd.f32 %v7093_v25, %v7053_v14  ;;  %v7385_v25 = vld [vmem:[%s14105_s7 + $0x5e0] sm:$0xff] }
 0x86c   : > { %v7117_v54 = vmax.f32 %v7094_v43, 0.0 }
 0x86e   : > { %7125 = vst [vmem:[#allocation6] sm:$0xff] %v7117_v54 }
 0x871   : > { %v7096_v17 = vpop.f32.mrf.mxu3 }
 0x872   : > { %v7097_v21 = vadd.f32 %v7096_v17, %v7056_v23  ;;  %v7238_v23 = vld [vmem:[%s14105_s7 + $0x148] sm:$0xff]  ;;  %v7237_v17 = vld [vmem:[%s14105_s7 + $0x140] sm:$0xff] }
 0x874   : > { %v7118_v63 = vmax.f32 %v7097_v21, 0.0  ;;  %v7349_v21 = vld [vmem:[%s14105_s7 + $0x4c0] sm:$0xff] }
 0x876   : > { %7126 = vst [vmem:[#allocation6 + $0x8] sm:$0xff] %v7118_v63  ;;  %v7074_v63 = vadd.f32 %v12869_v11, %v12855_v61  ;;  %v7347_v11 = vld [vmem:[%s14105_s7 + $0x4b0] sm:$0xff] }
 0x879   : > { %v7099_v53 = vpop.f32.mrf.mxu3 }
 0x87a   : > { %v7100_v32 = vadd.f32 %v7099_v53, %v7059_v50  ;;  %v7348_v50 = vld [vmem:[%s14105_s7 + $0x4b8] sm:$0xff] }
 0x87b   : > { %v7380_v53 = vld [vmem:[%s14105_s7 + $0x5b8] sm:$0xff] }
 0x87c   : > { %v7119_v34 = vmax.f32 %v7100_v32, 0.0 }
 0x87d   : > { %v7133_v56 = vld [vmem:[#allocation6] ss:$2 sm:$0xff]  ;;  %v7141_v31 = vld [vmem:[#allocation6 + $0x1] ss:$2 sm:$0xff] }
 0x87e   : > { %7127 = vst [vmem:[#allocation6 + $0x10] sm:$0xff] %v7119_v34  ;;  %v7156_v27 = vmax.f32 %v7133_v56, %v7141_v31  ;;  %v7235_v56 = vld [vmem:[%s14105_s7 + $0x130] sm:$0xff] }
 0x87f   : > { %v7379_v31 = vld [vmem:[%s14105_s7 + $0x5b0] sm:$0xff] }
 0x881   : > { %v7102_v19 = vpop.f32.mrf.mxu3 }
 0x882   : > { %v7103_v5 = vadd.f32 %v7102_v19, %v7062_v42  ;;  %v7234_v19 = vld [vmem:[%s14105_s7 + $0x128] sm:$0xff] }
 0x884   : > { %v7120_v9 = vmax.f32 %v7103_v5, 0.0 }
 0x885   : > { %v7149_v33 = vld [vmem:[#allocation6 + $0x2] ss:$2 sm:$0xff] }
 0x886   : > { %v7160_v37 = vmax.f32 %v7156_v27, %v7149_v33  ;;  %7128 = vst [vmem:[#allocation6 + $0x18] sm:$0xff] %v7120_v9  ;;  %v7346_v9 = vld [vmem:[%s14105_s7 + $0x4a8] sm:$0xff] }
 0x887   : > { %v7378_v33 = vld [vmem:[%s14105_s7 + $0x5a8] sm:$0xff] }
 0x888   : > { %7164 = vst [vmem:[#allocation7] sm:$0xff] %v7160_v37 }
 0x889   : > { %v7105_v4 = vpop.f32.mrf.mxu3 }
 0x88a   : > { %v7106_v62 = vadd.f32 %v7105_v4, %v7065_v40  ;;  %v7233_v40 = vld [vmem:[%s14105_s7 + $0x120] sm:$0xff] }
 0x88c   : > { %v7121_v29 = vmax.f32 %v7106_v62, 0.0  ;;  %v7345_v62 = vld [vmem:[%s14105_s7 + $0x4a0] sm:$0xff] }
 0x88d   : > { %v7135_v26 = vld [vmem:[#allocation6 + $0x10] ss:$2 sm:$0xff]  ;;  %v7143_v22 = vld [vmem:[#allocation6 + $0x11] ss:$2 sm:$0xff] }
 0x88e   : > { %7129 = vst [vmem:[#allocation6 + $0x20] sm:$0xff] %v7121_v29  ;;  %v7157_v7 = vmax.f32 %v7135_v26, %v7143_v22  ;;  %v7377_v29 = vld [vmem:[%s14105_s7 + $0x5a0] sm:$0xff] }
 0x88f   : > { %v7168_v51 = vld [vmem:[#allocation7] sm:$0x1]  ;;  %v7171_v55 = vld [vmem:[#allocation7 + $0x3] sm:$0x1]  ;;  %v7173_v57 = vld [vmem:[#allocation7 + $0x5] sm:$0x1] }
 0x890   : > { %7678 = vmatmul.f32.vlgmr.msrb.gmra.mxu3 %v7168_v51  ;;  %7738 = vmatmul.f32.vlgmr.msra.gmra.mxu2 %v7171_v55  ;;  %v7169_v54 = vld [vmem:[#allocation7 + $0x1] sm:$0x1]  ;;  %v7174_v28 = vld [vmem:[#allocation7 + $0x6] sm:$0x1]  ;;  %v7231_v51 = vld [vmem:[%s14105_s7 + $0x110] sm:$0xff] }
 0x891   : > { %7702 = vmatpush.msrb.mxu3 %v7244_v20  ;;  %7778 = vmatmul.f32.vlgmr.msra.gmra.mxu1 %v7173_v57  ;;  %v7108_v46 = vpop.f32.mrf.mxu3  ;;  %v7232_v20 = vld [vmem:[%s14105_s7 + $0x118] sm:$0xff]  ;;  %v7343_v55 = vld [vmem:[%s14105_s7 + $0x490] sm:$0xff]  ;;  %v7229_v26 = vld [vmem:[%s14105_s7 + $0x100] sm:$0xff] }
 0x892   : > { %7842 = vmatpush.msra.mxu2 %v7356_v16  ;;  %7882 = vmatpush.msra.mxu1 %v7388_v41  ;;  %v7109_v0 = vadd.f32 %v7108_v46, %v7068_v15  ;;  %v7344_v16 = vld [vmem:[%s14105_s7 + $0x498] sm:$0xff]  ;;  %v7375_v57 = vld [vmem:[%s14105_s7 + $0x590] sm:$0xff]  ;;  %v7230_v15 = vld [vmem:[%s14105_s7 + $0x108] sm:$0xff] }
 0x893   : > { %7703 = vmatpush.msrb.mxu3 %v7243_v58  ;;  %v7376_v41 = vld [vmem:[%s14105_s7 + $0x598] sm:$0xff]  ;;  %v7342_v58 = vld [vmem:[%s14105_s7 + $0x488] sm:$0xff] }
 0x894   : > { %v7122_v14 = vmax.f32 %v7109_v0, 0.0  ;;  %7843 = vmatpush.msra.mxu2 %v7355_v30  ;;  %7883 = vmatpush.msra.mxu1 %v7387_v13  ;;  %v7374_v30 = vld [vmem:[%s14105_s7 + $0x588] sm:$0xff]  ;;  %v7341_v0 = vld [vmem:[%s14105_s7 + $0x480] sm:$0xff] }
 0x895   : > { %v7151_v6 = vld [vmem:[#allocation6 + $0x12] ss:$2 sm:$0xff]  ;;  %7704 = vmatpush.msrb.mxu3 %v7242_v60 }
 0x896   : > { %v7161_v43 = vmax.f32 %v7157_v7, %v7151_v6  ;;  %7130 = vst [vmem:[#allocation6 + $0x28] sm:$0xff] %v7122_v14  ;;  %7844 = vmatpush.msra.mxu2 %v7354_v12  ;;  %7884 = vmatpush.msra.mxu1 %v7386_v24  ;;  %v7373_v60 = vld [vmem:[%s14105_s7 + $0x580] sm:$0xff]  ;;  %v7170_v7 = vld [vmem:[#allocation7 + $0x2] sm:$0x1]  ;;  %v7276_v14 = vld [vmem:[%s14105_s7 + $0x278] sm:$0xff] }
 0x897   : > { %7705 = vmatpush.msrb.mxu3 %v7241_v44  ;;  %v7404_v6 = vld [vmem:[%s14105_s7 + $0x678] sm:$0xff] }
 0x898   : > { %7165 = vst [vmem:[#allocation7 + $0x8] sm:$0xff] %v7161_v43  ;;  %7845 = vmatpush.msra.mxu2 %v7353_v3  ;;  %7885 = vmatpush.msra.mxu1 %v7385_v25  ;;  %v7436_v3 = vld [vmem:[%s14105_s7 + $0x778] sm:$0xff]  ;;  %v7275_v43 = vld [vmem:[%s14105_s7 + $0x270] sm:$0xff] }
 0x899   : > { %7698 = vmatmul.f32.vlgmr.msra.gmra.mxu3 %v7169_v54  ;;  %7798 = vmatmul.f32.vlgmr.msrb.gmra.mxu2 %v7174_v28  ;;  %v7111_v35 = vpop.f32.mrf.mxu3  ;;  %v7402_v54 = vld [vmem:[%s14105_s7 + $0x668] sm:$0xff] }
 0x89a   : > { %7706 = vmatpush.msrb.mxu3 %v7240_v36  ;;  %7846 = vmatpush.msra.mxu2 %v7352_v49  ;;  %v7112_v39 = vadd.f32 %v7111_v35, %v7071_v1  ;;  %v7403_v36 = vld [vmem:[%s14105_s7 + $0x670] sm:$0xff]  ;;  %v7274_v1 = vld [vmem:[%s14105_s7 + $0x268] sm:$0xff]  ;;  %v7401_v35 = vld [vmem:[%s14105_s7 + $0x660] sm:$0xff] }
 0x89b   : > { %7886 = vmatpush.msra.mxu1 %v7384_v2  ;;  %v7435_v49 = vld [vmem:[%s14105_s7 + $0x770] sm:$0xff]  ;;  %v7434_v28 = vld [vmem:[%s14105_s7 + $0x768] sm:$0xff]  ;;  %v7273_v2 = vld [vmem:[%s14105_s7 + $0x260] sm:$0xff] }
 0x89c   : > { %v7123_v47 = vmax.f32 %v7112_v39, 0.0  ;;  %7707 = vmatpush.msrb.mxu3 %v7239_v59  ;;  %7847 = vmatpush.msra.mxu2 %v7351_v18  ;;  %v7433_v59 = vld [vmem:[%s14105_s7 + $0x760] sm:$0xff]  ;;  %v7272_v18 = vld [vmem:[%s14105_s7 + $0x258] sm:$0xff] }
 0x89d   : > { %7887 = vmatpush.msra.mxu1 %v7383_v8  ;;  %v7137_v32 = vld [vmem:[#allocation6 + $0x20] ss:$2 sm:$0xff]  ;;  %v7145_v34 = vld [vmem:[#allocation6 + $0x21] ss:$2 sm:$0xff]  ;;  %v7400_v39 = vld [vmem:[%s14105_s7 + $0x658] sm:$0xff] }
 0x89e   : > { %7131 = vst [vmem:[#allocation6 + $0x30] sm:$0xff] %v7123_v47  ;;  %7708 = vmatpush.msrb.mxu3 %v7238_v23  ;;  %7848 = vmatpush.msra.mxu2 %v7350_v48  ;;  %v7158_v5 = vmax.f32 %v7137_v32, %v7145_v34  ;;  %v7432_v8 = vld [vmem:[%s14105_s7 + $0x758] sm:$0xff]  ;;  %v7271_v23 = vld [vmem:[%s14105_s7 + $0x250] sm:$0xff] }
 0x89f   : > { %7888 = vmatpush.msra.mxu1 %v7382_v38  ;;  %v7176_v10 = vld [vmem:[#allocation7 + $0x8] sm:$0x1]  ;;  %v7177_v44 = vld [vmem:[#allocation7 + $0x9] sm:$0x1]  ;;  %v7179_v25 = vld [vmem:[#allocation7 + $0xb] sm:$0x1] }
 0x8a0   : > { %7709 = vmatpush.msrb.mxu3 %v7237_v17  ;;  %7849 = vmatpush.msra.mxu2 %v7349_v21  ;;  %v7399_v48 = vld [vmem:[%s14105_s7 + $0x650] sm:$0xff]  ;;  %v7270_v38 = vld [vmem:[%s14105_s7 + $0x248] sm:$0xff] }
 0x8a1   : > { %7889 = vmatpush.msra.mxu1 %v7381_v52  ;;  %v7114_v42 = vpop.f32.mrf.mxu3  ;;  %v7431_v47 = vld [vmem:[%s14105_s7 + $0x750] sm:$0xff]  ;;  %v7398_v17 = vld [vmem:[%s14105_s7 + $0x648] sm:$0xff]  ;;  %v7269_v52 = vld [vmem:[%s14105_s7 + $0x240] sm:$0xff] }
 0x8a2   : > { %7710 = vmatpush.msrb.mxu3 %v7236_v45  ;;  %7838 = vmatmul.f32.vlgmr.msrb.gmra.mxu1 %v7176_v10  ;;  %v7115_v61 = vadd.f32 %v7114_v42, %v7074_v63  ;;  %v7430_v21 = vld [vmem:[%s14105_s7 + $0x748] sm:$0xff]  ;;  %v7397_v45 = vld [vmem:[%s14105_s7 + $0x640] sm:$0xff]  ;;  %v7268_v63 = vld [vmem:[%s14105_s7 + $0x238] sm:$0xff] }
 0x8a3   : > { %7850 = vmatpush.msra.mxu2 %v7348_v50  ;;  %7890 = vmatpush.msra.mxu1 %v7380_v53  ;;  %v7429_v10 = vld [vmem:[%s14105_s7 + $0x740] sm:$0xff]  ;;  %v7396_v50 = vld [vmem:[%s14105_s7 + $0x638] sm:$0xff]  ;;  %v7267_v32 = vld [vmem:[%s14105_s7 + $0x230] sm:$0xff] }
 0x8a4   : > { %v7124_v27 = vmax.f32 %v7115_v61, 0.0  ;;  %7711 = vmatpush.msrb.mxu3 %v7235_v56  ;;  %v7428_v53 = vld [vmem:[%s14105_s7 + $0x738] sm:$0xff]  ;;  %v7395_v34 = vld [vmem:[%s14105_s7 + $0x630] sm:$0xff]  ;;  %v7266_v56 = vld [vmem:[%s14105_s7 + $0x228] sm:$0xff] }
 0x8a5   : > { %v7153_v37 = vld [vmem:[#allocation6 + $0x22] ss:$2 sm:$0xff]  ;;  %7851 = vmatpush.msra.mxu2 %v7347_v11  ;;  %7891 = vmatpush.msra.mxu1 %v7379_v31  ;;  %v7265_v31 = vld [vmem:[%s14105_s7 + $0x220] sm:$0xff] }
 0x8a6   : > { %v7162_v4 = vmax.f32 %v7158_v5, %v7153_v37  ;;  %7132 = vst [vmem:[#allocation6 + $0x38] sm:$0x7] %v7124_v27  ;;  %7712 = vmatpush.msrb.mxu3 %v7234_v19  ;;  %v7427_v42 = vld [vmem:[%s14105_s7 + $0x730] sm:$0xff]  ;;  %v7394_v61 = vld [vmem:[%s14105_s7 + $0x628] sm:$0xff]  ;;  %v7393_v19 = vld [vmem:[%s14105_s7 + $0x620] sm:$0xff] }
 0x8a7   : > { %7852 = vmatpush.msra.mxu2 %v7346_v9  ;;  %7892 = vmatpush.msra.mxu1 %v7378_v33  ;;  %v7426_v11 = vld [vmem:[%s14105_s7 + $0x728] sm:$0xff]  ;;  %v7425_v5 = vld [vmem:[%s14105_s7 + $0x720] sm:$0xff]  ;;  %v7264_v27 = vld [vmem:[%s14105_s7 + $0x218] sm:$0xff] }
 0x8a8   : > { %7166 = vst [vmem:[#allocation7 + $0x10] sm:$0xff] %v7162_v4  ;;  %7713 = vmatpush.msrb.mxu3 %v7233_v40  ;;  %v7392_v9 = vld [vmem:[%s14105_s7 + $0x618] sm:$0xff]  ;;  %v7263_v37 = vld [vmem:[%s14105_s7 + $0x210] sm:$0xff] }
 0x8a9   : > { %7853 = vmatpush.msra.mxu2 %v7345_v62  ;;  %7893 = vmatpush.msra.mxu1 %v7377_v29  ;;  %v7424_v33 = vld [vmem:[%s14105_s7 + $0x718] sm:$0xff]  ;;  %v7391_v40 = vld [vmem:[%s14105_s7 + $0x610] sm:$0xff]  ;;  %v7262_v62 = vld [vmem:[%s14105_s7 + $0x208] sm:$0xff] }
 0x8aa   : > { %7714 = vmatpush.msrb.mxu3 %v7232_v20  ;;  %v7423_v4 = vld [vmem:[%s14105_s7 + $0x710] sm:$0xff]  ;;  %v7390_v29 = vld [vmem:[%s14105_s7 + $0x608] sm:$0xff] }
 0x8ab   : > { %7854 = vmatpush.msra.mxu2 %v7344_v16  ;;  %7894 = vmatpush.msra.mxu1 %v7376_v41  ;;  %v7422_v20 = vld [vmem:[%s14105_s7 + $0x708] sm:$0xff]  ;;  %v7261_v16 = vld [vmem:[%s14105_s7 + $0x200] sm:$0xff] }
 0x8ac   : > { %7715 = vmatpush.msrb.mxu3 %v7231_v51  ;;  %v7389_v41 = vld [vmem:[%s14105_s7 + $0x600] sm:$0xff] }
 0x8ad   : > { %v7139_v22 = vld [vmem:[#allocation6 + $0x30] ss:$2 sm:$0x1f]  ;;  %v7147_v46 = vld [vmem:[#allocation6 + $0x31] ss:$2 sm:$0x1f]  ;;  %7855 = vmatpush.msra.mxu2 %v7343_v55  ;;  %7895 = vmatpush.msra.mxu1 %v7375_v57 }
 0x8ae   : > { %v7159_v13 = vmax.f32 %v7139_v22, %v7147_v46  ;;  %7716 = vmatpush.msrb.mxu3 %v7230_v15  ;;  %v7155_v12 = vld [vmem:[#allocation6 + $0x32] ss:$2 sm:$0x1f]  ;;  %v7172_v55 = vld [vmem:[#allocation7 + $0x4] sm:$0x1]  ;;  %v7323_v22 = vld [vmem:[%s14105_s7 + $0x3f0] sm:$0xff] }
 0x8af   : > { %7856 = vmatpush.msra.mxu2 %v7342_v58  ;;  %7896 = vmatpush.msra.mxu1 %v7374_v30  ;;  %v7421_v51 = vld [vmem:[%s14105_s7 + $0x700] sm:$0xff]  ;;  %v7324_v57 = vld [vmem:[%s14105_s7 + $0x3f8] sm:$0xff]  ;;  %v7180_v15 = vld [vmem:[#allocation7 + $0xc] sm:$0x1] }
 0x8b0   : > { %v7163_v24 = vmax.f32 %v7159_v13, %v7155_v12  ;;  %7717 = vmatpush.msrb.mxu3 %v7229_v26  ;;  %v7452_v58 = vld [vmem:[%s14105_s7 + $0x7f8] sm:$0xff]  ;;  %v7182_v26 = vld [vmem:[#allocation7 + $0xe] sm:$0x1]  ;;  %v7482_v12 = vld [vmem:[%s14105_s7 + $0x8e8] sm:$0xff] }
 0x8b1   : > { %7857 = vmatpush.msra.mxu2 %v7341_v0  ;;  %7897 = vmatpush.msra.mxu1 %v7373_v60  ;;  %v7484_v30 = vld [vmem:[%s14105_s7 + $0x8f8] sm:$0xff]  ;;  %v7451_v46 = vld [vmem:[%s14105_s7 + $0x7f0] sm:$0xff]  ;;  %v7322_v0 = vld [vmem:[%s14105_s7 + $0x3e8] sm:$0xff] }
 0x8b2   : > { %7167 = vst [vmem:[#allocation7 + $0x18] sm:$0x1f] %v7163_v24  ;;  %7718 = vmatmul.f32.vlgmr.msrb.gmra.mxu3 %v7170_v7  ;;  %7858 = vmatmul.f32.vlgmr.msra.gmra.mxu2 %v7177_v44  ;;  %v7483_v13 = vld [vmem:[%s14105_s7 + $0x8f0] sm:$0xff]  ;;  %v7450_v60 = vld [vmem:[%s14105_s7 + $0x7e8] sm:$0xff]  ;;  %v7321_v24 = vld [vmem:[%s14105_s7 + $0x3e0] sm:$0xff] }
 0x8b3   : > { %7742 = vmatpush.msra.mxu3 %v7276_v14  ;;  %7898 = vmatmul.f32.vlgmr.msra.gmra.mxu1 %v7179_v25  ;;  %v7449_v7 = vld [vmem:[%s14105_s7 + $0x7e0] sm:$0xff]  ;;  %v7320_v44 = vld [vmem:[%s14105_s7 + $0x3d8] sm:$0xff]  ;;  %v7319_v25 = vld [vmem:[%s14105_s7 + $0x3d0] sm:$0xff] }
 0x8b4   : > { %7902 = vmatpush.msrb.mxu2 %v7404_v6  ;;  %7942 = vmatpush.msrb.mxu1 %v7436_v3  ;;  %v7481_v14 = vld [vmem:[%s14105_s7 + $0x8e0] sm:$0xff]  ;;  %v7448_v6 = vld [vmem:[%s14105_s7 + $0x7d8] sm:$0xff] }
 0x8b5   : > { %7743 = vmatpush.msra.mxu3 %v7275_v43  ;;  %v7480_v3 = vld [vmem:[%s14105_s7 + $0x8d8] sm:$0xff]  ;;  %v7447_v43 = vld [vmem:[%s14105_s7 + $0x7d0] sm:$0xff] }
 0x8b6   : > { %7903 = vmatpush.msrb.mxu2 %v7403_v36  ;;  %7943 = vmatpush.msrb.mxu1 %v7435_v49  ;;  %v7479_v36 = vld [vmem:[%s14105_s7 + $0x8d0] sm:$0xff]  ;;  %v7318_v49 = vld [vmem:[%s14105_s7 + $0x3c8] sm:$0xff] }
 0x8b7   : > { %7744 = vmatpush.msra.mxu3 %v7274_v1  ;;  %v7446_v1 = vld [vmem:[%s14105_s7 + $0x7c8] sm:$0xff] }
 0x8b8   : > { %7904 = vmatpush.msrb.mxu2 %v7402_v54  ;;  %7944 = vmatpush.msrb.mxu1 %v7434_v28  ;;  %v7478_v54 = vld [vmem:[%s14105_s7 + $0x8c8] sm:$0xff]  ;;  %v7317_v28 = vld [vmem:[%s14105_s7 + $0x3c0] sm:$0xff] }
 0x8b9   : > { %7745 = vmatpush.msra.mxu3 %v7273_v2  ;;  %v7445_v2 = vld [vmem:[%s14105_s7 + $0x7c0] sm:$0xff] }
 0x8ba   : > { %7905 = vmatpush.msrb.mxu2 %v7401_v35  ;;  %7945 = vmatpush.msrb.mxu1 %v7433_v59  ;;  %v7477_v35 = vld [vmem:[%s14105_s7 + $0x8c0] sm:$0xff]  ;;  %v7316_v59 = vld [vmem:[%s14105_s7 + $0x3b8] sm:$0xff] }
 0x8bb   : > { %7746 = vmatpush.msra.mxu3 %v7272_v18  ;;  %v7444_v18 = vld [vmem:[%s14105_s7 + $0x7b8] sm:$0xff] }
 0x8bc   : > { %7906 = vmatpush.msrb.mxu2 %v7400_v39  ;;  %7946 = vmatpush.msrb.mxu1 %v7432_v8  ;;  %v7476_v39 = vld [vmem:[%s14105_s7 + $0x8b8] sm:$0xff]  ;;  %v7315_v8 = vld [vmem:[%s14105_s7 + $0x3b0] sm:$0xff] }
 0x8bd   : > { %7747 = vmatpush.msra.mxu3 %v7271_v23  ;;  %v7443_v23 = vld [vmem:[%s14105_s7 + $0x7b0] sm:$0xff] }
 0x8be   : > { %7907 = vmatpush.msrb.mxu2 %v7399_v48  ;;  %7947 = vmatpush.msrb.mxu1 %v7431_v47  ;;  %v7475_v48 = vld [vmem:[%s14105_s7 + $0x8b0] sm:$0xff]  ;;  %v7314_v47 = vld [vmem:[%s14105_s7 + $0x3a8] sm:$0xff] }
 0x8bf   : > { %7748 = vmatpush.msra.mxu3 %v7270_v38  ;;  %v7442_v38 = vld [vmem:[%s14105_s7 + $0x7a8] sm:$0xff] }
 0x8c0   : > { %7908 = vmatpush.msrb.mxu2 %v7398_v17  ;;  %7948 = vmatpush.msrb.mxu1 %v7430_v21  ;;  %v7474_v17 = vld [vmem:[%s14105_s7 + $0x8a8] sm:$0xff]  ;;  %v7313_v21 = vld [vmem:[%s14105_s7 + $0x3a0] sm:$0xff] }
 0x8c1   : > { %7749 = vmatpush.msra.mxu3 %v7269_v52  ;;  %v7441_v52 = vld [vmem:[%s14105_s7 + $0x7a0] sm:$0xff] }
 0x8c2   : > { %7909 = vmatpush.msrb.mxu2 %v7397_v45  ;;  %7949 = vmatpush.msrb.mxu1 %v7429_v10  ;;  %v7473_v45 = vld [vmem:[%s14105_s7 + $0x8a0] sm:$0xff]  ;;  %v7312_v10 = vld [vmem:[%s14105_s7 + $0x398] sm:$0xff] }
 0x8c3   : > { %7750 = vmatpush.msra.mxu3 %v7268_v63  ;;  %v7440_v63 = vld [vmem:[%s14105_s7 + $0x798] sm:$0xff] }
 0x8c4   : > { %7910 = vmatpush.msrb.mxu2 %v7396_v50  ;;  %7950 = vmatpush.msrb.mxu1 %v7428_v53  ;;  %v7472_v50 = vld [vmem:[%s14105_s7 + $0x898] sm:$0xff]  ;;  %v7311_v53 = vld [vmem:[%s14105_s7 + $0x390] sm:$0xff] }
 0x8c5   : > { %7751 = vmatpush.msra.mxu3 %v7267_v32  ;;  %v7439_v32 = vld [vmem:[%s14105_s7 + $0x790] sm:$0xff] }
 0x8c6   : > { %7911 = vmatpush.msrb.mxu2 %v7395_v34  ;;  %7951 = vmatpush.msrb.mxu1 %v7427_v42  ;;  %v7471_v34 = vld [vmem:[%s14105_s7 + $0x890] sm:$0xff]  ;;  %v7310_v42 = vld [vmem:[%s14105_s7 + $0x388] sm:$0xff] }
 0x8c7   : > { %7752 = vmatpush.msra.mxu3 %v7266_v56  ;;  %v7438_v56 = vld [vmem:[%s14105_s7 + $0x788] sm:$0xff] }
 0x8c8   : > { %7912 = vmatpush.msrb.mxu2 %v7394_v61  ;;  %7952 = vmatpush.msrb.mxu1 %v7426_v11  ;;  %v7470_v61 = vld [vmem:[%s14105_s7 + $0x888] sm:$0xff]  ;;  %v7309_v11 = vld [vmem:[%s14105_s7 + $0x380] sm:$0xff] }
 0x8c9   : > { %7753 = vmatpush.msra.mxu3 %v7265_v31  ;;  %v7437_v31 = vld [vmem:[%s14105_s7 + $0x780] sm:$0xff] }
 0x8ca   : > { %7913 = vmatpush.msrb.mxu2 %v7393_v19  ;;  %7953 = vmatpush.msrb.mxu1 %v7425_v5  ;;  %v7469_v19 = vld [vmem:[%s14105_s7 + $0x880] sm:$0xff]  ;;  %v7175_v5 = vld [vmem:[#allocation7 + $0x7] sm:$0x1] }
 0x8cb   : > { %7754 = vmatpush.msra.mxu3 %v7264_v27  ;;  %v7372_v27 = vld [vmem:[%s14105_s7 + $0x578] sm:$0xff] }
 0x8cc   : > { %7914 = vmatpush.msrb.mxu2 %v7392_v9  ;;  %7954 = vmatpush.msrb.mxu1 %v7424_v33  ;;  %v7183_v9 = vld [vmem:[#allocation7 + $0xf] sm:$0x1]  ;;  %v7500_v33 = vld [vmem:[%s14105_s7 + $0x978] sm:$0xff] }
 0x8cd   : > { %7755 = vmatpush.msra.mxu3 %v7263_v37  ;;  %v7532_v37 = vld [vmem:[%s14105_s7 + $0xa78] sm:$0xff] }
 0x8ce   : > { %7915 = vmatpush.msrb.mxu2 %v7391_v40  ;;  %7955 = vmatpush.msrb.mxu1 %v7423_v4  ;;  %v7185_v40 = vld [vmem:[#allocation7 + $0x11] sm:$0x1]  ;;  %v7371_v4 = vld [vmem:[%s14105_s7 + $0x570] sm:$0xff] }
 0x8cf   : > { %7756 = vmatpush.msra.mxu3 %v7262_v62  ;;  %v7499_v62 = vld [vmem:[%s14105_s7 + $0x970] sm:$0xff] }
 0x8d0   : > { %7916 = vmatpush.msrb.mxu2 %v7390_v29  ;;  %7956 = vmatpush.msrb.mxu1 %v7422_v20  ;;  %v7531_v29 = vld [vmem:[%s14105_s7 + $0xa70] sm:$0xff]  ;;  %v7370_v20 = vld [vmem:[%s14105_s7 + $0x568] sm:$0xff] }
 0x8d1   : > { %7757 = vmatpush.msra.mxu3 %v7261_v16  ;;  %v7498_v16 = vld [vmem:[%s14105_s7 + $0x968] sm:$0xff] }
 0x8d2   : > { %7917 = vmatpush.msrb.mxu2 %v7389_v41  ;;  %7957 = vmatpush.msrb.mxu1 %v7421_v51  ;;  %v7530_v41 = vld [vmem:[%s14105_s7 + $0xa68] sm:$0xff]  ;;  %v7369_v51 = vld [vmem:[%s14105_s7 + $0x560] sm:$0xff] }
 0x8d3   : > { %7758 = vmatmul.f32.vlgmr.msra.gmra.mxu3 %v7172_v55  ;;  %7918 = vmatmul.f32.vlgmr.msrb.gmra.mxu2 %v7180_v15  ;;  %v7497_v55 = vld [vmem:[%s14105_s7 + $0x960] sm:$0xff]  ;;  %v7368_v15 = vld [vmem:[%s14105_s7 + $0x558] sm:$0xff] }
 0x8d4   : > { %7802 = vmatpush.msrb.mxu3 %v7324_v57  ;;  %7958 = vmatmul.f32.vlgmr.msrb.gmra.mxu1 %v7182_v26  ;;  %v7529_v57 = vld [vmem:[%s14105_s7 + $0xa60] sm:$0xff]  ;;  %v7367_v26 = vld [vmem:[%s14105_s7 + $0x550] sm:$0xff] }
 0x8d5   : > { %7962 = vmatpush.msra.mxu2 %v7452_v58  ;;  %8002 = vmatpush.msra.mxu1 %v7484_v30  ;;  %v7496_v58 = vld [vmem:[%s14105_s7 + $0x958] sm:$0xff] }
 0x8d6   : > { %7803 = vmatpush.msrb.mxu3 %v7323_v22  ;;  %v7528_v30 = vld [vmem:[%s14105_s7 + $0xa58] sm:$0xff]  ;;  %v7495_v22 = vld [vmem:[%s14105_s7 + $0x950] sm:$0xff] }
 0x8d7   : > { %7963 = vmatpush.msra.mxu2 %v7451_v46  ;;  %8003 = vmatpush.msra.mxu1 %v7483_v13  ;;  %v7527_v46 = vld [vmem:[%s14105_s7 + $0xa50] sm:$0xff]  ;;  %v7366_v13 = vld [vmem:[%s14105_s7 + $0x548] sm:$0xff] }
 0x8d8   : > { %7804 = vmatpush.msrb.mxu3 %v7322_v0  ;;  %v7494_v0 = vld [vmem:[%s14105_s7 + $0x948] sm:$0xff] }
 0x8d9   : > { %7964 = vmatpush.msra.mxu2 %v7450_v60  ;;  %8004 = vmatpush.msra.mxu1 %v7482_v12  ;;  %v7526_v60 = vld [vmem:[%s14105_s7 + $0xa48] sm:$0xff]  ;;  %v7365_v12 = vld [vmem:[%s14105_s7 + $0x540] sm:$0xff] }
 0x8da   : > { %7805 = vmatpush.msrb.mxu3 %v7321_v24  ;;  %v7493_v24 = vld [vmem:[%s14105_s7 + $0x940] sm:$0xff] }
 0x8db   : > { %7965 = vmatpush.msra.mxu2 %v7449_v7  ;;  %8005 = vmatpush.msra.mxu1 %v7481_v14  ;;  %v7525_v7 = vld [vmem:[%s14105_s7 + $0xa40] sm:$0xff]  ;;  %v7364_v14 = vld [vmem:[%s14105_s7 + $0x538] sm:$0xff] }
 0x8dc   : > { %7806 = vmatpush.msrb.mxu3 %v7320_v44  ;;  %v7492_v44 = vld [vmem:[%s14105_s7 + $0x938] sm:$0xff] }
 0x8dd   : > { %7966 = vmatpush.msra.mxu2 %v7448_v6  ;;  %8006 = vmatpush.msra.mxu1 %v7480_v3  ;;  %v7524_v6 = vld [vmem:[%s14105_s7 + $0xa38] sm:$0xff]  ;;  %v7363_v3 = vld [vmem:[%s14105_s7 + $0x530] sm:$0xff] }
 0x8de   : > { %7807 = vmatpush.msrb.mxu3 %v7319_v25  ;;  %v7491_v25 = vld [vmem:[%s14105_s7 + $0x930] sm:$0xff] }
 0x8df   : > { %7967 = vmatpush.msra.mxu2 %v7447_v43  ;;  %8007 = vmatpush.msra.mxu1 %v7479_v36  ;;  %v7523_v43 = vld [vmem:[%s14105_s7 + $0xa30] sm:$0xff]  ;;  %v7362_v36 = vld [vmem:[%s14105_s7 + $0x528] sm:$0xff] }
 0x8e0   : > { %7808 = vmatpush.msrb.mxu3 %v7318_v49  ;;  %v7490_v49 = vld [vmem:[%s14105_s7 + $0x928] sm:$0xff] }
 0x8e1   : > { %7968 = vmatpush.msra.mxu2 %v7446_v1  ;;  %8008 = vmatpush.msra.mxu1 %v7478_v54  ;;  %v7522_v1 = vld [vmem:[%s14105_s7 + $0xa28] sm:$0xff]  ;;  %v7361_v54 = vld [vmem:[%s14105_s7 + $0x520] sm:$0xff] }
 0x8e2   : > { %7809 = vmatpush.msrb.mxu3 %v7317_v28  ;;  %v7489_v28 = vld [vmem:[%s14105_s7 + $0x920] sm:$0xff] }
 0x8e3   : > { %7969 = vmatpush.msra.mxu2 %v7445_v2  ;;  %8009 = vmatpush.msra.mxu1 %v7477_v35  ;;  %v7521_v2 = vld [vmem:[%s14105_s7 + $0xa20] sm:$0xff]  ;;  %v7360_v35 = vld [vmem:[%s14105_s7 + $0x518] sm:$0xff] }
 0x8e4   : > { %7810 = vmatpush.msrb.mxu3 %v7316_v59  ;;  %v7488_v59 = vld [vmem:[%s14105_s7 + $0x918] sm:$0xff] }
 0x8e5   : > { %7970 = vmatpush.msra.mxu2 %v7444_v18  ;;  %8010 = vmatpush.msra.mxu1 %v7476_v39  ;;  %v7520_v18 = vld [vmem:[%s14105_s7 + $0xa18] sm:$0xff]  ;;  %v7359_v39 = vld [vmem:[%s14105_s7 + $0x510] sm:$0xff] }
 0x8e6   : > { %7811 = vmatpush.msrb.mxu3 %v7315_v8  ;;  %v7487_v8 = vld [vmem:[%s14105_s7 + $0x910] sm:$0xff] }
 0x8e7   : > { %7971 = vmatpush.msra.mxu2 %v7443_v23  ;;  %8011 = vmatpush.msra.mxu1 %v7475_v48  ;;  %v7519_v23 = vld [vmem:[%s14105_s7 + $0xa10] sm:$0xff]  ;;  %v7358_v48 = vld [vmem:[%s14105_s7 + $0x508] sm:$0xff] }
 0x8e8   : > { %7812 = vmatpush.msrb.mxu3 %v7314_v47  ;;  %v7486_v47 = vld [vmem:[%s14105_s7 + $0x908] sm:$0xff] }
 0x8e9   : > { %7972 = vmatpush.msra.mxu2 %v7442_v38  ;;  %8012 = vmatpush.msra.mxu1 %v7474_v17  ;;  %v7518_v38 = vld [vmem:[%s14105_s7 + $0xa08] sm:$0xff]  ;;  %v7357_v17 = vld [vmem:[%s14105_s7 + $0x500] sm:$0xff] }
 0x8ea   : > { %7813 = vmatpush.msrb.mxu3 %v7313_v21  ;;  %v7485_v21 = vld [vmem:[%s14105_s7 + $0x900] sm:$0xff] }
 0x8eb   : > { %7973 = vmatpush.msra.mxu2 %v7441_v52  ;;  %8013 = vmatpush.msra.mxu1 %v7473_v45  ;;  %v7517_v52 = vld [vmem:[%s14105_s7 + $0xa00] sm:$0xff]  ;;  %v7178_v45 = vld [vmem:[#allocation7 + $0xa] sm:$0x1] }
 0x8ec   : > { %7814 = vmatpush.msrb.mxu3 %v7312_v10  ;;  %v7420_v10 = vld [vmem:[%s14105_s7 + $0x6f8] sm:$0xff] }
 0x8ed   : > { %7974 = vmatpush.msra.mxu2 %v7440_v63  ;;  %8014 = vmatpush.msra.mxu1 %v7472_v50  ;;  %v7186_v63 = vld [vmem:[#allocation7 + $0x12] sm:$0x1] }
 0x8ee   : > { %7815 = vmatpush.msrb.mxu3 %v7311_v53  ;;  %v7548_v50 = vld [vmem:[%s14105_s7 + $0xaf8] sm:$0xff] }
 0x8ef   : > { %7975 = vmatpush.msra.mxu2 %v7439_v32  ;;  %8015 = vmatpush.msra.mxu1 %v7471_v34  ;;  %v7580_v53 = vld [vmem:[%s14105_s7 + $0xbf8] sm:$0xff]  ;;  %v7419_v34 = vld [vmem:[%s14105_s7 + $0x6f0] sm:$0xff] }
 0x8f0   : > { %7816 = vmatpush.msrb.mxu3 %v7310_v42  ;;  %v7188_v32 = vld [vmem:[#allocation7 + $0x14] sm:$0x1]  ;;  %v7547_v42 = vld [vmem:[%s14105_s7 + $0xaf0] sm:$0xff] }
 0x8f1   : > { %7976 = vmatpush.msra.mxu2 %v7438_v56  ;;  %8016 = vmatpush.msra.mxu1 %v7470_v61  ;;  %v7579_v56 = vld [vmem:[%s14105_s7 + $0xbf0] sm:$0xff]  ;;  %v7418_v61 = vld [vmem:[%s14105_s7 + $0x6e8] sm:$0xff] }
 0x8f2   : > { %7817 = vmatpush.msrb.mxu3 %v7309_v11  ;;  %v7546_v11 = vld [vmem:[%s14105_s7 + $0xae8] sm:$0xff] }
 0x8f3   : > { %7977 = vmatpush.msra.mxu2 %v7437_v31  ;;  %8017 = vmatpush.msra.mxu1 %v7469_v19  ;;  %v7578_v31 = vld [vmem:[%s14105_s7 + $0xbe8] sm:$0xff]  ;;  %v7417_v19 = vld [vmem:[%s14105_s7 + $0x6e0] sm:$0xff] }
 0x8f4   : > { %7818 = vmatmul.f32.vlgmr.msrb.gmra.mxu3 %v7175_v5  ;;  %7978 = vmatmul.f32.vlgmr.msra.gmra.mxu2 %v7183_v9  ;;  %v7545_v5 = vld [vmem:[%s14105_s7 + $0xae0] sm:$0xff]  ;;  %v7416_v9 = vld [vmem:[%s14105_s7 + $0x6d8] sm:$0xff] }
 0x8f5   : > { %7862 = vmatpush.msra.mxu3 %v7372_v27  ;;  %8018 = vmatmul.f32.vlgmr.msra.gmra.mxu1 %v7185_v40  ;;  %v7577_v27 = vld [vmem:[%s14105_s7 + $0xbe0] sm:$0xff]  ;;  %v7415_v40 = vld [vmem:[%s14105_s7 + $0x6d0] sm:$0xff] }
 0x8f6   : > { %8022 = vmatpush.msrb.mxu2 %v7500_v33  ;;  %8062 = vmatpush.msrb.mxu1 %v7532_v37  ;;  %v7544_v33 = vld [vmem:[%s14105_s7 + $0xad8] sm:$0xff] }
 0x8f7   : > { %7863 = vmatpush.msra.mxu3 %v7371_v4  ;;  %v7576_v37 = vld [vmem:[%s14105_s7 + $0xbd8] sm:$0xff]  ;;  %v7543_v4 = vld [vmem:[%s14105_s7 + $0xad0] sm:$0xff] }
 0x8f8   : > { %8023 = vmatpush.msrb.mxu2 %v7499_v62  ;;  %8063 = vmatpush.msrb.mxu1 %v7531_v29  ;;  %v7575_v62 = vld [vmem:[%s14105_s7 + $0xbd0] sm:$0xff]  ;;  %v7414_v29 = vld [vmem:[%s14105_s7 + $0x6c8] sm:$0xff] }
 0x8f9   : > { %7864 = vmatpush.msra.mxu3 %v7370_v20  ;;  %v7542_v20 = vld [vmem:[%s14105_s7 + $0xac8] sm:$0xff] }
 0x8fa   : > { %8024 = vmatpush.msrb.mxu2 %v7498_v16  ;;  %8064 = vmatpush.msrb.mxu1 %v7530_v41  ;;  %v7574_v16 = vld [vmem:[%s14105_s7 + $0xbc8] sm:$0xff]  ;;  %v7413_v41 = vld [vmem:[%s14105_s7 + $0x6c0] sm:$0xff] }
 0x8fb   : > { %7865 = vmatpush.msra.mxu3 %v7369_v51  ;;  %v7541_v51 = vld [vmem:[%s14105_s7 + $0xac0] sm:$0xff] }
 0x8fc   : > { %8025 = vmatpush.msrb.mxu2 %v7497_v55  ;;  %8065 = vmatpush.msrb.mxu1 %v7529_v57  ;;  %v7573_v55 = vld [vmem:[%s14105_s7 + $0xbc0] sm:$0xff]  ;;  %v7412_v57 = vld [vmem:[%s14105_s7 + $0x6b8] sm:$0xff] }
 0x8fd   : > { %7866 = vmatpush.msra.mxu3 %v7368_v15  ;;  %v7540_v15 = vld [vmem:[%s14105_s7 + $0xab8] sm:$0xff] }
 0x8fe   : > { %8026 = vmatpush.msrb.mxu2 %v7496_v58  ;;  %8066 = vmatpush.msrb.mxu1 %v7528_v30  ;;  %v7572_v58 = vld [vmem:[%s14105_s7 + $0xbb8] sm:$0xff]  ;;  %v7411_v30 = vld [vmem:[%s14105_s7 + $0x6b0] sm:$0xff] }
 0x8ff   : > { %7867 = vmatpush.msra.mxu3 %v7367_v26  ;;  %v7539_v26 = vld [vmem:[%s14105_s7 + $0xab0] sm:$0xff] }
 0x900   : > { %8027 = vmatpush.msrb.mxu2 %v7495_v22  ;;  %8067 = vmatpush.msrb.mxu1 %v7527_v46  ;;  %v7571_v22 = vld [vmem:[%s14105_s7 + $0xbb0] sm:$0xff]  ;;  %v7410_v46 = vld [vmem:[%s14105_s7 + $0x6a8] sm:$0xff] }
 0x901   : > { %7868 = vmatpush.msra.mxu3 %v7366_v13  ;;  %v7538_v13 = vld [vmem:[%s14105_s7 + $0xaa8] sm:$0xff] }
 0x902   : > { %8028 = vmatpush.msrb.mxu2 %v7494_v0  ;;  %8068 = vmatpush.msrb.mxu1 %v7526_v60  ;;  %v7570_v0 = vld [vmem:[%s14105_s7 + $0xba8] sm:$0xff]  ;;  %v7409_v60 = vld [vmem:[%s14105_s7 + $0x6a0] sm:$0xff] }
 0x903   : > { %7869 = vmatpush.msra.mxu3 %v7365_v12  ;;  %v7537_v12 = vld [vmem:[%s14105_s7 + $0xaa0] sm:$0xff] }
 0x904   : > { %8029 = vmatpush.msrb.mxu2 %v7493_v24  ;;  %8069 = vmatpush.msrb.mxu1 %v7525_v7  ;;  %v7569_v24 = vld [vmem:[%s14105_s7 + $0xba0] sm:$0xff]  ;;  %v7408_v7 = vld [vmem:[%s14105_s7 + $0x698] sm:$0xff] }
 0x905   : > { %7870 = vmatpush.msra.mxu3 %v7364_v14  ;;  %v7536_v14 = vld [vmem:[%s14105_s7 + $0xa98] sm:$0xff] }
 0x906   : > { %8030 = vmatpush.msrb.mxu2 %v7492_v44  ;;  %8070 = vmatpush.msrb.mxu1 %v7524_v6  ;;  %v7568_v44 = vld [vmem:[%s14105_s7 + $0xb98] sm:$0xff]  ;;  %v7407_v6 = vld [vmem:[%s14105_s7 + $0x690] sm:$0xff] }
 0x907   : > { %7871 = vmatpush.msra.mxu3 %v7363_v3  ;;  %v7535_v3 = vld [vmem:[%s14105_s7 + $0xa90] sm:$0xff] }
 0x908   : > { %8031 = vmatpush.msrb.mxu2 %v7491_v25  ;;  %8071 = vmatpush.msrb.mxu1 %v7523_v43  ;;  %v7567_v25 = vld [vmem:[%s14105_s7 + $0xb90] sm:$0xff]  ;;  %v7406_v43 = vld [vmem:[%s14105_s7 + $0x688] sm:$0xff] }
 0x909   : > { %7872 = vmatpush.msra.mxu3 %v7362_v36  ;;  %v7534_v36 = vld [vmem:[%s14105_s7 + $0xa88] sm:$0xff] }
 0x90a   : > { %8032 = vmatpush.msrb.mxu2 %v7490_v49  ;;  %8072 = vmatpush.msrb.mxu1 %v7522_v1  ;;  %v7566_v49 = vld [vmem:[%s14105_s7 + $0xb88] sm:$0xff]  ;;  %v7405_v1 = vld [vmem:[%s14105_s7 + $0x680] sm:$0xff] }
 0x90b   : > { %7873 = vmatpush.msra.mxu3 %v7361_v54  ;;  %v7533_v54 = vld [vmem:[%s14105_s7 + $0xa80] sm:$0xff] }
 0x90c   : > { %8033 = vmatpush.msrb.mxu2 %v7489_v28  ;;  %8073 = vmatpush.msrb.mxu1 %v7521_v2  ;;  %v7565_v28 = vld [vmem:[%s14105_s7 + $0xb80] sm:$0xff]  ;;  %v7181_v2 = vld [vmem:[#allocation7 + $0xd] sm:$0x1] }
 0x90d   : > { %7874 = vmatpush.msra.mxu3 %v7360_v35  ;;  %v7468_v35 = vld [vmem:[%s14105_s7 + $0x878] sm:$0xff] }
 0x90e   : > { %8034 = vmatpush.msrb.mxu2 %v7488_v59  ;;  %8074 = vmatpush.msrb.mxu1 %v7520_v18  ;;  %v7189_v59 = vld [vmem:[#allocation7 + $0x15] sm:$0x1] }
 0x90f   : > { %7875 = vmatpush.msra.mxu3 %v7359_v39  ;;  %v7596_v18 = vld [vmem:[%s14105_s7 + $0xc78] sm:$0xff] }
 0x910   : > { %8035 = vmatpush.msrb.mxu2 %v7487_v8  ;;  %8075 = vmatpush.msrb.mxu1 %v7519_v23  ;;  %v7628_v39 = vld [vmem:[%s14105_s7 + $0xd78] sm:$0xff]  ;;  %v7467_v23 = vld [vmem:[%s14105_s7 + $0x870] sm:$0xff] }
 0x911   : > { %7876 = vmatpush.msra.mxu3 %v7358_v48  ;;  %v7191_v8 = vld [vmem:[#allocation7 + $0x17] sm:$0x1]  ;;  %v7595_v48 = vld [vmem:[%s14105_s7 + $0xc70] sm:$0xff] }
 0x912   : > { %8036 = vmatpush.msrb.mxu2 %v7486_v47  ;;  %8076 = vmatpush.msrb.mxu1 %v7518_v38  ;;  %v7627_v47 = vld [vmem:[%s14105_s7 + $0xd70] sm:$0xff]  ;;  %v7466_v38 = vld [vmem:[%s14105_s7 + $0x868] sm:$0xff] }
 0x913   : > { %7877 = vmatpush.msra.mxu3 %v7357_v17  ;;  %v7594_v17 = vld [vmem:[%s14105_s7 + $0xc68] sm:$0xff] }
 0x914   : > { %8037 = vmatpush.msrb.mxu2 %v7485_v21  ;;  %8077 = vmatpush.msrb.mxu1 %v7517_v52  ;;  %v7626_v21 = vld [vmem:[%s14105_s7 + $0xd68] sm:$0xff]  ;;  %v7465_v52 = vld [vmem:[%s14105_s7 + $0x860] sm:$0xff] }
 0x915   : > { %7878 = vmatmul.f32.vlgmr.msra.gmra.mxu3 %v7178_v45  ;;  %8038 = vmatmul.f32.vlgmr.msrb.gmra.mxu2 %v7186_v63  ;;  %v7593_v45 = vld [vmem:[%s14105_s7 + $0xc60] sm:$0xff]  ;;  %v7464_v63 = vld [vmem:[%s14105_s7 + $0x858] sm:$0xff] }
 0x916   : > { %7922 = vmatpush.msrb.mxu3 %v7420_v10  ;;  %8078 = vmatmul.f32.vlgmr.msrb.gmra.mxu1 %v7188_v32  ;;  %v7625_v10 = vld [vmem:[%s14105_s7 + $0xd60] sm:$0xff]  ;;  %v7463_v32 = vld [vmem:[%s14105_s7 + $0x850] sm:$0xff] }
 0x917   : > { %8082 = vmatpush.msra.mxu2 %v7548_v50  ;;  %8122 = vmatpush.msra.mxu1 %v7580_v53  ;;  %v7592_v50 = vld [vmem:[%s14105_s7 + $0xc58] sm:$0xff] }
 0x918   : > { %7923 = vmatpush.msrb.mxu3 %v7419_v34  ;;  %v7624_v53 = vld [vmem:[%s14105_s7 + $0xd58] sm:$0xff]  ;;  %v7591_v34 = vld [vmem:[%s14105_s7 + $0xc50] sm:$0xff] }
 0x919   : > { %8083 = vmatpush.msra.mxu2 %v7547_v42  ;;  %8123 = vmatpush.msra.mxu1 %v7579_v56  ;;  %v7623_v42 = vld [vmem:[%s14105_s7 + $0xd50] sm:$0xff]  ;;  %v7462_v56 = vld [vmem:[%s14105_s7 + $0x848] sm:$0xff] }
 0x91a   : > { %7924 = vmatpush.msrb.mxu3 %v7418_v61  ;;  %v7590_v61 = vld [vmem:[%s14105_s7 + $0xc48] sm:$0xff] }
 0x91b   : > { %8084 = vmatpush.msra.mxu2 %v7546_v11  ;;  %8124 = vmatpush.msra.mxu1 %v7578_v31  ;;  %v7622_v11 = vld [vmem:[%s14105_s7 + $0xd48] sm:$0xff]  ;;  %v7461_v31 = vld [vmem:[%s14105_s7 + $0x840] sm:$0xff] }
 0x91c   : > { %7925 = vmatpush.msrb.mxu3 %v7417_v19  ;;  %v7589_v19 = vld [vmem:[%s14105_s7 + $0xc40] sm:$0xff] }
 0x91d   : > { %8085 = vmatpush.msra.mxu2 %v7545_v5  ;;  %8125 = vmatpush.msra.mxu1 %v7577_v27  ;;  %v7621_v5 = vld [vmem:[%s14105_s7 + $0xd40] sm:$0xff]  ;;  %v7460_v27 = vld [vmem:[%s14105_s7 + $0x838] sm:$0xff] }
 0x91e   : > { %7926 = vmatpush.msrb.mxu3 %v7416_v9  ;;  %v7588_v9 = vld [vmem:[%s14105_s7 + $0xc38] sm:$0xff] }
 0x91f   : > { %8086 = vmatpush.msra.mxu2 %v7544_v33  ;;  %8126 = vmatpush.msra.mxu1 %v7576_v37  ;;  %v7620_v33 = vld [vmem:[%s14105_s7 + $0xd38] sm:$0xff]  ;;  %v7459_v37 = vld [vmem:[%s14105_s7 + $0x830] sm:$0xff] }
 0x920   : > { %7927 = vmatpush.msrb.mxu3 %v7415_v40  ;;  %v7587_v40 = vld [vmem:[%s14105_s7 + $0xc30] sm:$0xff] }
 0x921   : > { %8087 = vmatpush.msra.mxu2 %v7543_v4  ;;  %8127 = vmatpush.msra.mxu1 %v7575_v62  ;;  %v7619_v4 = vld [vmem:[%s14105_s7 + $0xd30] sm:$0xff]  ;;  %v7458_v62 = vld [vmem:[%s14105_s7 + $0x828] sm:$0xff] }
 0x922   : > { %7928 = vmatpush.msrb.mxu3 %v7414_v29  ;;  %v7586_v29 = vld [vmem:[%s14105_s7 + $0xc28] sm:$0xff] }
 0x923   : > { %8088 = vmatpush.msra.mxu2 %v7542_v20  ;;  %8128 = vmatpush.msra.mxu1 %v7574_v16  ;;  %v7618_v20 = vld [vmem:[%s14105_s7 + $0xd28] sm:$0xff]  ;;  %v7457_v16 = vld [vmem:[%s14105_s7 + $0x820] sm:$0xff] }
 0x924   : > { %7929 = vmatpush.msrb.mxu3 %v7413_v41  ;;  %v7585_v41 = vld [vmem:[%s14105_s7 + $0xc20] sm:$0xff] }
 0x925   : > { %8089 = vmatpush.msra.mxu2 %v7541_v51  ;;  %8129 = vmatpush.msra.mxu1 %v7573_v55  ;;  %v7617_v51 = vld [vmem:[%s14105_s7 + $0xd20] sm:$0xff]  ;;  %v7456_v55 = vld [vmem:[%s14105_s7 + $0x818] sm:$0xff] }
 0x926   : > { %7930 = vmatpush.msrb.mxu3 %v7412_v57  ;;  %v7584_v57 = vld [vmem:[%s14105_s7 + $0xc18] sm:$0xff] }
 0x927   : > { %8090 = vmatpush.msra.mxu2 %v7540_v15  ;;  %8130 = vmatpush.msra.mxu1 %v7572_v58  ;;  %v7616_v15 = vld [vmem:[%s14105_s7 + $0xd18] sm:$0xff]  ;;  %v7455_v58 = vld [vmem:[%s14105_s7 + $0x810] sm:$0xff] }
 0x928   : > { %7931 = vmatpush.msrb.mxu3 %v7411_v30  ;;  %v7583_v30 = vld [vmem:[%s14105_s7 + $0xc10] sm:$0xff] }
 0x929   : > { %8091 = vmatpush.msra.mxu2 %v7539_v26  ;;  %8131 = vmatpush.msra.mxu1 %v7571_v22  ;;  %v7615_v26 = vld [vmem:[%s14105_s7 + $0xd10] sm:$0xff]  ;;  %v7454_v22 = vld [vmem:[%s14105_s7 + $0x808] sm:$0xff] }
 0x92a   : > { %7932 = vmatpush.msrb.mxu3 %v7410_v46  ;;  %v7582_v46 = vld [vmem:[%s14105_s7 + $0xc08] sm:$0xff] }
 0x92b   : > { %8092 = vmatpush.msra.mxu2 %v7538_v13  ;;  %8132 = vmatpush.msra.mxu1 %v7570_v0  ;;  %v7614_v13 = vld [vmem:[%s14105_s7 + $0xd08] sm:$0xff]  ;;  %v7453_v0 = vld [vmem:[%s14105_s7 + $0x800] sm:$0xff] }
 0x92c   : > { %7933 = vmatpush.msrb.mxu3 %v7409_v60  ;;  %v7581_v60 = vld [vmem:[%s14105_s7 + $0xc00] sm:$0xff] }
 0x92d   : > { %8093 = vmatpush.msra.mxu2 %v7537_v12  ;;  %8133 = vmatpush.msra.mxu1 %v7569_v24  ;;  %v7613_v12 = vld [vmem:[%s14105_s7 + $0xd00] sm:$0xff]  ;;  %v7516_v24 = vld [vmem:[%s14105_s7 + $0x9f8] sm:$0xff] }
 0x92e   : > { %7934 = vmatpush.msrb.mxu3 %v7408_v7  ;;  %v7184_v7 = vld [vmem:[#allocation7 + $0x10] sm:$0x1] }
 0x92f   : > { %8094 = vmatpush.msra.mxu2 %v7536_v14  ;;  %8134 = vmatpush.msra.mxu1 %v7568_v44  ;;  %v7192_v14 = vld [vmem:[#allocation7 + $0x18] sm:$0x1]  ;;  %v7644_v44 = vld [vmem:[%s14105_s7 + $0xdf8] sm:$0xff] }
 0x930   : > { %7935 = vmatpush.msrb.mxu3 %v7407_v6  ;;  %v7194_v6 = vld [vmem:[#allocation7 + $0x1a] sm:$0x1] }
 0x931   : > { %8095 = vmatpush.msra.mxu2 %v7535_v3  ;;  %8135 = vmatpush.msra.mxu1 %v7567_v25  ;;  %v7515_v3 = vld [vmem:[%s14105_s7 + $0x9f0] sm:$0xff] }
 0x932   : > { %7936 = vmatpush.msrb.mxu3 %v7406_v43  ;;  %v7643_v25 = vld [vmem:[%s14105_s7 + $0xdf0] sm:$0xff]  ;;  %v7514_v43 = vld [vmem:[%s14105_s7 + $0x9e8] sm:$0xff] }
 0x933   : > { %8096 = vmatpush.msra.mxu2 %v7534_v36  ;;  %8136 = vmatpush.msra.mxu1 %v7566_v49  ;;  %v7642_v36 = vld [vmem:[%s14105_s7 + $0xde8] sm:$0xff]  ;;  %v7513_v49 = vld [vmem:[%s14105_s7 + $0x9e0] sm:$0xff] }
 0x934   : > { %7937 = vmatpush.msrb.mxu3 %v7405_v1  ;;  %v7641_v1 = vld [vmem:[%s14105_s7 + $0xde0] sm:$0xff] }
 0x935   : > { %8097 = vmatpush.msra.mxu2 %v7533_v54  ;;  %8137 = vmatpush.msra.mxu1 %v7565_v28  ;;  %v7512_v54 = vld [vmem:[%s14105_s7 + $0x9d8] sm:$0xff] }
 0x936   : > { %7938 = vmatmul.f32.vlgmr.msrb.gmra.mxu3 %v7181_v2  ;;  %8098 = vmatmul.f32.vlgmr.msra.gmra.mxu2 %v7189_v59  ;;  %v7640_v28 = vld [vmem:[%s14105_s7 + $0xdd8] sm:$0xff]  ;;  %v7511_v2 = vld [vmem:[%s14105_s7 + $0x9d0] sm:$0xff]  ;;  %v7510_v59 = vld [vmem:[%s14105_s7 + $0x9c8] sm:$0xff] }
 0x937   : > { %7982 = vmatpush.msra.mxu3 %v7468_v35  ;;  %8138 = vmatmul.f32.vlgmr.msra.gmra.mxu1 %v7191_v8  ;;  %v7639_v35 = vld [vmem:[%s14105_s7 + $0xdd0] sm:$0xff]  ;;  %v7637_v8 = vld [vmem:[%s14105_s7 + $0xdc0] sm:$0xff] }
 0x938   : > { %8142 = vmatpush.msrb.mxu2 %v7596_v18  ;;  %8182 = vmatpush.msrb.mxu1 %v7628_v39  ;;  %v7638_v18 = vld [vmem:[%s14105_s7 + $0xdc8] sm:$0xff]  ;;  %v7509_v39 = vld [vmem:[%s14105_s7 + $0x9c0] sm:$0xff] }
 0x939   : > { %7983 = vmatpush.msra.mxu3 %v7467_v23  ;;  %v7508_v23 = vld [vmem:[%s14105_s7 + $0x9b8] sm:$0xff] }
 0x93a   : > { %8143 = vmatpush.msrb.mxu2 %v7595_v48  ;;  %8183 = vmatpush.msrb.mxu1 %v7627_v47  ;;  %v7636_v48 = vld [vmem:[%s14105_s7 + $0xdb8] sm:$0xff]  ;;  %v7507_v47 = vld [vmem:[%s14105_s7 + $0x9b0] sm:$0xff] }
 0x93b   : > { %7984 = vmatpush.msra.mxu3 %v7466_v38  ;;  %v7635_v38 = vld [vmem:[%s14105_s7 + $0xdb0] sm:$0xff] }
 0x93c   : > { %8144 = vmatpush.msrb.mxu2 %v7594_v17  ;;  %8184 = vmatpush.msrb.mxu1 %v7626_v21  ;;  %v7506_v17 = vld [vmem:[%s14105_s7 + $0x9a8] sm:$0xff] }
 0x93d   : > { %7985 = vmatpush.msra.mxu3 %v7465_v52  ;;  %v7634_v21 = vld [vmem:[%s14105_s7 + $0xda8] sm:$0xff]  ;;  %v7505_v52 = vld [vmem:[%s14105_s7 + $0x9a0] sm:$0xff] }
 0x93e   : > { %8145 = vmatpush.msrb.mxu2 %v7593_v45  ;;  %8185 = vmatpush.msrb.mxu1 %v7625_v10  ;;  %v7633_v45 = vld [vmem:[%s14105_s7 + $0xda0] sm:$0xff]  ;;  %v7504_v10 = vld [vmem:[%s14105_s7 + $0x998] sm:$0xff] }
 0x93f   : > { %7986 = vmatpush.msra.mxu3 %v7464_v63  ;;  %v7632_v63 = vld [vmem:[%s14105_s7 + $0xd98] sm:$0xff] }
 0x940   : > { %8146 = vmatpush.msrb.mxu2 %v7592_v50  ;;  %8186 = vmatpush.msrb.mxu1 %v7624_v53  ;;  %v7503_v50 = vld [vmem:[%s14105_s7 + $0x990] sm:$0xff] }
 0x941   : > { %7987 = vmatpush.msra.mxu3 %v7463_v32  ;;  %v7631_v53 = vld [vmem:[%s14105_s7 + $0xd90] sm:$0xff]  ;;  %v7502_v32 = vld [vmem:[%s14105_s7 + $0x988] sm:$0xff] }
 0x942   : > { %8147 = vmatpush.msrb.mxu2 %v7591_v34  ;;  %8187 = vmatpush.msrb.mxu1 %v7623_v42  ;;  %v7630_v34 = vld [vmem:[%s14105_s7 + $0xd88] sm:$0xff]  ;;  %v7501_v42 = vld [vmem:[%s14105_s7 + $0x980] sm:$0xff] }
 0x943   : > { %7988 = vmatpush.msra.mxu3 %v7462_v56  ;;  %v7629_v56 = vld [vmem:[%s14105_s7 + $0xd80] sm:$0xff] }
 0x944   : > { %8148 = vmatpush.msrb.mxu2 %v7590_v61  ;;  %8188 = vmatpush.msrb.mxu1 %v7622_v11  ;;  %v7564_v61 = vld [vmem:[%s14105_s7 + $0xb78] sm:$0xff] }
 0x945   : > { %7989 = vmatpush.msra.mxu3 %v7461_v31  ;;  %v7187_v11 = vld [vmem:[#allocation7 + $0x13] sm:$0x1]  ;;  %v7195_v31 = vld [vmem:[#allocation7 + $0x1b] sm:$0x1] }
 0x946   : > { %8149 = vmatpush.msrb.mxu2 %v7589_v19  ;;  %8189 = vmatpush.msrb.mxu1 %v7621_v5  ;;  %v7563_v19 = vld [vmem:[%s14105_s7 + $0xb70] sm:$0xff]  ;;  %v7562_v5 = vld [vmem:[%s14105_s7 + $0xb68] sm:$0xff] }
 0x947   : > { %7990 = vmatpush.msra.mxu3 %v7460_v27  ;;  %v7561_v27 = vld [vmem:[%s14105_s7 + $0xb60] sm:$0xff] }
 0x948   : > { %8150 = vmatpush.msrb.mxu2 %v7588_v9  ;;  %8190 = vmatpush.msrb.mxu1 %v7620_v33  ;;  %v7560_v9 = vld [vmem:[%s14105_s7 + $0xb58] sm:$0xff]  ;;  %v7559_v33 = vld [vmem:[%s14105_s7 + $0xb50] sm:$0xff] }
 0x949   : > { %7991 = vmatpush.msra.mxu3 %v7459_v37  ;;  %v7558_v37 = vld [vmem:[%s14105_s7 + $0xb48] sm:$0xff] }
 0x94a   : > { %8151 = vmatpush.msrb.mxu2 %v7587_v40  ;;  %8191 = vmatpush.msrb.mxu1 %v7619_v4  ;;  %v7557_v40 = vld [vmem:[%s14105_s7 + $0xb40] sm:$0xff]  ;;  %v7556_v4 = vld [vmem:[%s14105_s7 + $0xb38] sm:$0xff] }
 0x94b   : > { %7992 = vmatpush.msra.mxu3 %v7458_v62  ;;  %v7555_v62 = vld [vmem:[%s14105_s7 + $0xb30] sm:$0xff] }
 0x94c   : > { %8152 = vmatpush.msrb.mxu2 %v7586_v29  ;;  %8192 = vmatpush.msrb.mxu1 %v7618_v20  ;;  %v7554_v29 = vld [vmem:[%s14105_s7 + $0xb28] sm:$0xff]  ;;  %v7553_v20 = vld [vmem:[%s14105_s7 + $0xb20] sm:$0xff] }
 0x94d   : > { %7993 = vmatpush.msra.mxu3 %v7457_v16  ;;  %v7552_v16 = vld [vmem:[%s14105_s7 + $0xb18] sm:$0xff] }
 0x94e   : > { %8153 = vmatpush.msrb.mxu2 %v7585_v41  ;;  %8193 = vmatpush.msrb.mxu1 %v7617_v51  ;;  %v7551_v41 = vld [vmem:[%s14105_s7 + $0xb10] sm:$0xff]  ;;  %v7550_v51 = vld [vmem:[%s14105_s7 + $0xb08] sm:$0xff] }
 0x94f   : > { %7994 = vmatpush.msra.mxu3 %v7456_v55  ;;  %v7549_v55 = vld [vmem:[%s14105_s7 + $0xb00] sm:$0xff] }
 0x950   : > { %8154 = vmatpush.msrb.mxu2 %v7584_v57  ;;  %8194 = vmatpush.msrb.mxu1 %v7616_v15  ;;  %v7612_v57 = vld [vmem:[%s14105_s7 + $0xcf8] sm:$0xff] }
 0x951   : > { %7995 = vmatpush.msra.mxu3 %v7455_v58  ;;  %v7190_v15 = vld [vmem:[#allocation7 + $0x16] sm:$0x1]  ;;  %v7611_v58 = vld [vmem:[%s14105_s7 + $0xcf0] sm:$0xff] }
 0x952   : > { %8155 = vmatpush.msrb.mxu2 %v7583_v30  ;;  %8195 = vmatpush.msrb.mxu1 %v7615_v26  ;;  %v7610_v30 = vld [vmem:[%s14105_s7 + $0xce8] sm:$0xff]  ;;  %v7609_v26 = vld [vmem:[%s14105_s7 + $0xce0] sm:$0xff] }
 0x953   : > { %7996 = vmatpush.msra.mxu3 %v7454_v22  ;;  %v7608_v22 = vld [vmem:[%s14105_s7 + $0xcd8] sm:$0xff] }
 0x954   : > { %8156 = vmatpush.msrb.mxu2 %v7582_v46  ;;  %8196 = vmatpush.msrb.mxu1 %v7614_v13  ;;  %v7607_v46 = vld [vmem:[%s14105_s7 + $0xcd0] sm:$0xff]  ;;  %v7606_v13 = vld [vmem:[%s14105_s7 + $0xcc8] sm:$0xff] }
 0x955   : > { %7997 = vmatpush.msra.mxu3 %v7453_v0  ;;  %v7605_v0 = vld [vmem:[%s14105_s7 + $0xcc0] sm:$0xff] }
 0x956   : > { %8157 = vmatpush.msrb.mxu2 %v7581_v60  ;;  %8197 = vmatpush.msrb.mxu1 %v7613_v12  ;;  %v7604_v60 = vld [vmem:[%s14105_s7 + $0xcb8] sm:$0xff]  ;;  %v7603_v12 = vld [vmem:[%s14105_s7 + $0xcb0] sm:$0xff] }
 0x957   : > { %7998 = vmatmul.f32.vlgmr.msra.gmra.mxu3 %v7184_v7  ;;  %8158 = vmatmul.f32.vlgmr.msrb.gmra.mxu2 %v7192_v14  ;;  %v7601_v7 = vld [vmem:[%s14105_s7 + $0xca0] sm:$0xff]  ;;  %v7600_v14 = vld [vmem:[%s14105_s7 + $0xc98] sm:$0xff] }
 0x958   : > { %8042 = vmatpush.msrb.mxu3 %v7516_v24  ;;  %8198 = vmatmul.f32.vlgmr.msrb.gmra.mxu1 %v7194_v6  ;;  %v7602_v24 = vld [vmem:[%s14105_s7 + $0xca8] sm:$0xff] }
 0x959   : > { %8202 = vmatpush.msra.mxu2 %v7644_v44  ;;  %v7599_v44 = vld [vmem:[%s14105_s7 + $0xc90] sm:$0xff]  ;;  %v7598_v6 = vld [vmem:[%s14105_s7 + $0xc88] sm:$0xff] }
 0x95a   : > { %8043 = vmatpush.msrb.mxu3 %v7515_v3  ;;  %v7597_v3 = vld [vmem:[%s14105_s7 + $0xc80] sm:$0xff] }
 0x95b   : > { %8203 = vmatpush.msra.mxu2 %v7643_v25  ;;  %v7660_v25 = vld [vmem:[%s14105_s7 + $0xe78] sm:$0xff] }
 0x95c   : > { %8044 = vmatpush.msrb.mxu3 %v7514_v43  ;;  %v7193_v43 = vld [vmem:[#allocation7 + $0x19] sm:$0x1] }
 0x95d   : > { %8204 = vmatpush.msra.mxu2 %v7642_v36  ;;  %v7659_v36 = vld [vmem:[%s14105_s7 + $0xe70] sm:$0xff] }
 0x95e   : > { %8045 = vmatpush.msrb.mxu3 %v7513_v49  ;;  %v7658_v49 = vld [vmem:[%s14105_s7 + $0xe68] sm:$0xff] }
 0x95f   : > { %8205 = vmatpush.msra.mxu2 %v7641_v1  ;;  %v7657_v1 = vld [vmem:[%s14105_s7 + $0xe60] sm:$0xff] }
 0x960   : > { %8046 = vmatpush.msrb.mxu3 %v7512_v54  ;;  %v7656_v54 = vld [vmem:[%s14105_s7 + $0xe58] sm:$0xff] }
 0x961   : > { %8206 = vmatpush.msra.mxu2 %v7640_v28  ;;  %v7655_v28 = vld [vmem:[%s14105_s7 + $0xe50] sm:$0xff] }
 0x962   : > { %8047 = vmatpush.msrb.mxu3 %v7511_v2  ;;  %v7654_v2 = vld [vmem:[%s14105_s7 + $0xe48] sm:$0xff] }
 0x963   : > { %8207 = vmatpush.msra.mxu2 %v7639_v35  ;;  %v7653_v35 = vld [vmem:[%s14105_s7 + $0xe40] sm:$0xff] }
 0x964   : > { %8048 = vmatpush.msrb.mxu3 %v7510_v59  ;;  %v7652_v59 = vld [vmem:[%s14105_s7 + $0xe38] sm:$0xff] }
 0x965   : > { %8208 = vmatpush.msra.mxu2 %v7638_v18  ;;  %v7651_v18 = vld [vmem:[%s14105_s7 + $0xe30] sm:$0xff] }
 0x966   : > { %8049 = vmatpush.msrb.mxu3 %v7509_v39  ;;  %v7650_v39 = vld [vmem:[%s14105_s7 + $0xe28] sm:$0xff] }
 0x967   : > { %8209 = vmatpush.msra.mxu2 %v7637_v8  ;;  %v7649_v8 = vld [vmem:[%s14105_s7 + $0xe20] sm:$0xff] }
 0x968   : > { %8050 = vmatpush.msrb.mxu3 %v7508_v23  ;;  %v7648_v23 = vld [vmem:[%s14105_s7 + $0xe18] sm:$0xff] }
 0x969   : > { %8210 = vmatpush.msra.mxu2 %v7636_v48  ;;  %v7647_v48 = vld [vmem:[%s14105_s7 + $0xe10] sm:$0xff] }
 0x96a   : > { %8051 = vmatpush.msrb.mxu3 %v7507_v47  ;;  %v7646_v47 = vld [vmem:[%s14105_s7 + $0xe08] sm:$0xff] }
 0x96b   : > { %8211 = vmatpush.msra.mxu2 %v7635_v38  ;;  %v7645_v38 = vld [vmem:[%s14105_s7 + $0xe00] sm:$0xff] }
 0x96c   : > { %8052 = vmatpush.msrb.mxu3 %v7506_v17  ;;  %v7196_v17 = vld [vmem:[#allocation7 + $0x1c] sm:$0x1] }
 0x96d   : > { %8212 = vmatpush.msra.mxu2 %v7634_v21  ;;  %v7679_v21 = vpop.f32.mrf.mxu3 }
 0x96e   : > { %8053 = vmatpush.msrb.mxu3 %v7505_v52 }
 0x96f   : > { %8213 = vmatpush.msra.mxu2 %v7633_v45  ;;  %v7661_v45 = vld [vmem:[%s14106_s8] sm:$0x1] }
 0x970   : > { %8054 = vmatpush.msrb.mxu3 %v7504_v10 }
 0x971   : > { %8214 = vmatpush.msra.mxu2 %v7632_v63  ;;  %v7680_v63 = vadd.f32 %v7679_v21, %v7661_v45 }
 0x972   : > { %8055 = vmatpush.msrb.mxu3 %v7503_v50 }
 0x973   : > { %8215 = vmatpush.msra.mxu2 %v7631_v53 }
 0x974   : > { %8056 = vmatpush.msrb.mxu3 %v7502_v32  ;;  %v7739_v32 = vpop.f32.mrf.mxu2 }
 0x975   : > { %8216 = vmatpush.msra.mxu2 %v7630_v34  ;;  %v7699_v52 = vpop.f32.mrf.mxu3 }
 0x976   : > { %8057 = vmatpush.msrb.mxu3 %v7501_v42  ;;  %v7700_v50 = vadd.f32 %v7699_v52, %v7680_v63 }
 0x977   : > { %8217 = vmatpush.msra.mxu2 %v7629_v56  ;;  %8058 = vmatmul.f32.vlgmr.msrb.gmra.mxu3 %v7187_v11 }
 0x978   : > { %8102 = vmatpush.msra.mxu3 %v7564_v61  ;;  %8218 = vmatmul.f32.vlgmr.msra.gmra.mxu2 %v7195_v31  ;;  %v7779_v61 = vpop.f32.mrf.mxu1 }
 0x97a   : > { %8103 = vmatpush.msra.mxu3 %v7563_v19 }
 0x97c   : > { %8104 = vmatpush.msra.mxu3 %v7562_v5  ;;  %v7799_v31 = vpop.f32.mrf.mxu2 }
 0x97d   : > { %v7719_v10 = vpop.f32.mrf.mxu3 }
 0x97e   : > { %8105 = vmatpush.msra.mxu3 %v7561_v27  ;;  %v7720_v53 = vadd.f32 %v7719_v10, %v7700_v50 }
 0x980   : > { %8106 = vmatpush.msra.mxu3 %v7560_v9  ;;  %v7740_v42 = vadd.f32 %v7739_v32, %v7720_v53  ;;  %v7839_v9 = vpop.f32.mrf.mxu1 }
 0x982   : > { %8107 = vmatpush.msra.mxu3 %v7559_v33 }
 0x984   : > { %8108 = vmatpush.msra.mxu3 %v7558_v37  ;;  %v7859_v37 = vpop.f32.mrf.mxu2 }
 0x985   : > { %v7759_v34 = vpop.f32.mrf.mxu3 }
 0x986   : > { %8109 = vmatpush.msra.mxu3 %v7557_v40  ;;  %v7760_v56 = vadd.f32 %v7759_v34, %v7740_v42 }
 0x988   : > { %8110 = vmatpush.msra.mxu3 %v7556_v4  ;;  %v7780_v11 = vadd.f32 %v7779_v61, %v7760_v56 }
 0x98a   : > { %8111 = vmatpush.msra.mxu3 %v7555_v62  ;;  %v7800_v5 = vadd.f32 %v7799_v31, %v7780_v11 }
 0x98c   : > { %8112 = vmatpush.msra.mxu3 %v7554_v29  ;;  %v7899_v29 = vpop.f32.mrf.mxu1 }
 0x98d   : > { %v7819_v19 = vpop.f32.mrf.mxu3 }
 0x98e   : > { %8113 = vmatpush.msra.mxu3 %v7553_v20  ;;  %v7820_v27 = vadd.f32 %v7819_v19, %v7800_v5 }
 0x990   : > { %8114 = vmatpush.msra.mxu3 %v7552_v16  ;;  %v7840_v33 = vadd.f32 %v7839_v9, %v7820_v27  ;;  %v7919_v16 = vpop.f32.mrf.mxu2 }
 0x992   : > { %8115 = vmatpush.msra.mxu3 %v7551_v41  ;;  %v7860_v4 = vadd.f32 %v7859_v37, %v7840_v33 }
 0x994   : > { %8116 = vmatpush.msra.mxu3 %v7550_v51 }
 0x996   : > { %8117 = vmatpush.msra.mxu3 %v7549_v55 }
 0x997   : > { %8118 = vmatmul.f32.vlgmr.msra.gmra.mxu3 %v7190_v15 }
 0x998   : > { %8162 = vmatpush.msrb.mxu3 %v7612_v57  ;;  %v7879_v40 = vpop.f32.mrf.mxu3  ;;  %v7959_v57 = vpop.f32.mrf.mxu1 }
 0x999   : > { %v7880_v62 = vadd.f32 %v7879_v40, %v7860_v4 }
 0x99a   : > { %8163 = vmatpush.msrb.mxu3 %v7611_v58  ;;  %v7979_v58 = vpop.f32.mrf.mxu2 }
 0x99b   : > { %v7900_v20 = vadd.f32 %v7899_v29, %v7880_v62 }
 0x99c   : > { %8164 = vmatpush.msrb.mxu3 %v7610_v30 }
 0x99d   : > { %v7920_v51 = vadd.f32 %v7919_v16, %v7900_v20 }
 0x99e   : > { %8165 = vmatpush.msrb.mxu3 %v7609_v26 }
 0x9a0   : > { %8166 = vmatpush.msrb.mxu3 %v7608_v22 }
 0x9a2   : > { %8167 = vmatpush.msrb.mxu3 %v7607_v46  ;;  %v8019_v46 = vpop.f32.mrf.mxu1 }
 0x9a4   : > { %8168 = vmatpush.msrb.mxu3 %v7606_v13 }
 0x9a6   : > { %8169 = vmatpush.msrb.mxu3 %v7605_v0  ;;  %v8039_v0 = vpop.f32.mrf.mxu2 }
 0x9a8   : > { %8170 = vmatpush.msrb.mxu3 %v7604_v60 }
 0x9aa   : > { %8171 = vmatpush.msrb.mxu3 %v7603_v12 }
 0x9ac   : > { %8172 = vmatpush.msrb.mxu3 %v7602_v24 }
 0x9ae   : > { %8173 = vmatpush.msrb.mxu3 %v7601_v7  ;;  %v8079_v7 = vpop.f32.mrf.mxu1 }
 0x9b0   : > { %8174 = vmatpush.msrb.mxu3 %v7600_v14 }
 0x9b2   : > { %8175 = vmatpush.msrb.mxu3 %v7599_v44 }
 0x9b4   : > { %8176 = vmatpush.msrb.mxu3 %v7598_v6 }
 0x9b6   : > { %8177 = vmatpush.msrb.mxu3 %v7597_v3 }
 0x9b7   : > { %8178 = vmatmul.f32.vlgmr.msrb.gmra.mxu3 %v7193_v43  ;;  %v8139_v43 = vpop.f32.mrf.mxu1 }
 0x9b8   : > { %8222 = vmatpush.msra.mxu3 %v7660_v25 }
 0x9b9   : > { %v7939_v41 = vpop.f32.mrf.mxu3  ;;  %v8099_v44 = vpop.f32.mrf.mxu2 }
 0x9ba   : > { %8223 = vmatpush.msra.mxu3 %v7659_v36  ;;  %v7940_v55 = vadd.f32 %v7939_v41, %v7920_v51 }
 0x9bc   : > { %8224 = vmatpush.msra.mxu3 %v7658_v49  ;;  %v7960_v15 = vadd.f32 %v7959_v57, %v7940_v55 }
 0x9be   : > { %8225 = vmatpush.msra.mxu3 %v7657_v1  ;;  %v7980_v26 = vadd.f32 %v7979_v58, %v7960_v15 }
 0x9c0   : > { %8226 = vmatpush.msra.mxu3 %v7656_v54 }
 0x9c2   : > { %8227 = vmatpush.msra.mxu3 %v7655_v28 }
 0x9c4   : > { %8228 = vmatpush.msra.mxu3 %v7654_v2 }
 0x9c6   : > { %8229 = vmatpush.msra.mxu3 %v7653_v35 }
 0x9c8   : > { %8230 = vmatpush.msra.mxu3 %v7652_v59 }
 0x9ca   : > { %8231 = vmatpush.msra.mxu3 %v7651_v18 }
 0x9cc   : > { %8232 = vmatpush.msra.mxu3 %v7650_v39 }
 0x9ce   : > { %8233 = vmatpush.msra.mxu3 %v7649_v8 }
 0x9d0   : > { %8234 = vmatpush.msra.mxu3 %v7648_v23 }
 0x9d2   : > { %8235 = vmatpush.msra.mxu3 %v7647_v48 }
 0x9d4   : > { %8236 = vmatpush.msra.mxu3 %v7646_v47 }
 0x9d5   : > { %v8199_v2 = vpop.f32.mrf.mxu1 }
 0x9d6   : > { %8237 = vmatpush.msra.mxu3 %v7645_v38 }
 0x9d7   : > { %8238 = vmatmul.f32.vlgmr.msra.gmra.mxu3 %v7196_v17 }
 0x9da   : > { %v7999_v30 = vpop.f32.mrf.mxu3  ;;  %v8159_v49 = vpop.f32.mrf.mxu2 }
 0x9db   : > { %v8000_v22 = vadd.f32 %v7999_v30, %v7980_v26 }
 0x9dd   : > { %v8020_v13 = vadd.f32 %v8019_v46, %v8000_v22 }
 0x9df   : > { %v8040_v12 = vadd.f32 %v8039_v0, %v8020_v13 }
 0x9fa   : > { %v8059_v60 = vpop.f32.mrf.mxu3 }
 0x9fb   : > { %v8060_v24 = vadd.f32 %v8059_v60, %v8040_v12  ;;  %v8219_v59 = vpop.f32.mrf.mxu2 }
 0x9fd   : > { %v8080_v14 = vadd.f32 %v8079_v7, %v8060_v24 }
 0x9ff   : > { %v8100_v3 = vadd.f32 %v8099_v44, %v8080_v14 }
 0xa1a   : > { %v8119_v6 = vpop.f32.mrf.mxu3 }
 0xa1b   : > { %v8120_v25 = vadd.f32 %v8119_v6, %v8100_v3 }
 0xa1d   : > { %v8140_v36 = vadd.f32 %v8139_v43, %v8120_v25 }
 0xa1f   : > { %v8160_v54 = vadd.f32 %v8159_v49, %v8140_v36 }
 0xa3a   : > { %v8179_v1 = vpop.f32.mrf.mxu3 }
 0xa3b   : > { %v8180_v28 = vadd.f32 %v8179_v1, %v8160_v54 }
 0xa3d   : > { %v8200_v35 = vadd.f32 %v8199_v2, %v8180_v28 }
 0xa3f   : > { %v8220_v18 = vadd.f32 %v8219_v59, %v8200_v35 }
 0xa5a   : > { %v8239_v39 = vpop.f32.mrf.mxu3 }
 0xa5b   : > { %v8240_v8 = vadd.f32 %v8239_v39, %v8220_v18 }
 0xa5d   : > { %v8242_v23 = vmax.f32 %v8240_v8, 0.0 }
 0xa5f   : > { %8243 = vst [vmem:[%s324_s16] sm:$0x1] %v8242_v23 }
 0xa60   : > { %9373 = shalt.err (!%p9370_p3)
}
 0xa61   : > { %9097 = dma.vmem_to_hbm [thread:$0]  (%p9504_p5), %s8256_s25, 16, %s8258_s17, %s8245_s29  }
 0xa62 PF: > { %p9103_p4 = scmp.ge.s32.totalorder %s9408_s12, 2  ;;  %s8269_s24 = sand.u32 1, %s9396_s30  }
 0xa63   : > { %s8270_s28 = scalar_lea.sflag [#allocation9], %s8269_s24 }
 0xa64   : > { %p9100_p7 = pnand %p9103_p4, %p9508_p6 }
 0xa66   : > { %p9101_p8 = pneg %p9100_p7 }
 0xa68   : > { %9391 = dma.done.wait (%p9101_p8), %s8270_s28, 16  }
 0xa69   : > { %9393 = vsyncadd (%p9101_p8), %s8270_s28, 4294967280  ;;  %p19_p9 = scmp.ge.s32.totalorder %s9491_s15, 4   ;;  %s14136_s30 = smov %s9400_s10 }
 0xa6a   : > { %s14137_s10 = smov %s9404_s11  ;;  %s14138_s11 = smov %s9502_s18 }
 0xa6b   : > { %s14139_s12 = smov %s9491_s15  ;;  %21 = sbr.rel (!%p19_p9) target bundleno = 3 (0x3), region = 1122 }
 0xa70   :  { %8275 = vsyncpa [#allocation9], 1 }
 0xa71   :  { %8277 = vsyncpa [#allocation9 + $0x1], 1 }

</bundles_post_ra>
